<compile_context>
chip_gen: v7x
topology: tpu7x:2x2x1
jax: 0.10.0
libtpu: 0.0.40
codegen_flags: <defaults>
</compile_context>

<pallas_src>
import functools

import jax
import jax.numpy as jnp
from jax.experimental import pallas as pl
from jax.experimental.pallas import tpu as pltpu


def _round_up(x, m):
    return ((x + m - 1) // m) * m


# ----------------------------------------------------------------------------
# Pallas kernel: fused conv-as-matmul.
#   O[i-tile] = act( A[i-tile, :] @ W + b )
# A: (tm, K = k*k*Cin) bf16 tile;  W: (K, Cout_pad) bf16, resident in VMEM
# (constant index map -> fetched once);  accumulate f32 on the MXU; bias +
# activation in f32; lane-dense bf16 store (Cout padded to 128).
# Grid = (M_tiles,) only — the tap reduction lives inside the matmul K axis.
# ----------------------------------------------------------------------------
def _conv_matmul_kernel(a_ref, w_ref, b_ref, o_ref, *, act):
    r = jnp.dot(a_ref[...], w_ref[...], preferred_element_type=jnp.float32)
    r = r + b_ref[...]                      # bias broadcast in f32
    if act == "relu":
        r = jnp.maximum(r, 0.0)
    o_ref[...] = r.astype(o_ref.dtype)


def _pick_tm(m, tm_max):
    # >=2 M-tiles whenever possible so the 'parallel' axis can be split across
    # both v7x TensorCores; 16-row multiples keep bf16 stores sublane-aligned.
    if m < 16:
        return _round_up(m, 8)              # single full-M block
    return min(tm_max, _round_up((m + 1) // 2, 16))


def conv_matmul(a, w2d, b, *, act="none", out_dtype=jnp.bfloat16, tm_max=1024):
    """act(a @ w2d + b).

    a: (M, K) bf16 im2col slab; w2d: (K, Cout) f32; b: (Cout,) f32.
    Returns (M, Cout) in `out_dtype`.
    """
    m, kk = a.shape
    cout = w2d.shape[-1]

    # Lane-dense output: zero-pad Cout up to a multiple of 128; slice after.
    npad = _round_up(cout, 128)
    w_p = jnp.pad(w2d, ((0, 0), (0, npad - cout))).astype(jnp.bfloat16)
    b_p = jnp.pad(b, (0, npad - cout)).astype(jnp.float32).reshape(1, npad)

    tm = _pick_tm(m, tm_max)
    m_pad = _round_up(m, tm)
    a_p = a if m_pad == m else jnp.pad(a, ((0, m_pad - m), (0, 0)))

    # VMEM: double-buffered A + out tiles, resident W, bias. Capped at 40 MiB
    # so v7x's 64 MiB budget keeps headroom for compiler scratch; v5e/v6e have
    # 128 MiB so the same cap is always safe.
    est = (2 * (tm * kk * 2) + 2 * (kk * npad * 2)
           + 2 * (tm * npad * 2) + 4 * npad)
    vmem_limit = int(min(max(4 * est, 16 * 1024 * 1024), 40 * 1024 * 1024))

    out = pl.pallas_call(
        functools.partial(_conv_matmul_kernel, act=act),
        out_shape=jax.ShapeDtypeStruct((m_pad, npad), out_dtype),
        grid=(m_pad // tm,),
        in_specs=[
            pl.BlockSpec((tm, kk), lambda i: (i, 0)),     # A tile
            pl.BlockSpec((kk, npad), lambda i: (0, 0)),   # W (VMEM-resident)
            pl.BlockSpec((1, npad), lambda i: (0, 0)),    # bias row
        ],
        out_specs=pl.BlockSpec((tm, npad), lambda i: (i, 0)),
        compiler_params=pltpu.CompilerParams(
            dimension_semantics=("parallel",),
            vmem_limit_bytes=vmem_limit),
    )(a_p, w_p, b_p)
    return out[:m, :cout]


# ----------------------------------------------------------------------------
# Tiled elementwise sigmoid kernel (wide lane-dense slabs, bf16 in / f32 out).
# ----------------------------------------------------------------------------
def _sigmoid_kernel(x_ref, o_ref):
    o_ref[...] = jax.nn.sigmoid(x_ref[...].astype(jnp.float32)).astype(o_ref.dtype)


def sigmoid_pallas(x, *, lane=1024, max_tile_rows=512, out_dtype=jnp.float32):
    orig_shape = x.shape
    flat = x.reshape(-1)
    rows = (flat.size + lane - 1) // lane
    tile_rows = max_tile_rows if rows >= max_tile_rows else _round_up(rows, 8)
    rows_pad = _round_up(rows, tile_rows)
    flat_p = jnp.pad(flat, (0, rows_pad * lane - flat.size))
    arr = flat_p.reshape(rows_pad, lane)
    out = pl.pallas_call(
        _sigmoid_kernel,
        out_shape=jax.ShapeDtypeStruct(arr.shape, out_dtype),
        grid=(rows_pad // tile_rows,),
        in_specs=[pl.BlockSpec((tile_rows, lane), lambda i: (i, 0))],
        out_specs=pl.BlockSpec((tile_rows, lane), lambda i: (i, 0)),
        compiler_params=pltpu.CompilerParams(
            dimension_semantics=("parallel",)),
    )(arr)
    return out.reshape(-1)[: flat.size].reshape(orig_shape)


# ----------------------------------------------------------------------------
# Conv = im2col with taps folded into the channel/K axis (XLA glue, bf16)
#        + one Pallas matmul.
# ----------------------------------------------------------------------------
def _im2col(x, k, stride, pad):
    """x: NHWC bf16 -> (N*Ho*Wo, k*k*C); 1x1/s1 is a pure reshape."""
    n, h, w, c = x.shape
    if k == 1 and stride == 1 and pad == 0:
        return x.reshape(n * h * w, c), (n, h, w)
    xp = jnp.pad(x, ((0, 0), (pad, pad), (pad, pad), (0, 0)))
    ho = (h + 2 * pad - k) // stride + 1
    wo = (w + 2 * pad - k) // stride + 1
    taps = []
    for i in range(k):
        for j in range(k):
            taps.append(
                xp[:, i:i + ho * stride:stride, j:j + wo * stride:stride, :]
                .reshape(n * ho * wo, c))
    # TODO(synk): the k*k read amplification of this materialized im2col could
    # be removed by DMA-ing a halo'd NHWC window per M-tile (memory_space=
    # pl.ANY + make_async_copy) and forming the tap slices in VMEM in-kernel.
    return jnp.concatenate(taps, axis=1), (n, ho, wo)


def conv2d(x, w, b, *, k, stride=1, pad=0, act="none"):
    """x: NHWC (any float dtype); w: (k*k, Cin, Cout) f32; b: (Cout,) f32."""
    cin, cout = w.shape[1], w.shape[2]
    a, (n, ho, wo) = _im2col(x.astype(jnp.bfloat16), k, stride, pad)
    w2d = w.reshape(k * k * cin, cout)
    out = conv_matmul(a, w2d, b, act=act)
    return out.reshape(n, ho, wo, cout)


def upsample_nearest(x, factor):
    # Broadcast-style repeat; XLA fuses this with the following adds, so the
    # bf16 sum-merge does not materialize three inflated tensors separately.
    # TODO(synk): could be fully fused into the consuming conv's A-tile gather.
    return jnp.repeat(jnp.repeat(x, factor, axis=1), factor, axis=2)


# ----------------------------------------------------------------------------
# Parameter construction (deterministic, synthetic)
# ----------------------------------------------------------------------------
ENC_CH = (16, 32, 64, 128, 256)   # features at strides 2, 4, 8, 16, 32
PYR_CH = 64                       # FPN pyramid channels
SEG_CH = 32                       # FPN segmentation channels


def _conv_param(key, k, cin, cout):
    kw_, kb = jax.random.split(key)
    fan_in = k * k * cin
    w = jax.random.normal(kw_, (k * k, cin, cout), jnp.float32) * (fan_in ** -0.5)
    b = jax.random.normal(kb, (cout,), jnp.float32) * 0.01
    return {"w": w, "b": b}


def init_params(key, in_ch, num_classes):
    keys = jax.random.split(key, 16)
    p = {}
    chans = (in_ch,) + ENC_CH
    for s in range(5):  # encoder stages, each 3x3 stride-2 conv
        p[f"enc{s+1}"] = _conv_param(keys[s], 3, chans[s], chans[s + 1])
    for i, c in zip((2, 3, 4, 5), ENC_CH[1:]):  # lateral 1x1 convs
        p[f"lat{i}"] = _conv_param(keys[3 + i], 1, c, PYR_CH)
    for i in (2, 3, 4, 5):  # segmentation blocks (3x3, pyramid -> seg)
        p[f"seg{i}"] = _conv_param(keys[7 + i], 3, PYR_CH, SEG_CH)
    p["head"] = _conv_param(keys[13], 3, SEG_CH, num_classes)
    return p


# ----------------------------------------------------------------------------
# SegModel.forward
# ----------------------------------------------------------------------------
def seg_model_forward(params, x_nchw, sigmoid=True):
    x = jnp.transpose(x_nchw, (0, 2, 3, 1)).astype(jnp.bfloat16)  # -> NHWC

    # Encoder: 5 strided conv stages (strides 2,4,8,16,32).
    # TODO(synk): a 2x2 space-to-depth stem would raise enc1's folded K from
    # 27 to 108 and quarter its M; skipped to keep the stage structure intact.
    c1 = conv2d(x,  **params["enc1"], k=3, stride=2, pad=1, act="relu")
    c2 = conv2d(c1, **params["enc2"], k=3, stride=2, pad=1, act="relu")
    c3 = conv2d(c2, **params["enc3"], k=3, stride=2, pad=1, act="relu")
    c4 = conv2d(c3, **params["enc4"], k=3, stride=2, pad=1, act="relu")
    c5 = conv2d(c4, **params["enc5"], k=3, stride=2, pad=1, act="relu")

    # FPN top-down pathway: lateral 1x1 conv + nearest-upsample + add (bf16).
    # TODO(synk): the 4 laterals (and 4 seg blocks) could be batched into one
    # pallas_call with a leading parallel 'level' grid axis selecting W.
    p5 = conv2d(c5, **params["lat5"], k=1)
    p4 = conv2d(c4, **params["lat4"], k=1) + upsample_nearest(p5, 2)
    p3 = conv2d(c3, **params["lat3"], k=1) + upsample_nearest(p4, 2)
    p2 = conv2d(c2, **params["lat2"], k=1) + upsample_nearest(p3, 2)

    # Segmentation blocks -> stride-4 resolution, bf16 sum merge.
    # TODO(synk): smp uses repeated Conv3x3+GroupNorm+ReLU blocks per level;
    #             simplified here to a single Conv3x3+ReLU per level.
    s5 = upsample_nearest(conv2d(p5, **params["seg5"], k=3, pad=1, act="relu"), 8)
    s4 = upsample_nearest(conv2d(p4, **params["seg4"], k=3, pad=1, act="relu"), 4)
    s3 = upsample_nearest(conv2d(p3, **params["seg3"], k=3, pad=1, act="relu"), 2)
    s2 = conv2d(p2, **params["seg2"], k=3, pad=1, act="relu")
    merged = s5 + s4 + s3 + s2

    # Segmentation head: 3x3 conv -> x4 bilinear upsample (bf16 logits).
    logits = conv2d(merged, **params["head"], k=3, pad=1)
    n, h, w, c = logits.shape
    # TODO(synk): nn.UpsamplingBilinear2d uses align_corners=True; jax.image.resize
    #             bilinear uses half-pixel centers (tiny numerical difference).
    logits = jax.image.resize(logits, (n, h * 4, w * 4, c), method="bilinear")

    if sigmoid:
        out = sigmoid_pallas(logits)                  # bf16 in, f32 out
    else:
        out = logits.astype(jnp.float32)
    return jnp.transpose(out, (0, 3, 1, 2))           # back to NCHW


# ----------------------------------------------------------------------------
if __name__ == "__main__":
    IN_CH, NUM_CLASSES = 3, 2
    N, H, W = 2, 64, 64  # H, W must be multiples of 32 (FPN stride-32 encoder)

    root = jax.random.PRNGKey(0)
    kx, kp = jax.random.split(root)
    x = jax.random.normal(kx, (N, IN_CH, H, W), jnp.float32)
    params = init_params(kp, IN_CH, NUM_CLASSES)

    fwd = jax.jit(functools.partial(seg_model_forward, sigmoid=True))
    y = fwd(params, x)
    y = jax.block_until_ready(y)

    assert y.shape == (N, NUM_CLASSES, H, W), y.shape
    assert y.dtype == jnp.float32, y.dtype
    assert bool(jnp.all((y >= 0.0) & (y <= 1.0))), "sigmoid range violated"
    print("KERNEL_OK")
</pallas_src>

<mosaic_0001>
module attributes {stable_mosaic.version = 11 : i64} {
  func.func @_conv_matmul_kernel(%arg0: i32, %arg1: memref<1024x27xbf16, #tpu.memory_space<vmem>>, %arg2: memref<27x128xbf16, #tpu.memory_space<vmem>>, %arg3: memref<1x128xf32, #tpu.memory_space<vmem>>, %arg4: memref<1024x128xbf16, #tpu.memory_space<vmem>>) attributes {dimension_semantics = [#tpu.dimension_semantics<parallel>], iteration_bounds = array<i64: 2>, scalar_prefetch = 0 : i64, scratch_operands = 0 : i64, tpu.core_type = #tpu.core_type<tc>, window_params = [{transform_indices = @transform_0, window_bounds = array<i64: 1024, 27>}, {pipeline_mode = #tpu.pipeline_mode<synchronous>, transform_indices = @transform_1, window_bounds = array<i64: 27, 128>}, {pipeline_mode = #tpu.pipeline_mode<synchronous>, transform_indices = @transform_2, window_bounds = array<i64: 1, 128>}, {transform_indices = @transform_3, window_bounds = array<i64: 1024, 128>}]} {
    %c0 = arith.constant 0 : index
    %c0_0 = arith.constant 0 : index
    %0 = vector.load %arg1[%c0, %c0_0] : memref<1024x27xbf16, #tpu.memory_space<vmem>>, vector<1024x27xbf16>
    %c0_1 = arith.constant 0 : index
    %c0_2 = arith.constant 0 : index
    %1 = vector.load %arg2[%c0_1, %c0_2] : memref<27x128xbf16, #tpu.memory_space<vmem>>, vector<27x128xbf16>
    %cst = arith.constant dense<0.000000e+00> : vector<1024x128xf32>
    %2 = tpu.matmul %0, %1, %cst {dimension_numbers = #tpu.dot_dimension_numbers<[1], [0], [0], [1], [0, 0, 1, 1], [], []>} : vector<1024x27xbf16>, vector<27x128xbf16>, vector<1024x128xf32> -> vector<1024x128xf32>
    %c0_3 = arith.constant 0 : index
    %c0_4 = arith.constant 0 : index
    %3 = vector.load %arg3[%c0_3, %c0_4] : memref<1x128xf32, #tpu.memory_space<vmem>>, vector<1x128xf32>
    %4 = vector.broadcast %3 : vector<1x128xf32> to vector<1024x128xf32>
    %5 = arith.addf %2, %4 : vector<1024x128xf32>
    %cst_5 = arith.constant 0.000000e+00 : f32
    %6 = vector.broadcast %cst_5 : f32 to vector<1024x128xf32>
    %7 = arith.maximumf %5, %6 : vector<1024x128xf32>
    %8 = arith.truncf %7 : vector<1024x128xf32> to vector<1024x128xbf16>
    %c0_6 = arith.constant 0 : index
    %c0_7 = arith.constant 0 : index
    %9 = vector.load %arg4[%c0_6, %c0_7] : memref<1024x128xbf16, #tpu.memory_space<vmem>>, vector<1024x128xbf16>
    tpu.vector_store %arg4[%c0_6, %c0_7], %8 {strides = array<i32>} : memref<1024x128xbf16, #tpu.memory_space<vmem>>, vector<1024x128xbf16>,
    return
  }
  func.func @transform_0(%arg0: i32) -> (i32, i32) {
    %c0_i32 = arith.constant 0 : i32
    %c0_i32_0 = arith.constant 0 : i32
    return %arg0, %c0_i32 : i32, i32
  }
  func.func @transform_1(%arg0: i32) -> (i32, i32) {
    %c0_i32 = arith.constant 0 : i32
    %c0_i32_0 = arith.constant 0 : i32
    %c0_i32_1 = arith.constant 0 : i32
    return %c0_i32, %c0_i32_0 : i32, i32
  }
  func.func @transform_2(%arg0: i32) -> (i32, i32) {
    %c0_i32 = arith.constant 0 : i32
    %c0_i32_0 = arith.constant 0 : i32
    %c0_i32_1 = arith.constant 0 : i32
    return %c0_i32, %c0_i32_0 : i32, i32
  }
  func.func @transform_3(%arg0: i32) -> (i32, i32) {
    %c0_i32 = arith.constant 0 : i32
    %c0_i32_0 = arith.constant 0 : i32
    return %arg0, %c0_i32 : i32, i32
  }
}

module attributes {stable_mosaic.version = 11 : i64} {
  func.func @_conv_matmul_kernel(%arg0: i32, %arg1: memref<256x144xbf16, #tpu.memory_space<vmem>>, %arg2: memref<144x128xbf16, #tpu.memory_space<vmem>>, %arg3: memref<1x128xf32, #tpu.memory_space<vmem>>, %arg4: memref<256x128xbf16, #tpu.memory_space<vmem>>) attributes {dimension_semantics = [#tpu.dimension_semantics<parallel>], iteration_bounds = array<i64: 2>, scalar_prefetch = 0 : i64, scratch_operands = 0 : i64, tpu.core_type = #tpu.core_type<tc>, window_params = [{transform_indices = @transform_0, window_bounds = array<i64: 256, 144>}, {pipeline_mode = #tpu.pipeline_mode<synchronous>, transform_indices = @transform_1, window_bounds = array<i64: 144, 128>}, {pipeline_mode = #tpu.pipeline_mode<synchronous>, transform_indices = @transform_2, window_bounds = array<i64: 1, 128>}, {transform_indices = @transform_3, window_bounds = array<i64: 256, 128>}]} {
    %c0 = arith.constant 0 : index
    %c0_0 = arith.constant 0 : index
    %0 = vector.load %arg1[%c0, %c0_0] : memref<256x144xbf16, #tpu.memory_space<vmem>>, vector<256x144xbf16>
    %c0_1 = arith.constant 0 : index
    %c0_2 = arith.constant 0 : index
    %1 = vector.load %arg2[%c0_1, %c0_2] : memref<144x128xbf16, #tpu.memory_space<vmem>>, vector<144x128xbf16>
    %cst = arith.constant dense<0.000000e+00> : vector<256x128xf32>
    %2 = tpu.matmul %0, %1, %cst {dimension_numbers = #tpu.dot_dimension_numbers<[1], [0], [0], [1], [0, 0, 1, 1], [], []>} : vector<256x144xbf16>, vector<144x128xbf16>, vector<256x128xf32> -> vector<256x128xf32>
    %c0_3 = arith.constant 0 : index
    %c0_4 = arith.constant 0 : index
    %3 = vector.load %arg3[%c0_3, %c0_4] : memref<1x128xf32, #tpu.memory_space<vmem>>, vector<1x128xf32>
    %4 = vector.broadcast %3 : vector<1x128xf32> to vector<256x128xf32>
    %5 = arith.addf %2, %4 : vector<256x128xf32>
    %cst_5 = arith.constant 0.000000e+00 : f32
    %6 = vector.broadcast %cst_5 : f32 to vector<256x128xf32>
    %7 = arith.maximumf %5, %6 : vector<256x128xf32>
    %8 = arith.truncf %7 : vector<256x128xf32> to vector<256x128xbf16>
    %c0_6 = arith.constant 0 : index
    %c0_7 = arith.constant 0 : index
    %9 = vector.load %arg4[%c0_6, %c0_7] : memref<256x128xbf16, #tpu.memory_space<vmem>>, vector<256x128xbf16>
    tpu.vector_store %arg4[%c0_6, %c0_7], %8 {strides = array<i32>} : memref<256x128xbf16, #tpu.memory_space<vmem>>, vector<256x128xbf16>,
    return
  }
  func.func @transform_0(%arg0: i32) -> (i32, i32) {
    %c0_i32 = arith.constant 0 : i32
    %c0_i32_0 = arith.constant 0 : i32
    return %arg0, %c0_i32 : i32, i32
  }
  func.func @transform_1(%arg0: i32) -> (i32, i32) {
    %c0_i32 = arith.constant 0 : i32
    %c0_i32_0 = arith.constant 0 : i32
    %c0_i32_1 = arith.constant 0 : i32
    return %c0_i32, %c0_i32_0 : i32, i32
  }
  func.func @transform_2(%arg0: i32) -> (i32, i32) {
    %c0_i32 = arith.constant 0 : i32
    %c0_i32_0 = arith.constant 0 : i32
    %c0_i32_1 = arith.constant 0 : i32
    return %c0_i32, %c0_i32_0 : i32, i32
  }
  func.func @transform_3(%arg0: i32) -> (i32, i32) {
    %c0_i32 = arith.constant 0 : i32
    %c0_i32_0 = arith.constant 0 : i32
    return %arg0, %c0_i32 : i32, i32
  }
}

module attributes {stable_mosaic.version = 11 : i64} {
  func.func @_conv_matmul_kernel(%arg0: i32, %arg1: memref<256x32xbf16, #tpu.memory_space<vmem>>, %arg2: memref<32x128xbf16, #tpu.memory_space<vmem>>, %arg3: memref<1x128xf32, #tpu.memory_space<vmem>>, %arg4: memref<256x128xbf16, #tpu.memory_space<vmem>>) attributes {dimension_semantics = [#tpu.dimension_semantics<parallel>], iteration_bounds = array<i64: 2>, scalar_prefetch = 0 : i64, scratch_operands = 0 : i64, tpu.core_type = #tpu.core_type<tc>, window_params = [{transform_indices = @transform_0, window_bounds = array<i64: 256, 32>}, {pipeline_mode = #tpu.pipeline_mode<synchronous>, transform_indices = @transform_1, window_bounds = array<i64: 32, 128>}, {pipeline_mode = #tpu.pipeline_mode<synchronous>, transform_indices = @transform_2, window_bounds = array<i64: 1, 128>}, {transform_indices = @transform_3, window_bounds = array<i64: 256, 128>}]} {
    %c0 = arith.constant 0 : index
    %c0_0 = arith.constant 0 : index
    %0 = vector.load %arg1[%c0, %c0_0] : memref<256x32xbf16, #tpu.memory_space<vmem>>, vector<256x32xbf16>
    %c0_1 = arith.constant 0 : index
    %c0_2 = arith.constant 0 : index
    %1 = vector.load %arg2[%c0_1, %c0_2] : memref<32x128xbf16, #tpu.memory_space<vmem>>, vector<32x128xbf16>
    %cst = arith.constant dense<0.000000e+00> : vector<256x128xf32>
    %2 = tpu.matmul %0, %1, %cst {dimension_numbers = #tpu.dot_dimension_numbers<[1], [0], [0], [1], [0, 0, 1, 1], [], []>} : vector<256x32xbf16>, vector<32x128xbf16>, vector<256x128xf32> -> vector<256x128xf32>
    %c0_3 = arith.constant 0 : index
    %c0_4 = arith.constant 0 : index
    %3 = vector.load %arg3[%c0_3, %c0_4] : memref<1x128xf32, #tpu.memory_space<vmem>>, vector<1x128xf32>
    %4 = vector.broadcast %3 : vector<1x128xf32> to vector<256x128xf32>
    %5 = arith.addf %2, %4 : vector<256x128xf32>
    %6 = arith.truncf %5 : vector<256x128xf32> to vector<256x128xbf16>
    %c0_5 = arith.constant 0 : index
    %c0_6 = arith.constant 0 : index
    %7 = vector.load %arg4[%c0_5, %c0_6] : memref<256x128xbf16, #tpu.memory_space<vmem>>, vector<256x128xbf16>
    tpu.vector_store %arg4[%c0_5, %c0_6], %6 {strides = array<i32>} : memref<256x128xbf16, #tpu.memory_space<vmem>>, vector<256x128xbf16>,
    return
  }
  func.func @transform_0(%arg0: i32) -> (i32, i32) {
    %c0_i32 = arith.constant 0 : i32
    %c0_i32_0 = arith.constant 0 : i32
    return %arg0, %c0_i32 : i32, i32
  }
  func.func @transform_1(%arg0: i32) -> (i32, i32) {
    %c0_i32 = arith.constant 0 : i32
    %c0_i32_0 = arith.constant 0 : i32
    %c0_i32_1 = arith.constant 0 : i32
    return %c0_i32, %c0_i32_0 : i32, i32
  }
  func.func @transform_2(%arg0: i32) -> (i32, i32) {
    %c0_i32 = arith.constant 0 : i32
    %c0_i32_0 = arith.constant 0 : i32
    %c0_i32_1 = arith.constant 0 : i32
    return %c0_i32, %c0_i32_0 : i32, i32
  }
  func.func @transform_3(%arg0: i32) -> (i32, i32) {
    %c0_i32 = arith.constant 0 : i32
    %c0_i32_0 = arith.constant 0 : i32
    return %arg0, %c0_i32 : i32, i32
  }
}

module attributes {stable_mosaic.version = 11 : i64} {
  func.func @_conv_matmul_kernel(%arg0: i32, %arg1: memref<64x64xbf16, #tpu.memory_space<vmem>>, %arg2: memref<64x128xbf16, #tpu.memory_space<vmem>>, %arg3: memref<1x128xf32, #tpu.memory_space<vmem>>, %arg4: memref<64x128xbf16, #tpu.memory_space<vmem>>) attributes {dimension_semantics = [#tpu.dimension_semantics<parallel>], iteration_bounds = array<i64: 2>, scalar_prefetch = 0 : i64, scratch_operands = 0 : i64, tpu.core_type = #tpu.core_type<tc>, window_params = [{transform_indices = @transform_0, window_bounds = array<i64: 64, 64>}, {pipeline_mode = #tpu.pipeline_mode<synchronous>, transform_indices = @transform_1, window_bounds = array<i64: 64, 128>}, {pipeline_mode = #tpu.pipeline_mode<synchronous>, transform_indices = @transform_2, window_bounds = array<i64: 1, 128>}, {transform_indices = @transform_3, window_bounds = array<i64: 64, 128>}]} {
    %c0 = arith.constant 0 : index
    %c0_0 = arith.constant 0 : index
    %0 = vector.load %arg1[%c0, %c0_0] : memref<64x64xbf16, #tpu.memory_space<vmem>>, vector<64x64xbf16>
    %c0_1 = arith.constant 0 : index
    %c0_2 = arith.constant 0 : index
    %1 = vector.load %arg2[%c0_1, %c0_2] : memref<64x128xbf16, #tpu.memory_space<vmem>>, vector<64x128xbf16>
    %cst = arith.constant dense<0.000000e+00> : vector<64x128xf32>
    %2 = tpu.matmul %0, %1, %cst {dimension_numbers = #tpu.dot_dimension_numbers<[1], [0], [0], [1], [0, 0, 1, 1], [], []>} : vector<64x64xbf16>, vector<64x128xbf16>, vector<64x128xf32> -> vector<64x128xf32>
    %c0_3 = arith.constant 0 : index
    %c0_4 = arith.constant 0 : index
    %3 = vector.load %arg3[%c0_3, %c0_4] : memref<1x128xf32, #tpu.memory_space<vmem>>, vector<1x128xf32>
    %4 = vector.broadcast %3 : vector<1x128xf32> to vector<64x128xf32>
    %5 = arith.addf %2, %4 : vector<64x128xf32>
    %6 = arith.truncf %5 : vector<64x128xf32> to vector<64x128xbf16>
    %c0_5 = arith.constant 0 : index
    %c0_6 = arith.constant 0 : index
    %7 = vector.load %arg4[%c0_5, %c0_6] : memref<64x128xbf16, #tpu.memory_space<vmem>>, vector<64x128xbf16>
    tpu.vector_store %arg4[%c0_5, %c0_6], %6 {strides = array<i32>} : memref<64x128xbf16, #tpu.memory_space<vmem>>, vector<64x128xbf16>,
    return
  }
  func.func @transform_0(%arg0: i32) -> (i32, i32) {
    %c0_i32 = arith.constant 0 : i32
    %c0_i32_0 = arith.constant 0 : i32
    return %arg0, %c0_i32 : i32, i32
  }
  func.func @transform_1(%arg0: i32) -> (i32, i32) {
    %c0_i32 = arith.constant 0 : i32
    %c0_i32_0 = arith.constant 0 : i32
    %c0_i32_1 = arith.constant 0 : i32
    return %c0_i32, %c0_i32_0 : i32, i32
  }
  func.func @transform_2(%arg0: i32) -> (i32, i32) {
    %c0_i32 = arith.constant 0 : i32
    %c0_i32_0 = arith.constant 0 : i32
    %c0_i32_1 = arith.constant 0 : i32
    return %c0_i32, %c0_i32_0 : i32, i32
  }
  func.func @transform_3(%arg0: i32) -> (i32, i32) {
    %c0_i32 = arith.constant 0 : i32
    %c0_i32_0 = arith.constant 0 : i32
    return %arg0, %c0_i32 : i32, i32
  }
}

module attributes {stable_mosaic.version = 11 : i64} {
  func.func @_conv_matmul_kernel(%arg0: i32, %arg1: memref<64x288xbf16, #tpu.memory_space<vmem>>, %arg2: memref<288x128xbf16, #tpu.memory_space<vmem>>, %arg3: memref<1x128xf32, #tpu.memory_space<vmem>>, %arg4: memref<64x128xbf16, #tpu.memory_space<vmem>>) attributes {dimension_semantics = [#tpu.dimension_semantics<parallel>], iteration_bounds = array<i64: 2>, scalar_prefetch = 0 : i64, scratch_operands = 0 : i64, tpu.core_type = #tpu.core_type<tc>, window_params = [{transform_indices = @transform_0, window_bounds = array<i64: 64, 288>}, {pipeline_mode = #tpu.pipeline_mode<synchronous>, transform_indices = @transform_1, window_bounds = array<i64: 288, 128>}, {pipeline_mode = #tpu.pipeline_mode<synchronous>, transform_indices = @transform_2, window_bounds = array<i64: 1, 128>}, {transform_indices = @transform_3, window_bounds = array<i64: 64, 128>}]} {
    %c0 = arith.constant 0 : index
    %c0_0 = arith.constant 0 : index
    %0 = vector.load %arg1[%c0, %c0_0] : memref<64x288xbf16, #tpu.memory_space<vmem>>, vector<64x288xbf16>
    %c0_1 = arith.constant 0 : index
    %c0_2 = arith.constant 0 : index
    %1 = vector.load %arg2[%c0_1, %c0_2] : memref<288x128xbf16, #tpu.memory_space<vmem>>, vector<288x128xbf16>
    %cst = arith.constant dense<0.000000e+00> : vector<64x128xf32>
    %2 = tpu.matmul %0, %1, %cst {dimension_numbers = #tpu.dot_dimension_numbers<[1], [0], [0], [1], [0, 0, 1, 1], [], []>} : vector<64x288xbf16>, vector<288x128xbf16>, vector<64x128xf32> -> vector<64x128xf32>
    %c0_3 = arith.constant 0 : index
    %c0_4 = arith.constant 0 : index
    %3 = vector.load %arg3[%c0_3, %c0_4] : memref<1x128xf32, #tpu.memory_space<vmem>>, vector<1x128xf32>
    %4 = vector.broadcast %3 : vector<1x128xf32> to vector<64x128xf32>
    %5 = arith.addf %2, %4 : vector<64x128xf32>
    %cst_5 = arith.constant 0.000000e+00 : f32
    %6 = vector.broadcast %cst_5 : f32 to vector<64x128xf32>
    %7 = arith.maximumf %5, %6 : vector<64x128xf32>
    %8 = arith.truncf %7 : vector<64x128xf32> to vector<64x128xbf16>
    %c0_6 = arith.constant 0 : index
    %c0_7 = arith.constant 0 : index
    %9 = vector.load %arg4[%c0_6, %c0_7] : memref<64x128xbf16, #tpu.memory_space<vmem>>, vector<64x128xbf16>
    tpu.vector_store %arg4[%c0_6, %c0_7], %8 {strides = array<i32>} : memref<64x128xbf16, #tpu.memory_space<vmem>>, vector<64x128xbf16>,
    return
  }
  func.func @transform_0(%arg0: i32) -> (i32, i32) {
    %c0_i32 = arith.constant 0 : i32
    %c0_i32_0 = arith.constant 0 : i32
    return %arg0, %c0_i32 : i32, i32
  }
  func.func @transform_1(%arg0: i32) -> (i32, i32) {
    %c0_i32 = arith.constant 0 : i32
    %c0_i32_0 = arith.constant 0 : i32
    %c0_i32_1 = arith.constant 0 : i32
    return %c0_i32, %c0_i32_0 : i32, i32
  }
  func.func @transform_2(%arg0: i32) -> (i32, i32) {
    %c0_i32 = arith.constant 0 : i32
    %c0_i32_0 = arith.constant 0 : i32
    %c0_i32_1 = arith.constant 0 : i32
    return %c0_i32, %c0_i32_0 : i32, i32
  }
  func.func @transform_3(%arg0: i32) -> (i32, i32) {
    %c0_i32 = arith.constant 0 : i32
    %c0_i32_0 = arith.constant 0 : i32
    return %arg0, %c0_i32 : i32, i32
  }
}

module attributes {stable_mosaic.version = 11 : i64} {
  func.func @_conv_matmul_kernel(%arg0: i32, %arg1: memref<16x576xbf16, #tpu.memory_space<vmem>>, %arg2: memref<576x128xbf16, #tpu.memory_space<vmem>>, %arg3: memref<1x128xf32, #tpu.memory_space<vmem>>, %arg4: memref<16x128xbf16, #tpu.memory_space<vmem>>) attributes {dimension_semantics = [#tpu.dimension_semantics<parallel>], iteration_bounds = array<i64: 2>, scalar_prefetch = 0 : i64, scratch_operands = 0 : i64, tpu.core_type = #tpu.core_type<tc>, window_params = [{transform_indices = @transform_0, window_bounds = array<i64: 16, 576>}, {pipeline_mode = #tpu.pipeline_mode<synchronous>, transform_indices = @transform_1, window_bounds = array<i64: 576, 128>}, {pipeline_mode = #tpu.pipeline_mode<synchronous>, transform_indices = @transform_2, window_bounds = array<i64: 1, 128>}, {transform_indices = @transform_3, window_bounds = array<i64: 16, 128>}]} {
    %c0 = arith.constant 0 : index
    %c0_0 = arith.constant 0 : index
    %0 = vector.load %arg1[%c0, %c0_0] : memref<16x576xbf16, #tpu.memory_space<vmem>>, vector<16x576xbf16>
    %c0_1 = arith.constant 0 : index
    %c0_2 = arith.constant 0 : index
    %1 = vector.load %arg2[%c0_1, %c0_2] : memref<576x128xbf16, #tpu.memory_space<vmem>>, vector<576x128xbf16>
    %cst = arith.constant dense<0.000000e+00> : vector<16x128xf32>
    %2 = tpu.matmul %0, %1, %cst {dimension_numbers = #tpu.dot_dimension_numbers<[1], [0], [0], [1], [0, 0, 1, 1], [], []>} : vector<16x576xbf16>, vector<576x128xbf16>, vector<16x128xf32> -> vector<16x128xf32>
    %c0_3 = arith.constant 0 : index
    %c0_4 = arith.constant 0 : index
    %3 = vector.load %arg3[%c0_3, %c0_4] : memref<1x128xf32, #tpu.memory_space<vmem>>, vector<1x128xf32>
    %4 = vector.broadcast %3 : vector<1x128xf32> to vector<16x128xf32>
    %5 = arith.addf %2, %4 : vector<16x128xf32>
    %cst_5 = arith.constant 0.000000e+00 : f32
    %6 = vector.broadcast %cst_5 : f32 to vector<16x128xf32>
    %7 = arith.maximumf %5, %6 : vector<16x128xf32>
    %8 = arith.truncf %7 : vector<16x128xf32> to vector<16x128xbf16>
    %c0_6 = arith.constant 0 : index
    %c0_7 = arith.constant 0 : index
    %9 = vector.load %arg4[%c0_6, %c0_7] : memref<16x128xbf16, #tpu.memory_space<vmem>>, vector<16x128xbf16>
    tpu.vector_store %arg4[%c0_6, %c0_7], %8 {strides = array<i32>} : memref<16x128xbf16, #tpu.memory_space<vmem>>, vector<16x128xbf16>,
    return
  }
  func.func @transform_0(%arg0: i32) -> (i32, i32) {
    %c0_i32 = arith.constant 0 : i32
    %c0_i32_0 = arith.constant 0 : i32
    return %arg0, %c0_i32 : i32, i32
  }
  func.func @transform_1(%arg0: i32) -> (i32, i32) {
    %c0_i32 = arith.constant 0 : i32
    %c0_i32_0 = arith.constant 0 : i32
    %c0_i32_1 = arith.constant 0 : i32
    return %c0_i32, %c0_i32_0 : i32, i32
  }
  func.func @transform_2(%arg0: i32) -> (i32, i32) {
    %c0_i32 = arith.constant 0 : i32
    %c0_i32_0 = arith.constant 0 : i32
    %c0_i32_1 = arith.constant 0 : i32
    return %c0_i32, %c0_i32_0 : i32, i32
  }
  func.func @transform_3(%arg0: i32) -> (i32, i32) {
    %c0_i32 = arith.constant 0 : i32
    %c0_i32_0 = arith.constant 0 : i32
    return %arg0, %c0_i32 : i32, i32
  }
}

module attributes {stable_mosaic.version = 11 : i64} {
  func.func @_conv_matmul_kernel(%arg0: i32, %arg1: memref<16x128xbf16, #tpu.memory_space<vmem>>, %arg2: memref<128x128xbf16, #tpu.memory_space<vmem>>, %arg3: memref<1x128xf32, #tpu.memory_space<vmem>>, %arg4: memref<16x128xbf16, #tpu.memory_space<vmem>>) attributes {dimension_semantics = [#tpu.dimension_semantics<parallel>], iteration_bounds = array<i64: 2>, scalar_prefetch = 0 : i64, scratch_operands = 0 : i64, tpu.core_type = #tpu.core_type<tc>, window_params = [{transform_indices = @transform_0, window_bounds = array<i64: 16, 128>}, {pipeline_mode = #tpu.pipeline_mode<synchronous>, transform_indices = @transform_1, window_bounds = array<i64: 128, 128>}, {pipeline_mode = #tpu.pipeline_mode<synchronous>, transform_indices = @transform_2, window_bounds = array<i64: 1, 128>}, {transform_indices = @transform_3, window_bounds = array<i64: 16, 128>}]} {
    %c0 = arith.constant 0 : index
    %c0_0 = arith.constant 0 : index
    %0 = vector.load %arg1[%c0, %c0_0] : memref<16x128xbf16, #tpu.memory_space<vmem>>, vector<16x128xbf16>
    %c0_1 = arith.constant 0 : index
    %c0_2 = arith.constant 0 : index
    %1 = vector.load %arg2[%c0_1, %c0_2] : memref<128x128xbf16, #tpu.memory_space<vmem>>, vector<128x128xbf16>
    %cst = arith.constant dense<0.000000e+00> : vector<16x128xf32>
    %2 = tpu.matmul %0, %1, %cst {dimension_numbers = #tpu.dot_dimension_numbers<[1], [0], [0], [1], [0, 0, 1, 1], [], []>} : vector<16x128xbf16>, vector<128x128xbf16>, vector<16x128xf32> -> vector<16x128xf32>
    %c0_3 = arith.constant 0 : index
    %c0_4 = arith.constant 0 : index
    %3 = vector.load %arg3[%c0_3, %c0_4] : memref<1x128xf32, #tpu.memory_space<vmem>>, vector<1x128xf32>
    %4 = vector.broadcast %3 : vector<1x128xf32> to vector<16x128xf32>
    %5 = arith.addf %2, %4 : vector<16x128xf32>
    %6 = arith.truncf %5 : vector<16x128xf32> to vector<16x128xbf16>
    %c0_5 = arith.constant 0 : index
    %c0_6 = arith.constant 0 : index
    %7 = vector.load %arg4[%c0_5, %c0_6] : memref<16x128xbf16, #tpu.memory_space<vmem>>, vector<16x128xbf16>
    tpu.vector_store %arg4[%c0_5, %c0_6], %6 {strides = array<i32>} : memref<16x128xbf16, #tpu.memory_space<vmem>>, vector<16x128xbf16>,
    return
  }
  func.func @transform_0(%arg0: i32) -> (i32, i32) {
    %c0_i32 = arith.constant 0 : i32
    %c0_i32_0 = arith.constant 0 : i32
    return %arg0, %c0_i32 : i32, i32
  }
  func.func @transform_1(%arg0: i32) -> (i32, i32) {
    %c0_i32 = arith.constant 0 : i32
    %c0_i32_0 = arith.constant 0 : i32
    %c0_i32_1 = arith.constant 0 : i32
    return %c0_i32, %c0_i32_0 : i32, i32
  }
  func.func @transform_2(%arg0: i32) -> (i32, i32) {
    %c0_i32 = arith.constant 0 : i32
    %c0_i32_0 = arith.constant 0 : i32
    %c0_i32_1 = arith.constant 0 : i32
    return %c0_i32, %c0_i32_0 : i32, i32
  }
  func.func @transform_3(%arg0: i32) -> (i32, i32) {
    %c0_i32 = arith.constant 0 : i32
    %c0_i32_0 = arith.constant 0 : i32
    return %arg0, %c0_i32 : i32, i32
  }
}

module attributes {stable_mosaic.version = 11 : i64} {
  func.func @_conv_matmul_kernel(%arg0: i32, %arg1: memref<8x256xbf16, #tpu.memory_space<vmem>>, %arg2: memref<256x128xbf16, #tpu.memory_space<vmem>>, %arg3: memref<1x128xf32, #tpu.memory_space<vmem>>, %arg4: memref<8x128xbf16, #tpu.memory_space<vmem>>) attributes {dimension_semantics = [#tpu.dimension_semantics<parallel>], iteration_bounds = array<i64: 1>, scalar_prefetch = 0 : i64, scratch_operands = 0 : i64, tpu.core_type = #tpu.core_type<tc>, window_params = [{transform_indices = @transform_0, window_bounds = array<i64: 8, 256>}, {pipeline_mode = #tpu.pipeline_mode<synchronous>, transform_indices = @transform_1, window_bounds = array<i64: 256, 128>}, {pipeline_mode = #tpu.pipeline_mode<synchronous>, transform_indices = @transform_2, window_bounds = array<i64: 1, 128>}, {transform_indices = @transform_3, window_bounds = array<i64: 8, 128>}]} {
    %c0 = arith.constant 0 : index
    %c0_0 = arith.constant 0 : index
    %0 = vector.load %arg1[%c0, %c0_0] : memref<8x256xbf16, #tpu.memory_space<vmem>>, vector<8x256xbf16>
    %c0_1 = arith.constant 0 : index
    %c0_2 = arith.constant 0 : index
    %1 = vector.load %arg2[%c0_1, %c0_2] : memref<256x128xbf16, #tpu.memory_space<vmem>>, vector<256x128xbf16>
    %cst = arith.constant dense<0.000000e+00> : vector<8x128xf32>
    %2 = tpu.matmul %0, %1, %cst {dimension_numbers = #tpu.dot_dimension_numbers<[1], [0], [0], [1], [0, 0, 1, 1], [], []>} : vector<8x256xbf16>, vector<256x128xbf16>, vector<8x128xf32> -> vector<8x128xf32>
    %c0_3 = arith.constant 0 : index
    %c0_4 = arith.constant 0 : index
    %3 = vector.load %arg3[%c0_3, %c0_4] : memref<1x128xf32, #tpu.memory_space<vmem>>, vector<1x128xf32>
    %4 = vector.broadcast %3 : vector<1x128xf32> to vector<8x128xf32>
    %5 = arith.addf %2, %4 : vector<8x128xf32>
    %6 = arith.truncf %5 : vector<8x128xf32> to vector<8x128xbf16>
    %c0_5 = arith.constant 0 : index
    %c0_6 = arith.constant 0 : index
    %7 = vector.load %arg4[%c0_5, %c0_6] : memref<8x128xbf16, #tpu.memory_space<vmem>>, vector<8x128xbf16>
    tpu.vector_store %arg4[%c0_5, %c0_6], %6 {strides = array<i32>} : memref<8x128xbf16, #tpu.memory_space<vmem>>, vector<8x128xbf16>,
    return
  }
  func.func @transform_0(%arg0: i32) -> (i32, i32) {
    %c0_i32 = arith.constant 0 : i32
    %c0_i32_0 = arith.constant 0 : i32
    return %arg0, %c0_i32 : i32, i32
  }
  func.func @transform_1(%arg0: i32) -> (i32, i32) {
    %c0_i32 = arith.constant 0 : i32
    %c0_i32_0 = arith.constant 0 : i32
    %c0_i32_1 = arith.constant 0 : i32
    return %c0_i32, %c0_i32_0 : i32, i32
  }
  func.func @transform_2(%arg0: i32) -> (i32, i32) {
    %c0_i32 = arith.constant 0 : i32
    %c0_i32_0 = arith.constant 0 : i32
    %c0_i32_1 = arith.constant 0 : i32
    return %c0_i32, %c0_i32_0 : i32, i32
  }
  func.func @transform_3(%arg0: i32) -> (i32, i32) {
    %c0_i32 = arith.constant 0 : i32
    %c0_i32_0 = arith.constant 0 : i32
    return %arg0, %c0_i32 : i32, i32
  }
}

module attributes {stable_mosaic.version = 11 : i64} {
  func.func @_conv_matmul_kernel(%arg0: i32, %arg1: memref<8x1152xbf16, #tpu.memory_space<vmem>>, %arg2: memref<1152x256xbf16, #tpu.memory_space<vmem>>, %arg3: memref<1x256xf32, #tpu.memory_space<vmem>>, %arg4: memref<8x256xbf16, #tpu.memory_space<vmem>>) attributes {dimension_semantics = [#tpu.dimension_semantics<parallel>], iteration_bounds = array<i64: 1>, scalar_prefetch = 0 : i64, scratch_operands = 0 : i64, tpu.core_type = #tpu.core_type<tc>, window_params = [{transform_indices = @transform_0, window_bounds = array<i64: 8, 1152>}, {pipeline_mode = #tpu.pipeline_mode<synchronous>, transform_indices = @transform_1, window_bounds = array<i64: 1152, 256>}, {pipeline_mode = #tpu.pipeline_mode<synchronous>, transform_indices = @transform_2, window_bounds = array<i64: 1, 256>}, {transform_indices = @transform_3, window_bounds = array<i64: 8, 256>}]} {
    %c0 = arith.constant 0 : index
    %c0_0 = arith.constant 0 : index
    %0 = vector.load %arg1[%c0, %c0_0] : memref<8x1152xbf16, #tpu.memory_space<vmem>>, vector<8x1152xbf16>
    %c0_1 = arith.constant 0 : index
    %c0_2 = arith.constant 0 : index
    %1 = vector.load %arg2[%c0_1, %c0_2] : memref<1152x256xbf16, #tpu.memory_space<vmem>>, vector<1152x256xbf16>
    %cst = arith.constant dense<0.000000e+00> : vector<8x256xf32>
    %2 = tpu.matmul %0, %1, %cst {dimension_numbers = #tpu.dot_dimension_numbers<[1], [0], [0], [1], [0, 0, 1, 1], [], []>} : vector<8x1152xbf16>, vector<1152x256xbf16>, vector<8x256xf32> -> vector<8x256xf32>
    %c0_3 = arith.constant 0 : index
    %c0_4 = arith.constant 0 : index
    %3 = vector.load %arg3[%c0_3, %c0_4] : memref<1x256xf32, #tpu.memory_space<vmem>>, vector<1x256xf32>
    %4 = vector.broadcast %3 : vector<1x256xf32> to vector<8x256xf32>
    %5 = arith.addf %2, %4 : vector<8x256xf32>
    %cst_5 = arith.constant 0.000000e+00 : f32
    %6 = vector.broadcast %cst_5 : f32 to vector<8x256xf32>
    %7 = arith.maximumf %5, %6 : vector<8x256xf32>
    %8 = arith.truncf %7 : vector<8x256xf32> to vector<8x256xbf16>
    %c0_6 = arith.constant 0 : index
    %c0_7 = arith.constant 0 : index
    %9 = vector.load %arg4[%c0_6, %c0_7] : memref<8x256xbf16, #tpu.memory_space<vmem>>, vector<8x256xbf16>
    tpu.vector_store %arg4[%c0_6, %c0_7], %8 {strides = array<i32>} : memref<8x256xbf16, #tpu.memory_space<vmem>>, vector<8x256xbf16>,
    return
  }
  func.func @transform_0(%arg0: i32) -> (i32, i32) {
    %c0_i32 = arith.constant 0 : i32
    %c0_i32_0 = arith.constant 0 : i32
    return %arg0, %c0_i32 : i32, i32
  }
  func.func @transform_1(%arg0: i32) -> (i32, i32) {
    %c0_i32 = arith.constant 0 : i32
    %c0_i32_0 = arith.constant 0 : i32
    %c0_i32_1 = arith.constant 0 : i32
    return %c0_i32, %c0_i32_0 : i32, i32
  }
  func.func @transform_2(%arg0: i32) -> (i32, i32) {
    %c0_i32 = arith.constant 0 : i32
    %c0_i32_0 = arith.constant 0 : i32
    %c0_i32_1 = arith.constant 0 : i32
    return %c0_i32, %c0_i32_0 : i32, i32
  }
  func.func @transform_3(%arg0: i32) -> (i32, i32) {
    %c0_i32 = arith.constant 0 : i32
    %c0_i32_0 = arith.constant 0 : i32
    return %arg0, %c0_i32 : i32, i32
  }
}

module attributes {stable_mosaic.version = 11 : i64} {
  func.func @_conv_matmul_kernel(%arg0: i32, %arg1: memref<8x576xbf16, #tpu.memory_space<vmem>>, %arg2: memref<576x128xbf16, #tpu.memory_space<vmem>>, %arg3: memref<1x128xf32, #tpu.memory_space<vmem>>, %arg4: memref<8x128xbf16, #tpu.memory_space<vmem>>) attributes {dimension_semantics = [#tpu.dimension_semantics<parallel>], iteration_bounds = array<i64: 1>, scalar_prefetch = 0 : i64, scratch_operands = 0 : i64, tpu.core_type = #tpu.core_type<tc>, window_params = [{transform_indices = @transform_0, window_bounds = array<i64: 8, 576>}, {pipeline_mode = #tpu.pipeline_mode<synchronous>, transform_indices = @transform_1, window_bounds = array<i64: 576, 128>}, {pipeline_mode = #tpu.pipeline_mode<synchronous>, transform_indices = @transform_2, window_bounds = array<i64: 1, 128>}, {transform_indices = @transform_3, window_bounds = array<i64: 8, 128>}]} {
    %c0 = arith.constant 0 : index
    %c0_0 = arith.constant 0 : index
    %0 = vector.load %arg1[%c0, %c0_0] : memref<8x576xbf16, #tpu.memory_space<vmem>>, vector<8x576xbf16>
    %c0_1 = arith.constant 0 : index
    %c0_2 = arith.constant 0 : index
    %1 = vector.load %arg2[%c0_1, %c0_2] : memref<576x128xbf16, #tpu.memory_space<vmem>>, vector<576x128xbf16>
    %cst = arith.constant dense<0.000000e+00> : vector<8x128xf32>
    %2 = tpu.matmul %0, %1, %cst {dimension_numbers = #tpu.dot_dimension_numbers<[1], [0], [0], [1], [0, 0, 1, 1], [], []>} : vector<8x576xbf16>, vector<576x128xbf16>, vector<8x128xf32> -> vector<8x128xf32>
    %c0_3 = arith.constant 0 : index
    %c0_4 = arith.constant 0 : index
    %3 = vector.load %arg3[%c0_3, %c0_4] : memref<1x128xf32, #tpu.memory_space<vmem>>, vector<1x128xf32>
    %4 = vector.broadcast %3 : vector<1x128xf32> to vector<8x128xf32>
    %5 = arith.addf %2, %4 : vector<8x128xf32>
    %cst_5 = arith.constant 0.000000e+00 : f32
    %6 = vector.broadcast %cst_5 : f32 to vector<8x128xf32>
    %7 = arith.maximumf %5, %6 : vector<8x128xf32>
    %8 = arith.truncf %7 : vector<8x128xf32> to vector<8x128xbf16>
    %c0_6 = arith.constant 0 : index
    %c0_7 = arith.constant 0 : index
    %9 = vector.load %arg4[%c0_6, %c0_7] : memref<8x128xbf16, #tpu.memory_space<vmem>>, vector<8x128xbf16>
    tpu.vector_store %arg4[%c0_6, %c0_7], %8 {strides = array<i32>} : memref<8x128xbf16, #tpu.memory_space<vmem>>, vector<8x128xbf16>,
    return
  }
  func.func @transform_0(%arg0: i32) -> (i32, i32) {
    %c0_i32 = arith.constant 0 : i32
    %c0_i32_0 = arith.constant 0 : i32
    return %arg0, %c0_i32 : i32, i32
  }
  func.func @transform_1(%arg0: i32) -> (i32, i32) {
    %c0_i32 = arith.constant 0 : i32
    %c0_i32_0 = arith.constant 0 : i32
    %c0_i32_1 = arith.constant 0 : i32
    return %c0_i32, %c0_i32_0 : i32, i32
  }
  func.func @transform_2(%arg0: i32) -> (i32, i32) {
    %c0_i32 = arith.constant 0 : i32
    %c0_i32_0 = arith.constant 0 : i32
    %c0_i32_1 = arith.constant 0 : i32
    return %c0_i32, %c0_i32_0 : i32, i32
  }
  func.func @transform_3(%arg0: i32) -> (i32, i32) {
    %c0_i32 = arith.constant 0 : i32
    %c0_i32_0 = arith.constant 0 : i32
    return %arg0, %c0_i32 : i32, i32
  }
}

module attributes {stable_mosaic.version = 11 : i64} {
  func.func @_conv_matmul_kernel(%arg0: i32, %arg1: memref<64x576xbf16, #tpu.memory_space<vmem>>, %arg2: memref<576x128xbf16, #tpu.memory_space<vmem>>, %arg3: memref<1x128xf32, #tpu.memory_space<vmem>>, %arg4: memref<64x128xbf16, #tpu.memory_space<vmem>>) attributes {dimension_semantics = [#tpu.dimension_semantics<parallel>], iteration_bounds = array<i64: 2>, scalar_prefetch = 0 : i64, scratch_operands = 0 : i64, tpu.core_type = #tpu.core_type<tc>, window_params = [{transform_indices = @transform_0, window_bounds = array<i64: 64, 576>}, {pipeline_mode = #tpu.pipeline_mode<synchronous>, transform_indices = @transform_1, window_bounds = array<i64: 576, 128>}, {pipeline_mode = #tpu.pipeline_mode<synchronous>, transform_indices = @transform_2, window_bounds = array<i64: 1, 128>}, {transform_indices = @transform_3, window_bounds = array<i64: 64, 128>}]} {
    %c0 = arith.constant 0 : index
    %c0_0 = arith.constant 0 : index
    %0 = vector.load %arg1[%c0, %c0_0] : memref<64x576xbf16, #tpu.memory_space<vmem>>, vector<64x576xbf16>
    %c0_1 = arith.constant 0 : index
    %c0_2 = arith.constant 0 : index
    %1 = vector.load %arg2[%c0_1, %c0_2] : memref<576x128xbf16, #tpu.memory_space<vmem>>, vector<576x128xbf16>
    %cst = arith.constant dense<0.000000e+00> : vector<64x128xf32>
    %2 = tpu.matmul %0, %1, %cst {dimension_numbers = #tpu.dot_dimension_numbers<[1], [0], [0], [1], [0, 0, 1, 1], [], []>} : vector<64x576xbf16>, vector<576x128xbf16>, vector<64x128xf32> -> vector<64x128xf32>
    %c0_3 = arith.constant 0 : index
    %c0_4 = arith.constant 0 : index
    %3 = vector.load %arg3[%c0_3, %c0_4] : memref<1x128xf32, #tpu.memory_space<vmem>>, vector<1x128xf32>
    %4 = vector.broadcast %3 : vector<1x128xf32> to vector<64x128xf32>
    %5 = arith.addf %2, %4 : vector<64x128xf32>
    %cst_5 = arith.constant 0.000000e+00 : f32
    %6 = vector.broadcast %cst_5 : f32 to vector<64x128xf32>
    %7 = arith.maximumf %5, %6 : vector<64x128xf32>
    %8 = arith.truncf %7 : vector<64x128xf32> to vector<64x128xbf16>
    %c0_6 = arith.constant 0 : index
    %c0_7 = arith.constant 0 : index
    %9 = vector.load %arg4[%c0_6, %c0_7] : memref<64x128xbf16, #tpu.memory_space<vmem>>, vector<64x128xbf16>
    tpu.vector_store %arg4[%c0_6, %c0_7], %8 {strides = array<i32>} : memref<64x128xbf16, #tpu.memory_space<vmem>>, vector<64x128xbf16>,
    return
  }
  func.func @transform_0(%arg0: i32) -> (i32, i32) {
    %c0_i32 = arith.constant 0 : i32
    %c0_i32_0 = arith.constant 0 : i32
    return %arg0, %c0_i32 : i32, i32
  }
  func.func @transform_1(%arg0: i32) -> (i32, i32) {
    %c0_i32 = arith.constant 0 : i32
    %c0_i32_0 = arith.constant 0 : i32
    %c0_i32_1 = arith.constant 0 : i32
    return %c0_i32, %c0_i32_0 : i32, i32
  }
  func.func @transform_2(%arg0: i32) -> (i32, i32) {
    %c0_i32 = arith.constant 0 : i32
    %c0_i32_0 = arith.constant 0 : i32
    %c0_i32_1 = arith.constant 0 : i32
    return %c0_i32, %c0_i32_0 : i32, i32
  }
  func.func @transform_3(%arg0: i32) -> (i32, i32) {
    %c0_i32 = arith.constant 0 : i32
    %c0_i32_0 = arith.constant 0 : i32
    return %arg0, %c0_i32 : i32, i32
  }
}

module attributes {stable_mosaic.version = 11 : i64} {
  func.func @_conv_matmul_kernel(%arg0: i32, %arg1: memref<256x576xbf16, #tpu.memory_space<vmem>>, %arg2: memref<576x128xbf16, #tpu.memory_space<vmem>>, %arg3: memref<1x128xf32, #tpu.memory_space<vmem>>, %arg4: memref<256x128xbf16, #tpu.memory_space<vmem>>) attributes {dimension_semantics = [#tpu.dimension_semantics<parallel>], iteration_bounds = array<i64: 2>, scalar_prefetch = 0 : i64, scratch_operands = 0 : i64, tpu.core_type = #tpu.core_type<tc>, window_params = [{transform_indices = @transform_0, window_bounds = array<i64: 256, 576>}, {pipeline_mode = #tpu.pipeline_mode<synchronous>, transform_indices = @transform_1, window_bounds = array<i64: 576, 128>}, {pipeline_mode = #tpu.pipeline_mode<synchronous>, transform_indices = @transform_2, window_bounds = array<i64: 1, 128>}, {transform_indices = @transform_3, window_bounds = array<i64: 256, 128>}]} {
    %c0 = arith.constant 0 : index
    %c0_0 = arith.constant 0 : index
    %0 = vector.load %arg1[%c0, %c0_0] : memref<256x576xbf16, #tpu.memory_space<vmem>>, vector<256x576xbf16>
    %c0_1 = arith.constant 0 : index
    %c0_2 = arith.constant 0 : index
    %1 = vector.load %arg2[%c0_1, %c0_2] : memref<576x128xbf16, #tpu.memory_space<vmem>>, vector<576x128xbf16>
    %cst = arith.constant dense<0.000000e+00> : vector<256x128xf32>
    %2 = tpu.matmul %0, %1, %cst {dimension_numbers = #tpu.dot_dimension_numbers<[1], [0], [0], [1], [0, 0, 1, 1], [], []>} : vector<256x576xbf16>, vector<576x128xbf16>, vector<256x128xf32> -> vector<256x128xf32>
    %c0_3 = arith.constant 0 : index
    %c0_4 = arith.constant 0 : index
    %3 = vector.load %arg3[%c0_3, %c0_4] : memref<1x128xf32, #tpu.memory_space<vmem>>, vector<1x128xf32>
    %4 = vector.broadcast %3 : vector<1x128xf32> to vector<256x128xf32>
    %5 = arith.addf %2, %4 : vector<256x128xf32>
    %cst_5 = arith.constant 0.000000e+00 : f32
    %6 = vector.broadcast %cst_5 : f32 to vector<256x128xf32>
    %7 = arith.maximumf %5, %6 : vector<256x128xf32>
    %8 = arith.truncf %7 : vector<256x128xf32> to vector<256x128xbf16>
    %c0_6 = arith.constant 0 : index
    %c0_7 = arith.constant 0 : index
    %9 = vector.load %arg4[%c0_6, %c0_7] : memref<256x128xbf16, #tpu.memory_space<vmem>>, vector<256x128xbf16>
    tpu.vector_store %arg4[%c0_6, %c0_7], %8 {strides = array<i32>} : memref<256x128xbf16, #tpu.memory_space<vmem>>, vector<256x128xbf16>,
    return
  }
  func.func @transform_0(%arg0: i32) -> (i32, i32) {
    %c0_i32 = arith.constant 0 : i32
    %c0_i32_0 = arith.constant 0 : i32
    return %arg0, %c0_i32 : i32, i32
  }
  func.func @transform_1(%arg0: i32) -> (i32, i32) {
    %c0_i32 = arith.constant 0 : i32
    %c0_i32_0 = arith.constant 0 : i32
    %c0_i32_1 = arith.constant 0 : i32
    return %c0_i32, %c0_i32_0 : i32, i32
  }
  func.func @transform_2(%arg0: i32) -> (i32, i32) {
    %c0_i32 = arith.constant 0 : i32
    %c0_i32_0 = arith.constant 0 : i32
    %c0_i32_1 = arith.constant 0 : i32
    return %c0_i32, %c0_i32_0 : i32, i32
  }
  func.func @transform_3(%arg0: i32) -> (i32, i32) {
    %c0_i32 = arith.constant 0 : i32
    %c0_i32_0 = arith.constant 0 : i32
    return %arg0, %c0_i32 : i32, i32
  }
}

module attributes {stable_mosaic.version = 11 : i64} {
  func.func @_conv_matmul_kernel(%arg0: i32, %arg1: memref<256x288xbf16, #tpu.memory_space<vmem>>, %arg2: memref<288x128xbf16, #tpu.memory_space<vmem>>, %arg3: memref<1x128xf32, #tpu.memory_space<vmem>>, %arg4: memref<256x128xbf16, #tpu.memory_space<vmem>>) attributes {dimension_semantics = [#tpu.dimension_semantics<parallel>], iteration_bounds = array<i64: 2>, scalar_prefetch = 0 : i64, scratch_operands = 0 : i64, tpu.core_type = #tpu.core_type<tc>, window_params = [{transform_indices = @transform_0, window_bounds = array<i64: 256, 288>}, {pipeline_mode = #tpu.pipeline_mode<synchronous>, transform_indices = @transform_1, window_bounds = array<i64: 288, 128>}, {pipeline_mode = #tpu.pipeline_mode<synchronous>, transform_indices = @transform_2, window_bounds = array<i64: 1, 128>}, {transform_indices = @transform_3, window_bounds = array<i64: 256, 128>}]} {
    %c0 = arith.constant 0 : index
    %c0_0 = arith.constant 0 : index
    %0 = vector.load %arg1[%c0, %c0_0] : memref<256x288xbf16, #tpu.memory_space<vmem>>, vector<256x288xbf16>
    %c0_1 = arith.constant 0 : index
    %c0_2 = arith.constant 0 : index
    %1 = vector.load %arg2[%c0_1, %c0_2] : memref<288x128xbf16, #tpu.memory_space<vmem>>, vector<288x128xbf16>
    %cst = arith.constant dense<0.000000e+00> : vector<256x128xf32>
    %2 = tpu.matmul %0, %1, %cst {dimension_numbers = #tpu.dot_dimension_numbers<[1], [0], [0], [1], [0, 0, 1, 1], [], []>} : vector<256x288xbf16>, vector<288x128xbf16>, vector<256x128xf32> -> vector<256x128xf32>
    %c0_3 = arith.constant 0 : index
    %c0_4 = arith.constant 0 : index
    %3 = vector.load %arg3[%c0_3, %c0_4] : memref<1x128xf32, #tpu.memory_space<vmem>>, vector<1x128xf32>
    %4 = vector.broadcast %3 : vector<1x128xf32> to vector<256x128xf32>
    %5 = arith.addf %2, %4 : vector<256x128xf32>
    %6 = arith.truncf %5 : vector<256x128xf32> to vector<256x128xbf16>
    %c0_5 = arith.constant 0 : index
    %c0_6 = arith.constant 0 : index
    %7 = vector.load %arg4[%c0_5, %c0_6] : memref<256x128xbf16, #tpu.memory_space<vmem>>, vector<256x128xbf16>
    tpu.vector_store %arg4[%c0_5, %c0_6], %6 {strides = array<i32>} : memref<256x128xbf16, #tpu.memory_space<vmem>>, vector<256x128xbf16>,
    return
  }
  func.func @transform_0(%arg0: i32) -> (i32, i32) {
    %c0_i32 = arith.constant 0 : i32
    %c0_i32_0 = arith.constant 0 : i32
    return %arg0, %c0_i32 : i32, i32
  }
  func.func @transform_1(%arg0: i32) -> (i32, i32) {
    %c0_i32 = arith.constant 0 : i32
    %c0_i32_0 = arith.constant 0 : i32
    %c0_i32_1 = arith.constant 0 : i32
    return %c0_i32, %c0_i32_0 : i32, i32
  }
  func.func @transform_2(%arg0: i32) -> (i32, i32) {
    %c0_i32 = arith.constant 0 : i32
    %c0_i32_0 = arith.constant 0 : i32
    %c0_i32_1 = arith.constant 0 : i32
    return %c0_i32, %c0_i32_0 : i32, i32
  }
  func.func @transform_3(%arg0: i32) -> (i32, i32) {
    %c0_i32 = arith.constant 0 : i32
    %c0_i32_0 = arith.constant 0 : i32
    return %arg0, %c0_i32 : i32, i32
  }
}

module attributes {stable_mosaic.version = 11 : i64} {
  func.func @_sigmoid_kernel(%arg0: i32, %arg1: memref<16x1024xbf16, #tpu.memory_space<vmem>>, %arg2: memref<16x1024xf32, #tpu.memory_space<vmem>>) attributes {dimension_semantics = [#tpu.dimension_semantics<parallel>], iteration_bounds = array<i64: 1>, scalar_prefetch = 0 : i64, scratch_operands = 0 : i64, tpu.core_type = #tpu.core_type<tc>, window_params = [{transform_indices = @transform_0, window_bounds = array<i64: 16, 1024>}, {transform_indices = @transform_1, window_bounds = array<i64: 16, 1024>}]} {
    %c0 = arith.constant 0 : index
    %c0_0 = arith.constant 0 : index
    %0 = vector.load %arg1[%c0, %c0_0] : memref<16x1024xbf16, #tpu.memory_space<vmem>>, vector<16x1024xbf16>
    %1 = arith.extf %0 : vector<16x1024xbf16> to vector<16x1024xf32>
    %2 = arith.negf %1 : vector<16x1024xf32>
    %3 = math.exp %2 : vector<16x1024xf32>
    %cst = arith.constant 1.000000e+00 : f32
    %4 = vector.broadcast %cst : f32 to vector<16x1024xf32>
    %5 = arith.addf %4, %3 : vector<16x1024xf32>
    %6 = arith.divf %4, %5 : vector<16x1024xf32>
    %c0_1 = arith.constant 0 : index
    %c0_2 = arith.constant 0 : index
    %7 = vector.load %arg2[%c0_1, %c0_2] : memref<16x1024xf32, #tpu.memory_space<vmem>>, vector<16x1024xf32>
    tpu.vector_store %arg2[%c0_1, %c0_2], %6 {strides = array<i32>} : memref<16x1024xf32, #tpu.memory_space<vmem>>, vector<16x1024xf32>,
    return
  }
  func.func @transform_0(%arg0: i32) -> (i32, i32) {
    %c0_i32 = arith.constant 0 : i32
    %c0_i32_0 = arith.constant 0 : i32
    return %arg0, %c0_i32 : i32, i32
  }
  func.func @transform_1(%arg0: i32) -> (i32, i32) {
    %c0_i32 = arith.constant 0 : i32
    %c0_i32_0 = arith.constant 0 : i32
    return %arg0, %c0_i32 : i32, i32
  }
}

</mosaic_0001>

<bundles_post_ra>
// kernel: seg_model_forward.16
= control target key start
LH: loop header
LB: loop body
LE: loop exit
PB: predicated region body
PF: predicated region fallthrough
CT: control target
= control target key end

     0   :  { %s1234_s12 = smov 0   ;;  %s1387_s0 = inlined_call_operand.vmem [shape: bf16[512,144], index: 0, kind: input, shape index: {}]   ;;  %s1388_s1 = inlined_call_operand.vmem [shape: bf16[144,128], index: 1, kind: input, shape index: {}]   ;;  %s1389_s2 = inlined_call_operand.vmem [shape: f32[1,128], index: 2, kind: input, shape index: {}]   ;;  %s1390_s3 = inlined_call_operand.vmem [shape: bf16[512,128], index: 3, kind: output, shape index: {}]  }
   0x1 LB: > { %s891_s13 = sadd.s32 4294967295, %s1211_s12   ;;  %p895_p0 = scmp.ge.s32.totalorder %s1211_s12, 1  ;;  %s1211_s12 = sphi %s1234_s12, %s13_s12  }
   0x2   : > { %p139_p1 = scmp.lt.s32.totalorder %s1211_s12, 3 }
   0x4   : > { %p140_p2 = pnand %p895_p0, %p139_p1 }
   0x5   : > { %v1148_v0 = vld [vmem:[%s1388_s1] sm:$0xff] (!%p140_p2)   ;;  %v1213_v1 = vmov (!%p140_p2), 0   ;;  %s896_s16 = sshll.u32 (!%p140_p2), %s891_s13, 5  ;;  %v1149_v2 = vld [vmem:[%s1388_s1 + $0x8] sm:$0xff] (!%p140_p2)   ;;  %v1150_v3 = vld [vmem:[%s1388_s1 + $0x10] sm:$0xff] (!%p140_p2)   ;;  %vm433_vm0 = vcmask (!%p140_p2), 130048  }
   0x6   : > { %143 = sbr.rel (%p140_p2) target bundleno = 319 (0x13f), region = 32  ;;  %482 = vmatprep.subr.bf16.mxu0 (!%p140_p2), %v1213_v1  ;;  %1121 = vmatprep.subr.bf16.mxu1 (!%p140_p2), %v1213_v1  ;;  %p165_p3 = scmp.lt.s32.totalorder (!%p140_p2), %s896_s16, 63  ;;  %v1151_v4 = vld [vmem:[%s1388_s1 + $0x18] sm:$0xff] (!%p140_p2)   ;;  %v1152_v7 = vld [vmem:[%s1388_s1 + $0x20] sm:$0xff] (!%p140_p2)   ;;  %v1153_v8 = vld [vmem:[%s1388_s1 + $0x28] sm:$0xff] (!%p140_p2)  }
   0x7   : > { %483 = vmatpush1.bf16.msra.mxu0 (!%p140_p2), %v1148_v0  ;;  %1130 = vmatpush1.bf16.msra.mxu1 (!%p140_p2), %v1148_v0  ;;  %v1154_v9 = vld [vmem:[%s1388_s1 + $0x30] sm:$0xff] (!%p140_p2)   ;;  %v1155_v10 = vld [vmem:[%s1388_s1 + $0x38] sm:$0xff] (!%p140_p2)   ;;  %v1156_v11 = vld [vmem:[%s1388_s1 + $0x40] sm:$0xff] (!%p140_p2)  }
   0x8   : > { %484 = vmatprep.subr.bf16.mxu0 (!%p140_p2), %v1213_v1  ;;  %1122 = vmatprep.subr.bf16.mxu1 (!%p140_p2), %v1213_v1  ;;  %v1328_v42 = vld [vmem:[%s1389_s2] ss:$0 sm:$0xff] (!%p140_p2) }
   0xb   : > { %485 = vmatpush1.bf16.msra.mxu0 (!%p140_p2), %v1149_v2  ;;  %1131 = vmatpush1.bf16.msra.mxu1 (!%p140_p2), %v1149_v2 }
   0xc   : > { %486 = vmatprep.subr.bf16.mxu0 (!%p140_p2), %v1213_v1  ;;  %1123 = vmatprep.subr.bf16.mxu1 (!%p140_p2), %v1213_v1 }
   0xd   : > { %s1392_s16 = smov (!%p165_p3, %s896_s16), 63 }
   0xe   : > { %s993_s21 = sshll.u32 %s1392_s16, 3  ;;  %s900_s13 = sshll.u32 %s1392_s16, 2 }
   0xf   : > { %s1257_s24 = scalar_lea.vmem %s1387_s0, %s993_s21  ;;  %487 = vmatpush1.bf16.msra.mxu0 %v1150_v3  ;;  %1132 = vmatpush1.bf16.msra.mxu1 %v1150_v3  ;;  %s1338_s17 = scalar_lea.vmem %s1390_s3, %s900_s13 }
  0x10   : > { %v1159_v5 = vld [vmem:[%s1257_s24 + $0x4] ss:$8 sps:$4 sm:$0xff]   ;;  %488 = vmatprep.subr.bf16.mxu0 %v1213_v1  ;;  %1124 = vmatprep.subr.bf16.mxu1 %v1213_v1  ;;  %v1157_v12 = vld [vmem:[%s1257_s24] ss:$8 sps:$4 sm:$0xff]   ;;  %v1163_v14 = vld [vmem:[%s1257_s24 + $0x14] ss:$8 sps:$4 sm:$0xff]  }
  0x11   : > { %v1162_v6 = vld [vmem:[%s1257_s24 + $0x84] ss:$8 sps:$4 sm:$0xff]   ;;  %943 = vmatprep.mubr.msk.bf16.mxu0 %vm433_vm0, %v1159_v5  ;;  %v1160_v13 = vld [vmem:[%s1257_s24 + $0x80] ss:$8 sps:$4 sm:$0xff]   ;;  %v1165_v15 = vld [vmem:[%s1257_s24 + $0x94] ss:$8 sps:$4 sm:$0xff]  }
  0x12   : > { %951 = vmatprep.mubr.msk.bf16.mxu1 %vm433_vm0, %v1162_v6  ;;  %v1167_v16 = vld [vmem:[%s1257_s24 + $0x10] ss:$8 sps:$4 sm:$0xff]   ;;  %v1169_v18 = vld [vmem:[%s1257_s24 + $0x24] ss:$8 sps:$4 sm:$0xff]   ;;  %v1173_v20 = vld [vmem:[%s1257_s24 + $0x20] ss:$8 sps:$4 sm:$0xff]  }
  0x13   : > { %489 = vmatpush1.bf16.msra.mxu0 %v1151_v4  ;;  %1133 = vmatpush1.bf16.msra.mxu1 %v1151_v4  ;;  %v1168_v17 = vld [vmem:[%s1257_s24 + $0x90] ss:$8 sps:$4 sm:$0xff]   ;;  %v1171_v19 = vld [vmem:[%s1257_s24 + $0xa4] ss:$8 sps:$4 sm:$0xff]   ;;  %v1174_v21 = vld [vmem:[%s1257_s24 + $0xa0] ss:$8 sps:$4 sm:$0xff]  }
  0x14   : > { %490 = vmatprep.subr.bf16.mxu0 %v1213_v1  ;;  %1125 = vmatprep.subr.bf16.mxu1 %v1213_v1  ;;  %v1175_v22 = vld [vmem:[%s1257_s24 + $0x34] ss:$8 sps:$4 sm:$0xff]   ;;  %v1179_v24 = vld [vmem:[%s1257_s24 + $0x30] ss:$8 sps:$4 sm:$0xff]   ;;  %v1181_v26 = vld [vmem:[%s1257_s24 + $0x44] ss:$8 sps:$4 sm:$0xff]  }
  0x15   : > { %v1177_v23 = vld [vmem:[%s1257_s24 + $0xb4] ss:$8 sps:$4 sm:$0xff]   ;;  %v1180_v25 = vld [vmem:[%s1257_s24 + $0xb0] ss:$8 sps:$4 sm:$0xff]   ;;  %v1183_v27 = vld [vmem:[%s1257_s24 + $0xc4] ss:$8 sps:$4 sm:$0xff]  }
  0x16   : > { %v1185_v28 = vld [vmem:[%s1257_s24 + $0x40] ss:$8 sps:$4 sm:$0xff]   ;;  %v1187_v30 = vld [vmem:[%s1257_s24 + $0x54] ss:$8 sps:$4 sm:$0xff]   ;;  %v1191_v32 = vld [vmem:[%s1257_s24 + $0x50] ss:$8 sps:$4 sm:$0xff]  }
  0x17   : > { %491 = vmatpush1.bf16.msra.mxu0 %v1152_v7  ;;  %1134 = vmatpush1.bf16.msra.mxu1 %v1152_v7  ;;  %v1186_v29 = vld [vmem:[%s1257_s24 + $0xc0] ss:$8 sps:$4 sm:$0xff]   ;;  %v1189_v31 = vld [vmem:[%s1257_s24 + $0xd4] ss:$8 sps:$4 sm:$0xff]   ;;  %v1192_v33 = vld [vmem:[%s1257_s24 + $0xd0] ss:$8 sps:$4 sm:$0xff]  }
  0x18   : > { %492 = vmatprep.subr.bf16.mxu0 %v1213_v1  ;;  %1126 = vmatprep.subr.bf16.mxu1 %v1213_v1  ;;  %v1193_v34 = vld [vmem:[%s1257_s24 + $0x64] ss:$8 sps:$4 sm:$0xff]   ;;  %v1197_v36 = vld [vmem:[%s1257_s24 + $0x60] ss:$8 sps:$4 sm:$0xff]   ;;  %v1199_v38 = vld [vmem:[%s1257_s24 + $0x74] ss:$8 sps:$4 sm:$0xff]  }
  0x19   : > { %v1195_v35 = vld [vmem:[%s1257_s24 + $0xe4] ss:$8 sps:$4 sm:$0xff]   ;;  %v1198_v37 = vld [vmem:[%s1257_s24 + $0xe0] ss:$8 sps:$4 sm:$0xff]   ;;  %v1201_v39 = vld [vmem:[%s1257_s24 + $0xf4] ss:$8 sps:$4 sm:$0xff]  }
  0x1a   : > { %v1203_v40 = vld [vmem:[%s1257_s24 + $0x70] ss:$8 sps:$4 sm:$0xff]  }
  0x1b   : > { %493 = vmatpush1.bf16.msra.mxu0 %v1153_v8  ;;  %1135 = vmatpush1.bf16.msra.mxu1 %v1153_v8  ;;  %v1204_v41 = vld [vmem:[%s1257_s24 + $0xf0] ss:$8 sps:$4 sm:$0xff]  }
  0x1c   : > { %494 = vmatprep.subr.bf16.mxu0 %v1213_v1  ;;  %1127 = vmatprep.subr.bf16.mxu1 %v1213_v1 }
  0x1f   : > { %495 = vmatpush1.bf16.msra.mxu0 %v1154_v9  ;;  %1136 = vmatpush1.bf16.msra.mxu1 %v1154_v9 }
  0x20   : > { %496 = vmatprep.subr.bf16.mxu0 %v1213_v1  ;;  %1128 = vmatprep.subr.bf16.mxu1 %v1213_v1 }
  0x23   : > { %497 = vmatpush1.bf16.msra.mxu0 %v1155_v10  ;;  %1137 = vmatpush1.bf16.msra.mxu1 %v1155_v10 }
  0x24   : > { %498 = vmatprep.subr.bf16.mxu0 %v1213_v1  ;;  %1129 = vmatprep.subr.bf16.mxu1 %v1213_v1 }
  0x27   : > { %499 = vmatpush1.bf16.msra.mxu0 %v1156_v11  ;;  %1138 = vmatpush1.bf16.msra.mxu1 %v1156_v11 }
  0x2a   : > { %515 = vmatmul.mubr.bf16.vlgmr.msra.gmra.mrb[0].mxu0 %v1157_v12  ;;  %579 = vmatmul.mubr.bf16.vlgmr.msra.gmra.mrb[0].mxu1 %v1160_v13 }
  0x2b   : > { %944 = vmatprep.mubr.msk.bf16.mxu0 %vm433_vm0, %v1163_v14  ;;  %952 = vmatprep.mubr.msk.bf16.mxu1 %vm433_vm0, %v1165_v15 }
  0x32   : > { %523 = vmatmul.mubr.bf16.gmra.mrb[4].mxu0 %v1167_v16  ;;  %587 = vmatmul.mubr.bf16.gmra.mrb[4].mxu1 %v1168_v17 }
  0x33   : > { %945 = vmatprep.mubr.msk.bf16.mxu0 %vm433_vm0, %v1169_v18  ;;  %953 = vmatprep.mubr.msk.bf16.mxu1 %vm433_vm0, %v1171_v19 }
  0x3a   : > { %531 = vmatmul.mubr.bf16.gmra.mrb[8].mxu0 %v1173_v20  ;;  %595 = vmatmul.mubr.bf16.gmra.mrb[8].mxu1 %v1174_v21 }
  0x3b   : > { %946 = vmatprep.mubr.msk.bf16.mxu0 %vm433_vm0, %v1175_v22  ;;  %954 = vmatprep.mubr.msk.bf16.mxu1 %vm433_vm0, %v1177_v23 }
  0x42   : > { %539 = vmatmul.mubr.bf16.gmra.mrb[12].mxu0 %v1179_v24  ;;  %603 = vmatmul.mubr.bf16.gmra.mrb[12].mxu1 %v1180_v25 }
  0x43   : > { %947 = vmatprep.mubr.msk.bf16.mxu0 %vm433_vm0, %v1181_v26  ;;  %955 = vmatprep.mubr.msk.bf16.mxu1 %vm433_vm0, %v1183_v27 }
  0x4a   : > { %547 = vmatmul.mubr.bf16.gmra.mrb[16].mxu0 %v1185_v28  ;;  %611 = vmatmul.mubr.bf16.gmra.mrb[16].mxu1 %v1186_v29 }
  0x4b   : > { %948 = vmatprep.mubr.msk.bf16.mxu0 %vm433_vm0, %v1187_v30  ;;  %956 = vmatprep.mubr.msk.bf16.mxu1 %vm433_vm0, %v1189_v31 }
  0x52   : > { %555 = vmatmul.mubr.bf16.gmra.mrb[20].mxu0 %v1191_v32  ;;  %619 = vmatmul.mubr.bf16.gmra.mrb[20].mxu1 %v1192_v33 }
  0x53   : > { %949 = vmatprep.mubr.msk.bf16.mxu0 %vm433_vm0, %v1193_v34  ;;  %957 = vmatprep.mubr.msk.bf16.mxu1 %vm433_vm0, %v1195_v35 }
  0x5a   : > { %563 = vmatmul.mubr.bf16.gmra.mrb[24].mxu0 %v1197_v36  ;;  %627 = vmatmul.mubr.bf16.gmra.mrb[24].mxu1 %v1198_v37 }
  0x5b   : > { %950 = vmatprep.mubr.msk.bf16.mxu0 %vm433_vm0, %v1199_v38  ;;  %958 = vmatprep.mubr.msk.bf16.mxu1 %vm433_vm0, %v1201_v39 }
  0x62   : > { %571 = vmatmul.mubr.bf16.gmra.mrb[28].mxu0 %v1203_v40  ;;  %635 = vmatmul.mubr.bf16.gmra.mrb[28].mxu1 %v1204_v41 }
  0xfd   : > { %v516_v43 = vpop.f32.mrb[0].mxu0  ;;  %v580_v44 = vpop.f32.mrb[0].mxu1 }
  0xfe   : > { %v517_v45 = vadd.f32 %v1328_v42, %v516_v43  ;;  %v581_v46 = vadd.f32 %v1328_v42, %v580_v44  ;;  %v518_v47 = vpop.f32.mrb[1].mxu0  ;;  %v582_v48 = vpop.f32.mrb[1].mxu1 }
  0xff   : > { %v519_v49 = vpop.f32.mrb[2].mxu0  ;;  %v583_v50 = vpop.f32.mrb[2].mxu1 }
 0x100   : > { %v520_v51 = vadd.f32 %v1328_v42, %v519_v49  ;;  %v584_v52 = vadd.f32 %v1328_v42, %v583_v50  ;;  %v521_v53 = vpop.f32.mrb[3].mxu0  ;;  %v585_v54 = vpop.f32.mrb[3].mxu1  ;;  %v643_v55 = vmax.f32 %v517_v45, 0.0  ;;  %v659_v56 = vmax.f32 %v581_v46, 0.0 }
 0x102   : > { %v644_v57 = vmax.f32 %v520_v51, 0.0  ;;  %v660_v58 = vmax.f32 %v584_v52, 0.0 }
 0x104   : > { %v1029_v59 = vpack.c.bf16 %v644_v57, %v643_v55  ;;  %v1069_v60 = vpack.c.bf16 %v660_v58, %v659_v56 }
 0x105   : > { %v524_v61 = vpop.f32.mrb[4].mxu0  ;;  %v588_v62 = vpop.f32.mrb[4].mxu1 }
 0x106   : > { %1030 = vst [vmem:[%s1338_s17] sm:$0xff] %v1029_v59   ;;  %1113 = vst [vmem:[%s1338_s17 + $0x40] sm:$0xff] %v1069_v60   ;;  %v525_v63 = vadd.f32 %v1328_v42, %v524_v61  ;;  %v589_v0 = vadd.f32 %v1328_v42, %v588_v62  ;;  %v526_v1 = vpop.f32.mrb[5].mxu0  ;;  %v590_v2 = vpop.f32.mrb[5].mxu1 }
 0x107   : > { %v527_v3 = vpop.f32.mrb[6].mxu0  ;;  %v591_v4 = vpop.f32.mrb[6].mxu1 }
 0x108   : > { %v528_v5 = vadd.f32 %v1328_v42, %v527_v3  ;;  %v592_v6 = vadd.f32 %v1328_v42, %v591_v4  ;;  %v529_v7 = vpop.f32.mrb[7].mxu0  ;;  %v593_v8 = vpop.f32.mrb[7].mxu1  ;;  %v645_v9 = vmax.f32 %v525_v63, 0.0  ;;  %v661_v10 = vmax.f32 %v589_v0, 0.0 }
 0x10a   : > { %v646_v11 = vmax.f32 %v528_v5, 0.0  ;;  %v662_v12 = vmax.f32 %v592_v6, 0.0 }
 0x10c   : > { %v1034_v13 = vpack.c.bf16 %v646_v11, %v645_v9  ;;  %v1074_v14 = vpack.c.bf16 %v662_v12, %v661_v10 }
 0x10d   : > { %v532_v15 = vpop.f32.mrb[8].mxu0  ;;  %v596_v16 = vpop.f32.mrb[8].mxu1 }
 0x10e   : > { %1106 = vst [vmem:[%s1338_s17 + $0x8] sm:$0xff] %v1034_v13   ;;  %1114 = vst [vmem:[%s1338_s17 + $0x48] sm:$0xff] %v1074_v14   ;;  %v533_v17 = vadd.f32 %v1328_v42, %v532_v15  ;;  %v597_v18 = vadd.f32 %v1328_v42, %v596_v16  ;;  %v534_v19 = vpop.f32.mrb[9].mxu0  ;;  %v598_v20 = vpop.f32.mrb[9].mxu1 }
 0x10f   : > { %v535_v21 = vpop.f32.mrb[10].mxu0  ;;  %v599_v22 = vpop.f32.mrb[10].mxu1 }
 0x110   : > { %v536_v23 = vadd.f32 %v1328_v42, %v535_v21  ;;  %v600_v24 = vadd.f32 %v1328_v42, %v599_v22  ;;  %v537_v25 = vpop.f32.mrb[11].mxu0  ;;  %v601_v26 = vpop.f32.mrb[11].mxu1  ;;  %v647_v27 = vmax.f32 %v533_v17, 0.0  ;;  %v663_v28 = vmax.f32 %v597_v18, 0.0 }
 0x112   : > { %v648_v29 = vmax.f32 %v536_v23, 0.0  ;;  %v664_v30 = vmax.f32 %v600_v24, 0.0 }
 0x114   : > { %v1039_v31 = vpack.c.bf16 %v648_v29, %v647_v27  ;;  %v1079_v32 = vpack.c.bf16 %v664_v30, %v663_v28 }
 0x115   : > { %v540_v33 = vpop.f32.mrb[12].mxu0  ;;  %v604_v34 = vpop.f32.mrb[12].mxu1 }
 0x116   : > { %1107 = vst [vmem:[%s1338_s17 + $0x10] sm:$0xff] %v1039_v31   ;;  %1115 = vst [vmem:[%s1338_s17 + $0x50] sm:$0xff] %v1079_v32   ;;  %v541_v35 = vadd.f32 %v1328_v42, %v540_v33  ;;  %v605_v36 = vadd.f32 %v1328_v42, %v604_v34  ;;  %v542_v37 = vpop.f32.mrb[13].mxu0  ;;  %v606_v38 = vpop.f32.mrb[13].mxu1 }
 0x117   : > { %v543_v39 = vpop.f32.mrb[14].mxu0  ;;  %v607_v40 = vpop.f32.mrb[14].mxu1 }
 0x118   : > { %v544_v41 = vadd.f32 %v1328_v42, %v543_v39  ;;  %v608_v43 = vadd.f32 %v1328_v42, %v607_v40  ;;  %v545_v44 = vpop.f32.mrb[15].mxu0  ;;  %v609_v45 = vpop.f32.mrb[15].mxu1  ;;  %v649_v46 = vmax.f32 %v541_v35, 0.0  ;;  %v665_v47 = vmax.f32 %v605_v36, 0.0 }
 0x11a   : > { %v650_v48 = vmax.f32 %v544_v41, 0.0  ;;  %v666_v49 = vmax.f32 %v608_v43, 0.0 }
 0x11c   : > { %v1044_v50 = vpack.c.bf16 %v650_v48, %v649_v46  ;;  %v1084_v51 = vpack.c.bf16 %v666_v49, %v665_v47 }
 0x11d   : > { %v548_v52 = vpop.f32.mrb[16].mxu0  ;;  %v612_v53 = vpop.f32.mrb[16].mxu1 }
 0x11e   : > { %1108 = vst [vmem:[%s1338_s17 + $0x18] sm:$0xff] %v1044_v50   ;;  %1116 = vst [vmem:[%s1338_s17 + $0x58] sm:$0xff] %v1084_v51   ;;  %v549_v54 = vadd.f32 %v1328_v42, %v548_v52  ;;  %v613_v55 = vadd.f32 %v1328_v42, %v612_v53  ;;  %v550_v56 = vpop.f32.mrb[17].mxu0  ;;  %v614_v57 = vpop.f32.mrb[17].mxu1 }
 0x11f   : > { %v551_v58 = vpop.f32.mrb[18].mxu0  ;;  %v615_v59 = vpop.f32.mrb[18].mxu1 }
 0x120   : > { %v552_v60 = vadd.f32 %v1328_v42, %v551_v58  ;;  %v616_v61 = vadd.f32 %v1328_v42, %v615_v59  ;;  %v553_v62 = vpop.f32.mrb[19].mxu0  ;;  %v617_v63 = vpop.f32.mrb[19].mxu1  ;;  %v651_v0 = vmax.f32 %v549_v54, 0.0  ;;  %v667_v1 = vmax.f32 %v613_v55, 0.0 }
 0x122   : > { %v652_v2 = vmax.f32 %v552_v60, 0.0  ;;  %v668_v3 = vmax.f32 %v616_v61, 0.0 }
 0x124   : > { %v1049_v4 = vpack.c.bf16 %v652_v2, %v651_v0  ;;  %v1089_v5 = vpack.c.bf16 %v668_v3, %v667_v1 }
 0x125   : > { %v556_v6 = vpop.f32.mrb[20].mxu0  ;;  %v620_v7 = vpop.f32.mrb[20].mxu1 }
 0x126   : > { %1109 = vst [vmem:[%s1338_s17 + $0x20] sm:$0xff] %v1049_v4   ;;  %1117 = vst [vmem:[%s1338_s17 + $0x60] sm:$0xff] %v1089_v5   ;;  %v557_v8 = vadd.f32 %v1328_v42, %v556_v6  ;;  %v621_v9 = vadd.f32 %v1328_v42, %v620_v7  ;;  %v558_v10 = vpop.f32.mrb[21].mxu0  ;;  %v622_v11 = vpop.f32.mrb[21].mxu1 }
 0x127   : > { %v559_v12 = vpop.f32.mrb[22].mxu0  ;;  %v623_v13 = vpop.f32.mrb[22].mxu1 }
 0x128   : > { %v560_v14 = vadd.f32 %v1328_v42, %v559_v12  ;;  %v624_v15 = vadd.f32 %v1328_v42, %v623_v13  ;;  %v561_v16 = vpop.f32.mrb[23].mxu0  ;;  %v625_v17 = vpop.f32.mrb[23].mxu1  ;;  %v653_v18 = vmax.f32 %v557_v8, 0.0  ;;  %v669_v19 = vmax.f32 %v621_v9, 0.0 }
 0x12a   : > { %v654_v20 = vmax.f32 %v560_v14, 0.0  ;;  %v670_v21 = vmax.f32 %v624_v15, 0.0 }
 0x12c   : > { %v1054_v22 = vpack.c.bf16 %v654_v20, %v653_v18  ;;  %v1094_v23 = vpack.c.bf16 %v670_v21, %v669_v19 }
 0x12d   : > { %v564_v24 = vpop.f32.mrb[24].mxu0  ;;  %v628_v25 = vpop.f32.mrb[24].mxu1 }
 0x12e   : > { %1110 = vst [vmem:[%s1338_s17 + $0x28] sm:$0xff] %v1054_v22   ;;  %1118 = vst [vmem:[%s1338_s17 + $0x68] sm:$0xff] %v1094_v23   ;;  %v565_v26 = vadd.f32 %v1328_v42, %v564_v24  ;;  %v629_v27 = vadd.f32 %v1328_v42, %v628_v25  ;;  %v566_v28 = vpop.f32.mrb[25].mxu0  ;;  %v630_v29 = vpop.f32.mrb[25].mxu1 }
 0x12f   : > { %v567_v30 = vpop.f32.mrb[26].mxu0  ;;  %v631_v31 = vpop.f32.mrb[26].mxu1 }
 0x130   : > { %v568_v32 = vadd.f32 %v1328_v42, %v567_v30  ;;  %v632_v33 = vadd.f32 %v1328_v42, %v631_v31  ;;  %v569_v34 = vpop.f32.mrb[27].mxu0  ;;  %v633_v35 = vpop.f32.mrb[27].mxu1  ;;  %v655_v36 = vmax.f32 %v565_v26, 0.0  ;;  %v671_v37 = vmax.f32 %v629_v27, 0.0 }
 0x132   : > { %v656_v38 = vmax.f32 %v568_v32, 0.0  ;;  %v672_v39 = vmax.f32 %v632_v33, 0.0 }
 0x134   : > { %v1059_v40 = vpack.c.bf16 %v656_v38, %v655_v36  ;;  %v1099_v41 = vpack.c.bf16 %v672_v39, %v671_v37 }
 0x135   : > { %v572_v43 = vpop.f32.mrb[28].mxu0  ;;  %v636_v44 = vpop.f32.mrb[28].mxu1 }
 0x136   : > { %1111 = vst [vmem:[%s1338_s17 + $0x30] sm:$0xff] %v1059_v40   ;;  %1119 = vst [vmem:[%s1338_s17 + $0x70] sm:$0xff] %v1099_v41   ;;  %v573_v45 = vadd.f32 %v1328_v42, %v572_v43  ;;  %v637_v46 = vadd.f32 %v1328_v42, %v636_v44  ;;  %v574_v47 = vpop.f32.mrb[29].mxu0  ;;  %v638_v48 = vpop.f32.mrb[29].mxu1 }
 0x137   : > { %v575_v49 = vpop.f32.mrb[30].mxu0  ;;  %v639_v50 = vpop.f32.mrb[30].mxu1 }
 0x138   : > { %v576_v51 = vadd.f32 %v1328_v42, %v575_v49  ;;  %v640_v52 = vadd.f32 %v1328_v42, %v639_v50  ;;  %v577_v53 = vpop.f32.mrb[31].mxu0  ;;  %v641_v54 = vpop.f32.mrb[31].mxu1  ;;  %v657_v55 = vmax.f32 %v573_v45, 0.0  ;;  %v673_v56 = vmax.f32 %v637_v46, 0.0 }
 0x13a   : > { %v658_v57 = vmax.f32 %v576_v51, 0.0  ;;  %v674_v58 = vmax.f32 %v640_v52, 0.0 }
 0x13c   : > { %v1064_v59 = vpack.c.bf16 %v658_v57, %v657_v55  ;;  %v1104_v60 = vpack.c.bf16 %v674_v58, %v673_v56 }
 0x13e   : > { %1112 = vst [vmem:[%s1338_s17 + $0x38] sm:$0xff] %v1064_v59   ;;  %1120 = vst [vmem:[%s1338_s17 + $0x78] sm:$0xff] %v1104_v60  }
 0x13f PF: > { %s13_s12 = sadd.s32 1, %s1211_s12  }
 0x140   : > { %p10_p4 = scmp.ge.s32.totalorder %s13_s12, 4  }
 0x142   :  { %12 = sbr.rel (!%p10_p4) target bundleno = 1 (0x1), region = 62 }

// kernel: seg_model_forward.23
= control target key start
LH: loop header
LB: loop body
LE: loop exit
PB: predicated region body
PF: predicated region fallthrough
CT: control target
= control target key end

     0   :  { %s1053_s12 = smov 0   ;;  %s1172_s0 = inlined_call_operand.vmem [shape: bf16[512,32], index: 0, kind: input, shape index: {}]   ;;  %s1173_s1 = inlined_call_operand.vmem [shape: bf16[32,128], index: 1, kind: input, shape index: {}]   ;;  %s1174_s2 = inlined_call_operand.vmem [shape: f32[1,128], index: 2, kind: input, shape index: {}]   ;;  %s1175_s3 = inlined_call_operand.vmem [shape: bf16[512,128], index: 3, kind: output, shape index: {}]  }
   0x1 LB: > { %s736_s13 = sadd.s32 4294967295, %s1031_s12   ;;  %p740_p0 = scmp.ge.s32.totalorder %s1031_s12, 1  ;;  %s1031_s12 = sphi %s1053_s12, %s13_s12  }
   0x2   : > { %p138_p1 = scmp.lt.s32.totalorder %s1031_s12, 3 }
   0x4   : > { %p139_p2 = pnand %p740_p0, %p138_p1 }
   0x5   : > { %v1007_v0 = vld [vmem:[%s1173_s1] sm:$0xff] (!%p139_p2)   ;;  %s741_s16 = sshll.u32 (!%p139_p2), %s736_s13, 5  ;;  %v1008_v1 = vld [vmem:[%s1173_s1 + $0x8] sm:$0xff] (!%p139_p2)   ;;  %vm310_vm0 = vcmask (!%p139_p2), 261120  }
   0x6   : > { %142 = sbr.rel (%p139_p2) target bundleno = 263 (0x107), region = 32  ;;  %p163_p3 = scmp.lt.s32.totalorder (!%p139_p2), %s741_s16, 63  ;;  %959 = vmatprep.subr.bf16.mxu0 (!%p139_p2), %v1007_v0  ;;  %995 = vmatprep.subr.bf16.mxu1 (!%p139_p2), %v1007_v0  ;;  %v1112_v19 = vld [vmem:[%s1174_s2] ss:$0 sm:$0xff] (!%p139_p2) }
   0x7   : > { %960 = vmatpush3.bf16.msra.mxu0 (!%p139_p2), %v1007_v0  ;;  %997 = vmatpush3.bf16.msra.mxu1 (!%p139_p2), %v1007_v0 }
   0x8   : > { %961 = vmatprep.subr.bf16.mxu0 (!%p139_p2), %v1008_v1  ;;  %996 = vmatprep.subr.bf16.mxu1 (!%p139_p2), %v1008_v1 }
   0xb   : > { %962 = vmatpush3.bf16.msra.mxu0 (!%p139_p2), %v1008_v1  ;;  %998 = vmatpush3.bf16.msra.mxu1 (!%p139_p2), %v1008_v1 }
   0xd   : > { %s1177_s16 = smov (!%p163_p3, %s741_s16), 63 }
   0xe   : > { %s742_s19 = sshll.u32 %s1177_s16, 2 }
   0xf   : > { %s1075_s22 = scalar_lea.vmem %s1172_s0, %s742_s19  ;;  %s1123_s27 = scalar_lea.vmem %s1175_s3, %s742_s19 }
  0x10   : > { %v1009_v2 = vld [vmem:[%s1075_s22] sm:$0xff]   ;;  %v1011_v4 = vld [vmem:[%s1075_s22 + $0x8] sm:$0xff]   ;;  %v1013_v6 = vld [vmem:[%s1075_s22 + $0x10] sm:$0xff]  }
  0x11   : > { %v1010_v3 = vld [vmem:[%s1075_s22 + $0x40] sm:$0xff]   ;;  %963 = vmatprep.mubr.msk.bf16.mxu0 %vm310_vm0, %v1009_v2  ;;  %v1012_v5 = vld [vmem:[%s1075_s22 + $0x48] sm:$0xff]   ;;  %v1014_v7 = vld [vmem:[%s1075_s22 + $0x50] sm:$0xff]  }
  0x12   : > { %979 = vmatprep.mubr.msk.bf16.mxu1 %vm310_vm0, %v1010_v3  ;;  %964 = vmatmul.mubr.msk.bf16.vlgmr.msra.gmra.mrb[0].mxu0 %vm310_vm0, %v1011_v4  ;;  %v1015_v8 = vld [vmem:[%s1075_s22 + $0x18] sm:$0xff]   ;;  %v1017_v10 = vld [vmem:[%s1075_s22 + $0x20] sm:$0xff]   ;;  %v1019_v12 = vld [vmem:[%s1075_s22 + $0x28] sm:$0xff]  }
  0x13   : > { %980 = vmatmul.mubr.msk.bf16.vlgmr.msra.gmra.mrb[0].mxu1 %vm310_vm0, %v1012_v5  ;;  %967 = vmatprep.mubr.msk.bf16.mxu0 %vm310_vm0, %v1013_v6  ;;  %v1016_v9 = vld [vmem:[%s1075_s22 + $0x58] sm:$0xff]   ;;  %v1018_v11 = vld [vmem:[%s1075_s22 + $0x60] sm:$0xff]   ;;  %v1020_v13 = vld [vmem:[%s1075_s22 + $0x68] sm:$0xff]  }
  0x14   : > { %983 = vmatprep.mubr.msk.bf16.mxu1 %vm310_vm0, %v1014_v7  ;;  %v1021_v14 = vld [vmem:[%s1075_s22 + $0x30] sm:$0xff]   ;;  %v1023_v16 = vld [vmem:[%s1075_s22 + $0x38] sm:$0xff]  }
  0x15   : > { %v1022_v15 = vld [vmem:[%s1075_s22 + $0x70] sm:$0xff]   ;;  %v1024_v17 = vld [vmem:[%s1075_s22 + $0x78] sm:$0xff]  }
  0x1a   : > { %968 = vmatmul.mubr.msk.bf16.gmra.mrb[4].mxu0 %vm310_vm0, %v1015_v8 }
  0x1b   : > { %984 = vmatmul.mubr.msk.bf16.gmra.mrb[4].mxu1 %vm310_vm0, %v1016_v9  ;;  %971 = vmatprep.mubr.msk.bf16.mxu0 %vm310_vm0, %v1017_v10 }
  0x1c   : > { %987 = vmatprep.mubr.msk.bf16.mxu1 %vm310_vm0, %v1018_v11 }
  0x22   : > { %972 = vmatmul.mubr.msk.bf16.gmra.mrb[8].mxu0 %vm310_vm0, %v1019_v12 }
  0x23   : > { %988 = vmatmul.mubr.msk.bf16.gmra.mrb[8].mxu1 %vm310_vm0, %v1020_v13  ;;  %975 = vmatprep.mubr.msk.bf16.mxu0 %vm310_vm0, %v1021_v14 }
  0x24   : > { %991 = vmatprep.mubr.msk.bf16.mxu1 %vm310_vm0, %v1022_v15 }
  0x2a   : > { %976 = vmatmul.mubr.msk.bf16.gmra.mrb[12].mxu0 %vm310_vm0, %v1023_v16 }
  0x2b   : > { %992 = vmatmul.mubr.msk.bf16.gmra.mrb[12].mxu1 %vm310_vm0, %v1024_v17 }
  0xe5   : > { %v965_v18 = vpop.f32.mrb[0].mxu0 }
  0xe6   : > { %v981_v20 = vpop.f32.mrb[0].mxu1  ;;  %v393_v21 = vpop.f32.mrb[1].mxu0  ;;  %v402_v24 = vadd.f32 %v965_v18, %v1112_v19 }
  0xe7   : > { %v457_v22 = vpop.f32.mrb[1].mxu1  ;;  %v966_v23 = vpop.f32.mrb[2].mxu0  ;;  %v466_v28 = vadd.f32 %v981_v20, %v1112_v19  ;;  %v394_v29 = vadd.f32 %v1112_v19, %v393_v21 }
  0xe8   : > { %v405_v25 = vadd.f32 %v966_v23, %v1112_v19  ;;  %v982_v26 = vpop.f32.mrb[2].mxu1  ;;  %v396_v27 = vpop.f32.mrb[3].mxu0  ;;  %v458_v33 = vadd.f32 %v1112_v19, %v457_v22 }
  0xe9   : > { %v469_v30 = vadd.f32 %v982_v26, %v1112_v19  ;;  %v397_v31 = vadd.f32 %v1112_v19, %v396_v27  ;;  %v460_v32 = vpop.f32.mrb[3].mxu1 }
  0xea   : > { %v854_v34 = vpack.c.bf16 %v405_v25, %v402_v24  ;;  %v461_v35 = vadd.f32 %v1112_v19, %v460_v32 }
  0xeb   : > { %v894_v36 = vpack.c.bf16 %v469_v30, %v466_v28  ;;  %v849_v37 = vpack.c.bf16 %v397_v31, %v394_v29 }
  0xec   : > { %926 = vst [vmem:[%s1123_s27 + $0x8] sm:$0xff] %v854_v34   ;;  %v889_v38 = vpack.c.bf16 %v461_v35, %v458_v33 }
  0xed   : > { %934 = vst [vmem:[%s1123_s27 + $0x48] sm:$0xff] %v894_v36   ;;  %850 = vst [vmem:[%s1123_s27] sm:$0xff] %v849_v37   ;;  %v969_v39 = vpop.f32.mrb[4].mxu0 }
  0xee   : > { %933 = vst [vmem:[%s1123_s27 + $0x40] sm:$0xff] %v889_v38   ;;  %v985_v40 = vpop.f32.mrb[4].mxu1  ;;  %v409_v41 = vpop.f32.mrb[5].mxu0  ;;  %v418_v44 = vadd.f32 %v969_v39, %v1112_v19 }
  0xef   : > { %v473_v42 = vpop.f32.mrb[5].mxu1  ;;  %v970_v43 = vpop.f32.mrb[6].mxu0  ;;  %v482_v48 = vadd.f32 %v985_v40, %v1112_v19  ;;  %v410_v49 = vadd.f32 %v1112_v19, %v409_v41 }
  0xf0   : > { %v421_v45 = vadd.f32 %v970_v43, %v1112_v19  ;;  %v986_v46 = vpop.f32.mrb[6].mxu1  ;;  %v412_v47 = vpop.f32.mrb[7].mxu0  ;;  %v474_v53 = vadd.f32 %v1112_v19, %v473_v42 }
  0xf1   : > { %v485_v50 = vadd.f32 %v986_v46, %v1112_v19  ;;  %v413_v51 = vadd.f32 %v1112_v19, %v412_v47  ;;  %v476_v52 = vpop.f32.mrb[7].mxu1 }
  0xf2   : > { %v864_v54 = vpack.c.bf16 %v421_v45, %v418_v44  ;;  %v477_v55 = vadd.f32 %v1112_v19, %v476_v52 }
  0xf3   : > { %v904_v56 = vpack.c.bf16 %v485_v50, %v482_v48  ;;  %v859_v57 = vpack.c.bf16 %v413_v51, %v410_v49 }
  0xf4   : > { %928 = vst [vmem:[%s1123_s27 + $0x18] sm:$0xff] %v864_v54   ;;  %v899_v58 = vpack.c.bf16 %v477_v55, %v474_v53 }
  0xf5   : > { %936 = vst [vmem:[%s1123_s27 + $0x58] sm:$0xff] %v904_v56   ;;  %927 = vst [vmem:[%s1123_s27 + $0x10] sm:$0xff] %v859_v57   ;;  %v973_v59 = vpop.f32.mrb[8].mxu0 }
  0xf6   : > { %935 = vst [vmem:[%s1123_s27 + $0x50] sm:$0xff] %v899_v58   ;;  %v989_v60 = vpop.f32.mrb[8].mxu1  ;;  %v425_v61 = vpop.f32.mrb[9].mxu0  ;;  %v434_v0 = vadd.f32 %v973_v59, %v1112_v19 }
  0xf7   : > { %v489_v62 = vpop.f32.mrb[9].mxu1  ;;  %v974_v63 = vpop.f32.mrb[10].mxu0  ;;  %v498_v4 = vadd.f32 %v989_v60, %v1112_v19  ;;  %v426_v5 = vadd.f32 %v1112_v19, %v425_v61 }
  0xf8   : > { %v437_v1 = vadd.f32 %v974_v63, %v1112_v19  ;;  %v990_v2 = vpop.f32.mrb[10].mxu1  ;;  %v428_v3 = vpop.f32.mrb[11].mxu0  ;;  %v490_v9 = vadd.f32 %v1112_v19, %v489_v62 }
  0xf9   : > { %v501_v6 = vadd.f32 %v990_v2, %v1112_v19  ;;  %v429_v7 = vadd.f32 %v1112_v19, %v428_v3  ;;  %v492_v8 = vpop.f32.mrb[11].mxu1 }
  0xfa   : > { %v874_v10 = vpack.c.bf16 %v437_v1, %v434_v0  ;;  %v493_v11 = vadd.f32 %v1112_v19, %v492_v8 }
  0xfb   : > { %v914_v12 = vpack.c.bf16 %v501_v6, %v498_v4  ;;  %v869_v13 = vpack.c.bf16 %v429_v7, %v426_v5 }
  0xfc   : > { %930 = vst [vmem:[%s1123_s27 + $0x28] sm:$0xff] %v874_v10   ;;  %v909_v14 = vpack.c.bf16 %v493_v11, %v490_v9 }
  0xfd   : > { %938 = vst [vmem:[%s1123_s27 + $0x68] sm:$0xff] %v914_v12   ;;  %929 = vst [vmem:[%s1123_s27 + $0x20] sm:$0xff] %v869_v13   ;;  %v977_v15 = vpop.f32.mrb[12].mxu0 }
  0xfe   : > { %937 = vst [vmem:[%s1123_s27 + $0x60] sm:$0xff] %v909_v14   ;;  %v993_v16 = vpop.f32.mrb[12].mxu1  ;;  %v441_v17 = vpop.f32.mrb[13].mxu0  ;;  %v450_v21 = vadd.f32 %v977_v15, %v1112_v19 }
  0xff   : > { %v505_v18 = vpop.f32.mrb[13].mxu1  ;;  %v978_v20 = vpop.f32.mrb[14].mxu0  ;;  %v514_v25 = vadd.f32 %v993_v16, %v1112_v19  ;;  %v442_v26 = vadd.f32 %v1112_v19, %v441_v17 }
 0x100   : > { %v453_v22 = vadd.f32 %v978_v20, %v1112_v19  ;;  %v994_v23 = vpop.f32.mrb[14].mxu1  ;;  %v444_v24 = vpop.f32.mrb[15].mxu0  ;;  %v506_v30 = vadd.f32 %v1112_v19, %v505_v18 }
 0x101   : > { %v517_v27 = vadd.f32 %v994_v23, %v1112_v19  ;;  %v445_v28 = vadd.f32 %v1112_v19, %v444_v24  ;;  %v508_v29 = vpop.f32.mrb[15].mxu1 }
 0x102   : > { %v884_v31 = vpack.c.bf16 %v453_v22, %v450_v21  ;;  %v509_v32 = vadd.f32 %v1112_v19, %v508_v29 }
 0x103   : > { %v924_v33 = vpack.c.bf16 %v517_v27, %v514_v25  ;;  %v879_v34 = vpack.c.bf16 %v445_v28, %v442_v26 }
 0x104   : > { %932 = vst [vmem:[%s1123_s27 + $0x38] sm:$0xff] %v884_v31   ;;  %v919_v35 = vpack.c.bf16 %v509_v32, %v506_v30 }
 0x105   : > { %940 = vst [vmem:[%s1123_s27 + $0x78] sm:$0xff] %v924_v33   ;;  %931 = vst [vmem:[%s1123_s27 + $0x30] sm:$0xff] %v879_v34  }
 0x106   : > { %939 = vst [vmem:[%s1123_s27 + $0x70] sm:$0xff] %v919_v35  }
 0x107 PF: > { %s13_s12 = sadd.s32 1, %s1031_s12  }
 0x108   : > { %p10_p4 = scmp.ge.s32.totalorder %s13_s12, 4  }
 0x10a   :  { %12 = sbr.rel (!%p10_p4) target bundleno = 1 (0x1), region = 62 }

// kernel: seg_model_forward.15
= control target key start
LH: loop header
LB: loop body
LE: loop exit
PB: predicated region body
PF: predicated region fallthrough
CT: control target
= control target key end

     0   :  { %s3301_s12 = smov 0   ;;  %s3660_s0 = inlined_call_operand.vmem [shape: bf16[2048,27], index: 0, kind: input, shape index: {}]   ;;  %s3661_s1 = inlined_call_operand.vmem [shape: bf16[27,128], index: 1, kind: input, shape index: {}]   ;;  %s3662_s2 = inlined_call_operand.vmem [shape: f32[1,128], index: 2, kind: input, shape index: {}]   ;;  %s3663_s3 = inlined_call_operand.vmem [shape: bf16[2048,128], index: 3, kind: output, shape index: {}]  }
   0x1 LB: > { %s2214_s13 = sadd.s32 4294967295, %s3278_s12   ;;  %p2218_p0 = scmp.ge.s32.totalorder %s3278_s12, 1  ;;  %s3278_s12 = sphi %s3301_s12, %s13_s12  }
   0x2   : > { %p138_p1 = scmp.lt.s32.totalorder %s3278_s12, 3 }
   0x4   : > { %p139_p2 = pnand %p2218_p0, %p138_p1 }
   0x5   : > { %v3206_v0 = vld [vmem:[%s3661_s1] sm:$0xff] (!%p139_p2)   ;;  %vm838_vm0 = vcmask (!%p139_p2), 1044480   ;;  %v3207_v1 = vld [vmem:[%s3661_s1 + $0x8] sm:$0x3f] (!%p139_p2)   ;;  %vm839_vm1 = vcmask (!%p139_p2), 1045504   ;;  %s2219_s18 = sshll.u32 (!%p139_p2), %s2214_s13, 7 }
   0x6   : > { %142 = sbr.rel (%p139_p2) target bundleno = 361 (0x169), region = 32  ;;  %3061 = vmatprep.subr.bf16.mxu0 (!%p139_p2), %v3206_v0  ;;  %3193 = vmatprep.subr.bf16.mxu1 (!%p139_p2), %v3206_v0  ;;  %v3280_v2 = vmov (!%p139_p2), 65535   ;;  %p163_p3 = scmp.lt.s32.totalorder (!%p139_p2), %s2219_s18, 255  ;;  %vm645_vm2 = vcmask (!%p139_p2), 220160  }
   0x7   : > { %3062 = vmatpush3.bf16.msra.mxu0 (!%p139_p2), %v3206_v0  ;;  %3195 = vmatpush3.bf16.msra.mxu1 (!%p139_p2), %v3206_v0  ;;  %v840_v3 = vsel (!%p139_p2), %vm838_vm0, 4294967295, %v3280_v2 }
   0x8   : > { %v841_v4 = vsel (!%p139_p2), %vm839_vm1, %v840_v3, 0 }
   0x9   : > { %v843_v5 = vand.u32 (!%p139_p2), %v3207_v1, %v841_v4 }
   0xb   : > { %3063 = vmatprep.subr.bf16.mxu0 (!%p139_p2), %v843_v5  ;;  %3194 = vmatprep.subr.bf16.mxu1 (!%p139_p2), %v843_v5 }
   0xc   : > { %3064 = vmatpush3.bf16.msra.mxu0 (!%p139_p2), %v843_v5  ;;  %3196 = vmatpush3.bf16.msra.mxu1 (!%p139_p2), %v843_v5 }
   0xd   : > { %s3665_s18 = smov (!%p163_p3, %s2219_s18), 255 }
   0xe   : > { %s2220_s19 = sshll.u32 %s3665_s18, 2 }
   0xf   : > { %s3323_s22 = scalar_lea.vmem %s3660_s0, %s2220_s19  ;;  %s3471_s27 = scalar_lea.vmem %s3663_s3, %s2220_s19 }
  0x10   : > { %v3208_v6 = vld [vmem:[%s3323_s22] sm:$0xff]   ;;  %v3210_v8 = vld [vmem:[%s3323_s22 + $0x8] sm:$0xff]   ;;  %v3212_v10 = vld [vmem:[%s3323_s22 + $0x10] sm:$0xff]  }
  0x11   : > { %v3209_v7 = vld [vmem:[%s3323_s22 + $0x100] sm:$0xff]   ;;  %3065 = vmatprep.mubr.msk.bf16.mxu0 %vm645_vm2, %v3208_v6  ;;  %v3211_v9 = vld [vmem:[%s3323_s22 + $0x108] sm:$0xff]   ;;  %v3213_v11 = vld [vmem:[%s3323_s22 + $0x110] sm:$0xff]  }
  0x12   : > { %3129 = vmatprep.mubr.msk.bf16.mxu1 %vm645_vm2, %v3209_v7  ;;  %3066 = vmatmul.mubr.msk.bf16.vlgmr.msra.gmra.mrb[0].mxu0 %vm645_vm2, %v3210_v8  ;;  %v3214_v12 = vld [vmem:[%s3323_s22 + $0x18] sm:$0xff]   ;;  %v3216_v14 = vld [vmem:[%s3323_s22 + $0x20] sm:$0xff]   ;;  %v3218_v16 = vld [vmem:[%s3323_s22 + $0x28] sm:$0xff]  }
  0x13   : > { %3130 = vmatmul.mubr.msk.bf16.vlgmr.msra.gmra.mrb[0].mxu1 %vm645_vm2, %v3211_v9  ;;  %3069 = vmatprep.mubr.msk.bf16.mxu0 %vm645_vm2, %v3212_v10  ;;  %v3215_v13 = vld [vmem:[%s3323_s22 + $0x118] sm:$0xff]   ;;  %v3217_v15 = vld [vmem:[%s3323_s22 + $0x120] sm:$0xff]   ;;  %v3219_v17 = vld [vmem:[%s3323_s22 + $0x128] sm:$0xff]  }
  0x14   : > { %3133 = vmatprep.mubr.msk.bf16.mxu1 %vm645_vm2, %v3213_v11  ;;  %v3220_v18 = vld [vmem:[%s3323_s22 + $0x30] sm:$0xff]   ;;  %v3222_v20 = vld [vmem:[%s3323_s22 + $0x38] sm:$0xff]   ;;  %v3224_v22 = vld [vmem:[%s3323_s22 + $0x40] sm:$0xff]  }
  0x15   : > { %v3221_v19 = vld [vmem:[%s3323_s22 + $0x130] sm:$0xff]   ;;  %v3223_v21 = vld [vmem:[%s3323_s22 + $0x138] sm:$0xff]   ;;  %v3225_v23 = vld [vmem:[%s3323_s22 + $0x140] sm:$0xff]  }
  0x16   : > { %v3226_v24 = vld [vmem:[%s3323_s22 + $0x48] sm:$0xff]   ;;  %v3228_v26 = vld [vmem:[%s3323_s22 + $0x50] sm:$0xff]   ;;  %v3230_v28 = vld [vmem:[%s3323_s22 + $0x58] sm:$0xff]  }
  0x17   : > { %v3227_v25 = vld [vmem:[%s3323_s22 + $0x148] sm:$0xff]   ;;  %v3229_v27 = vld [vmem:[%s3323_s22 + $0x150] sm:$0xff]   ;;  %v3231_v29 = vld [vmem:[%s3323_s22 + $0x158] sm:$0xff]  }
  0x18   : > { %v3232_v30 = vld [vmem:[%s3323_s22 + $0x60] sm:$0xff]   ;;  %v3234_v32 = vld [vmem:[%s3323_s22 + $0x68] sm:$0xff]   ;;  %v3236_v34 = vld [vmem:[%s3323_s22 + $0x70] sm:$0xff]  }
  0x19   : > { %v3233_v31 = vld [vmem:[%s3323_s22 + $0x160] sm:$0xff]   ;;  %v3235_v33 = vld [vmem:[%s3323_s22 + $0x168] sm:$0xff]   ;;  %v3237_v35 = vld [vmem:[%s3323_s22 + $0x170] sm:$0xff]  }
  0x1a   : > { %3070 = vmatmul.mubr.msk.bf16.gmra.mrb[4].mxu0 %vm645_vm2, %v3214_v12  ;;  %v3238_v36 = vld [vmem:[%s3323_s22 + $0x78] sm:$0xff]   ;;  %v3240_v38 = vld [vmem:[%s3323_s22 + $0x80] sm:$0xff]   ;;  %v3242_v40 = vld [vmem:[%s3323_s22 + $0x88] sm:$0xff]  }
  0x1b   : > { %3134 = vmatmul.mubr.msk.bf16.gmra.mrb[4].mxu1 %vm645_vm2, %v3215_v13  ;;  %3073 = vmatprep.mubr.msk.bf16.mxu0 %vm645_vm2, %v3216_v14  ;;  %v3239_v37 = vld [vmem:[%s3323_s22 + $0x178] sm:$0xff]   ;;  %v3241_v39 = vld [vmem:[%s3323_s22 + $0x180] sm:$0xff]   ;;  %v3243_v41 = vld [vmem:[%s3323_s22 + $0x188] sm:$0xff]  }
  0x1c   : > { %3137 = vmatprep.mubr.msk.bf16.mxu1 %vm645_vm2, %v3217_v15  ;;  %v3244_v42 = vld [vmem:[%s3323_s22 + $0x90] sm:$0xff]   ;;  %v3246_v44 = vld [vmem:[%s3323_s22 + $0x98] sm:$0xff]   ;;  %v3248_v46 = vld [vmem:[%s3323_s22 + $0xa0] sm:$0xff]  }
  0x1d   : > { %v3245_v43 = vld [vmem:[%s3323_s22 + $0x190] sm:$0xff]   ;;  %v3247_v45 = vld [vmem:[%s3323_s22 + $0x198] sm:$0xff]   ;;  %v3249_v47 = vld [vmem:[%s3323_s22 + $0x1a0] sm:$0xff]  }
  0x1e   : > { %v3250_v48 = vld [vmem:[%s3323_s22 + $0xa8] sm:$0xff]   ;;  %v3252_v50 = vld [vmem:[%s3323_s22 + $0xb0] sm:$0xff]   ;;  %v3254_v52 = vld [vmem:[%s3323_s22 + $0xb8] sm:$0xff]  }
  0x1f   : > { %v3251_v49 = vld [vmem:[%s3323_s22 + $0x1a8] sm:$0xff]   ;;  %v3253_v51 = vld [vmem:[%s3323_s22 + $0x1b0] sm:$0xff]   ;;  %v3255_v53 = vld [vmem:[%s3323_s22 + $0x1b8] sm:$0xff]  }
  0x20   : > { %v3256_v54 = vld [vmem:[%s3323_s22 + $0xc0] sm:$0xff]   ;;  %v3258_v56 = vld [vmem:[%s3323_s22 + $0xc8] sm:$0xff]   ;;  %v3260_v58 = vld [vmem:[%s3323_s22 + $0xd0] sm:$0xff]  }
  0x21   : > { %v3257_v55 = vld [vmem:[%s3323_s22 + $0x1c0] sm:$0xff]   ;;  %v3259_v57 = vld [vmem:[%s3323_s22 + $0x1c8] sm:$0xff]   ;;  %v3261_v59 = vld [vmem:[%s3323_s22 + $0x1d0] sm:$0xff]  }
  0x22   : > { %3074 = vmatmul.mubr.msk.bf16.gmra.mrb[8].mxu0 %vm645_vm2, %v3218_v16  ;;  %v3262_v60 = vld [vmem:[%s3323_s22 + $0xd8] sm:$0xff]   ;;  %v3264_v62 = vld [vmem:[%s3323_s22 + $0xe0] sm:$0xff]   ;;  %v3266_v0 = vld [vmem:[%s3323_s22 + $0xe8] sm:$0xff]  }
  0x23   : > { %3138 = vmatmul.mubr.msk.bf16.gmra.mrb[8].mxu1 %vm645_vm2, %v3219_v17  ;;  %3077 = vmatprep.mubr.msk.bf16.mxu0 %vm645_vm2, %v3220_v18  ;;  %v3263_v61 = vld [vmem:[%s3323_s22 + $0x1d8] sm:$0xff]   ;;  %v3265_v63 = vld [vmem:[%s3323_s22 + $0x1e0] sm:$0xff]   ;;  %v3267_v1 = vld [vmem:[%s3323_s22 + $0x1e8] sm:$0xff]  }
  0x24   : > { %3141 = vmatprep.mubr.msk.bf16.mxu1 %vm645_vm2, %v3221_v19  ;;  %v3268_v2 = vld [vmem:[%s3323_s22 + $0xf0] sm:$0xff]   ;;  %v3270_v4 = vld [vmem:[%s3323_s22 + $0xf8] sm:$0xff]   ;;  %v3456_v6 = vld [vmem:[%s3662_s2] ss:$0 sm:$0xff] }
  0x25   : > { %v3269_v3 = vld [vmem:[%s3323_s22 + $0x1f0] sm:$0xff]   ;;  %v3271_v5 = vld [vmem:[%s3323_s22 + $0x1f8] sm:$0xff]  }
  0x2a   : > { %3078 = vmatmul.mubr.msk.bf16.gmra.mrb[12].mxu0 %vm645_vm2, %v3222_v20 }
  0x2b   : > { %3142 = vmatmul.mubr.msk.bf16.gmra.mrb[12].mxu1 %vm645_vm2, %v3223_v21  ;;  %3081 = vmatprep.mubr.msk.bf16.mxu0 %vm645_vm2, %v3224_v22 }
  0x2c   : > { %3145 = vmatprep.mubr.msk.bf16.mxu1 %vm645_vm2, %v3225_v23 }
  0x32   : > { %3082 = vmatmul.mubr.msk.bf16.gmra.mrb[16].mxu0 %vm645_vm2, %v3226_v24 }
  0x33   : > { %3146 = vmatmul.mubr.msk.bf16.gmra.mrb[16].mxu1 %vm645_vm2, %v3227_v25  ;;  %3085 = vmatprep.mubr.msk.bf16.mxu0 %vm645_vm2, %v3228_v26 }
  0x34   : > { %3149 = vmatprep.mubr.msk.bf16.mxu1 %vm645_vm2, %v3229_v27 }
  0x3a   : > { %3086 = vmatmul.mubr.msk.bf16.gmra.mrb[20].mxu0 %vm645_vm2, %v3230_v28 }
  0x3b   : > { %3150 = vmatmul.mubr.msk.bf16.gmra.mrb[20].mxu1 %vm645_vm2, %v3231_v29  ;;  %3089 = vmatprep.mubr.msk.bf16.mxu0 %vm645_vm2, %v3232_v30 }
  0x3c   : > { %3153 = vmatprep.mubr.msk.bf16.mxu1 %vm645_vm2, %v3233_v31 }
  0x42   : > { %3090 = vmatmul.mubr.msk.bf16.gmra.mrb[24].mxu0 %vm645_vm2, %v3234_v32 }
  0x43   : > { %3154 = vmatmul.mubr.msk.bf16.gmra.mrb[24].mxu1 %vm645_vm2, %v3235_v33  ;;  %3093 = vmatprep.mubr.msk.bf16.mxu0 %vm645_vm2, %v3236_v34 }
  0x44   : > { %3157 = vmatprep.mubr.msk.bf16.mxu1 %vm645_vm2, %v3237_v35 }
  0x4a   : > { %3094 = vmatmul.mubr.msk.bf16.gmra.mrb[28].mxu0 %vm645_vm2, %v3238_v36 }
  0x4b   : > { %3158 = vmatmul.mubr.msk.bf16.gmra.mrb[28].mxu1 %vm645_vm2, %v3239_v37  ;;  %3097 = vmatprep.mubr.msk.bf16.mxu0 %vm645_vm2, %v3240_v38 }
  0x4c   : > { %3161 = vmatprep.mubr.msk.bf16.mxu1 %vm645_vm2, %v3241_v39 }
  0x52   : > { %3098 = vmatmul.mubr.msk.bf16.gmra.mrb[32].mxu0 %vm645_vm2, %v3242_v40 }
  0x53   : > { %3162 = vmatmul.mubr.msk.bf16.gmra.mrb[32].mxu1 %vm645_vm2, %v3243_v41  ;;  %3101 = vmatprep.mubr.msk.bf16.mxu0 %vm645_vm2, %v3244_v42 }
  0x54   : > { %3165 = vmatprep.mubr.msk.bf16.mxu1 %vm645_vm2, %v3245_v43 }
  0x5a   : > { %3102 = vmatmul.mubr.msk.bf16.gmra.mrb[36].mxu0 %vm645_vm2, %v3246_v44 }
  0x5b   : > { %3166 = vmatmul.mubr.msk.bf16.gmra.mrb[36].mxu1 %vm645_vm2, %v3247_v45  ;;  %3105 = vmatprep.mubr.msk.bf16.mxu0 %vm645_vm2, %v3248_v46 }
  0x5c   : > { %3169 = vmatprep.mubr.msk.bf16.mxu1 %vm645_vm2, %v3249_v47 }
  0x62   : > { %3106 = vmatmul.mubr.msk.bf16.gmra.mrb[40].mxu0 %vm645_vm2, %v3250_v48 }
  0x63   : > { %3170 = vmatmul.mubr.msk.bf16.gmra.mrb[40].mxu1 %vm645_vm2, %v3251_v49  ;;  %3109 = vmatprep.mubr.msk.bf16.mxu0 %vm645_vm2, %v3252_v50 }
  0x64   : > { %3173 = vmatprep.mubr.msk.bf16.mxu1 %vm645_vm2, %v3253_v51 }
  0x6a   : > { %3110 = vmatmul.mubr.msk.bf16.gmra.mrb[44].mxu0 %vm645_vm2, %v3254_v52 }
  0x6b   : > { %3174 = vmatmul.mubr.msk.bf16.gmra.mrb[44].mxu1 %vm645_vm2, %v3255_v53  ;;  %3113 = vmatprep.mubr.msk.bf16.mxu0 %vm645_vm2, %v3256_v54 }
  0x6c   : > { %3177 = vmatprep.mubr.msk.bf16.mxu1 %vm645_vm2, %v3257_v55 }
  0x72   : > { %3114 = vmatmul.mubr.msk.bf16.gmra.mrb[48].mxu0 %vm645_vm2, %v3258_v56 }
  0x73   : > { %3178 = vmatmul.mubr.msk.bf16.gmra.mrb[48].mxu1 %vm645_vm2, %v3259_v57  ;;  %3117 = vmatprep.mubr.msk.bf16.mxu0 %vm645_vm2, %v3260_v58 }
  0x74   : > { %3181 = vmatprep.mubr.msk.bf16.mxu1 %vm645_vm2, %v3261_v59 }
  0x7a   : > { %3118 = vmatmul.mubr.msk.bf16.gmra.mrb[52].mxu0 %vm645_vm2, %v3262_v60 }
  0x7b   : > { %3182 = vmatmul.mubr.msk.bf16.gmra.mrb[52].mxu1 %vm645_vm2, %v3263_v61  ;;  %3121 = vmatprep.mubr.msk.bf16.mxu0 %vm645_vm2, %v3264_v62 }
  0x7c   : > { %3185 = vmatprep.mubr.msk.bf16.mxu1 %vm645_vm2, %v3265_v63 }
  0x82   : > { %3122 = vmatmul.mubr.msk.bf16.gmra.mrb[56].mxu0 %vm645_vm2, %v3266_v0 }
  0x83   : > { %3186 = vmatmul.mubr.msk.bf16.gmra.mrb[56].mxu1 %vm645_vm2, %v3267_v1  ;;  %3125 = vmatprep.mubr.msk.bf16.mxu0 %vm645_vm2, %v3268_v2 }
  0x84   : > { %3189 = vmatprep.mubr.msk.bf16.mxu1 %vm645_vm2, %v3269_v3 }
  0x8a   : > { %3126 = vmatmul.mubr.msk.bf16.gmra.mrb[60].mxu0 %vm645_vm2, %v3270_v4 }
  0x8b   : > { %3190 = vmatmul.mubr.msk.bf16.gmra.mrb[60].mxu1 %vm645_vm2, %v3271_v5 }
  0xe5   : > { %v3067_v7 = vpop.f32.mrb[0].mxu0 }
  0xe6   : > { %v888_v8 = vadd.f32 %v3067_v7, %v3456_v6  ;;  %v3131_v9 = vpop.f32.mrb[0].mxu1  ;;  %v879_v10 = vpop.f32.mrb[1].mxu0 }
  0xe7   : > { %v1144_v11 = vadd.f32 %v3131_v9, %v3456_v6  ;;  %v880_v12 = vadd.f32 %v3456_v6, %v879_v10  ;;  %v1135_v13 = vpop.f32.mrb[1].mxu1  ;;  %v3068_v14 = vpop.f32.mrb[2].mxu0 }
  0xe8   : > { %v1136_v15 = vadd.f32 %v3456_v6, %v1135_v13  ;;  %v891_v16 = vadd.f32 %v3068_v14, %v3456_v6  ;;  %v3132_v17 = vpop.f32.mrb[2].mxu1  ;;  %v882_v18 = vpop.f32.mrb[3].mxu0  ;;  %v1392_v22 = vmax.f32 %v888_v8, 0.0 }
  0xe9   : > { %v1147_v19 = vadd.f32 %v3132_v17, %v3456_v6  ;;  %v883_v20 = vadd.f32 %v3456_v6, %v882_v18  ;;  %v1138_v21 = vpop.f32.mrb[3].mxu1  ;;  %v1456_v25 = vmax.f32 %v1144_v11, 0.0  ;;  %v1390_v26 = vmax.f32 %v880_v12, 0.0 }
  0xea   : > { %v1393_v23 = vmax.f32 %v891_v16, 0.0  ;;  %v1139_v24 = vadd.f32 %v3456_v6, %v1138_v21  ;;  %v1454_v29 = vmax.f32 %v1136_v15, 0.0 }
  0xeb   : > { %v1457_v27 = vmax.f32 %v1147_v19, 0.0  ;;  %v1391_v28 = vmax.f32 %v883_v20, 0.0 }
  0xec   : > { %v2620_v30 = vpack.c.bf16 %v1393_v23, %v1392_v22  ;;  %v1455_v31 = vmax.f32 %v1139_v24, 0.0 }
  0xed   : > { %v2780_v32 = vpack.c.bf16 %v1457_v27, %v1456_v25  ;;  %v2615_v33 = vpack.c.bf16 %v1391_v28, %v1390_v26  ;;  %v3071_v34 = vpop.f32.mrb[4].mxu0 }
  0xee   : > { %2932 = vst [vmem:[%s3471_s27 + $0x8] sm:$0xff] %v2620_v30   ;;  %v2775_v35 = vpack.c.bf16 %v1455_v31, %v1454_v29  ;;  %v904_v36 = vadd.f32 %v3071_v34, %v3456_v6  ;;  %v3135_v37 = vpop.f32.mrb[4].mxu1  ;;  %v895_v38 = vpop.f32.mrb[5].mxu0 }
  0xef   : > { %2964 = vst [vmem:[%s3471_s27 + $0x108] sm:$0xff] %v2780_v32   ;;  %2616 = vst [vmem:[%s3471_s27] sm:$0xff] %v2615_v33   ;;  %v1160_v39 = vadd.f32 %v3135_v37, %v3456_v6  ;;  %v896_v40 = vadd.f32 %v3456_v6, %v895_v38  ;;  %v1151_v41 = vpop.f32.mrb[5].mxu1  ;;  %v3072_v42 = vpop.f32.mrb[6].mxu0 }
  0xf0   : > { %2963 = vst [vmem:[%s3471_s27 + $0x100] sm:$0xff] %v2775_v35   ;;  %v1152_v43 = vadd.f32 %v3456_v6, %v1151_v41  ;;  %v907_v44 = vadd.f32 %v3072_v42, %v3456_v6  ;;  %v3136_v45 = vpop.f32.mrb[6].mxu1  ;;  %v898_v46 = vpop.f32.mrb[7].mxu0  ;;  %v1396_v50 = vmax.f32 %v904_v36, 0.0 }
  0xf1   : > { %v1163_v47 = vadd.f32 %v3136_v45, %v3456_v6  ;;  %v899_v48 = vadd.f32 %v3456_v6, %v898_v46  ;;  %v1154_v49 = vpop.f32.mrb[7].mxu1  ;;  %v1460_v53 = vmax.f32 %v1160_v39, 0.0  ;;  %v1394_v54 = vmax.f32 %v896_v40, 0.0 }
  0xf2   : > { %v1397_v51 = vmax.f32 %v907_v44, 0.0  ;;  %v1155_v52 = vadd.f32 %v3456_v6, %v1154_v49  ;;  %v1458_v57 = vmax.f32 %v1152_v43, 0.0 }
  0xf3   : > { %v1461_v55 = vmax.f32 %v1163_v47, 0.0  ;;  %v1395_v56 = vmax.f32 %v899_v48, 0.0 }
  0xf4   : > { %v2630_v58 = vpack.c.bf16 %v1397_v51, %v1396_v50  ;;  %v1459_v59 = vmax.f32 %v1155_v52, 0.0 }
  0xf5   : > { %v2790_v60 = vpack.c.bf16 %v1461_v55, %v1460_v53  ;;  %v2625_v61 = vpack.c.bf16 %v1395_v56, %v1394_v54  ;;  %v3075_v62 = vpop.f32.mrb[8].mxu0 }
  0xf6   : > { %2934 = vst [vmem:[%s3471_s27 + $0x18] sm:$0xff] %v2630_v58   ;;  %v2785_v63 = vpack.c.bf16 %v1459_v59, %v1458_v57  ;;  %v920_v0 = vadd.f32 %v3075_v62, %v3456_v6  ;;  %v3139_v1 = vpop.f32.mrb[8].mxu1  ;;  %v911_v2 = vpop.f32.mrb[9].mxu0 }
  0xf7   : > { %2966 = vst [vmem:[%s3471_s27 + $0x118] sm:$0xff] %v2790_v60   ;;  %2933 = vst [vmem:[%s3471_s27 + $0x10] sm:$0xff] %v2625_v61   ;;  %v1176_v3 = vadd.f32 %v3139_v1, %v3456_v6  ;;  %v912_v4 = vadd.f32 %v3456_v6, %v911_v2  ;;  %v1167_v5 = vpop.f32.mrb[9].mxu1  ;;  %v3076_v7 = vpop.f32.mrb[10].mxu0 }
  0xf8   : > { %2965 = vst [vmem:[%s3471_s27 + $0x110] sm:$0xff] %v2785_v63   ;;  %v1168_v8 = vadd.f32 %v3456_v6, %v1167_v5  ;;  %v923_v9 = vadd.f32 %v3076_v7, %v3456_v6  ;;  %v3140_v10 = vpop.f32.mrb[10].mxu1  ;;  %v914_v11 = vpop.f32.mrb[11].mxu0  ;;  %v1400_v15 = vmax.f32 %v920_v0, 0.0 }
  0xf9   : > { %v1179_v12 = vadd.f32 %v3140_v10, %v3456_v6  ;;  %v915_v13 = vadd.f32 %v3456_v6, %v914_v11  ;;  %v1170_v14 = vpop.f32.mrb[11].mxu1  ;;  %v1464_v18 = vmax.f32 %v1176_v3, 0.0  ;;  %v1398_v19 = vmax.f32 %v912_v4, 0.0 }
  0xfa   : > { %v1401_v16 = vmax.f32 %v923_v9, 0.0  ;;  %v1171_v17 = vadd.f32 %v3456_v6, %v1170_v14  ;;  %v1462_v22 = vmax.f32 %v1168_v8, 0.0 }
  0xfb   : > { %v1465_v20 = vmax.f32 %v1179_v12, 0.0  ;;  %v1399_v21 = vmax.f32 %v915_v13, 0.0 }
  0xfc   : > { %v2640_v23 = vpack.c.bf16 %v1401_v16, %v1400_v15  ;;  %v1463_v24 = vmax.f32 %v1171_v17, 0.0 }
  0xfd   : > { %v2800_v25 = vpack.c.bf16 %v1465_v20, %v1464_v18  ;;  %v2635_v26 = vpack.c.bf16 %v1399_v21, %v1398_v19  ;;  %v3079_v27 = vpop.f32.mrb[12].mxu0 }
  0xfe   : > { %2936 = vst [vmem:[%s3471_s27 + $0x28] sm:$0xff] %v2640_v23   ;;  %v2795_v28 = vpack.c.bf16 %v1463_v24, %v1462_v22  ;;  %v936_v29 = vadd.f32 %v3079_v27, %v3456_v6  ;;  %v3143_v30 = vpop.f32.mrb[12].mxu1  ;;  %v927_v31 = vpop.f32.mrb[13].mxu0 }
  0xff   : > { %2968 = vst [vmem:[%s3471_s27 + $0x128] sm:$0xff] %v2800_v25   ;;  %2935 = vst [vmem:[%s3471_s27 + $0x20] sm:$0xff] %v2635_v26   ;;  %v1192_v32 = vadd.f32 %v3143_v30, %v3456_v6  ;;  %v928_v33 = vadd.f32 %v3456_v6, %v927_v31  ;;  %v1183_v34 = vpop.f32.mrb[13].mxu1  ;;  %v3080_v35 = vpop.f32.mrb[14].mxu0 }
 0x100   : > { %2967 = vst [vmem:[%s3471_s27 + $0x120] sm:$0xff] %v2795_v28   ;;  %v1184_v36 = vadd.f32 %v3456_v6, %v1183_v34  ;;  %v939_v37 = vadd.f32 %v3080_v35, %v3456_v6  ;;  %v3144_v38 = vpop.f32.mrb[14].mxu1  ;;  %v930_v39 = vpop.f32.mrb[15].mxu0  ;;  %v1404_v43 = vmax.f32 %v936_v29, 0.0 }
 0x101   : > { %v1195_v40 = vadd.f32 %v3144_v38, %v3456_v6  ;;  %v931_v41 = vadd.f32 %v3456_v6, %v930_v39  ;;  %v1186_v42 = vpop.f32.mrb[15].mxu1  ;;  %v1468_v46 = vmax.f32 %v1192_v32, 0.0  ;;  %v1402_v47 = vmax.f32 %v928_v33, 0.0 }
 0x102   : > { %v1405_v44 = vmax.f32 %v939_v37, 0.0  ;;  %v1187_v45 = vadd.f32 %v3456_v6, %v1186_v42  ;;  %v1466_v50 = vmax.f32 %v1184_v36, 0.0 }
 0x103   : > { %v1469_v48 = vmax.f32 %v1195_v40, 0.0  ;;  %v1403_v49 = vmax.f32 %v931_v41, 0.0 }
 0x104   : > { %v2650_v51 = vpack.c.bf16 %v1405_v44, %v1404_v43  ;;  %v1467_v52 = vmax.f32 %v1187_v45, 0.0 }
 0x105   : > { %v2810_v53 = vpack.c.bf16 %v1469_v48, %v1468_v46  ;;  %v2645_v54 = vpack.c.bf16 %v1403_v49, %v1402_v47  ;;  %v3083_v55 = vpop.f32.mrb[16].mxu0 }
 0x106   : > { %2938 = vst [vmem:[%s3471_s27 + $0x38] sm:$0xff] %v2650_v51   ;;  %v2805_v56 = vpack.c.bf16 %v1467_v52, %v1466_v50  ;;  %v952_v57 = vadd.f32 %v3083_v55, %v3456_v6  ;;  %v3147_v58 = vpop.f32.mrb[16].mxu1  ;;  %v943_v59 = vpop.f32.mrb[17].mxu0 }
 0x107   : > { %2970 = vst [vmem:[%s3471_s27 + $0x138] sm:$0xff] %v2810_v53   ;;  %2937 = vst [vmem:[%s3471_s27 + $0x30] sm:$0xff] %v2645_v54   ;;  %v1208_v60 = vadd.f32 %v3147_v58, %v3456_v6  ;;  %v944_v61 = vadd.f32 %v3456_v6, %v943_v59  ;;  %v1199_v62 = vpop.f32.mrb[17].mxu1  ;;  %v3084_v63 = vpop.f32.mrb[18].mxu0 }
 0x108   : > { %2969 = vst [vmem:[%s3471_s27 + $0x130] sm:$0xff] %v2805_v56   ;;  %v1200_v0 = vadd.f32 %v3456_v6, %v1199_v62  ;;  %v955_v1 = vadd.f32 %v3084_v63, %v3456_v6  ;;  %v3148_v2 = vpop.f32.mrb[18].mxu1  ;;  %v946_v3 = vpop.f32.mrb[19].mxu0  ;;  %v1408_v8 = vmax.f32 %v952_v57, 0.0 }
 0x109   : > { %v1211_v4 = vadd.f32 %v3148_v2, %v3456_v6  ;;  %v947_v5 = vadd.f32 %v3456_v6, %v946_v3  ;;  %v1202_v7 = vpop.f32.mrb[19].mxu1  ;;  %v1472_v11 = vmax.f32 %v1208_v60, 0.0  ;;  %v1406_v12 = vmax.f32 %v944_v61, 0.0 }
 0x10a   : > { %v1409_v9 = vmax.f32 %v955_v1, 0.0  ;;  %v1203_v10 = vadd.f32 %v3456_v6, %v1202_v7  ;;  %v1470_v15 = vmax.f32 %v1200_v0, 0.0 }
 0x10b   : > { %v1473_v13 = vmax.f32 %v1211_v4, 0.0  ;;  %v1407_v14 = vmax.f32 %v947_v5, 0.0 }
 0x10c   : > { %v2660_v16 = vpack.c.bf16 %v1409_v9, %v1408_v8  ;;  %v1471_v17 = vmax.f32 %v1203_v10, 0.0 }
 0x10d   : > { %v2820_v18 = vpack.c.bf16 %v1473_v13, %v1472_v11  ;;  %v2655_v19 = vpack.c.bf16 %v1407_v14, %v1406_v12  ;;  %v3087_v20 = vpop.f32.mrb[20].mxu0 }
 0x10e   : > { %2940 = vst [vmem:[%s3471_s27 + $0x48] sm:$0xff] %v2660_v16   ;;  %v2815_v21 = vpack.c.bf16 %v1471_v17, %v1470_v15  ;;  %v968_v22 = vadd.f32 %v3087_v20, %v3456_v6  ;;  %v3151_v23 = vpop.f32.mrb[20].mxu1  ;;  %v959_v24 = vpop.f32.mrb[21].mxu0 }
 0x10f   : > { %2972 = vst [vmem:[%s3471_s27 + $0x148] sm:$0xff] %v2820_v18   ;;  %2939 = vst [vmem:[%s3471_s27 + $0x40] sm:$0xff] %v2655_v19   ;;  %v1224_v25 = vadd.f32 %v3151_v23, %v3456_v6  ;;  %v960_v26 = vadd.f32 %v3456_v6, %v959_v24  ;;  %v1215_v27 = vpop.f32.mrb[21].mxu1  ;;  %v3088_v28 = vpop.f32.mrb[22].mxu0 }
 0x110   : > { %2971 = vst [vmem:[%s3471_s27 + $0x140] sm:$0xff] %v2815_v21   ;;  %v1216_v29 = vadd.f32 %v3456_v6, %v1215_v27  ;;  %v971_v30 = vadd.f32 %v3088_v28, %v3456_v6  ;;  %v3152_v31 = vpop.f32.mrb[22].mxu1  ;;  %v962_v32 = vpop.f32.mrb[23].mxu0  ;;  %v1412_v36 = vmax.f32 %v968_v22, 0.0 }
 0x111   : > { %v1227_v33 = vadd.f32 %v3152_v31, %v3456_v6  ;;  %v963_v34 = vadd.f32 %v3456_v6, %v962_v32  ;;  %v1218_v35 = vpop.f32.mrb[23].mxu1  ;;  %v1476_v39 = vmax.f32 %v1224_v25, 0.0  ;;  %v1410_v40 = vmax.f32 %v960_v26, 0.0 }
 0x112   : > { %v1413_v37 = vmax.f32 %v971_v30, 0.0  ;;  %v1219_v38 = vadd.f32 %v3456_v6, %v1218_v35  ;;  %v1474_v43 = vmax.f32 %v1216_v29, 0.0 }
 0x113   : > { %v1477_v41 = vmax.f32 %v1227_v33, 0.0  ;;  %v1411_v42 = vmax.f32 %v963_v34, 0.0 }
 0x114   : > { %v2670_v44 = vpack.c.bf16 %v1413_v37, %v1412_v36  ;;  %v1475_v45 = vmax.f32 %v1219_v38, 0.0 }
 0x115   : > { %v2830_v46 = vpack.c.bf16 %v1477_v41, %v1476_v39  ;;  %v2665_v47 = vpack.c.bf16 %v1411_v42, %v1410_v40  ;;  %v3091_v48 = vpop.f32.mrb[24].mxu0 }
 0x116   : > { %2942 = vst [vmem:[%s3471_s27 + $0x58] sm:$0xff] %v2670_v44   ;;  %v2825_v49 = vpack.c.bf16 %v1475_v45, %v1474_v43  ;;  %v984_v50 = vadd.f32 %v3091_v48, %v3456_v6  ;;  %v3155_v51 = vpop.f32.mrb[24].mxu1  ;;  %v975_v52 = vpop.f32.mrb[25].mxu0 }
 0x117   : > { %2974 = vst [vmem:[%s3471_s27 + $0x158] sm:$0xff] %v2830_v46   ;;  %2941 = vst [vmem:[%s3471_s27 + $0x50] sm:$0xff] %v2665_v47   ;;  %v1240_v53 = vadd.f32 %v3155_v51, %v3456_v6  ;;  %v976_v54 = vadd.f32 %v3456_v6, %v975_v52  ;;  %v1231_v55 = vpop.f32.mrb[25].mxu1  ;;  %v3092_v56 = vpop.f32.mrb[26].mxu0 }
 0x118   : > { %2973 = vst [vmem:[%s3471_s27 + $0x150] sm:$0xff] %v2825_v49   ;;  %v1232_v57 = vadd.f32 %v3456_v6, %v1231_v55  ;;  %v987_v58 = vadd.f32 %v3092_v56, %v3456_v6  ;;  %v3156_v59 = vpop.f32.mrb[26].mxu1  ;;  %v978_v60 = vpop.f32.mrb[27].mxu0  ;;  %v1416_v0 = vmax.f32 %v984_v50, 0.0 }
 0x119   : > { %v1243_v61 = vadd.f32 %v3156_v59, %v3456_v6  ;;  %v979_v62 = vadd.f32 %v3456_v6, %v978_v60  ;;  %v1234_v63 = vpop.f32.mrb[27].mxu1  ;;  %v1480_v3 = vmax.f32 %v1240_v53, 0.0  ;;  %v1414_v4 = vmax.f32 %v976_v54, 0.0 }
 0x11a   : > { %v1417_v1 = vmax.f32 %v987_v58, 0.0  ;;  %v1235_v2 = vadd.f32 %v3456_v6, %v1234_v63  ;;  %v1478_v8 = vmax.f32 %v1232_v57, 0.0 }
 0x11b   : > { %v1481_v5 = vmax.f32 %v1243_v61, 0.0  ;;  %v1415_v7 = vmax.f32 %v979_v62, 0.0 }
 0x11c   : > { %v2680_v9 = vpack.c.bf16 %v1417_v1, %v1416_v0  ;;  %v1479_v10 = vmax.f32 %v1235_v2, 0.0 }
 0x11d   : > { %v2840_v11 = vpack.c.bf16 %v1481_v5, %v1480_v3  ;;  %v2675_v12 = vpack.c.bf16 %v1415_v7, %v1414_v4  ;;  %v3095_v13 = vpop.f32.mrb[28].mxu0 }
 0x11e   : > { %2944 = vst [vmem:[%s3471_s27 + $0x68] sm:$0xff] %v2680_v9   ;;  %v2835_v14 = vpack.c.bf16 %v1479_v10, %v1478_v8  ;;  %v1000_v15 = vadd.f32 %v3095_v13, %v3456_v6  ;;  %v3159_v16 = vpop.f32.mrb[28].mxu1  ;;  %v991_v17 = vpop.f32.mrb[29].mxu0 }
 0x11f   : > { %2976 = vst [vmem:[%s3471_s27 + $0x168] sm:$0xff] %v2840_v11   ;;  %2943 = vst [vmem:[%s3471_s27 + $0x60] sm:$0xff] %v2675_v12   ;;  %v1256_v18 = vadd.f32 %v3159_v16, %v3456_v6  ;;  %v992_v19 = vadd.f32 %v3456_v6, %v991_v17  ;;  %v1247_v20 = vpop.f32.mrb[29].mxu1  ;;  %v3096_v21 = vpop.f32.mrb[30].mxu0 }
 0x120   : > { %2975 = vst [vmem:[%s3471_s27 + $0x160] sm:$0xff] %v2835_v14   ;;  %v1248_v22 = vadd.f32 %v3456_v6, %v1247_v20  ;;  %v1003_v23 = vadd.f32 %v3096_v21, %v3456_v6  ;;  %v3160_v24 = vpop.f32.mrb[30].mxu1  ;;  %v994_v25 = vpop.f32.mrb[31].mxu0  ;;  %v1420_v29 = vmax.f32 %v1000_v15, 0.0 }
 0x121   : > { %v1259_v26 = vadd.f32 %v3160_v24, %v3456_v6  ;;  %v995_v27 = vadd.f32 %v3456_v6, %v994_v25  ;;  %v1250_v28 = vpop.f32.mrb[31].mxu1  ;;  %v1484_v32 = vmax.f32 %v1256_v18, 0.0  ;;  %v1418_v33 = vmax.f32 %v992_v19, 0.0 }
 0x122   : > { %v1421_v30 = vmax.f32 %v1003_v23, 0.0  ;;  %v1251_v31 = vadd.f32 %v3456_v6, %v1250_v28  ;;  %v1482_v36 = vmax.f32 %v1248_v22, 0.0 }
 0x123   : > { %v1485_v34 = vmax.f32 %v1259_v26, 0.0  ;;  %v1419_v35 = vmax.f32 %v995_v27, 0.0 }
 0x124   : > { %v2690_v37 = vpack.c.bf16 %v1421_v30, %v1420_v29  ;;  %v1483_v38 = vmax.f32 %v1251_v31, 0.0 }
 0x125   : > { %v2850_v39 = vpack.c.bf16 %v1485_v34, %v1484_v32  ;;  %v2685_v40 = vpack.c.bf16 %v1419_v35, %v1418_v33  ;;  %v3099_v41 = vpop.f32.mrb[32].mxu0 }
 0x126   : > { %2946 = vst [vmem:[%s3471_s27 + $0x78] sm:$0xff] %v2690_v37   ;;  %v2845_v42 = vpack.c.bf16 %v1483_v38, %v1482_v36  ;;  %v1016_v43 = vadd.f32 %v3099_v41, %v3456_v6  ;;  %v3163_v44 = vpop.f32.mrb[32].mxu1  ;;  %v1007_v45 = vpop.f32.mrb[33].mxu0 }
 0x127   : > { %2978 = vst [vmem:[%s3471_s27 + $0x178] sm:$0xff] %v2850_v39   ;;  %2945 = vst [vmem:[%s3471_s27 + $0x70] sm:$0xff] %v2685_v40   ;;  %v1272_v46 = vadd.f32 %v3163_v44, %v3456_v6  ;;  %v1008_v47 = vadd.f32 %v3456_v6, %v1007_v45  ;;  %v1263_v48 = vpop.f32.mrb[33].mxu1  ;;  %v3100_v49 = vpop.f32.mrb[34].mxu0 }
 0x128   : > { %2977 = vst [vmem:[%s3471_s27 + $0x170] sm:$0xff] %v2845_v42   ;;  %v1264_v50 = vadd.f32 %v3456_v6, %v1263_v48  ;;  %v1019_v51 = vadd.f32 %v3100_v49, %v3456_v6  ;;  %v3164_v52 = vpop.f32.mrb[34].mxu1  ;;  %v1010_v53 = vpop.f32.mrb[35].mxu0  ;;  %v1424_v57 = vmax.f32 %v1016_v43, 0.0 }
 0x129   : > { %v1275_v54 = vadd.f32 %v3164_v52, %v3456_v6  ;;  %v1011_v55 = vadd.f32 %v3456_v6, %v1010_v53  ;;  %v1266_v56 = vpop.f32.mrb[35].mxu1  ;;  %v1488_v60 = vmax.f32 %v1272_v46, 0.0  ;;  %v1422_v61 = vmax.f32 %v1008_v47, 0.0 }
 0x12a   : > { %v1425_v58 = vmax.f32 %v1019_v51, 0.0  ;;  %v1267_v59 = vadd.f32 %v3456_v6, %v1266_v56  ;;  %v1486_v0 = vmax.f32 %v1264_v50, 0.0 }
 0x12b   : > { %v1489_v62 = vmax.f32 %v1275_v54, 0.0  ;;  %v1423_v63 = vmax.f32 %v1011_v55, 0.0 }
 0x12c   : > { %v2700_v1 = vpack.c.bf16 %v1425_v58, %v1424_v57  ;;  %v1487_v2 = vmax.f32 %v1267_v59, 0.0 }
 0x12d   : > { %v2860_v3 = vpack.c.bf16 %v1489_v62, %v1488_v60  ;;  %v2695_v4 = vpack.c.bf16 %v1423_v63, %v1422_v61  ;;  %v3103_v5 = vpop.f32.mrb[36].mxu0 }
 0x12e   : > { %2948 = vst [vmem:[%s3471_s27 + $0x88] sm:$0xff] %v2700_v1   ;;  %v2855_v7 = vpack.c.bf16 %v1487_v2, %v1486_v0  ;;  %v1032_v8 = vadd.f32 %v3103_v5, %v3456_v6  ;;  %v3167_v9 = vpop.f32.mrb[36].mxu1  ;;  %v1023_v10 = vpop.f32.mrb[37].mxu0 }
 0x12f   : > { %2980 = vst [vmem:[%s3471_s27 + $0x188] sm:$0xff] %v2860_v3   ;;  %2947 = vst [vmem:[%s3471_s27 + $0x80] sm:$0xff] %v2695_v4   ;;  %v1288_v11 = vadd.f32 %v3167_v9, %v3456_v6  ;;  %v1024_v12 = vadd.f32 %v3456_v6, %v1023_v10  ;;  %v1279_v13 = vpop.f32.mrb[37].mxu1  ;;  %v3104_v14 = vpop.f32.mrb[38].mxu0 }
 0x130   : > { %2979 = vst [vmem:[%s3471_s27 + $0x180] sm:$0xff] %v2855_v7   ;;  %v1280_v15 = vadd.f32 %v3456_v6, %v1279_v13  ;;  %v1035_v16 = vadd.f32 %v3104_v14, %v3456_v6  ;;  %v3168_v17 = vpop.f32.mrb[38].mxu1  ;;  %v1026_v18 = vpop.f32.mrb[39].mxu0  ;;  %v1428_v22 = vmax.f32 %v1032_v8, 0.0 }
 0x131   : > { %v1291_v19 = vadd.f32 %v3168_v17, %v3456_v6  ;;  %v1027_v20 = vadd.f32 %v3456_v6, %v1026_v18  ;;  %v1282_v21 = vpop.f32.mrb[39].mxu1  ;;  %v1492_v25 = vmax.f32 %v1288_v11, 0.0  ;;  %v1426_v26 = vmax.f32 %v1024_v12, 0.0 }
 0x132   : > { %v1429_v23 = vmax.f32 %v1035_v16, 0.0  ;;  %v1283_v24 = vadd.f32 %v3456_v6, %v1282_v21  ;;  %v1490_v29 = vmax.f32 %v1280_v15, 0.0 }
 0x133   : > { %v1493_v27 = vmax.f32 %v1291_v19, 0.0  ;;  %v1427_v28 = vmax.f32 %v1027_v20, 0.0 }
 0x134   : > { %v2710_v30 = vpack.c.bf16 %v1429_v23, %v1428_v22  ;;  %v1491_v31 = vmax.f32 %v1283_v24, 0.0 }
 0x135   : > { %v2870_v32 = vpack.c.bf16 %v1493_v27, %v1492_v25  ;;  %v2705_v33 = vpack.c.bf16 %v1427_v28, %v1426_v26  ;;  %v3107_v34 = vpop.f32.mrb[40].mxu0 }
 0x136   : > { %2950 = vst [vmem:[%s3471_s27 + $0x98] sm:$0xff] %v2710_v30   ;;  %v2865_v35 = vpack.c.bf16 %v1491_v31, %v1490_v29  ;;  %v1048_v36 = vadd.f32 %v3107_v34, %v3456_v6  ;;  %v3171_v37 = vpop.f32.mrb[40].mxu1  ;;  %v1039_v38 = vpop.f32.mrb[41].mxu0 }
 0x137   : > { %2982 = vst [vmem:[%s3471_s27 + $0x198] sm:$0xff] %v2870_v32   ;;  %2949 = vst [vmem:[%s3471_s27 + $0x90] sm:$0xff] %v2705_v33   ;;  %v1304_v39 = vadd.f32 %v3171_v37, %v3456_v6  ;;  %v1040_v40 = vadd.f32 %v3456_v6, %v1039_v38  ;;  %v1295_v41 = vpop.f32.mrb[41].mxu1  ;;  %v3108_v42 = vpop.f32.mrb[42].mxu0 }
 0x138   : > { %2981 = vst [vmem:[%s3471_s27 + $0x190] sm:$0xff] %v2865_v35   ;;  %v1296_v43 = vadd.f32 %v3456_v6, %v1295_v41  ;;  %v1051_v44 = vadd.f32 %v3108_v42, %v3456_v6  ;;  %v3172_v45 = vpop.f32.mrb[42].mxu1  ;;  %v1042_v46 = vpop.f32.mrb[43].mxu0  ;;  %v1432_v50 = vmax.f32 %v1048_v36, 0.0 }
 0x139   : > { %v1307_v47 = vadd.f32 %v3172_v45, %v3456_v6  ;;  %v1043_v48 = vadd.f32 %v3456_v6, %v1042_v46  ;;  %v1298_v49 = vpop.f32.mrb[43].mxu1  ;;  %v1496_v53 = vmax.f32 %v1304_v39, 0.0  ;;  %v1430_v54 = vmax.f32 %v1040_v40, 0.0 }
 0x13a   : > { %v1433_v51 = vmax.f32 %v1051_v44, 0.0  ;;  %v1299_v52 = vadd.f32 %v3456_v6, %v1298_v49  ;;  %v1494_v57 = vmax.f32 %v1296_v43, 0.0 }
 0x13b   : > { %v1497_v55 = vmax.f32 %v1307_v47, 0.0  ;;  %v1431_v56 = vmax.f32 %v1043_v48, 0.0 }
 0x13c   : > { %v2720_v58 = vpack.c.bf16 %v1433_v51, %v1432_v50  ;;  %v1495_v59 = vmax.f32 %v1299_v52, 0.0 }
 0x13d   : > { %v2880_v60 = vpack.c.bf16 %v1497_v55, %v1496_v53  ;;  %v2715_v61 = vpack.c.bf16 %v1431_v56, %v1430_v54  ;;  %v3111_v62 = vpop.f32.mrb[44].mxu0 }
 0x13e   : > { %2952 = vst [vmem:[%s3471_s27 + $0xa8] sm:$0xff] %v2720_v58   ;;  %v2875_v63 = vpack.c.bf16 %v1495_v59, %v1494_v57  ;;  %v1064_v0 = vadd.f32 %v3111_v62, %v3456_v6  ;;  %v3175_v1 = vpop.f32.mrb[44].mxu1  ;;  %v1055_v2 = vpop.f32.mrb[45].mxu0 }
 0x13f   : > { %2984 = vst [vmem:[%s3471_s27 + $0x1a8] sm:$0xff] %v2880_v60   ;;  %2951 = vst [vmem:[%s3471_s27 + $0xa0] sm:$0xff] %v2715_v61   ;;  %v1320_v3 = vadd.f32 %v3175_v1, %v3456_v6  ;;  %v1056_v4 = vadd.f32 %v3456_v6, %v1055_v2  ;;  %v1311_v5 = vpop.f32.mrb[45].mxu1  ;;  %v3112_v7 = vpop.f32.mrb[46].mxu0 }
 0x140   : > { %2983 = vst [vmem:[%s3471_s27 + $0x1a0] sm:$0xff] %v2875_v63   ;;  %v1312_v8 = vadd.f32 %v3456_v6, %v1311_v5  ;;  %v1067_v9 = vadd.f32 %v3112_v7, %v3456_v6  ;;  %v3176_v10 = vpop.f32.mrb[46].mxu1  ;;  %v1058_v11 = vpop.f32.mrb[47].mxu0  ;;  %v1436_v15 = vmax.f32 %v1064_v0, 0.0 }
 0x141   : > { %v1323_v12 = vadd.f32 %v3176_v10, %v3456_v6  ;;  %v1059_v13 = vadd.f32 %v3456_v6, %v1058_v11  ;;  %v1314_v14 = vpop.f32.mrb[47].mxu1  ;;  %v1500_v18 = vmax.f32 %v1320_v3, 0.0  ;;  %v1434_v19 = vmax.f32 %v1056_v4, 0.0 }
 0x142   : > { %v1437_v16 = vmax.f32 %v1067_v9, 0.0  ;;  %v1315_v17 = vadd.f32 %v3456_v6, %v1314_v14  ;;  %v1498_v22 = vmax.f32 %v1312_v8, 0.0 }
 0x143   : > { %v1501_v20 = vmax.f32 %v1323_v12, 0.0  ;;  %v1435_v21 = vmax.f32 %v1059_v13, 0.0 }
 0x144   : > { %v2730_v23 = vpack.c.bf16 %v1437_v16, %v1436_v15  ;;  %v1499_v24 = vmax.f32 %v1315_v17, 0.0 }
 0x145   : > { %v2890_v25 = vpack.c.bf16 %v1501_v20, %v1500_v18  ;;  %v2725_v26 = vpack.c.bf16 %v1435_v21, %v1434_v19  ;;  %v3115_v27 = vpop.f32.mrb[48].mxu0 }
 0x146   : > { %2954 = vst [vmem:[%s3471_s27 + $0xb8] sm:$0xff] %v2730_v23   ;;  %v2885_v28 = vpack.c.bf16 %v1499_v24, %v1498_v22  ;;  %v1080_v29 = vadd.f32 %v3115_v27, %v3456_v6  ;;  %v3179_v30 = vpop.f32.mrb[48].mxu1  ;;  %v1071_v31 = vpop.f32.mrb[49].mxu0 }
 0x147   : > { %2986 = vst [vmem:[%s3471_s27 + $0x1b8] sm:$0xff] %v2890_v25   ;;  %2953 = vst [vmem:[%s3471_s27 + $0xb0] sm:$0xff] %v2725_v26   ;;  %v1336_v32 = vadd.f32 %v3179_v30, %v3456_v6  ;;  %v1072_v33 = vadd.f32 %v3456_v6, %v1071_v31  ;;  %v1327_v34 = vpop.f32.mrb[49].mxu1  ;;  %v3116_v35 = vpop.f32.mrb[50].mxu0 }
 0x148   : > { %2985 = vst [vmem:[%s3471_s27 + $0x1b0] sm:$0xff] %v2885_v28   ;;  %v1328_v36 = vadd.f32 %v3456_v6, %v1327_v34  ;;  %v1083_v37 = vadd.f32 %v3116_v35, %v3456_v6  ;;  %v3180_v38 = vpop.f32.mrb[50].mxu1  ;;  %v1074_v39 = vpop.f32.mrb[51].mxu0  ;;  %v1440_v43 = vmax.f32 %v1080_v29, 0.0 }
 0x149   : > { %v1339_v40 = vadd.f32 %v3180_v38, %v3456_v6  ;;  %v1075_v41 = vadd.f32 %v3456_v6, %v1074_v39  ;;  %v1330_v42 = vpop.f32.mrb[51].mxu1  ;;  %v1504_v46 = vmax.f32 %v1336_v32, 0.0  ;;  %v1438_v47 = vmax.f32 %v1072_v33, 0.0 }
 0x14a   : > { %v1441_v44 = vmax.f32 %v1083_v37, 0.0  ;;  %v1331_v45 = vadd.f32 %v3456_v6, %v1330_v42  ;;  %v1502_v50 = vmax.f32 %v1328_v36, 0.0 }
 0x14b   : > { %v1505_v48 = vmax.f32 %v1339_v40, 0.0  ;;  %v1439_v49 = vmax.f32 %v1075_v41, 0.0 }
 0x14c   : > { %v2740_v51 = vpack.c.bf16 %v1441_v44, %v1440_v43  ;;  %v1503_v52 = vmax.f32 %v1331_v45, 0.0 }
 0x14d   : > { %v2900_v53 = vpack.c.bf16 %v1505_v48, %v1504_v46  ;;  %v2735_v54 = vpack.c.bf16 %v1439_v49, %v1438_v47  ;;  %v3119_v55 = vpop.f32.mrb[52].mxu0 }
 0x14e   : > { %2956 = vst [vmem:[%s3471_s27 + $0xc8] sm:$0xff] %v2740_v51   ;;  %v2895_v56 = vpack.c.bf16 %v1503_v52, %v1502_v50  ;;  %v1096_v57 = vadd.f32 %v3119_v55, %v3456_v6  ;;  %v3183_v58 = vpop.f32.mrb[52].mxu1  ;;  %v1087_v59 = vpop.f32.mrb[53].mxu0 }
 0x14f   : > { %2988 = vst [vmem:[%s3471_s27 + $0x1c8] sm:$0xff] %v2900_v53   ;;  %2955 = vst [vmem:[%s3471_s27 + $0xc0] sm:$0xff] %v2735_v54   ;;  %v1352_v60 = vadd.f32 %v3183_v58, %v3456_v6  ;;  %v1088_v61 = vadd.f32 %v3456_v6, %v1087_v59  ;;  %v1343_v62 = vpop.f32.mrb[53].mxu1  ;;  %v3120_v63 = vpop.f32.mrb[54].mxu0 }
 0x150   : > { %2987 = vst [vmem:[%s3471_s27 + $0x1c0] sm:$0xff] %v2895_v56   ;;  %v1344_v0 = vadd.f32 %v3456_v6, %v1343_v62  ;;  %v1099_v1 = vadd.f32 %v3120_v63, %v3456_v6  ;;  %v3184_v2 = vpop.f32.mrb[54].mxu1  ;;  %v1090_v3 = vpop.f32.mrb[55].mxu0  ;;  %v1444_v8 = vmax.f32 %v1096_v57, 0.0 }
 0x151   : > { %v1355_v4 = vadd.f32 %v3184_v2, %v3456_v6  ;;  %v1091_v5 = vadd.f32 %v3456_v6, %v1090_v3  ;;  %v1346_v7 = vpop.f32.mrb[55].mxu1  ;;  %v1508_v11 = vmax.f32 %v1352_v60, 0.0  ;;  %v1442_v12 = vmax.f32 %v1088_v61, 0.0 }
 0x152   : > { %v1445_v9 = vmax.f32 %v1099_v1, 0.0  ;;  %v1347_v10 = vadd.f32 %v3456_v6, %v1346_v7  ;;  %v1506_v15 = vmax.f32 %v1344_v0, 0.0 }
 0x153   : > { %v1509_v13 = vmax.f32 %v1355_v4, 0.0  ;;  %v1443_v14 = vmax.f32 %v1091_v5, 0.0 }
 0x154   : > { %v2750_v16 = vpack.c.bf16 %v1445_v9, %v1444_v8  ;;  %v1507_v17 = vmax.f32 %v1347_v10, 0.0 }
 0x155   : > { %v2910_v18 = vpack.c.bf16 %v1509_v13, %v1508_v11  ;;  %v2745_v19 = vpack.c.bf16 %v1443_v14, %v1442_v12  ;;  %v3123_v20 = vpop.f32.mrb[56].mxu0 }
 0x156   : > { %2958 = vst [vmem:[%s3471_s27 + $0xd8] sm:$0xff] %v2750_v16   ;;  %v2905_v21 = vpack.c.bf16 %v1507_v17, %v1506_v15  ;;  %v1112_v22 = vadd.f32 %v3123_v20, %v3456_v6  ;;  %v3187_v23 = vpop.f32.mrb[56].mxu1  ;;  %v1103_v24 = vpop.f32.mrb[57].mxu0 }
 0x157   : > { %2990 = vst [vmem:[%s3471_s27 + $0x1d8] sm:$0xff] %v2910_v18   ;;  %2957 = vst [vmem:[%s3471_s27 + $0xd0] sm:$0xff] %v2745_v19   ;;  %v1368_v25 = vadd.f32 %v3187_v23, %v3456_v6  ;;  %v1104_v26 = vadd.f32 %v3456_v6, %v1103_v24  ;;  %v1359_v27 = vpop.f32.mrb[57].mxu1  ;;  %v3124_v28 = vpop.f32.mrb[58].mxu0 }
 0x158   : > { %2989 = vst [vmem:[%s3471_s27 + $0x1d0] sm:$0xff] %v2905_v21   ;;  %v1360_v29 = vadd.f32 %v3456_v6, %v1359_v27  ;;  %v1115_v30 = vadd.f32 %v3124_v28, %v3456_v6  ;;  %v3188_v31 = vpop.f32.mrb[58].mxu1  ;;  %v1106_v32 = vpop.f32.mrb[59].mxu0  ;;  %v1448_v36 = vmax.f32 %v1112_v22, 0.0 }
 0x159   : > { %v1371_v33 = vadd.f32 %v3188_v31, %v3456_v6  ;;  %v1107_v34 = vadd.f32 %v3456_v6, %v1106_v32  ;;  %v1362_v35 = vpop.f32.mrb[59].mxu1  ;;  %v1512_v39 = vmax.f32 %v1368_v25, 0.0  ;;  %v1446_v40 = vmax.f32 %v1104_v26, 0.0 }
 0x15a   : > { %v1449_v37 = vmax.f32 %v1115_v30, 0.0  ;;  %v1363_v38 = vadd.f32 %v3456_v6, %v1362_v35  ;;  %v1510_v43 = vmax.f32 %v1360_v29, 0.0 }
 0x15b   : > { %v1513_v41 = vmax.f32 %v1371_v33, 0.0  ;;  %v1447_v42 = vmax.f32 %v1107_v34, 0.0 }
 0x15c   : > { %v2760_v44 = vpack.c.bf16 %v1449_v37, %v1448_v36  ;;  %v1511_v45 = vmax.f32 %v1363_v38, 0.0 }
 0x15d   : > { %v2920_v46 = vpack.c.bf16 %v1513_v41, %v1512_v39  ;;  %v2755_v47 = vpack.c.bf16 %v1447_v42, %v1446_v40  ;;  %v3127_v48 = vpop.f32.mrb[60].mxu0 }
 0x15e   : > { %2960 = vst [vmem:[%s3471_s27 + $0xe8] sm:$0xff] %v2760_v44   ;;  %v2915_v49 = vpack.c.bf16 %v1511_v45, %v1510_v43  ;;  %v1128_v50 = vadd.f32 %v3127_v48, %v3456_v6  ;;  %v3191_v51 = vpop.f32.mrb[60].mxu1  ;;  %v1119_v52 = vpop.f32.mrb[61].mxu0 }
 0x15f   : > { %2992 = vst [vmem:[%s3471_s27 + $0x1e8] sm:$0xff] %v2920_v46   ;;  %2959 = vst [vmem:[%s3471_s27 + $0xe0] sm:$0xff] %v2755_v47   ;;  %v1384_v53 = vadd.f32 %v3191_v51, %v3456_v6  ;;  %v1120_v54 = vadd.f32 %v3456_v6, %v1119_v52  ;;  %v1375_v55 = vpop.f32.mrb[61].mxu1  ;;  %v3128_v56 = vpop.f32.mrb[62].mxu0 }
 0x160   : > { %2991 = vst [vmem:[%s3471_s27 + $0x1e0] sm:$0xff] %v2915_v49   ;;  %v1376_v57 = vadd.f32 %v3456_v6, %v1375_v55  ;;  %v1131_v58 = vadd.f32 %v3128_v56, %v3456_v6  ;;  %v3192_v59 = vpop.f32.mrb[62].mxu1  ;;  %v1122_v60 = vpop.f32.mrb[63].mxu0  ;;  %v1452_v0 = vmax.f32 %v1128_v50, 0.0 }
 0x161   : > { %v1387_v61 = vadd.f32 %v3192_v59, %v3456_v6  ;;  %v1123_v62 = vadd.f32 %v3456_v6, %v1122_v60  ;;  %v1378_v63 = vpop.f32.mrb[63].mxu1  ;;  %v1516_v3 = vmax.f32 %v1384_v53, 0.0  ;;  %v1450_v4 = vmax.f32 %v1120_v54, 0.0 }
 0x162   : > { %v1453_v1 = vmax.f32 %v1131_v58, 0.0  ;;  %v1379_v2 = vadd.f32 %v3456_v6, %v1378_v63  ;;  %v1514_v8 = vmax.f32 %v1376_v57, 0.0 }
 0x163   : > { %v1517_v5 = vmax.f32 %v1387_v61, 0.0  ;;  %v1451_v7 = vmax.f32 %v1123_v62, 0.0 }
 0x164   : > { %v2770_v9 = vpack.c.bf16 %v1453_v1, %v1452_v0  ;;  %v1515_v10 = vmax.f32 %v1379_v2, 0.0 }
 0x165   : > { %v2930_v11 = vpack.c.bf16 %v1517_v5, %v1516_v3  ;;  %v2765_v12 = vpack.c.bf16 %v1451_v7, %v1450_v4 }
 0x166   : > { %2962 = vst [vmem:[%s3471_s27 + $0xf8] sm:$0xff] %v2770_v9   ;;  %v2925_v13 = vpack.c.bf16 %v1515_v10, %v1514_v8 }
 0x167   : > { %2994 = vst [vmem:[%s3471_s27 + $0x1f8] sm:$0xff] %v2930_v11   ;;  %2961 = vst [vmem:[%s3471_s27 + $0xf0] sm:$0xff] %v2765_v12  }
 0x168   : > { %2993 = vst [vmem:[%s3471_s27 + $0x1f0] sm:$0xff] %v2925_v13  }
 0x169 PF: > { %s13_s12 = sadd.s32 1, %s3278_s12  }
 0x16a   : > { %p10_p4 = scmp.ge.s32.totalorder %s13_s12, 4  }
 0x16c   :  { %12 = sbr.rel (!%p10_p4) target bundleno = 1 (0x1), region = 62 }

// kernel: seg_model_forward.22
= control target key start
LH: loop header
LB: loop body
LE: loop exit
PB: predicated region body
PF: predicated region fallthrough
CT: control target
= control target key end

     0   :  { %s555_s12 = smov 0   ;;  %s598_s0 = inlined_call_operand.vmem [shape: bf16[128,64], index: 0, kind: input, shape index: {}]   ;;  %s599_s1 = inlined_call_operand.vmem [shape: bf16[64,128], index: 1, kind: input, shape index: {}]   ;;  %s600_s2 = inlined_call_operand.vmem [shape: f32[1,128], index: 2, kind: input, shape index: {}]   ;;  %s601_s3 = inlined_call_operand.vmem [shape: bf16[128,128], index: 3, kind: output, shape index: {}]  }
   0x1 LB: > { %s416_s13 = sadd.s32 4294967295, %s533_s12   ;;  %p420_p0 = scmp.ge.s32.totalorder %s533_s12, 1  ;;  %s533_s12 = sphi %s555_s12, %s13_s12  }
   0x2   : > { %p138_p1 = scmp.lt.s32.totalorder %s533_s12, 3 }
   0x4   : > { %p139_p2 = pnand %p420_p0, %p138_p1 }
   0x5   : > { %v519_v0 = vld [vmem:[%s599_s1] sm:$0xff] (!%p139_p2)   ;;  %s421_s16 = sshll.u32 (!%p139_p2), %s416_s13, 3  ;;  %v520_v1 = vld [vmem:[%s599_s1 + $0x8] sm:$0xff] (!%p139_p2)   ;;  %v521_v2 = vld [vmem:[%s599_s1 + $0x10] sm:$0xff] (!%p139_p2)   ;;  %vm242_vm0 = vcmask (!%p139_p2), 523264  }
   0x6   : > { %142 = sbr.rel (%p139_p2) target bundleno = 242 (0xf2), region = 32  ;;  %p163_p3 = scmp.lt.s32.totalorder (!%p139_p2), %s421_s16, 15  ;;  %487 = vmatprep.subr.bf16.mxu0 (!%p139_p2), %v519_v0  ;;  %503 = vmatprep.subr.bf16.mxu1 (!%p139_p2), %v519_v0  ;;  %v522_v3 = vld [vmem:[%s599_s1 + $0x18] sm:$0xff] (!%p139_p2)   ;;  %v425_v9 = vld [vmem:[%s600_s2] ss:$0 sm:$0xff] (!%p139_p2) }
   0x7   : > { %488 = vmatpush3.bf16.msra.mxu0 (!%p139_p2), %v519_v0  ;;  %507 = vmatpush3.bf16.msra.mxu1 (!%p139_p2), %v519_v0 }
   0x8   : > { %489 = vmatprep.subr.bf16.mxu0 (!%p139_p2), %v520_v1  ;;  %504 = vmatprep.subr.bf16.mxu1 (!%p139_p2), %v520_v1 }
   0xb   : > { %490 = vmatpush3.bf16.msra.mxu0 (!%p139_p2), %v520_v1  ;;  %508 = vmatpush3.bf16.msra.mxu1 (!%p139_p2), %v520_v1 }
   0xc   : > { %491 = vmatprep.subr.bf16.mxu0 (!%p139_p2), %v521_v2  ;;  %505 = vmatprep.subr.bf16.mxu1 (!%p139_p2), %v521_v2 }
   0xd   : > { %s603_s16 = smov (!%p163_p3, %s421_s16), 15 }
   0xe   : > { %s422_s21 = sshll.u32 %s603_s16, 2 }
   0xf   : > { %s166_s26 = scalar_lea.vmem %s598_s0, %s422_s21  ;;  %492 = vmatpush3.bf16.msra.mxu0 %v521_v2  ;;  %509 = vmatpush3.bf16.msra.mxu1 %v521_v2  ;;  %s172_s4 = scalar_lea.vmem %s601_s3, %s422_s21 }
  0x10   : > { %v523_v4 = vld [vmem:[%s166_s26] sm:$0xff]   ;;  %v524_v5 = vld [vmem:[%s166_s26 + $0x10] sm:$0xff]   ;;  %493 = vmatprep.subr.bf16.mxu0 %v522_v3  ;;  %506 = vmatprep.subr.bf16.mxu1 %v522_v3  ;;  %v525_v6 = vld [vmem:[%s166_s26 + $0x8] sm:$0xff]  }
  0x11   : > { %495 = vmatprep.mubr.msk.bf16.mxu0 %vm242_vm0, %v523_v4  ;;  %499 = vmatprep.mubr.msk.bf16.mxu1 %vm242_vm0, %v524_v5  ;;  %v526_v7 = vld [vmem:[%s166_s26 + $0x18] sm:$0xff]  }
  0x13   : > { %494 = vmatpush3.bf16.msra.mxu0 %v522_v3  ;;  %510 = vmatpush3.bf16.msra.mxu1 %v522_v3 }
  0x16   : > { %496 = vmatmul.mubr.msk.bf16.vlgmr.msra.gmra.mrb[0].mxu0 %vm242_vm0, %v525_v6  ;;  %500 = vmatmul.mubr.msk.bf16.vlgmr.msra.gmra.mrb[0].mxu1 %vm242_vm0, %v526_v7 }
  0xe9   : > { %v497_v8 = vpop.f32.mrb[0].mxu0  ;;  %v501_v10 = vpop.f32.mrb[0].mxu1 }
  0xea   : > { %v289_v11 = vpop.f32.mrb[1].mxu0  ;;  %v305_v12 = vpop.f32.mrb[1].mxu1  ;;  %v298_v15 = vadd.f32 %v497_v8, %v425_v9  ;;  %v314_v16 = vadd.f32 %v501_v10, %v425_v9 }
  0xeb   : > { %v498_v13 = vpop.f32.mrb[2].mxu0  ;;  %v502_v14 = vpop.f32.mrb[2].mxu1  ;;  %v290_v21 = vadd.f32 %v425_v9, %v289_v11  ;;  %v306_v22 = vadd.f32 %v425_v9, %v305_v12 }
  0xec   : > { %v301_v17 = vadd.f32 %v498_v13, %v425_v9  ;;  %v317_v18 = vadd.f32 %v502_v14, %v425_v9  ;;  %v292_v19 = vpop.f32.mrb[3].mxu0  ;;  %v308_v20 = vpop.f32.mrb[3].mxu1 }
  0xed   : > { %v293_v23 = vadd.f32 %v425_v9, %v292_v19  ;;  %v309_v24 = vadd.f32 %v425_v9, %v308_v20 }
  0xee   : > { %v464_v25 = vpack.c.bf16 %v301_v17, %v298_v15  ;;  %v474_v26 = vpack.c.bf16 %v317_v18, %v314_v16 }
  0xef   : > { %v459_v27 = vpack.c.bf16 %v293_v23, %v290_v21  ;;  %v469_v28 = vpack.c.bf16 %v309_v24, %v306_v22 }
  0xf0   : > { %476 = vst [vmem:[%s172_s4 + $0x8] sm:$0xff] %v464_v25   ;;  %478 = vst [vmem:[%s172_s4 + $0x18] sm:$0xff] %v474_v26  }
  0xf1   : > { %460 = vst [vmem:[%s172_s4] sm:$0xff] %v459_v27   ;;  %477 = vst [vmem:[%s172_s4 + $0x10] sm:$0xff] %v469_v28  }
  0xf2 PF: > { %s13_s12 = sadd.s32 1, %s533_s12  }
  0xf3   : > { %p10_p4 = scmp.ge.s32.totalorder %s13_s12, 4  }
  0xf5   :  { %12 = sbr.rel (!%p10_p4) target bundleno = 1 (0x1), region = 62 }

// kernel: seg_model_forward.17
= control target key start
LH: loop header
LB: loop body
LE: loop exit
PB: predicated region body
PF: predicated region fallthrough
CT: control target
= control target key end

     0   :  { %s882_s12 = smov 0   ;;  %s984_s0 = inlined_call_operand.vmem [shape: bf16[128,288], index: 0, kind: input, shape index: {}]   ;;  %s985_s1 = inlined_call_operand.vmem [shape: bf16[288,128], index: 1, kind: input, shape index: {}]   ;;  %s986_s2 = inlined_call_operand.vmem [shape: f32[1,128], index: 2, kind: input, shape index: {}]   ;;  %s987_s3 = inlined_call_operand.vmem [shape: bf16[128,128], index: 3, kind: output, shape index: {}]  }
   0x1 LB: > { %s652_s13 = sadd.s32 4294967295, %s860_s12   ;;  %p656_p0 = scmp.ge.s32.totalorder %s860_s12, 1  ;;  %s860_s12 = sphi %s882_s12, %s13_s12  }
   0x2   : > { %p139_p1 = scmp.lt.s32.totalorder %s860_s12, 3 }
   0x4   : > { %p140_p2 = pnand %p656_p0, %p139_p1 }
   0x5   : > { %v820_v0 = vld [vmem:[%s985_s1 + $0x40] sm:$0xff] (!%p140_p2)   ;;  %s657_s16 = sshll.u32 (!%p140_p2), %s652_s13, 3  ;;  %v822_v2 = vld [vmem:[%s985_s1 + $0x48] sm:$0xff] (!%p140_p2)   ;;  %v824_v4 = vld [vmem:[%s985_s1 + $0x50] sm:$0xff] (!%p140_p2)   ;;  %vm405_vm0 = vcmask (!%p140_p2), 261120  }
   0x6   : > { %143 = sbr.rel (%p140_p2) target bundleno = 280 (0x118), region = 32  ;;  %v821_v1 = vld [vmem:[%s985_s1] sm:$0xff] (!%p140_p2)   ;;  %737 = vmatprep.subr.bf16.mxu0 (!%p140_p2), %v820_v0  ;;  %795 = vmatprep.subr.bf16.mxu1 (!%p140_p2), %v820_v0  ;;  %p165_p3 = scmp.lt.s32.totalorder (!%p140_p2), %s657_s16, 15  ;;  %v823_v3 = vld [vmem:[%s985_s1 + $0x8] sm:$0xff] (!%p140_p2)   ;;  %v825_v5 = vld [vmem:[%s985_s1 + $0x10] sm:$0xff] (!%p140_p2)  }
   0x7   : > { %738 = vmatpush3.bf16.msra.mxu0 (!%p140_p2), %v821_v1  ;;  %803 = vmatpush3.bf16.msra.mxu1 (!%p140_p2), %v821_v1  ;;  %v826_v6 = vld [vmem:[%s985_s1 + $0x58] sm:$0xff] (!%p140_p2)   ;;  %v828_v8 = vld [vmem:[%s985_s1 + $0x60] sm:$0xff] (!%p140_p2)   ;;  %v830_v10 = vld [vmem:[%s985_s1 + $0x68] sm:$0xff] (!%p140_p2)  }
   0x8   : > { %739 = vmatprep.subr.bf16.mxu0 (!%p140_p2), %v822_v2  ;;  %796 = vmatprep.subr.bf16.mxu1 (!%p140_p2), %v822_v2  ;;  %v827_v7 = vld [vmem:[%s985_s1 + $0x18] sm:$0xff] (!%p140_p2)   ;;  %v829_v9 = vld [vmem:[%s985_s1 + $0x20] sm:$0xff] (!%p140_p2)   ;;  %v831_v13 = vld [vmem:[%s985_s1 + $0x28] sm:$0xff] (!%p140_p2)  }
   0x9   : > { %v832_v14 = vld [vmem:[%s985_s1 + $0x70] sm:$0xff] (!%p140_p2)   ;;  %v834_v16 = vld [vmem:[%s985_s1 + $0x78] sm:$0xff] (!%p140_p2)   ;;  %v842_v18 = vld [vmem:[%s985_s1 + $0x80] sm:$0xff] (!%p140_p2)  }
   0xa   : > { %v833_v15 = vld [vmem:[%s985_s1 + $0x30] sm:$0xff] (!%p140_p2)   ;;  %v835_v17 = vld [vmem:[%s985_s1 + $0x38] sm:$0xff] (!%p140_p2)   ;;  %v843_v22 = vld [vmem:[%s985_s1 + $0x88] sm:$0xff] (!%p140_p2)  }
   0xb   : > { %740 = vmatpush3.bf16.msra.mxu0 (!%p140_p2), %v823_v3  ;;  %804 = vmatpush3.bf16.msra.mxu1 (!%p140_p2), %v823_v3  ;;  %v661_v42 = vld [vmem:[%s986_s2] ss:$0 sm:$0xff] (!%p140_p2) }
   0xc   : > { %741 = vmatprep.subr.bf16.mxu0 (!%p140_p2), %v824_v4  ;;  %797 = vmatprep.subr.bf16.mxu1 (!%p140_p2), %v824_v4 }
   0xd   : > { %s989_s16 = smov (!%p165_p3, %s657_s16), 15 }
   0xe   : > { %s811_s29 = smul.u32 12, %s989_s16  ;;  %s660_s5 = sshll.u32 %s989_s16, 2 }
   0xf   : > { %742 = vmatpush3.bf16.msra.mxu0 %v825_v5  ;;  %805 = vmatpush3.bf16.msra.mxu1 %v825_v5  ;;  %s975_s8 = scalar_lea.vmem %s987_s3, %s660_s5 }
  0x10   : > { %743 = vmatprep.subr.bf16.mxu0 %v826_v6  ;;  %798 = vmatprep.subr.bf16.mxu1 %v826_v6  ;;  %s923_s9 = scalar_lea.vmem %s984_s0, %s811_s29 }
  0x11   : > { %v838_v11 = vld [vmem:[%s923_s9 + $0x4] ss:$12 sps:$4 sm:$0xff]   ;;  %v841_v12 = vld [vmem:[%s923_s9 + $0x4c] ss:$12 sps:$4 sm:$0xff]   ;;  %v839_v20 = vld [vmem:[%s923_s9 + $0x48] ss:$12 sps:$4 sm:$0xff]  }
  0x12   : > { %450 = vmatprep.mubr.bf16.mxu0 %v838_v11  ;;  %474 = vmatprep.mubr.bf16.mxu1 %v841_v12  ;;  %v836_v19 = vld [vmem:[%s923_s9] ss:$12 sps:$4 sm:$0xff]   ;;  %v844_v21 = vld [vmem:[%s923_s9 + $0x1c] ss:$12 sps:$4 sm:$0xff]   ;;  %v847_v24 = vld [vmem:[%s923_s9 + $0x18] ss:$12 sps:$4 sm:$0xff]  }
  0x13   : > { %744 = vmatpush3.bf16.msra.mxu0 %v827_v7  ;;  %806 = vmatpush3.bf16.msra.mxu1 %v827_v7  ;;  %v846_v23 = vld [vmem:[%s923_s9 + $0x8] ss:$12 sps:$4 sm:$0xff]   ;;  %v848_v25 = vld [vmem:[%s923_s9 + $0x20] ss:$12 sps:$4 sm:$0xff]   ;;  %v851_v27 = vld [vmem:[%s923_s9 + $0x38] ss:$12 sps:$4 sm:$0xff]  }
  0x14   : > { %745 = vmatprep.subr.bf16.mxu0 %v828_v8  ;;  %799 = vmatprep.subr.bf16.mxu1 %v828_v8  ;;  %v849_v26 = vld [vmem:[%s923_s9 + $0x34] ss:$12 sps:$4 sm:$0xff]   ;;  %v852_v28 = vld [vmem:[%s923_s9 + $0x30] ss:$12 sps:$4 sm:$0xff]  }
  0x15   : > { %v853_v29 = vld [vmem:[%s923_s9 + $0x50] ss:$12 sps:$4 sm:$0xff]  }
  0x17   : > { %746 = vmatpush3.bf16.msra.mxu0 %v829_v9  ;;  %807 = vmatpush3.bf16.msra.mxu1 %v829_v9 }
  0x18   : > { %747 = vmatprep.subr.bf16.mxu0 %v830_v10  ;;  %800 = vmatprep.subr.bf16.mxu1 %v830_v10 }
  0x1b   : > { %748 = vmatpush3.bf16.msra.mxu0 %v831_v13  ;;  %808 = vmatpush3.bf16.msra.mxu1 %v831_v13 }
  0x1c   : > { %749 = vmatprep.subr.bf16.mxu0 %v832_v14  ;;  %801 = vmatprep.subr.bf16.mxu1 %v832_v14 }
  0x1f   : > { %750 = vmatpush3.bf16.msra.mxu0 %v833_v15  ;;  %809 = vmatpush3.bf16.msra.mxu1 %v833_v15 }
  0x20   : > { %751 = vmatprep.subr.bf16.mxu0 %v834_v16  ;;  %802 = vmatprep.subr.bf16.mxu1 %v834_v16 }
  0x23   : > { %752 = vmatpush3.bf16.msra.mxu0 %v835_v17  ;;  %810 = vmatpush3.bf16.msra.mxu1 %v835_v17 }
  0x24   : > { %783 = vmatprep.subr.bf16.mxu1 %v842_v18 }
  0x26   : > { %451 = vmatmul.mubr.bf16.vlgmr.msra.gmra.mrb[0].mxu0 %v836_v19  ;;  %475 = vmatmul.mubr.bf16.vlgmr.msra.gmra.mrb[0].mxu1 %v839_v20 }
  0x27   : > { %784 = vmatpush3.bf16.msra.mxu1 %v842_v18  ;;  %458 = vmatprep.mubr.bf16.mxu0 %v844_v21 }
  0x28   : > { %785 = vmatprep.subr.bf16.mxu1 %v843_v22  ;;  %787 = vmatprep.mubr.msk.bf16.mxu1 %vm405_vm0, %v846_v23 }
  0x2b   : > { %786 = vmatpush3.bf16.msra.mxu1 %v843_v22 }
  0x2e   : > { %459 = vmatmul.mubr.bf16.gmra.mrb[4].mxu0 %v847_v24  ;;  %788 = vmatmul.mubr.msk.bf16.vlgmr.msra.gmra.mrb[4].mxu1 %vm405_vm0, %v848_v25 }
  0x2f   : > { %466 = vmatprep.mubr.bf16.mxu0 %v849_v26  ;;  %791 = vmatprep.mubr.msk.bf16.mxu1 %vm405_vm0, %v851_v27 }
  0x36   : > { %467 = vmatmul.mubr.bf16.gmra.mrb[8].mxu0 %v852_v28  ;;  %792 = vmatmul.mubr.msk.bf16.gmra.mrb[8].mxu1 %vm405_vm0, %v853_v29 }
  0xf9   : > { %v753_v30 = vpop.f32.mrb[0].mxu0  ;;  %v771_v31 = vpop.f32.mrb[0].mxu1 }
  0xfa   : > { %v754_v32 = vpop.f32.mrb[1].mxu0  ;;  %v772_v33 = vpop.f32.mrb[1].mxu1 }
  0xfb   : > { %v755_v34 = vadd.f32 %v754_v32, %v753_v30  ;;  %v756_v35 = vpop.f32.mrb[2].mxu0  ;;  %v773_v36 = vadd.f32 %v772_v33, %v771_v31  ;;  %v774_v37 = vpop.f32.mrb[2].mxu1 }
  0xfc   : > { %v757_v38 = vpop.f32.mrb[3].mxu0  ;;  %v775_v39 = vpop.f32.mrb[3].mxu1 }
  0xfd   : > { %v758_v40 = vadd.f32 %v757_v38, %v756_v35  ;;  %v776_v41 = vadd.f32 %v775_v39, %v774_v37  ;;  %v453_v45 = vadd.f32 %v755_v34, %v661_v42  ;;  %v477_v62 = vadd.f32 %v773_v36, %v661_v42 }
  0xff   : > { %v456_v52 = vadd.f32 %v758_v40, %v661_v42  ;;  %v480_v6 = vadd.f32 %v776_v41, %v661_v42 }
 0x101   : > { %v759_v43 = vpop.f32.mrb[4].mxu0  ;;  %v789_v44 = vpop.f32.mrb[4].mxu1 }
 0x102   : > { %v760_v46 = vpop.f32.mrb[5].mxu0  ;;  %v517_v47 = vpop.f32.mrb[5].mxu1 }
 0x103   : > { %v761_v48 = vadd.f32 %v760_v46, %v759_v43  ;;  %v518_v49 = vadd.f32 %v517_v47, %v453_v45  ;;  %v762_v50 = vpop.f32.mrb[6].mxu0  ;;  %v790_v51 = vpop.f32.mrb[6].mxu1 }
 0x104   : > { %v763_v53 = vpop.f32.mrb[7].mxu0  ;;  %v520_v54 = vpop.f32.mrb[7].mxu1 }
 0x105   : > { %v461_v55 = vadd.f32 %v761_v48, %v661_v42  ;;  %v764_v56 = vadd.f32 %v763_v53, %v762_v50  ;;  %v521_v57 = vadd.f32 %v520_v54, %v456_v52  ;;  %v548_v59 = vmax.f32 %v518_v49, 0.0 }
 0x107   : > { %v526_v58 = vadd.f32 %v789_v44, %v461_v55  ;;  %v464_v60 = vadd.f32 %v764_v56, %v661_v42  ;;  %v549_v61 = vmax.f32 %v521_v57, 0.0 }
 0x109   : > { %v529_v63 = vadd.f32 %v790_v51, %v464_v60  ;;  %v717_v0 = vpack.c.bf16 %v549_v61, %v548_v59  ;;  %v765_v1 = vpop.f32.mrb[8].mxu0  ;;  %v793_v2 = vpop.f32.mrb[8].mxu1  ;;  %v550_v7 = vmax.f32 %v526_v58, 0.0 }
 0x10a   : > { %v542_v3 = vadd.f32 %v793_v2, %v477_v62  ;;  %v766_v4 = vpop.f32.mrb[9].mxu0  ;;  %v533_v5 = vpop.f32.mrb[9].mxu1 }
 0x10b   : > { %v551_v8 = vmax.f32 %v529_v63, 0.0  ;;  %718 = vst [vmem:[%s975_s8] sm:$0xff] %v717_v0   ;;  %v767_v9 = vadd.f32 %v766_v4, %v765_v1  ;;  %v768_v10 = vpop.f32.mrb[10].mxu0  ;;  %v794_v11 = vpop.f32.mrb[10].mxu1 }
 0x10c   : > { %v545_v12 = vadd.f32 %v794_v11, %v480_v6  ;;  %v769_v13 = vpop.f32.mrb[11].mxu0  ;;  %v536_v14 = vpop.f32.mrb[11].mxu1  ;;  %v554_v18 = vmax.f32 %v542_v3, 0.0 }
 0x10d   : > { %v722_v15 = vpack.c.bf16 %v551_v8, %v550_v7  ;;  %v469_v16 = vadd.f32 %v767_v9, %v661_v42  ;;  %v770_v17 = vadd.f32 %v769_v13, %v768_v10 }
 0x10e   : > { %v555_v19 = vmax.f32 %v545_v12, 0.0 }
 0x10f   : > { %734 = vst [vmem:[%s975_s8 + $0x8] sm:$0xff] %v722_v15   ;;  %v534_v20 = vadd.f32 %v533_v5, %v469_v16  ;;  %v472_v21 = vadd.f32 %v770_v17, %v661_v42 }
 0x110   : > { %v732_v22 = vpack.c.bf16 %v555_v19, %v554_v18 }
 0x111   : > { %v537_v23 = vadd.f32 %v536_v14, %v472_v21  ;;  %v552_v24 = vmax.f32 %v534_v20, 0.0 }
 0x112   : > { %736 = vst [vmem:[%s975_s8 + $0x18] sm:$0xff] %v732_v22  }
 0x113   : > { %v553_v25 = vmax.f32 %v537_v23, 0.0 }
 0x115   : > { %v727_v26 = vpack.c.bf16 %v553_v25, %v552_v24 }
 0x117   : > { %735 = vst [vmem:[%s975_s8 + $0x10] sm:$0xff] %v727_v26  }
 0x118 PF: > { %s13_s12 = sadd.s32 1, %s860_s12  }
 0x119   : > { %p10_p4 = scmp.ge.s32.totalorder %s13_s12, 4  }
 0x11b   :  { %12 = sbr.rel (!%p10_p4) target bundleno = 1 (0x1), region = 62 }

// kernel: seg_model_forward.18
= control target key start
LH: loop header
LB: loop body
LE: loop exit
PB: predicated region body
PF: predicated region fallthrough
CT: control target
= control target key end

     0   :  { %s907_s12 = smov 0   ;;  %s1048_s0 = inlined_call_operand.vmem [shape: bf16[32,576], index: 0, kind: input, shape index: {}]   ;;  %s1049_s1 = inlined_call_operand.vmem [shape: bf16[576,128], index: 1, kind: input, shape index: {}]   ;;  %s1050_s2 = inlined_call_operand.vmem [shape: f32[1,128], index: 2, kind: input, shape index: {}]   ;;  %s1051_s3 = inlined_call_operand.vmem [shape: bf16[32,128], index: 3, kind: output, shape index: {}]  }
   0x1 LB: > { %s699_s13 = sadd.s32 4294967295, %s883_s12   ;;  %p703_p0 = scmp.ge.s32.totalorder %s883_s12, 1  ;;  %s883_s12 = sphi %s907_s12, %s13_s12  }
   0x2   : > { %p139_p1 = scmp.lt.s32.totalorder %s883_s12, 3 }
   0x4   : > { %p140_p2 = pnand %p703_p0, %p139_p1 }
   0x5   : > { %v834_v0 = vld [vmem:[%s1049_s1 + $0x40] sm:$0xff] (!%p140_p2)   ;;  %v838_v4 = vld [vmem:[%s1049_s1 + $0x48] sm:$0xff] (!%p140_p2)   ;;  %v842_v8 = vld [vmem:[%s1049_s1 + $0x50] sm:$0xff] (!%p140_p2)   ;;  %s704_s17 = sshll.u32 (!%p140_p2), %s699_s13, 1  ;;  %v885_v33 = vmov (!%p140_p2), 0.0   ;;  %vm886_vm0 = vmmov (!%p140_p2), 0  }
   0x6   : > { %143 = sbr.rel (%p140_p2) target bundleno = 275 (0x113), region = 32  ;;  %v835_v1 = vld [vmem:[%s1049_s1] sm:$0xff] (!%p140_p2)   ;;  %762 = vmatprep.subr.bf16.mxu0 (!%p140_p2), %v834_v0  ;;  %v839_v5 = vld [vmem:[%s1049_s1 + $0x8] sm:$0xff] (!%p140_p2)   ;;  %v843_v9 = vld [vmem:[%s1049_s1 + $0x10] sm:$0xff] (!%p140_p2)   ;;  %p165_p3 = scmp.lt.s32.totalorder (!%p140_p2), %s704_s17, 3  ;;  %vm504_vm1 = vcmask (!%p140_p2), 523264  }
   0x7   : > { %v836_v2 = vld [vmem:[%s1049_s1 + $0xc0] sm:$0xff] (!%p140_p2)   ;;  %763 = vmatpush3.bf16.msra.mxu0 (!%p140_p2), %v835_v1  ;;  %v840_v6 = vld [vmem:[%s1049_s1 + $0xc8] sm:$0xff] (!%p140_p2)   ;;  %v844_v10 = vld [vmem:[%s1049_s1 + $0xd0] sm:$0xff] (!%p140_p2)  }
   0x8   : > { %v837_v3 = vld [vmem:[%s1049_s1 + $0x80] sm:$0xff] (!%p140_p2)   ;;  %784 = vmatprep.subr.bf16.mxu1 (!%p140_p2), %v836_v2  ;;  %764 = vmatprep.subr.bf16.mxu0 (!%p140_p2), %v838_v4  ;;  %v841_v7 = vld [vmem:[%s1049_s1 + $0x88] sm:$0xff] (!%p140_p2)   ;;  %v845_v11 = vld [vmem:[%s1049_s1 + $0x90] sm:$0xff] (!%p140_p2)  }
   0x9   : > { %785 = vmatpush3.bf16.msra.mxu1 (!%p140_p2), %v837_v3  ;;  %v846_v12 = vld [vmem:[%s1049_s1 + $0x58] sm:$0xff] (!%p140_p2)   ;;  %v850_v16 = vld [vmem:[%s1049_s1 + $0x60] sm:$0xff] (!%p140_p2)   ;;  %v854_v20 = vld [vmem:[%s1049_s1 + $0x68] sm:$0xff] (!%p140_p2)  }
   0xa   : > { %786 = vmatprep.subr.bf16.mxu1 (!%p140_p2), %v840_v6  ;;  %v847_v13 = vld [vmem:[%s1049_s1 + $0x18] sm:$0xff] (!%p140_p2)   ;;  %v851_v17 = vld [vmem:[%s1049_s1 + $0x20] sm:$0xff] (!%p140_p2)   ;;  %v855_v21 = vld [vmem:[%s1049_s1 + $0x28] sm:$0xff] (!%p140_p2)  }
   0xb   : > { %765 = vmatpush3.bf16.msra.mxu0 (!%p140_p2), %v839_v5  ;;  %v848_v14 = vld [vmem:[%s1049_s1 + $0xd8] sm:$0xff] (!%p140_p2)   ;;  %v852_v18 = vld [vmem:[%s1049_s1 + $0xe0] sm:$0xff] (!%p140_p2)   ;;  %v856_v22 = vld [vmem:[%s1049_s1 + $0xe8] sm:$0xff] (!%p140_p2)  }
   0xc   : > { %766 = vmatprep.subr.bf16.mxu0 (!%p140_p2), %v842_v8  ;;  %v849_v15 = vld [vmem:[%s1049_s1 + $0x98] sm:$0xff] (!%p140_p2)   ;;  %v853_v19 = vld [vmem:[%s1049_s1 + $0xa0] sm:$0xff] (!%p140_p2)   ;;  %v857_v23 = vld [vmem:[%s1049_s1 + $0xa8] sm:$0xff] (!%p140_p2)  }
   0xd   : > { %787 = vmatpush3.bf16.msra.mxu1 %v841_v7  ;;  %s1053_s17 = smov (!%p165_p3, %s704_s17), 3  ;;  %v858_v24 = vld [vmem:[%s1049_s1 + $0x70] sm:$0xff]   ;;  %v862_v28 = vld [vmem:[%s1049_s1 + $0x78] sm:$0xff]   ;;  %v872_v37 = vld [vmem:[%s1049_s1 + $0x100] sm:$0xff]  }
   0xe   : > { %788 = vmatprep.subr.bf16.mxu1 %v844_v10  ;;  %s823_s14 = smul.u32 20, %s1053_s17  ;;  %v859_v25 = vld [vmem:[%s1049_s1 + $0x30] sm:$0xff]   ;;  %v863_v29 = vld [vmem:[%s1049_s1 + $0x38] sm:$0xff]   ;;  %v873_v38 = vld [vmem:[%s1049_s1 + $0x108] sm:$0xff]   ;;  %s707_s18 = sshll.u32 %s1053_s17, 2 }
   0xf   : > { %767 = vmatpush3.bf16.msra.mxu0 %v843_v9  ;;  %v860_v26 = vld [vmem:[%s1049_s1 + $0xf0] sm:$0xff]   ;;  %v864_v30 = vld [vmem:[%s1049_s1 + $0xf8] sm:$0xff]   ;;  %v708_v43 = vld [vmem:[%s1050_s2] ss:$0 sm:$0xff]  ;;  %s175_s21 = scalar_lea.vmem %s1051_s3, %s707_s18 }
  0x10   : > { %768 = vmatprep.subr.bf16.mxu0 %v846_v12  ;;  %v861_v27 = vld [vmem:[%s1049_s1 + $0xb0] sm:$0xff]   ;;  %s1010_s13 = scalar_lea.vmem %s1048_s0, %s823_s14  ;;  %v868_v34 = vld [vmem:[%s1049_s1 + $0xb8] sm:$0xff]  }
  0x11   : > { %789 = vmatpush3.bf16.msra.mxu1 %v845_v11  ;;  %v865_v31 = vld [vmem:[%s1010_s13] ss:$20 sps:$4 sm:$0xff]   ;;  %v867_v32 = vld [vmem:[%s1010_s13 + $0x4] ss:$20 sps:$4 sm:$0xff]   ;;  %v869_v35 = vld [vmem:[%s1010_s13 + $0x8] ss:$20 sps:$4 sm:$0xff]  }
  0x12   : > { %790 = vmatprep.subr.bf16.mxu1 %v848_v14  ;;  %540 = vmatprep.mubr.bf16.mxu0 %v867_v32  ;;  %v871_v36 = vld [vmem:[%s1010_s13 + $0xc] ss:$20 sps:$4 sm:$0xff]   ;;  %v874_v39 = vld [vmem:[%s1049_s1 + $0x110] sm:$0xff]   ;;  %v875_v40 = vld [vmem:[%s1049_s1 + $0x118] sm:$0xff]  }
  0x13   : > { %769 = vmatpush3.bf16.msra.mxu0 %v847_v13  ;;  %581 = vmatprep.mubr.bf16.mxu1 %v871_v36  ;;  %v876_v41 = vld [vmem:[%s1010_s13 + $0x10] ss:$20 sps:$4 sm:$0xff]  }
  0x14   : > { %770 = vmatprep.subr.bf16.mxu0 %v850_v16 }
  0x15   : > { %791 = vmatpush3.bf16.msra.mxu1 %v849_v15 }
  0x16   : > { %792 = vmatprep.subr.bf16.mxu1 %v852_v18 }
  0x17   : > { %771 = vmatpush3.bf16.msra.mxu0 %v851_v17 }
  0x18   : > { %772 = vmatprep.subr.bf16.mxu0 %v854_v20 }
  0x19   : > { %793 = vmatpush3.bf16.msra.mxu1 %v853_v19 }
  0x1a   : > { %794 = vmatprep.subr.bf16.mxu1 %v856_v22 }
  0x1b   : > { %773 = vmatpush3.bf16.msra.mxu0 %v855_v21 }
  0x1c   : > { %774 = vmatprep.subr.bf16.mxu0 %v858_v24 }
  0x1d   : > { %795 = vmatpush3.bf16.msra.mxu1 %v857_v23 }
  0x1e   : > { %796 = vmatprep.subr.bf16.mxu1 %v860_v26 }
  0x1f   : > { %775 = vmatpush3.bf16.msra.mxu0 %v859_v25 }
  0x20   : > { %776 = vmatprep.subr.bf16.mxu0 %v862_v28 }
  0x21   : > { %797 = vmatpush3.bf16.msra.mxu1 %v861_v27 }
  0x22   : > { %798 = vmatprep.subr.bf16.mxu1 %v864_v30 }
  0x23   : > { %777 = vmatpush3.bf16.msra.mxu0 %v863_v29 }
  0x24   : > { %811 = vmatprep.subr.bf16.mxu0 %v885_v33 }
  0x25   : > { %799 = vmatpush3.bf16.msra.mxu1 %v868_v34 }
  0x26   : > { %541 = vmatmul.mubr.bf16.vlgmr.msra.gmra.mrb[0].mxu0 %v865_v31 }
  0x27   : > { %819 = vmatprep.mubr.msk.bf16.mxu0 %vm886_vm0, %v885_v33  ;;  %812 = vmatpush3.bf16.msra.mxu0 %v872_v37 }
  0x28   : > { %582 = vmatmul.mubr.bf16.vlgmr.msra.gmra.mrb[0].mxu1 %v869_v35  ;;  %813 = vmatprep.subr.bf16.mxu0 %v885_v33 }
  0x2b   : > { %814 = vmatpush3.bf16.msra.mxu0 %v873_v38 }
  0x2c   : > { %815 = vmatprep.subr.bf16.mxu0 %v885_v33 }
  0x2f   : > { %816 = vmatpush3.bf16.msra.mxu0 %v874_v39 }
  0x30   : > { %817 = vmatprep.subr.bf16.mxu0 %v885_v33 }
  0x33   : > { %818 = vmatpush3.bf16.msra.mxu0 %v875_v40 }
  0x36   : > { %820 = vmatmul.mubr.msk.bf16.vlgmr.msra.gmra.mrb[4].mxu0 %vm504_vm1, %v876_v41 }
  0xf9   : > { %v778_v42 = vpop.f32.mrb[0].mxu0 }
  0xfa   : > { %v779_v44 = vpop.f32.mrb[1].mxu0 }
  0xfb   : > { %v780_v45 = vadd.f32 %v779_v44, %v778_v42  ;;  %v781_v46 = vpop.f32.mrb[2].mxu0  ;;  %v800_v47 = vpop.f32.mrb[0].mxu1 }
  0xfc   : > { %v782_v48 = vpop.f32.mrb[3].mxu0  ;;  %v801_v51 = vpop.f32.mrb[1].mxu1 }
  0xfd   : > { %v543_v49 = vadd.f32 %v780_v45, %v708_v43  ;;  %v783_v50 = vadd.f32 %v782_v48, %v781_v46  ;;  %v802_v52 = vadd.f32 %v801_v51, %v800_v47  ;;  %v803_v53 = vpop.f32.mrb[2].mxu1 }
  0xfe   : > { %v804_v55 = vpop.f32.mrb[3].mxu1 }
  0xff   : > { %v546_v54 = vadd.f32 %v783_v50, %v708_v43  ;;  %v805_v56 = vadd.f32 %v804_v55, %v803_v53  ;;  %v584_v57 = vadd.f32 %v802_v52, %v543_v49 }
 0x101   : > { %v587_v58 = vadd.f32 %v805_v56, %v546_v54 }
 0x109   : > { %v624_v59 = vpop.f32.mrb[4].mxu0 }
 0x10a   : > { %v625_v60 = vadd.f32 %v624_v59, %v584_v57  ;;  %v821_v61 = vpop.f32.mrb[5].mxu0 }
 0x10b   : > { %v627_v62 = vpop.f32.mrb[6].mxu0 }
 0x10c   : > { %v628_v63 = vadd.f32 %v627_v62, %v587_v58  ;;  %v822_v0 = vpop.f32.mrb[7].mxu0  ;;  %v631_v1 = vmax.f32 %v625_v60, 0.0 }
 0x10e   : > { %v632_v2 = vmax.f32 %v628_v63, 0.0 }
 0x110   : > { %v760_v3 = vpack.c.bf16 %v632_v2, %v631_v1 }
 0x112   : > { %761 = vst [vmem:[%s175_s21] sm:$0xff] %v760_v3  }
 0x113 PF: > { %s13_s12 = sadd.s32 1, %s883_s12  }
 0x114   : > { %p10_p4 = scmp.ge.s32.totalorder %s13_s12, 4  }
 0x116   :  { %12 = sbr.rel (!%p10_p4) target bundleno = 1 (0x1), region = 62 }

// kernel: seg_model_forward.21
= control target key start
LH: loop header
LB: loop body
LE: loop exit
PB: predicated region body
PF: predicated region fallthrough
CT: control target
= control target key end

     0   :  { %s469_s12 = smov 0   ;;  %s516_s0 = inlined_call_operand.vmem [shape: bf16[32,128], index: 0, kind: input, shape index: {}]   ;;  %s517_s1 = inlined_call_operand.vmem [shape: bf16[128,128], index: 1, kind: input, shape index: {}]   ;;  %s518_s2 = inlined_call_operand.vmem [shape: f32[1,128], index: 2, kind: input, shape index: {}]   ;;  %s519_s3 = inlined_call_operand.vmem [shape: bf16[32,128], index: 3, kind: output, shape index: {}]  }
   0x1 LB: > { %s361_s13 = sadd.s32 4294967295, %s445_s12   ;;  %p365_p0 = scmp.ge.s32.totalorder %s445_s12, 1  ;;  %s445_s12 = sphi %s469_s12, %s13_s12  }
   0x2   : > { %p138_p1 = scmp.lt.s32.totalorder %s445_s12, 3 }
   0x4   : > { %p139_p2 = pnand %p365_p0, %p138_p1 }
   0x5   : > { %v430_v0 = vld [vmem:[%s517_s1] sm:$0xff] (!%p139_p2)   ;;  %v447_v1 = vmov (!%p139_p2), 0.0   ;;  %v431_v2 = vld [vmem:[%s517_s1 + $0x8] sm:$0xff] (!%p139_p2)   ;;  %vm448_vm0 = vmmov (!%p139_p2), 0   ;;  %s366_s18 = sshll.u32 (!%p139_p2), %s361_s13, 1  ;;  %v432_v3 = vld [vmem:[%s517_s1 + $0x10] sm:$0xff] (!%p139_p2)  }
   0x6   : > { %142 = sbr.rel (%p139_p2) target bundleno = 257 (0x101), region = 32  ;;  %400 = vmatprep.subr.bf16.mxu0 (!%p139_p2), %v447_v1  ;;  %416 = vmatprep.mubr.msk.bf16.mxu0 (!%p139_p2), %vm448_vm0, %v447_v1  ;;  %p163_p3 = scmp.lt.s32.totalorder (!%p139_p2), %s366_s18, 3  ;;  %v433_v4 = vld [vmem:[%s517_s1 + $0x18] sm:$0xff] (!%p139_p2)   ;;  %v434_v5 = vld [vmem:[%s517_s1 + $0x20] sm:$0xff] (!%p139_p2)   ;;  %v435_v6 = vld [vmem:[%s517_s1 + $0x28] sm:$0xff] (!%p139_p2)  }
   0x7   : > { %401 = vmatpush3.bf16.msra.mxu0 (!%p139_p2), %v430_v0  ;;  %v436_v7 = vld [vmem:[%s517_s1 + $0x30] sm:$0xff] (!%p139_p2)   ;;  %v437_v8 = vld [vmem:[%s517_s1 + $0x38] sm:$0xff] (!%p139_p2)   ;;  %v370_v10 = vld [vmem:[%s518_s2] ss:$0 sm:$0xff] (!%p139_p2) }
   0x8   : > { %402 = vmatprep.subr.bf16.mxu0 (!%p139_p2), %v447_v1 }
   0xb   : > { %403 = vmatpush3.bf16.msra.mxu0 (!%p139_p2), %v431_v2 }
   0xc   : > { %404 = vmatprep.subr.bf16.mxu0 (!%p139_p2), %v447_v1 }
   0xd   : > { %s521_s18 = smov (!%p163_p3, %s366_s18), 3 }
   0xe   : > { %s367_s21 = sshll.u32 %s521_s18, 2 }
   0xf   : > { %s166_s24 = scalar_lea.vmem %s516_s0, %s367_s21  ;;  %405 = vmatpush3.bf16.msra.mxu0 %v432_v3  ;;  %s172_s13 = scalar_lea.vmem %s519_s3, %s367_s21 }
  0x10   : > { %406 = vmatprep.subr.bf16.mxu0 %v447_v1  ;;  %v438_v9 = vld [vmem:[%s166_s24] sm:$0xff]  }
  0x13   : > { %407 = vmatpush3.bf16.msra.mxu0 %v433_v4 }
  0x14   : > { %408 = vmatprep.subr.bf16.mxu0 %v447_v1 }
  0x17   : > { %409 = vmatpush3.bf16.msra.mxu0 %v434_v5 }
  0x18   : > { %410 = vmatprep.subr.bf16.mxu0 %v447_v1 }
  0x1b   : > { %411 = vmatpush3.bf16.msra.mxu0 %v435_v6 }
  0x1c   : > { %412 = vmatprep.subr.bf16.mxu0 %v447_v1 }
  0x1f   : > { %413 = vmatpush3.bf16.msra.mxu0 %v436_v7 }
  0x20   : > { %414 = vmatprep.subr.bf16.mxu0 %v447_v1 }
  0x23   : > { %415 = vmatpush3.bf16.msra.mxu0 %v437_v8 }
  0x26   : > { %417 = vmatmul.mubr.bf16.vlgmr.msra.gmra.mrb[0].mxu0 %v438_v9 }
  0xf9   : > { %v288_v11 = vpop.f32.mrb[0].mxu0 }
  0xfa   : > { %v418_v12 = vpop.f32.mrb[1].mxu0  ;;  %v289_v14 = vadd.f32 %v370_v10, %v288_v11 }
  0xfb   : > { %v291_v13 = vpop.f32.mrb[2].mxu0 }
  0xfc   : > { %v292_v15 = vadd.f32 %v370_v10, %v291_v13  ;;  %v419_v16 = vpop.f32.mrb[3].mxu0 }
  0xfe   : > { %v389_v17 = vpack.c.bf16 %v292_v15, %v289_v14 }
 0x100   : > { %390 = vst [vmem:[%s172_s13] sm:$0xff] %v389_v17  }
 0x101 PF: > { %s13_s12 = sadd.s32 1, %s445_s12  }
 0x102   : > { %p10_p4 = scmp.ge.s32.totalorder %s13_s12, 4  }
 0x104   :  { %12 = sbr.rel (!%p10_p4) target bundleno = 1 (0x1), region = 62 }

// kernel: seg_model_forward.20
= control target key start
LH: loop header
LB: loop body
LE: loop exit
PB: predicated region body
PF: predicated region fallthrough
CT: control target
= control target key end

     0   :  { %s340_s1 = inlined_call_operand.vmem [shape: bf16[256,128], index: 1, kind: input, shape index: {}]   ;;  %s341_s0 = inlined_call_operand.vmem [shape: bf16[8,256], index: 0, kind: input, shape index: {}]   ;;  %s342_s2 = inlined_call_operand.vmem [shape: f32[1,128], index: 2, kind: input, shape index: {}]   ;;  %s343_s3 = inlined_call_operand.vmem [shape: bf16[8,128], index: 3, kind: output, shape index: {}]  }
   0x1   :  { %v245_v0 = vld [vmem:[%s340_s1 + $0x40] sm:$0xff]   ;;  %v247_v2 = vld [vmem:[%s340_s1 + $0x48] sm:$0xff]   ;;  %v249_v4 = vld [vmem:[%s340_s1 + $0x50] sm:$0xff]  }
   0x2   :  { %v246_v1 = vld [vmem:[%s340_s1] sm:$0xff]   ;;  %223 = vmatprep.subr.bf16.mxu0 %v245_v0  ;;  %v248_v3 = vld [vmem:[%s340_s1 + $0x8] sm:$0xff]   ;;  %v250_v5 = vld [vmem:[%s340_s1 + $0x10] sm:$0xff]  }
   0x3   :  { %224 = vmatpush3.bf16.msra.mxu0 %v246_v1  ;;  %v251_v6 = vld [vmem:[%s340_s1 + $0x58] sm:$0xff]   ;;  %v253_v8 = vld [vmem:[%s340_s1 + $0x60] sm:$0xff]   ;;  %v255_v10 = vld [vmem:[%s340_s1 + $0x68] sm:$0xff]  }
   0x4   :  { %225 = vmatprep.subr.bf16.mxu0 %v247_v2  ;;  %v252_v7 = vld [vmem:[%s340_s1 + $0x18] sm:$0xff]   ;;  %v254_v9 = vld [vmem:[%s340_s1 + $0x20] sm:$0xff]   ;;  %v256_v13 = vld [vmem:[%s340_s1 + $0x28] sm:$0xff]  }
   0x5   :  { %v15_v11 = vld [vmem:[%s341_s0] sm:$0xff]  ;;  %v257_v14 = vld [vmem:[%s340_s1 + $0x70] sm:$0xff]   ;;  %v259_v16 = vld [vmem:[%s340_s1 + $0x78] sm:$0xff]  }
   0x6   :  { %v206_v12 = vcombine.high %v15_v11, %v15_v11  ;;  %v258_v15 = vld [vmem:[%s340_s1 + $0x30] sm:$0xff]   ;;  %v260_v17 = vld [vmem:[%s340_s1 + $0x38] sm:$0xff]   ;;  %v205_v18 = vcombine.low %v15_v11, %v15_v11  ;;  %v204_v20 = vld [vmem:[%s342_s2] ss:$0 sm:$0xff] }
   0x7   :  { %226 = vmatpush3.bf16.msra.mxu0 %v248_v3 }
   0x8   :  { %227 = vmatprep.subr.bf16.mxu0 %v249_v4  ;;  %190 = vmatprep.mubr.bf16.mxu0 %v206_v12 }
   0xb   :  { %228 = vmatpush3.bf16.msra.mxu0 %v250_v5 }
   0xc   :  { %229 = vmatprep.subr.bf16.mxu0 %v251_v6 }
   0xf   :  { %230 = vmatpush3.bf16.msra.mxu0 %v252_v7 }
  0x10   :  { %231 = vmatprep.subr.bf16.mxu0 %v253_v8 }
  0x13   :  { %232 = vmatpush3.bf16.msra.mxu0 %v254_v9 }
  0x14   :  { %233 = vmatprep.subr.bf16.mxu0 %v255_v10 }
  0x17   :  { %234 = vmatpush3.bf16.msra.mxu0 %v256_v13 }
  0x18   :  { %235 = vmatprep.subr.bf16.mxu0 %v257_v14 }
  0x1b   :  { %236 = vmatpush3.bf16.msra.mxu0 %v258_v15 }
  0x1c   :  { %237 = vmatprep.subr.bf16.mxu0 %v259_v16 }
  0x1f   :  { %238 = vmatpush3.bf16.msra.mxu0 %v260_v17 }
  0x22   :  { %191 = vmatmul.mubr.bf16.vlgmr.msra.gmra.mrb[0].mxu0 %v205_v18 }
  0xf5   :  { %v239_v19 = vpop.f32.mrb[0].mxu0 }
  0xf6   :  { %v240_v21 = vpop.f32.mrb[1].mxu0 }
  0xf7   :  { %v241_v22 = vadd.f32 %v240_v21, %v239_v19  ;;  %v242_v23 = vpop.f32.mrb[2].mxu0 }
  0xf8   :  { %v243_v24 = vpop.f32.mrb[3].mxu0 }
  0xf9   :  { %v193_v25 = vadd.f32 %v241_v22, %v204_v20 }
  0xfb   :  { %v198_v26 = vpack.c.bf16 %v193_v25, %v193_v25 }
  0xfd   :  { %199 = vst [vmem:[%s343_s3] sm:$0xf] %v198_v26 }

// kernel: seg_model_forward.19
= control target key start
LH: loop header
LB: loop body
LE: loop exit
PB: predicated region body
PF: predicated region fallthrough
CT: control target
= control target key end

     0   :  { %s2031_s1 = inlined_call_operand.vmem [shape: bf16[1152,256], index: 1, kind: input, shape index: {}]   ;;  %s2032_s0 = inlined_call_operand.vmem [shape: bf16[8,1152], index: 0, kind: input, shape index: {}]   ;;  %s2033_s2 = inlined_call_operand.vmem [shape: f32[1,256], index: 2, kind: input, shape index: {}]   ;;  %s2034_s3 = inlined_call_operand.vmem [shape: bf16[8,256], index: 3, kind: output, shape index: {}]  }
   0x1   :  { %v1320_v0 = vld [vmem:[%s2031_s1 + $0x4] ss:$8 sps:$4 sm:$0xff]   ;;  %v1324_v2 = vld [vmem:[%s2031_s1] ss:$8 sps:$4 sm:$0xff]   ;;  %v1326_v4 = vld [vmem:[%s2031_s1 + $0x14] ss:$8 sps:$4 sm:$0xff]  }
   0x2   :  { %v1322_v1 = vld [vmem:[%s2031_s1 + $0x204] ss:$8 sps:$4 sm:$0xff]   ;;  %928 = vmatprep.subr.bf16.mxu1 %v1320_v0  ;;  %v1325_v3 = vld [vmem:[%s2031_s1 + $0x200] ss:$8 sps:$4 sm:$0xff]   ;;  %v1328_v5 = vld [vmem:[%s2031_s1 + $0x214] ss:$8 sps:$4 sm:$0xff]  }
   0x3   :  { %1010 = vmatprep.subr.bf16.mxu0 %v1322_v1  ;;  %929 = vmatpush1.bf16.msra.mxu1 %v1324_v2  ;;  %v1330_v6 = vld [vmem:[%s2031_s1 + $0x10] ss:$8 sps:$4 sm:$0xff]   ;;  %v1332_v8 = vld [vmem:[%s2031_s1 + $0x24] ss:$8 sps:$4 sm:$0xff]   ;;  %v1336_v10 = vld [vmem:[%s2031_s1 + $0x20] ss:$8 sps:$4 sm:$0xff]  }
   0x4   :  { %1011 = vmatpush1.bf16.msra.mxu0 %v1325_v3  ;;  %930 = vmatprep.subr.bf16.mxu1 %v1326_v4  ;;  %v1331_v7 = vld [vmem:[%s2031_s1 + $0x210] ss:$8 sps:$4 sm:$0xff]   ;;  %v1334_v9 = vld [vmem:[%s2031_s1 + $0x224] ss:$8 sps:$4 sm:$0xff]   ;;  %v1337_v11 = vld [vmem:[%s2031_s1 + $0x220] ss:$8 sps:$4 sm:$0xff]  }
   0x5   :  { %1012 = vmatprep.subr.bf16.mxu0 %v1328_v5  ;;  %v1338_v12 = vld [vmem:[%s2031_s1 + $0x34] ss:$8 sps:$4 sm:$0xff]   ;;  %v1342_v14 = vld [vmem:[%s2031_s1 + $0x30] ss:$8 sps:$4 sm:$0xff]   ;;  %v1344_v16 = vld [vmem:[%s2031_s1 + $0x44] ss:$8 sps:$4 sm:$0xff]  }
   0x6   :  { %v1340_v13 = vld [vmem:[%s2031_s1 + $0x234] ss:$8 sps:$4 sm:$0xff]   ;;  %v1343_v15 = vld [vmem:[%s2031_s1 + $0x230] ss:$8 sps:$4 sm:$0xff]   ;;  %v1346_v17 = vld [vmem:[%s2031_s1 + $0x244] ss:$8 sps:$4 sm:$0xff]  }
   0x7   :  { %931 = vmatpush1.bf16.msra.mxu1 %v1330_v6  ;;  %v1348_v18 = vld [vmem:[%s2031_s1 + $0x40] ss:$8 sps:$4 sm:$0xff]   ;;  %v1350_v20 = vld [vmem:[%s2031_s1 + $0x54] ss:$8 sps:$4 sm:$0xff]   ;;  %v1354_v22 = vld [vmem:[%s2031_s1 + $0x50] ss:$8 sps:$4 sm:$0xff]  }
   0x8   :  { %1013 = vmatpush1.bf16.msra.mxu0 %v1331_v7  ;;  %932 = vmatprep.subr.bf16.mxu1 %v1332_v8  ;;  %v1349_v19 = vld [vmem:[%s2031_s1 + $0x240] ss:$8 sps:$4 sm:$0xff]   ;;  %v1352_v21 = vld [vmem:[%s2031_s1 + $0x254] ss:$8 sps:$4 sm:$0xff]   ;;  %v1355_v23 = vld [vmem:[%s2031_s1 + $0x250] ss:$8 sps:$4 sm:$0xff]  }
   0x9   :  { %1014 = vmatprep.subr.bf16.mxu0 %v1334_v9  ;;  %v1356_v24 = vld [vmem:[%s2031_s1 + $0x64] ss:$8 sps:$4 sm:$0xff]   ;;  %v1360_v26 = vld [vmem:[%s2031_s1 + $0x60] ss:$8 sps:$4 sm:$0xff]   ;;  %v1362_v28 = vld [vmem:[%s2031_s1 + $0x74] ss:$8 sps:$4 sm:$0xff]  }
   0xa   :  { %v1358_v25 = vld [vmem:[%s2031_s1 + $0x264] ss:$8 sps:$4 sm:$0xff]   ;;  %v1361_v27 = vld [vmem:[%s2031_s1 + $0x260] ss:$8 sps:$4 sm:$0xff]   ;;  %v1364_v29 = vld [vmem:[%s2031_s1 + $0x274] ss:$8 sps:$4 sm:$0xff]  }
   0xb   :  { %933 = vmatpush1.bf16.msra.mxu1 %v1336_v10  ;;  %v1366_v30 = vld [vmem:[%s2031_s1 + $0x70] ss:$8 sps:$4 sm:$0xff]   ;;  %v1368_v32 = vld [vmem:[%s2031_s1 + $0x84] ss:$8 sps:$4 sm:$0xff]   ;;  %v1372_v34 = vld [vmem:[%s2031_s1 + $0x80] ss:$8 sps:$4 sm:$0xff]  }
   0xc   :  { %1015 = vmatpush1.bf16.msra.mxu0 %v1337_v11  ;;  %934 = vmatprep.subr.bf16.mxu1 %v1338_v12  ;;  %v1367_v31 = vld [vmem:[%s2031_s1 + $0x270] ss:$8 sps:$4 sm:$0xff]   ;;  %v1370_v33 = vld [vmem:[%s2031_s1 + $0x284] ss:$8 sps:$4 sm:$0xff]   ;;  %v1373_v35 = vld [vmem:[%s2031_s1 + $0x280] ss:$8 sps:$4 sm:$0xff]  }
   0xd   :  { %1016 = vmatprep.subr.bf16.mxu0 %v1340_v13  ;;  %v1374_v36 = vld [vmem:[%s2031_s1 + $0x94] ss:$8 sps:$4 sm:$0xff]   ;;  %v1378_v38 = vld [vmem:[%s2031_s1 + $0x90] ss:$8 sps:$4 sm:$0xff]   ;;  %v1380_v40 = vld [vmem:[%s2031_s1 + $0xa4] ss:$8 sps:$4 sm:$0xff]  }
   0xe   :  { %v1376_v37 = vld [vmem:[%s2031_s1 + $0x294] ss:$8 sps:$4 sm:$0xff]   ;;  %v1379_v39 = vld [vmem:[%s2031_s1 + $0x290] ss:$8 sps:$4 sm:$0xff]   ;;  %v1382_v41 = vld [vmem:[%s2031_s1 + $0x2a4] ss:$8 sps:$4 sm:$0xff]  }
   0xf   :  { %935 = vmatpush1.bf16.msra.mxu1 %v1342_v14  ;;  %v1384_v42 = vld [vmem:[%s2031_s1 + $0xa0] ss:$8 sps:$4 sm:$0xff]   ;;  %v1386_v44 = vld [vmem:[%s2031_s1 + $0xb4] ss:$8 sps:$4 sm:$0xff]   ;;  %v1390_v47 = vld [vmem:[%s2031_s1 + $0xb0] ss:$8 sps:$4 sm:$0xff]  }
  0x10   :  { %1017 = vmatpush1.bf16.msra.mxu0 %v1343_v15  ;;  %936 = vmatprep.subr.bf16.mxu1 %v1344_v16  ;;  %v1385_v43 = vld [vmem:[%s2031_s1 + $0x2a0] ss:$8 sps:$4 sm:$0xff]   ;;  %v1388_v45 = vld [vmem:[%s2031_s1 + $0x2b4] ss:$8 sps:$4 sm:$0xff]   ;;  %v1391_v49 = vld [vmem:[%s2031_s1 + $0x2b0] ss:$8 sps:$4 sm:$0xff]  }
  0x11   :  { %1018 = vmatprep.subr.bf16.mxu0 %v1346_v17  ;;  %v15_v46 = vld [vmem:[%s2032_s0] sm:$0xff]  ;;  %v17_v50 = vld [vmem:[%s2032_s0 + $0x10] sm:$0xff] }
  0x12   :  { %v1149_v48 = vcombine.high %v15_v46, %v15_v46  ;;  %v1392_v51 = vld [vmem:[%s2031_s1 + $0xc4] ss:$8 sps:$4 sm:$0xff]   ;;  %v1153_v53 = vcombine.high %v17_v50, %v17_v50  ;;  %v1396_v54 = vld [vmem:[%s2031_s1 + $0xc0] ss:$8 sps:$4 sm:$0xff]   ;;  %v1398_v56 = vld [vmem:[%s2031_s1 + $0xd4] ss:$8 sps:$4 sm:$0xff]   ;;  %v1148_v6 = vcombine.low %v15_v46, %v15_v46  ;;  %v1152_v7 = vcombine.low %v17_v50, %v17_v50 }
  0x13   :  { %937 = vmatpush1.bf16.msra.mxu1 %v1348_v18  ;;  %v1394_v52 = vld [vmem:[%s2031_s1 + $0x2c4] ss:$8 sps:$4 sm:$0xff]   ;;  %v1397_v55 = vld [vmem:[%s2031_s1 + $0x2c0] ss:$8 sps:$4 sm:$0xff]   ;;  %v1400_v57 = vld [vmem:[%s2031_s1 + $0x2d4] ss:$8 sps:$4 sm:$0xff]  }
  0x14   :  { %1019 = vmatpush1.bf16.msra.mxu0 %v1349_v19  ;;  %938 = vmatprep.subr.bf16.mxu1 %v1350_v20  ;;  %v1402_v58 = vld [vmem:[%s2031_s1 + $0xd0] ss:$8 sps:$4 sm:$0xff]   ;;  %v1404_v60 = vld [vmem:[%s2031_s1 + $0xe4] ss:$8 sps:$4 sm:$0xff]   ;;  %v1408_v62 = vld [vmem:[%s2031_s1 + $0xe0] ss:$8 sps:$4 sm:$0xff]  }
  0x15   :  { %1020 = vmatprep.subr.bf16.mxu0 %v1352_v21  ;;  %960 = vmatprep.mubr.bf16.mxu1 %v1149_v48  ;;  %v1403_v59 = vld [vmem:[%s2031_s1 + $0x2d0] ss:$8 sps:$4 sm:$0xff]   ;;  %v1406_v61 = vld [vmem:[%s2031_s1 + $0x2e4] ss:$8 sps:$4 sm:$0xff]   ;;  %v1409_v63 = vld [vmem:[%s2031_s1 + $0x2e0] ss:$8 sps:$4 sm:$0xff]  }
  0x16   :  { %1042 = vmatprep.mubr.bf16.mxu0 %v1153_v53  ;;  %v1410_v0 = vld [vmem:[%s2031_s1 + $0xf4] ss:$8 sps:$4 sm:$0xff]   ;;  %v1414_v2 = vld [vmem:[%s2031_s1 + $0xf0] ss:$8 sps:$4 sm:$0xff]   ;;  %v1420_v4 = vld [vmem:[%s2031_s1 + $0x104] ss:$8 sps:$4 sm:$0xff]  }
  0x17   :  { %939 = vmatpush1.bf16.msra.mxu1 %v1354_v22  ;;  %v1412_v1 = vld [vmem:[%s2031_s1 + $0x2f4] ss:$8 sps:$4 sm:$0xff]   ;;  %v1415_v3 = vld [vmem:[%s2031_s1 + $0x2f0] ss:$8 sps:$4 sm:$0xff]   ;;  %v1425_v5 = vld [vmem:[%s2031_s1 + $0x304] ss:$8 sps:$4 sm:$0xff]  }
  0x18   :  { %1021 = vmatpush1.bf16.msra.mxu0 %v1355_v23  ;;  %940 = vmatprep.subr.bf16.mxu1 %v1356_v24  ;;  %v1418_v8 = vld [vmem:[%s2031_s1 + $0x100] ss:$8 sps:$4 sm:$0xff]   ;;  %v1428_v10 = vld [vmem:[%s2031_s1 + $0x114] ss:$8 sps:$4 sm:$0xff]   ;;  %v1426_v12 = vld [vmem:[%s2031_s1 + $0x110] ss:$8 sps:$4 sm:$0xff]  }
  0x19   :  { %1022 = vmatprep.subr.bf16.mxu0 %v1358_v25  ;;  %v1423_v9 = vld [vmem:[%s2031_s1 + $0x300] ss:$8 sps:$4 sm:$0xff]   ;;  %v1431_v11 = vld [vmem:[%s2031_s1 + $0x314] ss:$8 sps:$4 sm:$0xff]   ;;  %v1429_v13 = vld [vmem:[%s2031_s1 + $0x310] ss:$8 sps:$4 sm:$0xff]  }
  0x1a   :  { %v1434_v14 = vld [vmem:[%s2031_s1 + $0x124] ss:$8 sps:$4 sm:$0xff]   ;;  %v1432_v16 = vld [vmem:[%s2031_s1 + $0x120] ss:$8 sps:$4 sm:$0xff]   ;;  %v1440_v18 = vld [vmem:[%s2031_s1 + $0x134] ss:$8 sps:$4 sm:$0xff]  }
  0x1b   :  { %941 = vmatpush1.bf16.msra.mxu1 %v1360_v26  ;;  %v1437_v15 = vld [vmem:[%s2031_s1 + $0x324] ss:$8 sps:$4 sm:$0xff]   ;;  %v1435_v17 = vld [vmem:[%s2031_s1 + $0x320] ss:$8 sps:$4 sm:$0xff]   ;;  %v1443_v19 = vld [vmem:[%s2031_s1 + $0x334] ss:$8 sps:$4 sm:$0xff]  }
  0x1c   :  { %1023 = vmatpush1.bf16.msra.mxu0 %v1361_v27  ;;  %942 = vmatprep.subr.bf16.mxu1 %v1362_v28  ;;  %v1438_v20 = vld [vmem:[%s2031_s1 + $0x130] ss:$8 sps:$4 sm:$0xff]   ;;  %v1446_v22 = vld [vmem:[%s2031_s1 + $0x144] ss:$8 sps:$4 sm:$0xff]   ;;  %v1444_v24 = vld [vmem:[%s2031_s1 + $0x140] ss:$8 sps:$4 sm:$0xff]  }
  0x1d   :  { %1024 = vmatprep.subr.bf16.mxu0 %v1364_v29  ;;  %v1441_v21 = vld [vmem:[%s2031_s1 + $0x330] ss:$8 sps:$4 sm:$0xff]   ;;  %v1449_v23 = vld [vmem:[%s2031_s1 + $0x344] ss:$8 sps:$4 sm:$0xff]   ;;  %v1447_v25 = vld [vmem:[%s2031_s1 + $0x340] ss:$8 sps:$4 sm:$0xff]  }
  0x1e   :  { %v1452_v26 = vld [vmem:[%s2031_s1 + $0x154] ss:$8 sps:$4 sm:$0xff]   ;;  %v1450_v28 = vld [vmem:[%s2031_s1 + $0x150] ss:$8 sps:$4 sm:$0xff]   ;;  %v1482_v50 = vld [vmem:[%s2031_s1 + $0x1a4] ss:$8 sps:$4 sm:$0xff]  }
  0x1f   :  { %943 = vmatpush1.bf16.msra.mxu1 %v1366_v30  ;;  %v1455_v27 = vld [vmem:[%s2031_s1 + $0x354] ss:$8 sps:$4 sm:$0xff]   ;;  %v1453_v29 = vld [vmem:[%s2031_s1 + $0x350] ss:$8 sps:$4 sm:$0xff]   ;;  %v1458_v30 = vld [vmem:[%s2031_s1 + $0x164] ss:$8 sps:$4 sm:$0xff]  }
  0x20   :  { %1025 = vmatpush1.bf16.msra.mxu0 %v1367_v31  ;;  %944 = vmatprep.subr.bf16.mxu1 %v1368_v32  ;;  %v1461_v31 = vld [vmem:[%s2031_s1 + $0x364] ss:$8 sps:$4 sm:$0xff]   ;;  %v1476_v46 = vld [vmem:[%s2031_s1 + $0x194] ss:$8 sps:$4 sm:$0xff]   ;;  %v1474_v48 = vld [vmem:[%s2031_s1 + $0x190] ss:$8 sps:$4 sm:$0xff]  }
  0x21   :  { %1026 = vmatprep.subr.bf16.mxu0 %v1370_v33  ;;  %v1845_v32 = vld [vmem:[%s2032_s0 + $0x8] sm:$0xff]  ;;  %v1850_v33 = vld [vmem:[%s2032_s0 + $0x18] sm:$0xff] }
  0x22   :  { %v1483_v53 = vld [vmem:[%s2031_s1 + $0x3a0] ss:$8 sps:$4 sm:$0xff]  }
  0x23   :  { %945 = vmatpush1.bf16.msra.mxu1 %v1372_v34  ;;  %v1456_v34 = vld [vmem:[%s2031_s1 + $0x160] ss:$8 sps:$4 sm:$0xff]  }
  0x24   :  { %1027 = vmatpush1.bf16.msra.mxu0 %v1373_v35  ;;  %946 = vmatprep.subr.bf16.mxu1 %v1374_v36  ;;  %v1459_v35 = vld [vmem:[%s2031_s1 + $0x360] ss:$8 sps:$4 sm:$0xff]   ;;  %v1151_v36 = vcombine.high %v1845_v32, %v1845_v32 }
  0x25   :  { %1028 = vmatprep.subr.bf16.mxu0 %v1376_v37  ;;  %v1155_v37 = vcombine.high %v1850_v33, %v1850_v33 }
  0x27   :  { %947 = vmatpush1.bf16.msra.mxu1 %v1378_v38  ;;  %v1464_v38 = vld [vmem:[%s2031_s1 + $0x174] ss:$8 sps:$4 sm:$0xff]  }
  0x28   :  { %1029 = vmatpush1.bf16.msra.mxu0 %v1379_v39  ;;  %948 = vmatprep.subr.bf16.mxu1 %v1380_v40  ;;  %v1467_v39 = vld [vmem:[%s2031_s1 + $0x374] ss:$8 sps:$4 sm:$0xff]   ;;  %v1462_v40 = vld [vmem:[%s2031_s1 + $0x170] ss:$8 sps:$4 sm:$0xff]  }
  0x29   :  { %1030 = vmatprep.subr.bf16.mxu0 %v1382_v41  ;;  %v1465_v41 = vld [vmem:[%s2031_s1 + $0x370] ss:$8 sps:$4 sm:$0xff]  }
  0x2b   :  { %949 = vmatpush1.bf16.msra.mxu1 %v1384_v42  ;;  %v1470_v42 = vld [vmem:[%s2031_s1 + $0x184] ss:$8 sps:$4 sm:$0xff]  }
  0x2c   :  { %1031 = vmatpush1.bf16.msra.mxu0 %v1385_v43  ;;  %950 = vmatprep.subr.bf16.mxu1 %v1386_v44  ;;  %v1473_v43 = vld [vmem:[%s2031_s1 + $0x384] ss:$8 sps:$4 sm:$0xff]   ;;  %v1468_v44 = vld [vmem:[%s2031_s1 + $0x180] ss:$8 sps:$4 sm:$0xff]  }
  0x2d   :  { %1032 = vmatprep.subr.bf16.mxu0 %v1388_v45  ;;  %v1471_v45 = vld [vmem:[%s2031_s1 + $0x380] ss:$8 sps:$4 sm:$0xff]  }
  0x2f   :  { %951 = vmatpush1.bf16.msra.mxu1 %v1390_v47  ;;  %v1479_v47 = vld [vmem:[%s2031_s1 + $0x394] ss:$8 sps:$4 sm:$0xff]  }
  0x30   :  { %1033 = vmatpush1.bf16.msra.mxu0 %v1391_v49  ;;  %952 = vmatprep.subr.bf16.mxu1 %v1392_v51  ;;  %v1477_v49 = vld [vmem:[%s2031_s1 + $0x390] ss:$8 sps:$4 sm:$0xff]   ;;  %v1485_v51 = vld [vmem:[%s2031_s1 + $0x3a4] ss:$8 sps:$4 sm:$0xff]  }
  0x31   :  { %1034 = vmatprep.subr.bf16.mxu0 %v1394_v52  ;;  %v1480_v52 = vld [vmem:[%s2031_s1 + $0x1a0] ss:$8 sps:$4 sm:$0xff]  }
  0x33   :  { %953 = vmatpush1.bf16.msra.mxu1 %v1396_v54  ;;  %v1488_v54 = vld [vmem:[%s2031_s1 + $0x1b4] ss:$8 sps:$4 sm:$0xff]  }
  0x34   :  { %1035 = vmatpush1.bf16.msra.mxu0 %v1397_v55  ;;  %954 = vmatprep.subr.bf16.mxu1 %v1398_v56  ;;  %v1491_v55 = vld [vmem:[%s2031_s1 + $0x3b4] ss:$8 sps:$4 sm:$0xff]   ;;  %v1486_v56 = vld [vmem:[%s2031_s1 + $0x1b0] ss:$8 sps:$4 sm:$0xff]  }
  0x35   :  { %1036 = vmatprep.subr.bf16.mxu0 %v1400_v57  ;;  %v1489_v57 = vld [vmem:[%s2031_s1 + $0x3b0] ss:$8 sps:$4 sm:$0xff]  }
  0x37   :  { %955 = vmatpush1.bf16.msra.mxu1 %v1402_v58  ;;  %v1494_v58 = vld [vmem:[%s2031_s1 + $0x1c4] ss:$8 sps:$4 sm:$0xff]  }
  0x38   :  { %1037 = vmatpush1.bf16.msra.mxu0 %v1403_v59  ;;  %956 = vmatprep.subr.bf16.mxu1 %v1404_v60  ;;  %v1497_v59 = vld [vmem:[%s2031_s1 + $0x3c4] ss:$8 sps:$4 sm:$0xff]   ;;  %v1492_v60 = vld [vmem:[%s2031_s1 + $0x1c0] ss:$8 sps:$4 sm:$0xff]  }
  0x39   :  { %1038 = vmatprep.subr.bf16.mxu0 %v1406_v61  ;;  %v1495_v61 = vld [vmem:[%s2031_s1 + $0x3c0] ss:$8 sps:$4 sm:$0xff]  }
  0x3b   :  { %957 = vmatpush1.bf16.msra.mxu1 %v1408_v62  ;;  %v1500_v62 = vld [vmem:[%s2031_s1 + $0x1d4] ss:$8 sps:$4 sm:$0xff]  }
  0x3c   :  { %1039 = vmatpush1.bf16.msra.mxu0 %v1409_v63  ;;  %958 = vmatprep.subr.bf16.mxu1 %v1410_v0  ;;  %v1503_v63 = vld [vmem:[%s2031_s1 + $0x3d4] ss:$8 sps:$4 sm:$0xff]   ;;  %v1498_v0 = vld [vmem:[%s2031_s1 + $0x1d0] ss:$8 sps:$4 sm:$0xff]  }
  0x3d   :  { %1040 = vmatprep.subr.bf16.mxu0 %v1412_v1  ;;  %v1501_v1 = vld [vmem:[%s2031_s1 + $0x3d0] ss:$8 sps:$4 sm:$0xff]  }
  0x3f   :  { %959 = vmatpush1.bf16.msra.mxu1 %v1414_v2  ;;  %v1506_v2 = vld [vmem:[%s2031_s1 + $0x1e4] ss:$8 sps:$4 sm:$0xff]  }
  0x40   :  { %1041 = vmatpush1.bf16.msra.mxu0 %v1415_v3  ;;  %969 = vmatprep.subr.bf16.mxu1 %v1420_v4  ;;  %v1509_v3 = vld [vmem:[%s2031_s1 + $0x3e4] ss:$8 sps:$4 sm:$0xff]   ;;  %v1504_v4 = vld [vmem:[%s2031_s1 + $0x1e0] ss:$8 sps:$4 sm:$0xff]  }
  0x41   :  { %1051 = vmatprep.subr.bf16.mxu0 %v1425_v5  ;;  %v1507_v5 = vld [vmem:[%s2031_s1 + $0x3e0] ss:$8 sps:$4 sm:$0xff]  }
  0x42   :  { %961 = vmatmul.mubr.bf16.vlgmr.msra.gmra.mrb[0].mxu1 %v1148_v6  ;;  %v1512_v6 = vld [vmem:[%s2031_s1 + $0x1f4] ss:$8 sps:$4 sm:$0xff]  }
  0x43   :  { %1043 = vmatmul.mubr.bf16.vlgmr.msra.gmra.mrb[0].mxu0 %v1152_v7  ;;  %970 = vmatpush1.bf16.msra.mxu1 %v1418_v8  ;;  %v1515_v7 = vld [vmem:[%s2031_s1 + $0x3f4] ss:$8 sps:$4 sm:$0xff]   ;;  %v1510_v8 = vld [vmem:[%s2031_s1 + $0x1f0] ss:$8 sps:$4 sm:$0xff]  }
  0x44   :  { %1052 = vmatpush1.bf16.msra.mxu0 %v1423_v9  ;;  %971 = vmatprep.subr.bf16.mxu1 %v1428_v10  ;;  %v1513_v9 = vld [vmem:[%s2031_s1 + $0x3f0] ss:$8 sps:$4 sm:$0xff]   ;;  %v1522_v10 = vld [vmem:[%s2031_s1 + $0x404] ss:$8 sps:$4 sm:$0xff]  }
  0x45   :  { %1053 = vmatprep.subr.bf16.mxu0 %v1431_v11  ;;  %1001 = vmatprep.mubr.bf16.mxu1 %v1151_v36  ;;  %v1150_v11 = vcombine.low %v1845_v32, %v1845_v32 }
  0x46   :  { %1083 = vmatprep.mubr.bf16.mxu0 %v1155_v37  ;;  %v164_v37 = vld [vmem:[%s2033_s2] sm:$0x3] }
  0x47   :  { %972 = vmatpush1.bf16.msra.mxu1 %v1426_v12  ;;  %v1154_v12 = vcombine.low %v1850_v33, %v1850_v33 }
  0x48   :  { %1054 = vmatpush1.bf16.msra.mxu0 %v1429_v13  ;;  %973 = vmatprep.subr.bf16.mxu1 %v1434_v14  ;;  %v1520_v13 = vld [vmem:[%s2031_s1 + $0x400] ss:$8 sps:$4 sm:$0xff]   ;;  %v1525_v14 = vld [vmem:[%s2031_s1 + $0x414] ss:$8 sps:$4 sm:$0xff]  }
  0x49   :  { %1055 = vmatprep.subr.bf16.mxu0 %v1437_v15  ;;  %v1523_v15 = vld [vmem:[%s2031_s1 + $0x410] ss:$8 sps:$4 sm:$0xff]  }
  0x4b   :  { %974 = vmatpush1.bf16.msra.mxu1 %v1432_v16  ;;  %v1545_v16 = vmov 0  }
  0x4c   :  { %1056 = vmatpush1.bf16.msra.mxu0 %v1435_v17  ;;  %975 = vmatprep.subr.bf16.mxu1 %v1440_v18  ;;  %v1528_v17 = vld [vmem:[%s2031_s1 + $0x424] ss:$8 sps:$4 sm:$0xff]   ;;  %v1526_v18 = vld [vmem:[%s2031_s1 + $0x420] ss:$8 sps:$4 sm:$0xff]  }
  0x4d   :  { %1057 = vmatprep.subr.bf16.mxu0 %v1443_v19  ;;  %v1531_v19 = vld [vmem:[%s2031_s1 + $0x434] ss:$8 sps:$4 sm:$0xff]  }
  0x4f   :  { %976 = vmatpush1.bf16.msra.mxu1 %v1438_v20  ;;  %v1529_v20 = vld [vmem:[%s2031_s1 + $0x430] ss:$8 sps:$4 sm:$0xff]  }
  0x50   :  { %1058 = vmatpush1.bf16.msra.mxu0 %v1441_v21  ;;  %977 = vmatprep.subr.bf16.mxu1 %v1446_v22  ;;  %v1534_v21 = vld [vmem:[%s2031_s1 + $0x444] ss:$8 sps:$4 sm:$0xff]   ;;  %v1532_v22 = vld [vmem:[%s2031_s1 + $0x440] ss:$8 sps:$4 sm:$0xff]  }
  0x51   :  { %1059 = vmatprep.subr.bf16.mxu0 %v1449_v23  ;;  %v1537_v23 = vld [vmem:[%s2031_s1 + $0x454] ss:$8 sps:$4 sm:$0xff]  }
  0x53   :  { %978 = vmatpush1.bf16.msra.mxu1 %v1444_v24  ;;  %v1535_v24 = vld [vmem:[%s2031_s1 + $0x450] ss:$8 sps:$4 sm:$0xff]  }
  0x54   :  { %1060 = vmatpush1.bf16.msra.mxu0 %v1447_v25  ;;  %979 = vmatprep.subr.bf16.mxu1 %v1452_v26  ;;  %v1540_v25 = vld [vmem:[%s2031_s1 + $0x464] ss:$8 sps:$4 sm:$0xff]   ;;  %v1538_v26 = vld [vmem:[%s2031_s1 + $0x460] ss:$8 sps:$4 sm:$0xff]  }
  0x55   :  { %1061 = vmatprep.subr.bf16.mxu0 %v1455_v27  ;;  %v1543_v27 = vld [vmem:[%s2031_s1 + $0x474] ss:$8 sps:$4 sm:$0xff]  }
  0x57   :  { %980 = vmatpush1.bf16.msra.mxu1 %v1450_v28  ;;  %v1541_v28 = vld [vmem:[%s2031_s1 + $0x470] ss:$8 sps:$4 sm:$0xff]  }
  0x58   :  { %1062 = vmatpush1.bf16.msra.mxu0 %v1453_v29  ;;  %981 = vmatprep.subr.bf16.mxu1 %v1458_v30  ;;  %v1544_v29 = vld [vmem:[%s2032_s0 + $0x20] ss:$0 sps:$4 sm:$0xff]  }
  0x59   :  { %1063 = vmatprep.subr.bf16.mxu0 %v1461_v31 }
  0x5b   :  { %982 = vmatpush1.bf16.msra.mxu1 %v1456_v34  ;;  %v166_v34 = vlaneseq }
  0x5c   :  { %1064 = vmatpush1.bf16.msra.mxu0 %v1459_v35  ;;  %983 = vmatprep.subr.bf16.mxu1 %v1464_v38 }
  0x5d   :  { %1065 = vmatprep.subr.bf16.mxu0 %v1467_v39  ;;  %v167_v35 = vshrl.u32 %v166_v34, 7 }
  0x5f   :  { %984 = vmatpush1.bf16.msra.mxu1 %v1462_v40  ;;  %v168_v36 = vsub.s32 0, %v167_v35  ;;  %v172_v38 = vsub.s32 1, %v167_v35 }
  0x60   :  { %1066 = vmatpush1.bf16.msra.mxu0 %v1465_v41  ;;  %985 = vmatprep.subr.bf16.mxu1 %v1470_v42 }
  0x61   :  { %1067 = vmatprep.subr.bf16.mxu0 %v1473_v43  ;;  %v169_v39 = vrot.slane %v164_v37, %v168_v36  ;;  %v173_v40 = vrot.slane %v164_v37, %v172_v38 }
  0x63   :  { %986 = vmatpush1.bf16.msra.mxu1 %v1468_v44 }
  0x64   :  { %1068 = vmatpush1.bf16.msra.mxu0 %v1471_v45  ;;  %987 = vmatprep.subr.bf16.mxu1 %v1476_v46 }
  0x65   :  { %1069 = vmatprep.subr.bf16.mxu0 %v1479_v47 }
  0x67   :  { %988 = vmatpush1.bf16.msra.mxu1 %v1474_v48 }
  0x68   :  { %1070 = vmatpush1.bf16.msra.mxu0 %v1477_v49  ;;  %989 = vmatprep.subr.bf16.mxu1 %v1482_v50 }
  0x69   :  { %1071 = vmatprep.subr.bf16.mxu0 %v1485_v51 }
  0x6b   :  { %990 = vmatpush1.bf16.msra.mxu1 %v1480_v52 }
  0x6c   :  { %1072 = vmatpush1.bf16.msra.mxu0 %v1483_v53  ;;  %991 = vmatprep.subr.bf16.mxu1 %v1488_v54 }
  0x6d   :  { %1073 = vmatprep.subr.bf16.mxu0 %v1491_v55 }
  0x6f   :  { %992 = vmatpush1.bf16.msra.mxu1 %v1486_v56 }
  0x70   :  { %1074 = vmatpush1.bf16.msra.mxu0 %v1489_v57  ;;  %993 = vmatprep.subr.bf16.mxu1 %v1494_v58 }
  0x71   :  { %1075 = vmatprep.subr.bf16.mxu0 %v1497_v59 }
  0x73   :  { %994 = vmatpush1.bf16.msra.mxu1 %v1492_v60 }
  0x74   :  { %1076 = vmatpush1.bf16.msra.mxu0 %v1495_v61  ;;  %995 = vmatprep.subr.bf16.mxu1 %v1500_v62 }
  0x75   :  { %1077 = vmatprep.subr.bf16.mxu0 %v1503_v63 }
  0x77   :  { %996 = vmatpush1.bf16.msra.mxu1 %v1498_v0 }
  0x78   :  { %1078 = vmatpush1.bf16.msra.mxu0 %v1501_v1  ;;  %997 = vmatprep.subr.bf16.mxu1 %v1506_v2 }
  0x79   :  { %1079 = vmatprep.subr.bf16.mxu0 %v1509_v3 }
  0x7b   :  { %998 = vmatpush1.bf16.msra.mxu1 %v1504_v4 }
  0x7c   :  { %1080 = vmatpush1.bf16.msra.mxu0 %v1507_v5  ;;  %999 = vmatprep.subr.bf16.mxu1 %v1512_v6 }
  0x7d   :  { %1081 = vmatprep.subr.bf16.mxu0 %v1515_v7 }
  0x7f   :  { %1000 = vmatpush1.bf16.msra.mxu1 %v1510_v8 }
  0x80   :  { %1082 = vmatpush1.bf16.msra.mxu0 %v1513_v9 }
  0x81   :  { %1092 = vmatprep.subr.bf16.mxu0 %v1522_v10 }
  0x82   :  { %1002 = vmatmul.mubr.bf16.vlgmr.msra.gmra.mrb[0].mxu1 %v1150_v11 }
  0x83   :  { %1084 = vmatmul.mubr.bf16.vlgmr.msra.gmra.mrb[0].mxu0 %v1154_v12 }
  0x84   :  { %1093 = vmatpush1.bf16.msra.mxu0 %v1520_v13  ;;  %1124 = vmatprep.mubr.bf16.mxu0 %v1545_v16 }
  0x85   :  { %1094 = vmatprep.subr.bf16.mxu0 %v1525_v14 }
  0x88   :  { %1095 = vmatpush1.bf16.msra.mxu0 %v1523_v15 }
  0x89   :  { %1096 = vmatprep.subr.bf16.mxu0 %v1528_v17 }
  0x8c   :  { %1097 = vmatpush1.bf16.msra.mxu0 %v1526_v18 }
  0x8d   :  { %1098 = vmatprep.subr.bf16.mxu0 %v1531_v19 }
  0x90   :  { %1099 = vmatpush1.bf16.msra.mxu0 %v1529_v20 }
  0x91   :  { %1100 = vmatprep.subr.bf16.mxu0 %v1534_v21 }
  0x94   :  { %1101 = vmatpush1.bf16.msra.mxu0 %v1532_v22 }
  0x95   :  { %1102 = vmatprep.subr.bf16.mxu0 %v1537_v23 }
  0x98   :  { %1103 = vmatpush1.bf16.msra.mxu0 %v1535_v24 }
  0x99   :  { %1104 = vmatprep.subr.bf16.mxu0 %v1540_v25 }
  0x9c   :  { %1105 = vmatpush1.bf16.msra.mxu0 %v1538_v26 }
  0x9d   :  { %1106 = vmatprep.subr.bf16.mxu0 %v1543_v27 }
  0xa0   :  { %1107 = vmatpush1.bf16.msra.mxu0 %v1541_v28 }
  0xa3   :  { %1125 = vmatmul.mubr.bf16.vlgmr.msra.gmra.mrb[0].mxu0 %v1544_v29 }
 0x155   :  { %v1003_v30 = vpop.f32.mrb[0].mxu1 }
 0x156   :  { %v1005_v31 = vpop.f32.mrb[1].mxu1  ;;  %v1303_v41 = vadd.f32 %v1003_v30, %v169_v39 }
 0x157   :  { %v1007_v32 = vpop.f32.mrb[2].mxu1  ;;  %v1305_v42 = vadd.f32 %v1005_v31, %v173_v40 }
 0x158   :  { %v1008_v33 = vpop.f32.mrb[3].mxu1 }
 0x176   :  { %v1126_v43 = vpop.f32.mrb[0].mxu0 }
 0x177   :  { %v1304_v44 = vadd.f32 %v1303_v41, %v1126_v43  ;;  %v1128_v45 = vpop.f32.mrb[1].mxu0 }
 0x178   :  { %v1306_v46 = vadd.f32 %v1305_v42, %v1128_v45  ;;  %v1130_v47 = vpop.f32.mrb[2].mxu0 }
 0x179   :  { %v1133_v48 = vmax.f32 %v1304_v44, 0.0  ;;  %v1131_v49 = vpop.f32.mrb[3].mxu0 }
 0x17a   :  { %v1134_v50 = vmax.f32 %v1306_v46, 0.0 }
 0x17c   :  { %v1302_v51 = vpack.c.bf16 %v1134_v50, %v1133_v48 }
 0x17e   :  { %1143 = vst [vmem:[%s2034_s3] sm:$0xff] %v1302_v51 }

// kernel: seg_model_forward.24
= control target key start
LH: loop header
LB: loop body
LE: loop exit
PB: predicated region body
PF: predicated region fallthrough
CT: control target
= control target key end

     0   :  { %v608_v35 = vmov 0.0   ;;  %vm609_vm0 = vmmov 0   ;;  %vm330_vm1 = vcmask 523264   ;;  %s753_s1 = inlined_call_operand.vmem [shape: bf16[576,128], index: 1, kind: input, shape index: {}]   ;;  %s754_s0 = inlined_call_operand.vmem [shape: bf16[8,576], index: 0, kind: input, shape index: {}]   ;;  %s755_s2 = inlined_call_operand.vmem [shape: f32[1,128], index: 2, kind: input, shape index: {}]   ;;  %s756_s3 = inlined_call_operand.vmem [shape: bf16[8,128], index: 3, kind: output, shape index: {}]  }
   0x1   :  { %v567_v0 = vld [vmem:[%s753_s1 + $0x40] sm:$0xff]   ;;  %v571_v4 = vld [vmem:[%s753_s1 + $0x48] sm:$0xff]   ;;  %v575_v8 = vld [vmem:[%s753_s1 + $0x50] sm:$0xff]  }
   0x2   :  { %v568_v1 = vld [vmem:[%s753_s1] sm:$0xff]   ;;  %504 = vmatprep.subr.bf16.mxu0 %v567_v0  ;;  %v572_v5 = vld [vmem:[%s753_s1 + $0x8] sm:$0xff]   ;;  %v576_v9 = vld [vmem:[%s753_s1 + $0x10] sm:$0xff]  }
   0x3   :  { %v569_v2 = vld [vmem:[%s753_s1 + $0xc0] sm:$0xff]   ;;  %505 = vmatpush3.bf16.msra.mxu0 %v568_v1  ;;  %v573_v6 = vld [vmem:[%s753_s1 + $0xc8] sm:$0xff]   ;;  %v577_v10 = vld [vmem:[%s753_s1 + $0xd0] sm:$0xff]  }
   0x4   :  { %v570_v3 = vld [vmem:[%s753_s1 + $0x80] sm:$0xff]   ;;  %526 = vmatprep.subr.bf16.mxu1 %v569_v2  ;;  %506 = vmatprep.subr.bf16.mxu0 %v571_v4  ;;  %v574_v7 = vld [vmem:[%s753_s1 + $0x88] sm:$0xff]   ;;  %v578_v11 = vld [vmem:[%s753_s1 + $0x90] sm:$0xff]  }
   0x5   :  { %527 = vmatpush3.bf16.msra.mxu1 %v570_v3  ;;  %v579_v12 = vld [vmem:[%s753_s1 + $0x58] sm:$0xff]   ;;  %v583_v16 = vld [vmem:[%s753_s1 + $0x60] sm:$0xff]   ;;  %v587_v20 = vld [vmem:[%s753_s1 + $0x68] sm:$0xff]  }
   0x6   :  { %528 = vmatprep.subr.bf16.mxu1 %v573_v6  ;;  %v580_v13 = vld [vmem:[%s753_s1 + $0x18] sm:$0xff]   ;;  %v584_v17 = vld [vmem:[%s753_s1 + $0x20] sm:$0xff]   ;;  %v588_v21 = vld [vmem:[%s753_s1 + $0x28] sm:$0xff]  }
   0x7   :  { %507 = vmatpush3.bf16.msra.mxu0 %v572_v5  ;;  %v581_v14 = vld [vmem:[%s753_s1 + $0xd8] sm:$0xff]   ;;  %v585_v18 = vld [vmem:[%s753_s1 + $0xe0] sm:$0xff]   ;;  %v589_v22 = vld [vmem:[%s753_s1 + $0xe8] sm:$0xff]  }
   0x8   :  { %508 = vmatprep.subr.bf16.mxu0 %v575_v8  ;;  %v582_v15 = vld [vmem:[%s753_s1 + $0x98] sm:$0xff]   ;;  %v586_v19 = vld [vmem:[%s753_s1 + $0xa0] sm:$0xff]   ;;  %v590_v23 = vld [vmem:[%s753_s1 + $0xa8] sm:$0xff]  }
   0x9   :  { %529 = vmatpush3.bf16.msra.mxu1 %v574_v7  ;;  %v591_v24 = vld [vmem:[%s753_s1 + $0x70] sm:$0xff]   ;;  %v595_v28 = vld [vmem:[%s753_s1 + $0x78] sm:$0xff]   ;;  %v15_v31 = vld [vmem:[%s754_s0] sm:$0xff] }
   0xa   :  { %530 = vmatprep.subr.bf16.mxu1 %v577_v10  ;;  %v592_v25 = vld [vmem:[%s753_s1 + $0x30] sm:$0xff]   ;;  %v596_v29 = vld [vmem:[%s753_s1 + $0x38] sm:$0xff]   ;;  %v462_v32 = vcombine.low %v15_v31, %v15_v31  ;;  %v463_v33 = vcombine.high %v15_v31, %v15_v31  ;;  %v16_v36 = vld [vmem:[%s754_s0 + $0x8] sm:$0xff] }
   0xb   :  { %509 = vmatpush3.bf16.msra.mxu0 %v576_v9  ;;  %v593_v26 = vld [vmem:[%s753_s1 + $0xf0] sm:$0xff]   ;;  %v597_v30 = vld [vmem:[%s753_s1 + $0xf8] sm:$0xff]   ;;  %v464_v37 = vcombine.low %v16_v36, %v16_v36  ;;  %v465_v38 = vcombine.high %v16_v36, %v16_v36  ;;  %v604_v39 = vld [vmem:[%s753_s1 + $0x100] sm:$0xff]  }
   0xc   :  { %510 = vmatprep.subr.bf16.mxu0 %v579_v12  ;;  %v594_v27 = vld [vmem:[%s753_s1 + $0xb0] sm:$0xff]   ;;  %v601_v34 = vld [vmem:[%s753_s1 + $0xb8] sm:$0xff]   ;;  %366 = vmatprep.mubr.bf16.mxu0 %v463_v33  ;;  %v605_v40 = vld [vmem:[%s753_s1 + $0x108] sm:$0xff]  }
   0xd   :  { %531 = vmatpush3.bf16.msra.mxu1 %v578_v11  ;;  %406 = vmatprep.mubr.bf16.mxu1 %v465_v38  ;;  %v606_v41 = vld [vmem:[%s753_s1 + $0x110] sm:$0xff]   ;;  %v607_v42 = vld [vmem:[%s753_s1 + $0x118] sm:$0xff]   ;;  %v461_v45 = vld [vmem:[%s755_s2] ss:$0 sm:$0xff] }
   0xe   :  { %532 = vmatprep.subr.bf16.mxu1 %v581_v14  ;;  %v600_v43 = vld [vmem:[%s754_s0 + $0x10] ss:$0 sps:$4 sm:$0xff]  }
   0xf   :  { %511 = vmatpush3.bf16.msra.mxu0 %v580_v13 }
  0x10   :  { %512 = vmatprep.subr.bf16.mxu0 %v583_v16 }
  0x11   :  { %533 = vmatpush3.bf16.msra.mxu1 %v582_v15 }
  0x12   :  { %534 = vmatprep.subr.bf16.mxu1 %v585_v18 }
  0x13   :  { %513 = vmatpush3.bf16.msra.mxu0 %v584_v17 }
  0x14   :  { %514 = vmatprep.subr.bf16.mxu0 %v587_v20 }
  0x15   :  { %535 = vmatpush3.bf16.msra.mxu1 %v586_v19 }
  0x16   :  { %536 = vmatprep.subr.bf16.mxu1 %v589_v22 }
  0x17   :  { %515 = vmatpush3.bf16.msra.mxu0 %v588_v21 }
  0x18   :  { %516 = vmatprep.subr.bf16.mxu0 %v591_v24 }
  0x19   :  { %537 = vmatpush3.bf16.msra.mxu1 %v590_v23 }
  0x1a   :  { %538 = vmatprep.subr.bf16.mxu1 %v593_v26 }
  0x1b   :  { %517 = vmatpush3.bf16.msra.mxu0 %v592_v25 }
  0x1c   :  { %518 = vmatprep.subr.bf16.mxu0 %v595_v28 }
  0x1d   :  { %539 = vmatpush3.bf16.msra.mxu1 %v594_v27 }
  0x1e   :  { %540 = vmatprep.subr.bf16.mxu1 %v597_v30 }
  0x1f   :  { %519 = vmatpush3.bf16.msra.mxu0 %v596_v29 }
  0x20   :  { %553 = vmatprep.subr.bf16.mxu0 %v608_v35 }
  0x21   :  { %541 = vmatpush3.bf16.msra.mxu1 %v601_v34 }
  0x22   :  { %367 = vmatmul.mubr.bf16.vlgmr.msra.gmra.mrb[0].mxu0 %v462_v32 }
  0x23   :  { %554 = vmatpush3.bf16.msra.mxu0 %v604_v39  ;;  %561 = vmatprep.mubr.msk.bf16.mxu0 %vm609_vm0, %v608_v35 }
  0x24   :  { %407 = vmatmul.mubr.bf16.vlgmr.msra.gmra.mrb[0].mxu1 %v464_v37  ;;  %555 = vmatprep.subr.bf16.mxu0 %v608_v35 }
  0x27   :  { %556 = vmatpush3.bf16.msra.mxu0 %v605_v40 }
  0x28   :  { %557 = vmatprep.subr.bf16.mxu0 %v608_v35 }
  0x2b   :  { %558 = vmatpush3.bf16.msra.mxu0 %v606_v41 }
  0x2c   :  { %559 = vmatprep.subr.bf16.mxu0 %v608_v35 }
  0x2f   :  { %560 = vmatpush3.bf16.msra.mxu0 %v607_v42 }
  0x32   :  { %562 = vmatmul.mubr.msk.bf16.vlgmr.msra.gmra.mrb[4].mxu0 %vm330_vm1, %v600_v43 }
  0xf5   :  { %v520_v44 = vpop.f32.mrb[0].mxu0 }
  0xf6   :  { %v521_v46 = vpop.f32.mrb[1].mxu0 }
  0xf7   :  { %v522_v47 = vadd.f32 %v521_v46, %v520_v44  ;;  %v523_v48 = vpop.f32.mrb[2].mxu0  ;;  %v542_v49 = vpop.f32.mrb[0].mxu1 }
  0xf8   :  { %v524_v50 = vpop.f32.mrb[3].mxu0  ;;  %v543_v51 = vpop.f32.mrb[1].mxu1 }
  0xf9   :  { %v369_v52 = vadd.f32 %v522_v47, %v461_v45  ;;  %v544_v53 = vadd.f32 %v543_v51, %v542_v49  ;;  %v545_v54 = vpop.f32.mrb[2].mxu1 }
  0xfa   :  { %v546_v55 = vpop.f32.mrb[3].mxu1 }
  0xfb   :  { %v409_v56 = vadd.f32 %v544_v53, %v369_v52 }
 0x105   :  { %v448_v57 = vpop.f32.mrb[4].mxu0 }
 0x106   :  { %v449_v58 = vadd.f32 %v448_v57, %v409_v56  ;;  %v563_v59 = vpop.f32.mrb[5].mxu0 }
 0x107   :  { %v451_v60 = vpop.f32.mrb[6].mxu0 }
 0x108   :  { %v454_v61 = vmax.f32 %v449_v58, 0.0  ;;  %v564_v62 = vpop.f32.mrb[7].mxu0 }
 0x10a   :  { %v455_v63 = vpack.c.bf16 %v454_v61, %v454_v61 }
 0x10c   :  { %456 = vst [vmem:[%s756_s3] sm:$0xf] %v455_v63 }

// kernel: seg_model_forward.26
= control target key start
LH: loop header
LB: loop body
LE: loop exit
PB: predicated region body
PF: predicated region fallthrough
CT: control target
= control target key end

     0   :  { %s1233_s12 = smov 0   ;;  %s1389_s0 = inlined_call_operand.vmem [shape: bf16[128,576], index: 0, kind: input, shape index: {}]   ;;  %s1390_s1 = inlined_call_operand.vmem [shape: bf16[576,128], index: 1, kind: input, shape index: {}]   ;;  %s1391_s2 = inlined_call_operand.vmem [shape: f32[1,128], index: 2, kind: input, shape index: {}]   ;;  %s1392_s3 = inlined_call_operand.vmem [shape: bf16[128,128], index: 3, kind: output, shape index: {}]  }
   0x1 LB: > { %s909_s13 = sadd.s32 4294967295, %s1211_s12   ;;  %p913_p0 = scmp.ge.s32.totalorder %s1211_s12, 1  ;;  %s1211_s12 = sphi %s1233_s12, %s13_s12  }
   0x2   : > { %p139_p1 = scmp.lt.s32.totalorder %s1211_s12, 3 }
   0x4   : > { %p140_p2 = pnand %p913_p0, %p139_p1 }
   0x5   : > { %v1141_v0 = vld [vmem:[%s1390_s1 + $0x40] sm:$0xff] (!%p140_p2)   ;;  %v1145_v4 = vld [vmem:[%s1390_s1 + $0x48] sm:$0xff] (!%p140_p2)   ;;  %v1149_v8 = vld [vmem:[%s1390_s1 + $0x50] sm:$0xff] (!%p140_p2)   ;;  %s914_s19 = sshll.u32 (!%p140_p2), %s909_s13, 3  ;;  %vm597_vm0 = vcmask (!%p140_p2), 523264  }
   0x6   : > { %143 = sbr.rel (%p140_p2) target bundleno = 294 (0x126), region = 32  ;;  %v1142_v1 = vld [vmem:[%s1390_s1 + $0xc0] sm:$0xff] (!%p140_p2)   ;;  %1020 = vmatprep.subr.bf16.mxu0 (!%p140_p2), %v1141_v0  ;;  %v1146_v5 = vld [vmem:[%s1390_s1 + $0xc8] sm:$0xff] (!%p140_p2)   ;;  %v1150_v9 = vld [vmem:[%s1390_s1 + $0xd0] sm:$0xff] (!%p140_p2)   ;;  %p165_p3 = scmp.lt.s32.totalorder (!%p140_p2), %s914_s19, 15 }
   0x7   : > { %v1143_v2 = vld [vmem:[%s1390_s1] sm:$0xff] (!%p140_p2)   ;;  %1060 = vmatprep.subr.bf16.mxu1 (!%p140_p2), %v1142_v1  ;;  %v1147_v6 = vld [vmem:[%s1390_s1 + $0x8] sm:$0xff] (!%p140_p2)   ;;  %v1151_v10 = vld [vmem:[%s1390_s1 + $0x10] sm:$0xff] (!%p140_p2)  }
   0x8   : > { %v1144_v3 = vld [vmem:[%s1390_s1 + $0x80] sm:$0xff] (!%p140_p2)   ;;  %1021 = vmatpush3.bf16.msra.mxu0 (!%p140_p2), %v1143_v2  ;;  %v1148_v7 = vld [vmem:[%s1390_s1 + $0x88] sm:$0xff] (!%p140_p2)   ;;  %v1152_v11 = vld [vmem:[%s1390_s1 + $0x90] sm:$0xff] (!%p140_p2)  }
   0x9   : > { %1061 = vmatpush3.bf16.msra.mxu1 (!%p140_p2), %v1144_v3  ;;  %1022 = vmatprep.subr.bf16.mxu0 (!%p140_p2), %v1145_v4  ;;  %v1153_v12 = vld [vmem:[%s1390_s1 + $0x58] sm:$0xff] (!%p140_p2)   ;;  %v1157_v16 = vld [vmem:[%s1390_s1 + $0x60] sm:$0xff] (!%p140_p2)   ;;  %v1161_v20 = vld [vmem:[%s1390_s1 + $0x68] sm:$0xff] (!%p140_p2)  }
   0xa   : > { %1062 = vmatprep.subr.bf16.mxu1 (!%p140_p2), %v1146_v5  ;;  %v1154_v13 = vld [vmem:[%s1390_s1 + $0xd8] sm:$0xff] (!%p140_p2)   ;;  %v1158_v17 = vld [vmem:[%s1390_s1 + $0xe0] sm:$0xff] (!%p140_p2)   ;;  %v1162_v21 = vld [vmem:[%s1390_s1 + $0xe8] sm:$0xff] (!%p140_p2)  }
   0xb   : > { %v1155_v14 = vld [vmem:[%s1390_s1 + $0x18] sm:$0xff] (!%p140_p2)   ;;  %v1159_v18 = vld [vmem:[%s1390_s1 + $0x20] sm:$0xff] (!%p140_p2)   ;;  %v1163_v22 = vld [vmem:[%s1390_s1 + $0x28] sm:$0xff] (!%p140_p2)  }
   0xc   : > { %1023 = vmatpush3.bf16.msra.mxu0 (!%p140_p2), %v1147_v6  ;;  %v1156_v15 = vld [vmem:[%s1390_s1 + $0x98] sm:$0xff] (!%p140_p2)   ;;  %v1160_v19 = vld [vmem:[%s1390_s1 + $0xa0] sm:$0xff] (!%p140_p2)   ;;  %v1164_v23 = vld [vmem:[%s1390_s1 + $0xa8] sm:$0xff] (!%p140_p2)  }
   0xd   : > { %1063 = vmatpush3.bf16.msra.mxu1 %v1148_v7  ;;  %1024 = vmatprep.subr.bf16.mxu0 %v1149_v8  ;;  %s1394_s19 = smov (!%p165_p3, %s914_s19), 15  ;;  %v1165_v24 = vld [vmem:[%s1390_s1 + $0x70] sm:$0xff]   ;;  %v1169_v28 = vld [vmem:[%s1390_s1 + $0x78] sm:$0xff]   ;;  %v1179_v36 = vld [vmem:[%s1390_s1 + $0x100] sm:$0xff]  }
   0xe   : > { %1064 = vmatprep.subr.bf16.mxu1 %v1150_v9  ;;  %v1166_v25 = vld [vmem:[%s1390_s1 + $0xf0] sm:$0xff]   ;;  %s1132_s16 = smul.u32 20, %s1394_s19  ;;  %v1170_v29 = vld [vmem:[%s1390_s1 + $0xf8] sm:$0xff]   ;;  %v1186_v39 = vld [vmem:[%s1390_s1 + $0x108] sm:$0xff]   ;;  %s917_s17 = sshll.u32 %s1394_s19, 2 }
   0xf   : > { %v1167_v26 = vld [vmem:[%s1390_s1 + $0x30] sm:$0xff]   ;;  %v1171_v30 = vld [vmem:[%s1390_s1 + $0x38] sm:$0xff]   ;;  %v918_v58 = vld [vmem:[%s1391_s2] ss:$0 sm:$0xff]  ;;  %s175_s21 = scalar_lea.vmem %s1392_s3, %s917_s17 }
  0x10   : > { %1025 = vmatpush3.bf16.msra.mxu0 %v1151_v10  ;;  %v1168_v27 = vld [vmem:[%s1390_s1 + $0xb0] sm:$0xff]   ;;  %s1339_s13 = scalar_lea.vmem %s1389_s0, %s1132_s16  ;;  %v1172_v31 = vld [vmem:[%s1390_s1 + $0xb8] sm:$0xff]  }
  0x11   : > { %1065 = vmatpush3.bf16.msra.mxu1 %v1152_v11  ;;  %1026 = vmatprep.subr.bf16.mxu0 %v1153_v12  ;;  %v1173_v32 = vld [vmem:[%s1339_s13] ss:$20 sps:$4 sm:$0xff]   ;;  %v1175_v33 = vld [vmem:[%s1339_s13 + $0x4] ss:$20 sps:$4 sm:$0xff]   ;;  %v1176_v34 = vld [vmem:[%s1339_s13 + $0x8] ss:$20 sps:$4 sm:$0xff]  }
  0x12   : > { %1066 = vmatprep.subr.bf16.mxu1 %v1154_v13  ;;  %v1178_v35 = vld [vmem:[%s1339_s13 + $0xc] ss:$20 sps:$4 sm:$0xff]   ;;  %642 = vmatprep.mubr.bf16.mxu0 %v1175_v33  ;;  %v1182_v38 = vld [vmem:[%s1339_s13 + $0x34] ss:$20 sps:$4 sm:$0xff]   ;;  %v1185_v41 = vld [vmem:[%s1339_s13 + $0x30] ss:$20 sps:$4 sm:$0xff]  }
  0x13   : > { %707 = vmatprep.mubr.bf16.mxu1 %v1178_v35  ;;  %v1180_v37 = vld [vmem:[%s1339_s13 + $0x2c] ss:$20 sps:$4 sm:$0xff]   ;;  %v1184_v40 = vld [vmem:[%s1339_s13 + $0x28] ss:$20 sps:$4 sm:$0xff]   ;;  %v1193_v44 = vld [vmem:[%s1390_s1 + $0x110] sm:$0xff]  }
  0x14   : > { %1027 = vmatpush3.bf16.msra.mxu0 %v1155_v14  ;;  %v1187_v42 = vld [vmem:[%s1339_s13 + $0x54] ss:$20 sps:$4 sm:$0xff]   ;;  %v1189_v43 = vld [vmem:[%s1339_s13 + $0x5c] ss:$20 sps:$4 sm:$0xff]   ;;  %v1192_v47 = vld [vmem:[%s1339_s13 + $0x58] ss:$20 sps:$4 sm:$0xff]  }
  0x15   : > { %1067 = vmatpush3.bf16.msra.mxu1 %v1156_v15  ;;  %1028 = vmatprep.subr.bf16.mxu0 %v1157_v16  ;;  %v1200_v45 = vld [vmem:[%s1390_s1 + $0x118] sm:$0xff]   ;;  %v1191_v46 = vld [vmem:[%s1339_s13 + $0x50] ss:$20 sps:$4 sm:$0xff]   ;;  %v1199_v51 = vld [vmem:[%s1339_s13 + $0x80] ss:$20 sps:$4 sm:$0xff]  }
  0x16   : > { %1068 = vmatprep.subr.bf16.mxu1 %v1158_v17  ;;  %v1194_v48 = vld [vmem:[%s1339_s13 + $0x7c] ss:$20 sps:$4 sm:$0xff]   ;;  %v1196_v49 = vld [vmem:[%s1339_s13 + $0x84] ss:$20 sps:$4 sm:$0xff]   ;;  %v1202_v53 = vld [vmem:[%s1339_s13 + $0x60] ss:$20 sps:$4 sm:$0xff]  }
  0x17   : > { %v1198_v50 = vld [vmem:[%s1339_s13 + $0x78] ss:$20 sps:$4 sm:$0xff]   ;;  %v1201_v52 = vld [vmem:[%s1339_s13 + $0x10] ss:$20 sps:$4 sm:$0xff]   ;;  %v1204_v55 = vld [vmem:[%s1339_s13 + $0x88] ss:$20 sps:$4 sm:$0xff]  }
  0x18   : > { %1029 = vmatpush3.bf16.msra.mxu0 %v1159_v18  ;;  %v1203_v54 = vld [vmem:[%s1339_s13 + $0x38] ss:$20 sps:$4 sm:$0xff]  }
  0x19   : > { %1069 = vmatpush3.bf16.msra.mxu1 %v1160_v19  ;;  %1030 = vmatprep.subr.bf16.mxu0 %v1161_v20 }
  0x1a   : > { %1070 = vmatprep.subr.bf16.mxu1 %v1162_v21 }
  0x1c   : > { %1031 = vmatpush3.bf16.msra.mxu0 %v1163_v22 }
  0x1d   : > { %1071 = vmatpush3.bf16.msra.mxu1 %v1164_v23  ;;  %1032 = vmatprep.subr.bf16.mxu0 %v1165_v24 }
  0x1e   : > { %1072 = vmatprep.subr.bf16.mxu1 %v1166_v25 }
  0x20   : > { %1033 = vmatpush3.bf16.msra.mxu0 %v1167_v26 }
  0x21   : > { %1073 = vmatpush3.bf16.msra.mxu1 %v1168_v27  ;;  %1034 = vmatprep.subr.bf16.mxu0 %v1169_v28 }
  0x22   : > { %1074 = vmatprep.subr.bf16.mxu1 %v1170_v29 }
  0x24   : > { %1035 = vmatpush3.bf16.msra.mxu0 %v1171_v30 }
  0x25   : > { %1075 = vmatpush3.bf16.msra.mxu1 %v1172_v31  ;;  %1108 = vmatprep.subr.bf16.mxu0 %v1179_v36 }
  0x26   : > { %1124 = vmatprep.subr.bf16.mxu1 %v1179_v36 }
  0x27   : > { %643 = vmatmul.mubr.bf16.vlgmr.msra.gmra.mrb[0].mxu0 %v1173_v32 }
  0x28   : > { %708 = vmatmul.mubr.bf16.vlgmr.msra.gmra.mrb[0].mxu1 %v1176_v34  ;;  %1109 = vmatpush3.bf16.msra.mxu0 %v1179_v36 }
  0x29   : > { %1128 = vmatpush3.bf16.msra.mxu1 %v1179_v36  ;;  %650 = vmatprep.mubr.bf16.mxu0 %v1180_v37 }
  0x2a   : > { %715 = vmatprep.mubr.bf16.mxu1 %v1182_v38  ;;  %1110 = vmatprep.subr.bf16.mxu0 %v1186_v39 }
  0x2b   : > { %1125 = vmatprep.subr.bf16.mxu1 %v1186_v39 }
  0x2c   : > { %1111 = vmatpush3.bf16.msra.mxu0 %v1186_v39 }
  0x2d   : > { %1129 = vmatpush3.bf16.msra.mxu1 %v1186_v39  ;;  %1112 = vmatprep.subr.bf16.mxu0 %v1193_v44 }
  0x2e   : > { %1126 = vmatprep.subr.bf16.mxu1 %v1193_v44 }
  0x2f   : > { %651 = vmatmul.mubr.bf16.gmra.mrb[4].mxu0 %v1184_v40 }
  0x30   : > { %716 = vmatmul.mubr.bf16.gmra.mrb[4].mxu1 %v1185_v41  ;;  %658 = vmatprep.mubr.bf16.mxu0 %v1187_v42 }
  0x31   : > { %723 = vmatprep.mubr.bf16.mxu1 %v1189_v43  ;;  %1113 = vmatpush3.bf16.msra.mxu0 %v1193_v44 }
  0x32   : > { %1130 = vmatpush3.bf16.msra.mxu1 %v1193_v44  ;;  %1114 = vmatprep.subr.bf16.mxu0 %v1200_v45 }
  0x33   : > { %1127 = vmatprep.subr.bf16.mxu1 %v1200_v45 }
  0x35   : > { %1115 = vmatpush3.bf16.msra.mxu0 %v1200_v45 }
  0x36   : > { %1131 = vmatpush3.bf16.msra.mxu1 %v1200_v45 }
  0x37   : > { %659 = vmatmul.mubr.bf16.gmra.mrb[8].mxu0 %v1191_v46 }
  0x38   : > { %724 = vmatmul.mubr.bf16.gmra.mrb[8].mxu1 %v1192_v47  ;;  %666 = vmatprep.mubr.bf16.mxu0 %v1194_v48 }
  0x39   : > { %731 = vmatprep.mubr.bf16.mxu1 %v1196_v49 }
  0x3f   : > { %667 = vmatmul.mubr.bf16.gmra.mrb[12].mxu0 %v1198_v50 }
  0x40   : > { %732 = vmatmul.mubr.bf16.gmra.mrb[12].mxu1 %v1199_v51  ;;  %1116 = vmatprep.mubr.msk.bf16.mxu0 %vm597_vm0, %v1201_v52 }
  0x41   : > { %1120 = vmatprep.mubr.msk.bf16.mxu1 %vm597_vm0, %v1202_v53 }
  0x47   : > { %1117 = vmatmul.mubr.msk.bf16.vlgmr.msra.gmra.mrb[16].mxu0 %vm597_vm0, %v1203_v54 }
  0x48   : > { %1121 = vmatmul.mubr.msk.bf16.vlgmr.msra.gmra.mrb[16].mxu1 %vm597_vm0, %v1204_v55 }
  0xfa   : > { %v1036_v56 = vpop.f32.mrb[0].mxu0 }
  0xfb   : > { %v1076_v57 = vpop.f32.mrb[0].mxu1  ;;  %v1037_v59 = vpop.f32.mrb[1].mxu0 }
  0xfc   : > { %v1038_v60 = vadd.f32 %v1037_v59, %v1036_v56  ;;  %v1077_v61 = vpop.f32.mrb[1].mxu1  ;;  %v1039_v62 = vpop.f32.mrb[2].mxu0 }
  0xfd   : > { %v1078_v63 = vadd.f32 %v1077_v61, %v1076_v57  ;;  %v1079_v0 = vpop.f32.mrb[2].mxu1  ;;  %v1040_v1 = vpop.f32.mrb[3].mxu0 }
  0xfe   : > { %v645_v2 = vadd.f32 %v1038_v60, %v918_v58  ;;  %v1041_v3 = vadd.f32 %v1040_v1, %v1039_v62  ;;  %v1080_v4 = vpop.f32.mrb[3].mxu1 }
  0xff   : > { %v1081_v5 = vadd.f32 %v1080_v4, %v1079_v0 }
 0x100   : > { %v648_v6 = vadd.f32 %v1041_v3, %v918_v58  ;;  %v710_v7 = vadd.f32 %v1078_v63, %v645_v2 }
 0x102   : > { %v1042_v8 = vpop.f32.mrb[4].mxu0  ;;  %v713_v9 = vadd.f32 %v1081_v5, %v648_v6 }
 0x103   : > { %v1082_v10 = vpop.f32.mrb[4].mxu1  ;;  %v1043_v11 = vpop.f32.mrb[5].mxu0 }
 0x104   : > { %v1044_v12 = vadd.f32 %v1043_v11, %v1042_v8  ;;  %v1083_v13 = vpop.f32.mrb[5].mxu1  ;;  %v1045_v14 = vpop.f32.mrb[6].mxu0 }
 0x105   : > { %v1084_v15 = vadd.f32 %v1083_v13, %v1082_v10  ;;  %v1085_v16 = vpop.f32.mrb[6].mxu1  ;;  %v1046_v17 = vpop.f32.mrb[7].mxu0 }
 0x106   : > { %v653_v18 = vadd.f32 %v1044_v12, %v918_v58  ;;  %v1047_v19 = vadd.f32 %v1046_v17, %v1045_v14  ;;  %v1086_v20 = vpop.f32.mrb[7].mxu1 }
 0x107   : > { %v1087_v21 = vadd.f32 %v1086_v20, %v1085_v16 }
 0x108   : > { %v656_v22 = vadd.f32 %v1047_v19, %v918_v58  ;;  %v718_v23 = vadd.f32 %v1084_v15, %v653_v18 }
 0x10a   : > { %v1048_v24 = vpop.f32.mrb[8].mxu0  ;;  %v721_v25 = vadd.f32 %v1087_v21, %v656_v22 }
 0x10b   : > { %v1088_v26 = vpop.f32.mrb[8].mxu1  ;;  %v1049_v27 = vpop.f32.mrb[9].mxu0 }
 0x10c   : > { %v1050_v28 = vadd.f32 %v1049_v27, %v1048_v24  ;;  %v1089_v29 = vpop.f32.mrb[9].mxu1  ;;  %v1051_v30 = vpop.f32.mrb[10].mxu0 }
 0x10d   : > { %v1090_v31 = vadd.f32 %v1089_v29, %v1088_v26  ;;  %v1091_v32 = vpop.f32.mrb[10].mxu1  ;;  %v1052_v33 = vpop.f32.mrb[11].mxu0 }
 0x10e   : > { %v661_v34 = vadd.f32 %v1050_v28, %v918_v58  ;;  %v1053_v35 = vadd.f32 %v1052_v33, %v1051_v30  ;;  %v1092_v36 = vpop.f32.mrb[11].mxu1 }
 0x10f   : > { %v1093_v37 = vadd.f32 %v1092_v36, %v1091_v32 }
 0x110   : > { %v664_v38 = vadd.f32 %v1053_v35, %v918_v58  ;;  %v726_v39 = vadd.f32 %v1090_v31, %v661_v34 }
 0x112   : > { %v1054_v40 = vpop.f32.mrb[12].mxu0  ;;  %v729_v41 = vadd.f32 %v1093_v37, %v664_v38 }
 0x113   : > { %v1094_v42 = vpop.f32.mrb[12].mxu1  ;;  %v1055_v43 = vpop.f32.mrb[13].mxu0 }
 0x114   : > { %v1056_v44 = vadd.f32 %v1055_v43, %v1054_v40  ;;  %v1095_v45 = vpop.f32.mrb[13].mxu1  ;;  %v1057_v46 = vpop.f32.mrb[14].mxu0 }
 0x115   : > { %v1096_v47 = vadd.f32 %v1095_v45, %v1094_v42  ;;  %v1097_v48 = vpop.f32.mrb[14].mxu1  ;;  %v1058_v49 = vpop.f32.mrb[15].mxu0 }
 0x116   : > { %v669_v50 = vadd.f32 %v1056_v44, %v918_v58  ;;  %v1059_v51 = vadd.f32 %v1058_v49, %v1057_v46  ;;  %v1098_v52 = vpop.f32.mrb[15].mxu1 }
 0x117   : > { %v1099_v53 = vadd.f32 %v1098_v52, %v1097_v48 }
 0x118   : > { %v672_v54 = vadd.f32 %v1059_v51, %v918_v58  ;;  %v734_v55 = vadd.f32 %v1096_v47, %v669_v50 }
 0x11a   : > { %v1118_v56 = vpop.f32.mrb[16].mxu0  ;;  %v737_v57 = vadd.f32 %v1099_v53, %v672_v54 }
 0x11b   : > { %v783_v59 = vadd.f32 %v1118_v56, %v718_v23  ;;  %v1122_v60 = vpop.f32.mrb[16].mxu1  ;;  %v774_v61 = vpop.f32.mrb[17].mxu0 }
 0x11c   : > { %v799_v62 = vadd.f32 %v1122_v60, %v734_v55  ;;  %v775_v63 = vadd.f32 %v774_v61, %v710_v7  ;;  %v790_v0 = vpop.f32.mrb[17].mxu1  ;;  %v1119_v1 = vpop.f32.mrb[18].mxu0 }
 0x11d   : > { %v791_v2 = vadd.f32 %v790_v0, %v726_v39  ;;  %v786_v3 = vadd.f32 %v1119_v1, %v721_v25  ;;  %v1123_v4 = vpop.f32.mrb[18].mxu1  ;;  %v777_v5 = vpop.f32.mrb[19].mxu0  ;;  %v807_v11 = vmax.f32 %v783_v59, 0.0 }
 0x11e   : > { %v802_v6 = vadd.f32 %v1123_v4, %v737_v57  ;;  %v778_v8 = vadd.f32 %v777_v5, %v713_v9  ;;  %v793_v10 = vpop.f32.mrb[19].mxu1  ;;  %v811_v13 = vmax.f32 %v799_v62, 0.0  ;;  %v805_v14 = vmax.f32 %v775_v63, 0.0 }
 0x11f   : > { %v808_v58 = vmax.f32 %v786_v3, 0.0  ;;  %v794_v12 = vadd.f32 %v793_v10, %v729_v41  ;;  %v809_v16 = vmax.f32 %v791_v2, 0.0 }
 0x120   : > { %v812_v7 = vmax.f32 %v802_v6, 0.0  ;;  %v806_v15 = vmax.f32 %v778_v8, 0.0 }
 0x121   : > { %v1005_v17 = vpack.c.bf16 %v808_v58, %v807_v11  ;;  %v810_v18 = vmax.f32 %v794_v12, 0.0 }
 0x122   : > { %v1015_v19 = vpack.c.bf16 %v812_v7, %v811_v13  ;;  %v1000_v20 = vpack.c.bf16 %v806_v15, %v805_v14 }
 0x123   : > { %1017 = vst [vmem:[%s175_s21 + $0x8] sm:$0xff] %v1005_v17   ;;  %v1010_v21 = vpack.c.bf16 %v810_v18, %v809_v16 }
 0x124   : > { %1019 = vst [vmem:[%s175_s21 + $0x18] sm:$0xff] %v1015_v19   ;;  %1001 = vst [vmem:[%s175_s21] sm:$0xff] %v1000_v20  }
 0x125   : > { %1018 = vst [vmem:[%s175_s21 + $0x10] sm:$0xff] %v1010_v21  }
 0x126 PF: > { %s13_s12 = sadd.s32 1, %s1211_s12  }
 0x127   : > { %p10_p4 = scmp.ge.s32.totalorder %s13_s12, 4  }
 0x129   :  { %12 = sbr.rel (!%p10_p4) target bundleno = 1 (0x1), region = 62 }

// kernel: seg_model_forward.27
= control target key start
LH: loop header
LB: loop body
LE: loop exit
PB: predicated region body
PF: predicated region fallthrough
CT: control target
= control target key end

     0   :  { %s2537_s12 = smov 0   ;;  %s2930_s0 = inlined_call_operand.vmem [shape: bf16[512,576], index: 0, kind: input, shape index: {}]   ;;  %s2931_s1 = inlined_call_operand.vmem [shape: bf16[576,128], index: 1, kind: input, shape index: {}]   ;;  %s2932_s2 = inlined_call_operand.vmem [shape: f32[1,128], index: 2, kind: input, shape index: {}]   ;;  %s2933_s3 = inlined_call_operand.vmem [shape: bf16[512,128], index: 3, kind: output, shape index: {}]  }
   0x1 LB: > { %s1749_s13 = sadd.s32 4294967295, %s2515_s12   ;;  %p1753_p0 = scmp.ge.s32.totalorder %s2515_s12, 1  ;;  %s2515_s12 = sphi %s2537_s12, %s13_s12  }
   0x2   : > { %p139_p1 = scmp.lt.s32.totalorder %s2515_s12, 3 }
   0x4   : > { %p140_p2 = pnand %p1753_p0, %p139_p1 }
   0x5   : > { %v2361_v0 = vld [vmem:[%s2931_s1 + $0x40] sm:$0xff] (!%p140_p2)   ;;  %s1754_s16 = sshll.u32 (!%p140_p2), %s1749_s13, 5  ;;  %v2363_v2 = vld [vmem:[%s2931_s1 + $0x48] sm:$0xff] (!%p140_p2)   ;;  %v2365_v4 = vld [vmem:[%s2931_s1 + $0x50] sm:$0xff] (!%p140_p2)   ;;  %vm969_vm0 = vcmask (!%p140_p2), 523264  }
   0x6   : > { %143 = sbr.rel (%p140_p2) target bundleno = 416 (0x1a0), region = 32  ;;  %v2362_v1 = vld [vmem:[%s2931_s1] sm:$0xff] (!%p140_p2)   ;;  %2052 = vmatprep.subr.bf16.mxu0 (!%p140_p2), %v2361_v0  ;;  %2336 = vmatprep.subr.bf16.mxu1 (!%p140_p2), %v2361_v0  ;;  %p165_p3 = scmp.lt.s32.totalorder (!%p140_p2), %s1754_s16, 63  ;;  %v2364_v3 = vld [vmem:[%s2931_s1 + $0x8] sm:$0xff] (!%p140_p2)   ;;  %v2366_v5 = vld [vmem:[%s2931_s1 + $0x10] sm:$0xff] (!%p140_p2)  }
   0x7   : > { %2053 = vmatpush3.bf16.msra.mxu0 (!%p140_p2), %v2362_v1  ;;  %2344 = vmatpush3.bf16.msra.mxu1 (!%p140_p2), %v2362_v1  ;;  %v2367_v6 = vld [vmem:[%s2931_s1 + $0x58] sm:$0xff] (!%p140_p2)   ;;  %v2369_v8 = vld [vmem:[%s2931_s1 + $0x60] sm:$0xff] (!%p140_p2)   ;;  %v2371_v10 = vld [vmem:[%s2931_s1 + $0x68] sm:$0xff] (!%p140_p2)  }
   0x8   : > { %2054 = vmatprep.subr.bf16.mxu0 (!%p140_p2), %v2363_v2  ;;  %2337 = vmatprep.subr.bf16.mxu1 (!%p140_p2), %v2363_v2  ;;  %v2368_v7 = vld [vmem:[%s2931_s1 + $0x18] sm:$0xff] (!%p140_p2)   ;;  %v2370_v9 = vld [vmem:[%s2931_s1 + $0x20] sm:$0xff] (!%p140_p2)   ;;  %v2372_v13 = vld [vmem:[%s2931_s1 + $0x28] sm:$0xff] (!%p140_p2)  }
   0x9   : > { %v2373_v14 = vld [vmem:[%s2931_s1 + $0x70] sm:$0xff] (!%p140_p2)   ;;  %v2375_v16 = vld [vmem:[%s2931_s1 + $0x78] sm:$0xff] (!%p140_p2)   ;;  %v2383_v18 = vld [vmem:[%s2931_s1 + $0xc0] sm:$0xff] (!%p140_p2)  }
   0xa   : > { %v2374_v15 = vld [vmem:[%s2931_s1 + $0x30] sm:$0xff] (!%p140_p2)   ;;  %v2376_v17 = vld [vmem:[%s2931_s1 + $0x38] sm:$0xff] (!%p140_p2)   ;;  %v2386_v19 = vld [vmem:[%s2931_s1 + $0x100] sm:$0xff] (!%p140_p2)  }
   0xb   : > { %2055 = vmatpush3.bf16.msra.mxu0 (!%p140_p2), %v2364_v3  ;;  %2345 = vmatpush3.bf16.msra.mxu1 (!%p140_p2), %v2364_v3  ;;  %v2384_v22 = vld [vmem:[%s2931_s1 + $0x80] sm:$0xff] (!%p140_p2)   ;;  %v2385_v23 = vld [vmem:[%s2931_s1 + $0xc8] sm:$0xff] (!%p140_p2)   ;;  %v2394_v28 = vld [vmem:[%s2931_s1 + $0xd0] sm:$0xff] (!%p140_p2)  }
   0xc   : > { %2056 = vmatprep.subr.bf16.mxu0 (!%p140_p2), %v2365_v4  ;;  %2338 = vmatprep.subr.bf16.mxu1 (!%p140_p2), %v2365_v4  ;;  %v2387_v26 = vld [vmem:[%s2931_s1 + $0x88] sm:$0xff] (!%p140_p2)   ;;  %v2395_v30 = vld [vmem:[%s2931_s1 + $0x90] sm:$0xff] (!%p140_p2)   ;;  %v2396_v31 = vld [vmem:[%s2931_s1 + $0xd8] sm:$0xff] (!%p140_p2)  }
   0xd   : > { %s2935_s16 = smov (!%p165_p3, %s1754_s16), 63  ;;  %v2397_v34 = vld [vmem:[%s2931_s1 + $0x98] sm:$0xff]   ;;  %v2417_v35 = vld [vmem:[%s2931_s1 + $0x108] sm:$0xff]   ;;  %v2404_v37 = vld [vmem:[%s2931_s1 + $0xe0] sm:$0xff]  }
   0xe   : > { %s2352_s29 = smul.u32 20, %s2935_s16  ;;  %v2405_v39 = vld [vmem:[%s2931_s1 + $0xa0] sm:$0xff]   ;;  %v2406_v40 = vld [vmem:[%s2931_s1 + $0xe8] sm:$0xff]   ;;  %v2414_v46 = vld [vmem:[%s2931_s1 + $0xf0] sm:$0xff]   ;;  %s1757_s19 = sshll.u32 %s2935_s16, 2 }
   0xf   : > { %2057 = vmatpush3.bf16.msra.mxu0 %v2366_v5  ;;  %2346 = vmatpush3.bf16.msra.mxu1 %v2366_v5  ;;  %v2407_v43 = vld [vmem:[%s2931_s1 + $0xa8] sm:$0xff]   ;;  %v2437_v47 = vld [vmem:[%s2931_s1 + $0x110] sm:$0xff]   ;;  %v2416_v49 = vld [vmem:[%s2931_s1 + $0xf8] sm:$0xff]   ;;  %s2853_s22 = scalar_lea.vmem %s2933_s3, %s1757_s19 }
  0x10   : > { %2058 = vmatprep.subr.bf16.mxu0 %v2367_v6  ;;  %2339 = vmatprep.subr.bf16.mxu1 %v2367_v6  ;;  %s2578_s9 = scalar_lea.vmem %s2930_s0, %s2352_s29  ;;  %v2415_v48 = vld [vmem:[%s2931_s1 + $0xb0] sm:$0xff]   ;;  %v2418_v52 = vld [vmem:[%s2931_s1 + $0xb8] sm:$0xff]  }
  0x11   : > { %v2379_v11 = vld [vmem:[%s2578_s9 + $0x4] ss:$20 sps:$4 sm:$0xff]   ;;  %v2377_v20 = vld [vmem:[%s2578_s9] ss:$20 sps:$4 sm:$0xff]   ;;  %v2392_v27 = vld [vmem:[%s2578_s9 + $0x28] ss:$20 sps:$4 sm:$0xff]  }
  0x12   : > { %v2382_v12 = vld [vmem:[%s2578_s9 + $0x1e4] ss:$20 sps:$4 sm:$0xff]   ;;  %1050 = vmatprep.mubr.bf16.mxu0 %v2379_v11  ;;  %v2380_v21 = vld [vmem:[%s2578_s9 + $0x1e0] ss:$20 sps:$4 sm:$0xff]   ;;  %v2393_v29 = vld [vmem:[%s2578_s9 + $0x208] ss:$20 sps:$4 sm:$0xff]  }
  0x13   : > { %2059 = vmatpush3.bf16.msra.mxu0 %v2368_v7  ;;  %2347 = vmatpush3.bf16.msra.mxu1 %v2368_v7  ;;  %v2388_v24 = vld [vmem:[%s2578_s9 + $0x2c] ss:$20 sps:$4 sm:$0xff]   ;;  %v2398_v32 = vld [vmem:[%s2578_s9 + $0x54] ss:$20 sps:$4 sm:$0xff]   ;;  %v2402_v36 = vld [vmem:[%s2578_s9 + $0x50] ss:$20 sps:$4 sm:$0xff]  }
  0x14   : > { %2060 = vmatprep.subr.bf16.mxu0 %v2369_v8  ;;  %2340 = vmatprep.subr.bf16.mxu1 %v2369_v8  ;;  %v2390_v25 = vld [vmem:[%s2578_s9 + $0x20c] ss:$20 sps:$4 sm:$0xff]   ;;  %v2400_v33 = vld [vmem:[%s2578_s9 + $0x234] ss:$20 sps:$4 sm:$0xff]   ;;  %v2403_v38 = vld [vmem:[%s2578_s9 + $0x230] ss:$20 sps:$4 sm:$0xff]  }
  0x15   : > { %1146 = vmatprep.mubr.bf16.mxu1 %v2382_v12  ;;  %v2408_v41 = vld [vmem:[%s2578_s9 + $0x7c] ss:$20 sps:$4 sm:$0xff]   ;;  %v2412_v44 = vld [vmem:[%s2578_s9 + $0x78] ss:$20 sps:$4 sm:$0xff]   ;;  %v2424_v54 = vld [vmem:[%s2578_s9 + $0xa0] ss:$20 sps:$4 sm:$0xff]  }
  0x16   : > { %v2410_v42 = vld [vmem:[%s2578_s9 + $0x25c] ss:$20 sps:$4 sm:$0xff]   ;;  %v2413_v45 = vld [vmem:[%s2578_s9 + $0x258] ss:$20 sps:$4 sm:$0xff]   ;;  %v2427_v57 = vld [vmem:[%s2578_s9 + $0x34] ss:$20 sps:$4 sm:$0xff]  }
  0x17   : > { %2061 = vmatpush3.bf16.msra.mxu0 %v2370_v9  ;;  %2348 = vmatpush3.bf16.msra.mxu1 %v2370_v9  ;;  %v2419_v50 = vld [vmem:[%s2578_s9 + $0xa4] ss:$20 sps:$4 sm:$0xff]   ;;  %v2423_v51 = vld [vmem:[%s2578_s9 + $0xc] ss:$20 sps:$4 sm:$0xff]   ;;  %v2421_v53 = vld [vmem:[%s2578_s9 + $0x8] ss:$20 sps:$4 sm:$0xff]  }
  0x18   : > { %2062 = vmatprep.subr.bf16.mxu0 %v2371_v10  ;;  %2341 = vmatprep.subr.bf16.mxu1 %v2371_v10  ;;  %v2425_v55 = vld [vmem:[%s2578_s9 + $0xcc] ss:$20 sps:$4 sm:$0xff]   ;;  %v2456_v56 = vld [vmem:[%s2931_s1 + $0x118] sm:$0xff]   ;;  %v2430_v59 = vld [vmem:[%s2578_s9 + $0x30] ss:$20 sps:$4 sm:$0xff]  }
  0x19   : > { %v2429_v58 = vld [vmem:[%s2578_s9 + $0xc8] ss:$20 sps:$4 sm:$0xff]   ;;  %v2435_v62 = vld [vmem:[%s2578_s9 + $0xf0] ss:$20 sps:$4 sm:$0xff]   ;;  %v2436_v63 = vld [vmem:[%s2578_s9 + $0x58] ss:$20 sps:$4 sm:$0xff]  }
  0x1a   : > { %v2431_v60 = vld [vmem:[%s2578_s9 + $0xf4] ss:$20 sps:$4 sm:$0xff]   ;;  %v2433_v61 = vld [vmem:[%s2578_s9 + $0x5c] ss:$20 sps:$4 sm:$0xff]   ;;  %v2440_v1 = vld [vmem:[%s2578_s9 + $0x84] ss:$20 sps:$4 sm:$0xff]  }
  0x1b   : > { %2063 = vmatpush3.bf16.msra.mxu0 %v2372_v13  ;;  %2349 = vmatpush3.bf16.msra.mxu1 %v2372_v13  ;;  %v2438_v0 = vld [vmem:[%s2578_s9 + $0x11c] ss:$20 sps:$4 sm:$0xff]   ;;  %v2442_v2 = vld [vmem:[%s2578_s9 + $0x118] ss:$20 sps:$4 sm:$0xff]   ;;  %v2443_v3 = vld [vmem:[%s2578_s9 + $0x80] ss:$20 sps:$4 sm:$0xff]  }
  0x1c   : > { %2064 = vmatprep.subr.bf16.mxu0 %v2373_v14  ;;  %2342 = vmatprep.subr.bf16.mxu1 %v2373_v14  ;;  %v2444_v4 = vld [vmem:[%s2578_s9 + $0x144] ss:$20 sps:$4 sm:$0xff]   ;;  %v2446_v5 = vld [vmem:[%s2578_s9 + $0xac] ss:$20 sps:$4 sm:$0xff]   ;;  %v2449_v7 = vld [vmem:[%s2578_s9 + $0xa8] ss:$20 sps:$4 sm:$0xff]  }
  0x1d   : > { %v2448_v6 = vld [vmem:[%s2578_s9 + $0x140] ss:$20 sps:$4 sm:$0xff]   ;;  %v2454_v10 = vld [vmem:[%s2578_s9 + $0x168] ss:$20 sps:$4 sm:$0xff]   ;;  %v2455_v11 = vld [vmem:[%s2578_s9 + $0xd0] ss:$20 sps:$4 sm:$0xff]  }
  0x1e   : > { %v2450_v8 = vld [vmem:[%s2578_s9 + $0x16c] ss:$20 sps:$4 sm:$0xff]   ;;  %v2452_v9 = vld [vmem:[%s2578_s9 + $0xd4] ss:$20 sps:$4 sm:$0xff]   ;;  %v2459_v13 = vld [vmem:[%s2578_s9 + $0xfc] ss:$20 sps:$4 sm:$0xff]  }
  0x1f   : > { %2065 = vmatpush3.bf16.msra.mxu0 %v2374_v15  ;;  %2350 = vmatpush3.bf16.msra.mxu1 %v2374_v15  ;;  %v2457_v12 = vld [vmem:[%s2578_s9 + $0x194] ss:$20 sps:$4 sm:$0xff]   ;;  %v2461_v14 = vld [vmem:[%s2578_s9 + $0x190] ss:$20 sps:$4 sm:$0xff]   ;;  %v2462_v15 = vld [vmem:[%s2578_s9 + $0xf8] ss:$20 sps:$4 sm:$0xff]  }
  0x20   : > { %2066 = vmatprep.subr.bf16.mxu0 %v2375_v16  ;;  %2343 = vmatprep.subr.bf16.mxu1 %v2375_v16  ;;  %v2463_v16 = vld [vmem:[%s2578_s9 + $0x1bc] ss:$20 sps:$4 sm:$0xff]  }
  0x23   : > { %2067 = vmatpush3.bf16.msra.mxu0 %v2376_v17  ;;  %2351 = vmatpush3.bf16.msra.mxu1 %v2376_v17  ;;  %v2465_v17 = vld [vmem:[%s2578_s9 + $0x124] ss:$20 sps:$4 sm:$0xff]  }
  0x24   : > { %2164 = vmatprep.subr.bf16.mxu1 %v2383_v18  ;;  %2296 = vmatprep.subr.bf16.mxu0 %v2386_v19  ;;  %v2467_v18 = vld [vmem:[%s2578_s9 + $0x1b8] ss:$20 sps:$4 sm:$0xff]  }
  0x26   : > { %1051 = vmatmul.mubr.bf16.vlgmr.msra.gmra.mrb[0].mxu0 %v2377_v20  ;;  %1147 = vmatmul.mubr.bf16.vlgmr.msra.gmra.mrb[0].mxu1 %v2380_v21  ;;  %v2469_v20 = vld [vmem:[%s2578_s9 + $0x14c] ss:$20 sps:$4 sm:$0xff]   ;;  %v2471_v21 = vld [vmem:[%s2578_s9 + $0x10] ss:$20 sps:$4 sm:$0xff]  }
  0x27   : > { %2165 = vmatpush3.bf16.msra.mxu1 %v2384_v22  ;;  %2297 = vmatpush3.bf16.msra.mxu0 %v2386_v19  ;;  %v2468_v19 = vld [vmem:[%s2578_s9 + $0x120] ss:$20 sps:$4 sm:$0xff]   ;;  %v2472_v22 = vld [vmem:[%s2578_s9 + $0x148] ss:$20 sps:$4 sm:$0xff]  }
  0x28   : > { %2166 = vmatprep.subr.bf16.mxu1 %v2385_v23  ;;  %1058 = vmatprep.mubr.bf16.mxu0 %v2388_v24  ;;  %v2473_v23 = vld [vmem:[%s2578_s9 + $0x38] ss:$20 sps:$4 sm:$0xff]   ;;  %v2474_v24 = vld [vmem:[%s2578_s9 + $0x174] ss:$20 sps:$4 sm:$0xff]  }
  0x29   : > { %1154 = vmatprep.mubr.bf16.mxu1 %v2390_v25  ;;  %2298 = vmatprep.subr.bf16.mxu0 %v2417_v35  ;;  %v2476_v25 = vld [vmem:[%s2578_s9 + $0x60] ss:$20 sps:$4 sm:$0xff]  }
  0x2b   : > { %2167 = vmatpush3.bf16.msra.mxu1 %v2387_v26  ;;  %2299 = vmatpush3.bf16.msra.mxu0 %v2417_v35  ;;  %v2477_v26 = vld [vmem:[%s2578_s9 + $0x170] ss:$20 sps:$4 sm:$0xff]   ;;  %v2488_v35 = vld [vmem:[%s2578_s9 + $0x128] ss:$20 sps:$4 sm:$0xff]  }
  0x2c   : > { %2168 = vmatprep.subr.bf16.mxu1 %v2394_v28  ;;  %2300 = vmatprep.subr.bf16.mxu0 %v2437_v47  ;;  %v2479_v28 = vld [vmem:[%s2578_s9 + $0x19c] ss:$20 sps:$4 sm:$0xff]  }
  0x2e   : > { %1059 = vmatmul.mubr.bf16.gmra.mrb[4].mxu0 %v2392_v27  ;;  %1155 = vmatmul.mubr.bf16.gmra.mrb[4].mxu1 %v2393_v29  ;;  %v2478_v27 = vld [vmem:[%s2578_s9 + $0x88] ss:$20 sps:$4 sm:$0xff]   ;;  %v2481_v29 = vld [vmem:[%s2578_s9 + $0xb0] ss:$20 sps:$4 sm:$0xff]  }
  0x2f   : > { %2169 = vmatpush3.bf16.msra.mxu1 %v2395_v30  ;;  %1066 = vmatprep.mubr.bf16.mxu0 %v2398_v32  ;;  %v2482_v30 = vld [vmem:[%s2578_s9 + $0x198] ss:$20 sps:$4 sm:$0xff]  }
  0x30   : > { %2170 = vmatprep.subr.bf16.mxu1 %v2396_v31  ;;  %1162 = vmatprep.mubr.bf16.mxu1 %v2400_v33  ;;  %v2483_v31 = vld [vmem:[%s2578_s9 + $0xd8] ss:$20 sps:$4 sm:$0xff]   ;;  %v2486_v33 = vld [vmem:[%s2578_s9 + $0x100] ss:$20 sps:$4 sm:$0xff]  }
  0x31   : > { %2301 = vmatpush3.bf16.msra.mxu0 %v2437_v47  ;;  %v2484_v32 = vld [vmem:[%s2578_s9 + $0x1c4] ss:$20 sps:$4 sm:$0xff]  }
  0x32   : > { %2302 = vmatprep.subr.bf16.mxu0 %v2456_v56  ;;  %v2503_v47 = vld [vmem:[%s2578_s9 + $0x218] ss:$20 sps:$4 sm:$0xff]  }
  0x33   : > { %2171 = vmatpush3.bf16.msra.mxu1 %v2397_v34  ;;  %v2487_v34 = vld [vmem:[%s2578_s9 + $0x1c0] ss:$20 sps:$4 sm:$0xff]  }
  0x34   : > { %2172 = vmatprep.subr.bf16.mxu1 %v2404_v37  ;;  %v2491_v37 = vld [vmem:[%s2578_s9 + $0x150] ss:$20 sps:$4 sm:$0xff]  }
  0x35   : > { %2303 = vmatpush3.bf16.msra.mxu0 %v2456_v56 }
  0x36   : > { %1067 = vmatmul.mubr.bf16.gmra.mrb[8].mxu0 %v2402_v36  ;;  %1163 = vmatmul.mubr.bf16.gmra.mrb[8].mxu1 %v2403_v38  ;;  %v2489_v36 = vld [vmem:[%s2578_s9 + $0x1ec] ss:$20 sps:$4 sm:$0xff]   ;;  %v2492_v38 = vld [vmem:[%s2578_s9 + $0x1e8] ss:$20 sps:$4 sm:$0xff]  }
  0x37   : > { %2173 = vmatpush3.bf16.msra.mxu1 %v2405_v39  ;;  %1074 = vmatprep.mubr.bf16.mxu0 %v2408_v41  ;;  %v2493_v39 = vld [vmem:[%s2578_s9 + $0x178] ss:$20 sps:$4 sm:$0xff]   ;;  %v2496_v41 = vld [vmem:[%s2578_s9 + $0x1a0] ss:$20 sps:$4 sm:$0xff]  }
  0x38   : > { %2174 = vmatprep.subr.bf16.mxu1 %v2406_v40  ;;  %1170 = vmatprep.mubr.bf16.mxu1 %v2410_v42  ;;  %v2494_v40 = vld [vmem:[%s2578_s9 + $0x214] ss:$20 sps:$4 sm:$0xff]   ;;  %v2497_v42 = vld [vmem:[%s2578_s9 + $0x210] ss:$20 sps:$4 sm:$0xff]  }
  0x3b   : > { %2175 = vmatpush3.bf16.msra.mxu1 %v2407_v43  ;;  %v2498_v43 = vld [vmem:[%s2578_s9 + $0x1c8] ss:$20 sps:$4 sm:$0xff]  }
  0x3c   : > { %2176 = vmatprep.subr.bf16.mxu1 %v2414_v46  ;;  %v2502_v46 = vld [vmem:[%s2578_s9 + $0x238] ss:$20 sps:$4 sm:$0xff]  }
  0x3e   : > { %1075 = vmatmul.mubr.bf16.gmra.mrb[12].mxu0 %v2412_v44  ;;  %1171 = vmatmul.mubr.bf16.gmra.mrb[12].mxu1 %v2413_v45  ;;  %v2499_v44 = vld [vmem:[%s2578_s9 + $0x23c] ss:$20 sps:$4 sm:$0xff]  }
  0x3f   : > { %2177 = vmatpush3.bf16.msra.mxu1 %v2415_v48  ;;  %1082 = vmatprep.mubr.bf16.mxu0 %v2419_v50  ;;  %v2501_v45 = vld [vmem:[%s2578_s9 + $0x1f0] ss:$20 sps:$4 sm:$0xff]   ;;  %v2507_v50 = vld [vmem:[%s2578_s9 + $0x260] ss:$20 sps:$4 sm:$0xff]  }
  0x40   : > { %2178 = vmatprep.subr.bf16.mxu1 %v2416_v49  ;;  %1211 = vmatprep.mubr.bf16.mxu1 %v2423_v51  ;;  %v2504_v48 = vld [vmem:[%s2578_s9 + $0x264] ss:$20 sps:$4 sm:$0xff]   ;;  %v2506_v49 = vld [vmem:[%s2578_s9 + $0x240] ss:$20 sps:$4 sm:$0xff]   ;;  %v2508_v51 = vld [vmem:[%s2578_s9 + $0x268] ss:$20 sps:$4 sm:$0xff]  }
  0x43   : > { %2179 = vmatpush3.bf16.msra.mxu1 %v2418_v52 }
  0x46   : > { %1083 = vmatmul.mubr.bf16.gmra.mrb[16].mxu0 %v2424_v54  ;;  %1212 = vmatmul.mubr.bf16.vlgmr.msra.gmra.mrb[16].mxu1 %v2421_v53 }
  0x47   : > { %1090 = vmatprep.mubr.bf16.mxu0 %v2425_v55  ;;  %1219 = vmatprep.mubr.bf16.mxu1 %v2427_v57 }
  0x4e   : > { %1091 = vmatmul.mubr.bf16.gmra.mrb[20].mxu0 %v2429_v58  ;;  %1220 = vmatmul.mubr.bf16.gmra.mrb[20].mxu1 %v2430_v59 }
  0x4f   : > { %1098 = vmatprep.mubr.bf16.mxu0 %v2431_v60  ;;  %1227 = vmatprep.mubr.bf16.mxu1 %v2433_v61 }
  0x56   : > { %1099 = vmatmul.mubr.bf16.gmra.mrb[24].mxu0 %v2435_v62  ;;  %1228 = vmatmul.mubr.bf16.gmra.mrb[24].mxu1 %v2436_v63 }
  0x57   : > { %1106 = vmatprep.mubr.bf16.mxu0 %v2438_v0  ;;  %1235 = vmatprep.mubr.bf16.mxu1 %v2440_v1 }
  0x5e   : > { %1107 = vmatmul.mubr.bf16.gmra.mrb[28].mxu0 %v2442_v2  ;;  %1236 = vmatmul.mubr.bf16.gmra.mrb[28].mxu1 %v2443_v3 }
  0x5f   : > { %1114 = vmatprep.mubr.bf16.mxu0 %v2444_v4  ;;  %1243 = vmatprep.mubr.bf16.mxu1 %v2446_v5 }
  0x66   : > { %1115 = vmatmul.mubr.bf16.gmra.mrb[32].mxu0 %v2448_v6  ;;  %1244 = vmatmul.mubr.bf16.gmra.mrb[32].mxu1 %v2449_v7 }
  0x67   : > { %1122 = vmatprep.mubr.bf16.mxu0 %v2450_v8  ;;  %1251 = vmatprep.mubr.bf16.mxu1 %v2452_v9 }
  0x6e   : > { %1123 = vmatmul.mubr.bf16.gmra.mrb[36].mxu0 %v2454_v10  ;;  %1252 = vmatmul.mubr.bf16.gmra.mrb[36].mxu1 %v2455_v11 }
  0x6f   : > { %1130 = vmatprep.mubr.bf16.mxu0 %v2457_v12  ;;  %1259 = vmatprep.mubr.bf16.mxu1 %v2459_v13 }
  0x76   : > { %1131 = vmatmul.mubr.bf16.gmra.mrb[40].mxu0 %v2461_v14  ;;  %1260 = vmatmul.mubr.bf16.gmra.mrb[40].mxu1 %v2462_v15 }
  0x77   : > { %1138 = vmatprep.mubr.bf16.mxu0 %v2463_v16  ;;  %1267 = vmatprep.mubr.bf16.mxu1 %v2465_v17 }
  0x7e   : > { %1139 = vmatmul.mubr.bf16.gmra.mrb[44].mxu0 %v2467_v18  ;;  %1268 = vmatmul.mubr.bf16.gmra.mrb[44].mxu1 %v2468_v19 }
  0x7f   : > { %1275 = vmatprep.mubr.bf16.mxu1 %v2469_v20  ;;  %2304 = vmatprep.mubr.msk.bf16.mxu0 %vm969_vm0, %v2471_v21 }
  0x86   : > { %1276 = vmatmul.mubr.bf16.gmra.mrb[48].mxu1 %v2472_v22  ;;  %2305 = vmatmul.mubr.msk.bf16.vlgmr.msra.gmra.mrb[48].mxu0 %vm969_vm0, %v2473_v23 }
  0x87   : > { %1283 = vmatprep.mubr.bf16.mxu1 %v2474_v24  ;;  %2308 = vmatprep.mubr.msk.bf16.mxu0 %vm969_vm0, %v2476_v25 }
  0x8e   : > { %1284 = vmatmul.mubr.bf16.gmra.mrb[52].mxu1 %v2477_v26  ;;  %2309 = vmatmul.mubr.msk.bf16.gmra.mrb[52].mxu0 %vm969_vm0, %v2478_v27 }
  0x8f   : > { %1291 = vmatprep.mubr.bf16.mxu1 %v2479_v28  ;;  %2312 = vmatprep.mubr.msk.bf16.mxu0 %vm969_vm0, %v2481_v29 }
  0x96   : > { %1292 = vmatmul.mubr.bf16.gmra.mrb[56].mxu1 %v2482_v30  ;;  %2313 = vmatmul.mubr.msk.bf16.gmra.mrb[56].mxu0 %vm969_vm0, %v2483_v31 }
  0x97   : > { %1299 = vmatprep.mubr.bf16.mxu1 %v2484_v32  ;;  %2316 = vmatprep.mubr.msk.bf16.mxu0 %vm969_vm0, %v2486_v33 }
  0x9e   : > { %1300 = vmatmul.mubr.bf16.gmra.mrb[60].mxu1 %v2487_v34  ;;  %2317 = vmatmul.mubr.msk.bf16.gmra.mrb[60].mxu0 %vm969_vm0, %v2488_v35 }
  0x9f   : > { %1307 = vmatprep.mubr.bf16.mxu1 %v2489_v36  ;;  %2320 = vmatprep.mubr.msk.bf16.mxu0 %vm969_vm0, %v2491_v37 }
  0xa6   : > { %1308 = vmatmul.mubr.bf16.gmra.mrb[64].mxu1 %v2492_v38  ;;  %2321 = vmatmul.mubr.msk.bf16.gmra.mrb[64].mxu0 %vm969_vm0, %v2493_v39  ;;  %v2776_v38 = vld [vmem:[%s2932_s2] ss:$0 sm:$0xff] }
  0xa7   : > { %1315 = vmatprep.mubr.bf16.mxu1 %v2494_v40  ;;  %2324 = vmatprep.mubr.msk.bf16.mxu0 %vm969_vm0, %v2496_v41 }
  0xae   : > { %1316 = vmatmul.mubr.bf16.gmra.mrb[68].mxu1 %v2497_v42  ;;  %2325 = vmatmul.mubr.msk.bf16.gmra.mrb[68].mxu0 %vm969_vm0, %v2498_v43 }
  0xaf   : > { %1323 = vmatprep.mubr.bf16.mxu1 %v2499_v44  ;;  %2328 = vmatprep.mubr.msk.bf16.mxu0 %vm969_vm0, %v2501_v45 }
  0xb6   : > { %1324 = vmatmul.mubr.bf16.gmra.mrb[72].mxu1 %v2502_v46  ;;  %2329 = vmatmul.mubr.msk.bf16.gmra.mrb[72].mxu0 %vm969_vm0, %v2503_v47 }
  0xb7   : > { %1331 = vmatprep.mubr.bf16.mxu1 %v2504_v48  ;;  %2332 = vmatprep.mubr.msk.bf16.mxu0 %vm969_vm0, %v2506_v49 }
  0xbe   : > { %1332 = vmatmul.mubr.bf16.gmra.mrb[76].mxu1 %v2507_v50  ;;  %2333 = vmatmul.mubr.msk.bf16.gmra.mrb[76].mxu0 %vm969_vm0, %v2508_v51 }
  0xf9   : > { %v2140_v52 = vpop.f32.mrb[0].mxu1  ;;  %v2068_v53 = vpop.f32.mrb[0].mxu0 }
  0xfa   : > { %v2141_v54 = vpop.f32.mrb[1].mxu1  ;;  %v2069_v55 = vpop.f32.mrb[1].mxu0 }
  0xfb   : > { %v2757_v56 = vadd.f32 %v2141_v54, %v2140_v52  ;;  %v2143_v57 = vpop.f32.mrb[2].mxu1  ;;  %v2070_v58 = vadd.f32 %v2069_v55, %v2068_v53  ;;  %v2071_v59 = vpop.f32.mrb[2].mxu0 }
  0xfc   : > { %v2144_v60 = vpop.f32.mrb[3].mxu1  ;;  %v2072_v61 = vpop.f32.mrb[3].mxu0 }
  0xfd   : > { %v2759_v62 = vadd.f32 %v2144_v60, %v2143_v57  ;;  %v2073_v63 = vadd.f32 %v2072_v61, %v2071_v59  ;;  %v1053_v41 = vadd.f32 %v2070_v58, %v2776_v38 }
  0xff   : > { %v1056_v48 = vadd.f32 %v2073_v63, %v2776_v38 }
 0x101   : > { %v2146_v0 = vpop.f32.mrb[4].mxu1  ;;  %v2074_v1 = vpop.f32.mrb[4].mxu0 }
 0x102   : > { %v2147_v2 = vpop.f32.mrb[5].mxu1  ;;  %v2075_v3 = vpop.f32.mrb[5].mxu0 }
 0x103   : > { %v2761_v4 = vadd.f32 %v2147_v2, %v2146_v0  ;;  %v2149_v5 = vpop.f32.mrb[6].mxu1  ;;  %v2076_v6 = vadd.f32 %v2075_v3, %v2074_v1  ;;  %v2077_v7 = vpop.f32.mrb[6].mxu0 }
 0x104   : > { %v2150_v8 = vpop.f32.mrb[7].mxu1  ;;  %v2078_v9 = vpop.f32.mrb[7].mxu0 }
 0x105   : > { %v2763_v10 = vadd.f32 %v2150_v8, %v2149_v5  ;;  %v2079_v11 = vadd.f32 %v2078_v9, %v2077_v7  ;;  %v1061_v58 = vadd.f32 %v2076_v6, %v2776_v38 }
 0x107   : > { %v1064_v63 = vadd.f32 %v2079_v11, %v2776_v38 }
 0x109   : > { %v2152_v12 = vpop.f32.mrb[8].mxu1  ;;  %v2080_v13 = vpop.f32.mrb[8].mxu0 }
 0x10a   : > { %v2153_v14 = vpop.f32.mrb[9].mxu1  ;;  %v2081_v15 = vpop.f32.mrb[9].mxu0 }
 0x10b   : > { %v2765_v16 = vadd.f32 %v2153_v14, %v2152_v12  ;;  %v2155_v17 = vpop.f32.mrb[10].mxu1  ;;  %v2082_v18 = vadd.f32 %v2081_v15, %v2080_v13  ;;  %v2083_v19 = vpop.f32.mrb[10].mxu0 }
 0x10c   : > { %v2156_v20 = vpop.f32.mrb[11].mxu1  ;;  %v2084_v21 = vpop.f32.mrb[11].mxu0 }
 0x10d   : > { %v2767_v22 = vadd.f32 %v2156_v20, %v2155_v17  ;;  %v2085_v23 = vadd.f32 %v2084_v21, %v2083_v19  ;;  %v1069_v6 = vadd.f32 %v2082_v18, %v2776_v38 }
 0x10f   : > { %v1072_v11 = vadd.f32 %v2085_v23, %v2776_v38 }
 0x111   : > { %v2158_v24 = vpop.f32.mrb[12].mxu1  ;;  %v2086_v25 = vpop.f32.mrb[12].mxu0 }
 0x112   : > { %v2159_v26 = vpop.f32.mrb[13].mxu1  ;;  %v2087_v27 = vpop.f32.mrb[13].mxu0 }
 0x113   : > { %v2769_v28 = vadd.f32 %v2159_v26, %v2158_v24  ;;  %v2161_v29 = vpop.f32.mrb[14].mxu1  ;;  %v2088_v30 = vadd.f32 %v2087_v27, %v2086_v25  ;;  %v2089_v31 = vpop.f32.mrb[14].mxu0 }
 0x114   : > { %v2162_v32 = vpop.f32.mrb[15].mxu1  ;;  %v2090_v33 = vpop.f32.mrb[15].mxu0 }
 0x115   : > { %v2771_v34 = vadd.f32 %v2162_v32, %v2161_v29  ;;  %v2091_v35 = vadd.f32 %v2090_v33, %v2089_v31  ;;  %v1077_v18 = vadd.f32 %v2088_v30, %v2776_v38 }
 0x117   : > { %v1080_v23 = vadd.f32 %v2091_v35, %v2776_v38 }
 0x119   : > { %v2180_v36 = vpop.f32.mrb[16].mxu1  ;;  %v2092_v37 = vpop.f32.mrb[16].mxu0 }
 0x11a   : > { %v2181_v39 = vpop.f32.mrb[17].mxu1  ;;  %v2093_v40 = vpop.f32.mrb[17].mxu0 }
 0x11b   : > { %v2182_v42 = vadd.f32 %v2181_v39, %v2180_v36  ;;  %v2183_v43 = vpop.f32.mrb[18].mxu1  ;;  %v2094_v44 = vadd.f32 %v2093_v40, %v2092_v37  ;;  %v2095_v45 = vpop.f32.mrb[18].mxu0 }
 0x11c   : > { %v2184_v46 = vpop.f32.mrb[19].mxu1  ;;  %v2096_v47 = vpop.f32.mrb[19].mxu0 }
 0x11d   : > { %v2185_v49 = vadd.f32 %v2184_v46, %v2183_v43  ;;  %v2097_v50 = vadd.f32 %v2096_v47, %v2095_v45  ;;  %v2780_v51 = vadd.f32 %v2182_v42, %v1053_v41  ;;  %v1085_v30 = vadd.f32 %v2094_v44, %v2776_v38 }
 0x11f   : > { %v2782_v52 = vadd.f32 %v2185_v49, %v1056_v48  ;;  %v1088_v35 = vadd.f32 %v2097_v50, %v2776_v38 }
 0x121   : > { %v2186_v53 = vpop.f32.mrb[20].mxu1  ;;  %v2098_v54 = vpop.f32.mrb[20].mxu0 }
 0x122   : > { %v2187_v55 = vpop.f32.mrb[21].mxu1  ;;  %v2099_v57 = vpop.f32.mrb[21].mxu0 }
 0x123   : > { %v2188_v59 = vadd.f32 %v2187_v55, %v2186_v53  ;;  %v2189_v60 = vpop.f32.mrb[22].mxu1  ;;  %v2100_v61 = vadd.f32 %v2099_v57, %v2098_v54  ;;  %v2101_v0 = vpop.f32.mrb[22].mxu0 }
 0x124   : > { %v2190_v1 = vpop.f32.mrb[23].mxu1  ;;  %v2102_v2 = vpop.f32.mrb[23].mxu0 }
 0x125   : > { %v2191_v3 = vadd.f32 %v2190_v1, %v2189_v60  ;;  %v2103_v5 = vadd.f32 %v2102_v2, %v2101_v0  ;;  %v2786_v7 = vadd.f32 %v2188_v59, %v1061_v58  ;;  %v1093_v44 = vadd.f32 %v2100_v61, %v2776_v38 }
 0x127   : > { %v2788_v8 = vadd.f32 %v2191_v3, %v1064_v63 }
 0x129   : > { %v2192_v9 = vpop.f32.mrb[24].mxu1  ;;  %v2104_v12 = vpop.f32.mrb[24].mxu0 }
 0x12a   : > { %v2193_v13 = vpop.f32.mrb[25].mxu1  ;;  %v2105_v14 = vpop.f32.mrb[25].mxu0 }
 0x12b   : > { %v2194_v15 = vadd.f32 %v2193_v13, %v2192_v9  ;;  %v2195_v17 = vpop.f32.mrb[26].mxu1  ;;  %v2106_v19 = vadd.f32 %v2105_v14, %v2104_v12  ;;  %v2107_v20 = vpop.f32.mrb[26].mxu0 }
 0x12c   : > { %v2196_v21 = vpop.f32.mrb[27].mxu1  ;;  %v2108_v24 = vpop.f32.mrb[27].mxu0 }
 0x12d   : > { %v2197_v25 = vadd.f32 %v2196_v21, %v2195_v17  ;;  %v2109_v26 = vadd.f32 %v2108_v24, %v2107_v20  ;;  %v2792_v27 = vadd.f32 %v2194_v15, %v1069_v6 }
 0x12f   : > { %v2794_v29 = vadd.f32 %v2197_v25, %v1072_v11  ;;  %v1096_v11 = vadd.f32 %v2103_v5, %v2776_v38 }
 0x131   : > { %v2198_v31 = vpop.f32.mrb[28].mxu1  ;;  %v2110_v32 = vpop.f32.mrb[28].mxu0 }
 0x132   : > { %v2199_v33 = vpop.f32.mrb[29].mxu1  ;;  %v2111_v36 = vpop.f32.mrb[29].mxu0 }
 0x133   : > { %v2200_v37 = vadd.f32 %v2199_v33, %v2198_v31  ;;  %v2201_v39 = vpop.f32.mrb[30].mxu1  ;;  %v2112_v40 = vadd.f32 %v2111_v36, %v2110_v32  ;;  %v2113_v41 = vpop.f32.mrb[30].mxu0 }
 0x134   : > { %v2202_v42 = vpop.f32.mrb[31].mxu1  ;;  %v2114_v43 = vpop.f32.mrb[31].mxu0 }
 0x135   : > { %v2203_v45 = vadd.f32 %v2202_v42, %v2201_v39  ;;  %v2115_v46 = vadd.f32 %v2114_v43, %v2113_v41  ;;  %v2798_v47 = vadd.f32 %v2200_v37, %v1077_v18  ;;  %v1101_v39 = vadd.f32 %v2106_v19, %v2776_v38 }
 0x137   : > { %v2800_v48 = vadd.f32 %v2203_v45, %v1080_v23 }
 0x139   : > { %v2204_v49 = vpop.f32.mrb[32].mxu1  ;;  %v2116_v53 = vpop.f32.mrb[32].mxu0 }
 0x13a   : > { %v2205_v54 = vpop.f32.mrb[33].mxu1  ;;  %v2117_v55 = vpop.f32.mrb[33].mxu0 }
 0x13b   : > { %v2206_v57 = vadd.f32 %v2205_v54, %v2204_v49  ;;  %v2207_v58 = vpop.f32.mrb[34].mxu1  ;;  %v2118_v59 = vadd.f32 %v2117_v55, %v2116_v53  ;;  %v2119_v60 = vpop.f32.mrb[34].mxu0  ;;  %v1104_v49 = vadd.f32 %v2109_v26, %v2776_v38 }
 0x13c   : > { %v2208_v0 = vpop.f32.mrb[35].mxu1  ;;  %v2120_v1 = vpop.f32.mrb[35].mxu0 }
 0x13d   : > { %v2209_v2 = vadd.f32 %v2208_v0, %v2207_v58  ;;  %v2804_v63 = vadd.f32 %v2120_v1, %v2119_v60  ;;  %v2806_v3 = vadd.f32 %v2206_v57, %v1085_v30  ;;  %v1109_v0 = vadd.f32 %v2112_v40, %v2776_v38 }
 0x13f   : > { %v2808_v9 = vadd.f32 %v2209_v2, %v1088_v35 }
 0x141   : > { %v2210_v12 = vpop.f32.mrb[36].mxu1  ;;  %v2122_v13 = vpop.f32.mrb[36].mxu0 }
 0x142   : > { %v2211_v14 = vpop.f32.mrb[37].mxu1  ;;  %v2123_v6 = vpop.f32.mrb[37].mxu0 }
 0x143   : > { %v2212_v15 = vadd.f32 %v2211_v14, %v2210_v12  ;;  %v2213_v17 = vpop.f32.mrb[38].mxu1  ;;  %v2811_v20 = vadd.f32 %v2123_v6, %v2122_v13  ;;  %v2125_v21 = vpop.f32.mrb[38].mxu0  ;;  %v1112_v14 = vadd.f32 %v2115_v46, %v2776_v38 }
 0x144   : > { %v2214_v24 = vpop.f32.mrb[39].mxu1  ;;  %v2126_v50 = vpop.f32.mrb[39].mxu0 }
 0x145   : > { %v2215_v25 = vadd.f32 %v2214_v24, %v2213_v17  ;;  %v2814_v31 = vadd.f32 %v2126_v50, %v2125_v21  ;;  %v2816_v32 = vadd.f32 %v2212_v15, %v1093_v44 }
 0x147   : > { %v2818_v33 = vadd.f32 %v2215_v25, %v1096_v11  ;;  %v1117_v25 = vadd.f32 %v2118_v59, %v2776_v38 }
 0x149   : > { %v2216_v36 = vpop.f32.mrb[40].mxu1  ;;  %v2128_v18 = vpop.f32.mrb[40].mxu0 }
 0x14a   : > { %v2217_v37 = vpop.f32.mrb[41].mxu1  ;;  %v2129_v61 = vpop.f32.mrb[41].mxu0 }
 0x14b   : > { %v2218_v41 = vadd.f32 %v2217_v37, %v2216_v36  ;;  %v2219_v42 = vpop.f32.mrb[42].mxu1  ;;  %v2821_v43 = vadd.f32 %v2129_v61, %v2128_v18  ;;  %v2131_v23 = vpop.f32.mrb[42].mxu0 }
 0x14c   : > { %v2220_v45 = vpop.f32.mrb[43].mxu1  ;;  %v2132_v5 = vpop.f32.mrb[43].mxu0 }
 0x14d   : > { %v2221_v53 = vadd.f32 %v2220_v45, %v2219_v42  ;;  %v2824_v54 = vadd.f32 %v2132_v5, %v2131_v23  ;;  %v2826_v55 = vadd.f32 %v2218_v41, %v1101_v39  ;;  %v1120_v42 = vadd.f32 %v2804_v63, %v2776_v38 }
 0x14f   : > { %v2828_v30 = vadd.f32 %v2221_v53, %v1104_v49 }
 0x151   : > { %v2222_v57 = vpop.f32.mrb[44].mxu1  ;;  %v2134_v58 = vpop.f32.mrb[44].mxu0 }
 0x152   : > { %v2223_v60 = vpop.f32.mrb[45].mxu1  ;;  %v2135_v19 = vpop.f32.mrb[45].mxu0 }
 0x153   : > { %v2224_v1 = vadd.f32 %v2223_v60, %v2222_v57  ;;  %v2225_v35 = vpop.f32.mrb[46].mxu1  ;;  %v2831_v2 = vadd.f32 %v2135_v19, %v2134_v58  ;;  %v2137_v12 = vpop.f32.mrb[46].mxu0 }
 0x154   : > { %v2226_v13 = vpop.f32.mrb[47].mxu1  ;;  %v2138_v26 = vpop.f32.mrb[47].mxu0 }
 0x155   : > { %v2227_v6 = vadd.f32 %v2226_v13, %v2225_v35  ;;  %v2834_v44 = vadd.f32 %v2138_v26, %v2137_v12  ;;  %v2836_v15 = vadd.f32 %v2224_v1, %v1109_v0  ;;  %v1125_v0 = vadd.f32 %v2811_v20, %v2776_v38 }
 0x157   : > { %v2838_v17 = vadd.f32 %v2227_v6, %v1112_v14 }
 0x159   : > { %v2228_v21 = vpop.f32.mrb[48].mxu1  ;;  %v2306_v24 = vpop.f32.mrb[48].mxu0 }
 0x15a   : > { %v1383_v40 = vadd.f32 %v2306_v24, %v2786_v7  ;;  %v2229_v50 = vpop.f32.mrb[49].mxu1  ;;  %v1374_v11 = vpop.f32.mrb[49].mxu0 }
 0x15b   : > { %v2230_v36 = vadd.f32 %v2229_v50, %v2228_v21  ;;  %v1375_v18 = vadd.f32 %v1374_v11, %v2780_v51  ;;  %v2231_v37 = vpop.f32.mrb[50].mxu1  ;;  %v2307_v46 = vpop.f32.mrb[50].mxu0  ;;  %v1128_v21 = vadd.f32 %v2814_v31, %v2776_v38 }
 0x15c   : > { %v1386_v61 = vadd.f32 %v2307_v46, %v2788_v8  ;;  %v2232_v39 = vpop.f32.mrb[51].mxu1  ;;  %v1377_v41 = vpop.f32.mrb[51].mxu0  ;;  %v1503_v5 = vmax.f32 %v1383_v40, 0.0 }
 0x15d   : > { %v2233_v23 = vadd.f32 %v2232_v39, %v2231_v37  ;;  %v1378_v7 = vadd.f32 %v1377_v41, %v2782_v52  ;;  %v2848_v45 = vadd.f32 %v2230_v36, %v1117_v25  ;;  %v1501_v49 = vmax.f32 %v1375_v18, 0.0 }
 0x15e   : > { %v1504_v59 = vmax.f32 %v1386_v61, 0.0 }
 0x15f   : > { %v1502_v51 = vmax.f32 %v1378_v7, 0.0  ;;  %v2855_v8 = vadd.f32 %v2233_v23, %v1120_v42 }
 0x160   : > { %v1965_v53 = vpack.c.bf16 %v1504_v59, %v1503_v5 }
 0x161   : > { %v1960_v63 = vpack.c.bf16 %v1502_v51, %v1501_v49  ;;  %v2234_v57 = vpop.f32.mrb[52].mxu1  ;;  %v2310_v58 = vpop.f32.mrb[52].mxu0  ;;  %v1136_v49 = vadd.f32 %v2824_v54, %v2776_v38 }
 0x162   : > { %2037 = vst [vmem:[%s2853_s22 + $0x8] sm:$0xff] %v1965_v53   ;;  %v1399_v52 = vadd.f32 %v2310_v58, %v2798_v47  ;;  %v2235_v60 = vpop.f32.mrb[53].mxu1  ;;  %v1390_v19 = vpop.f32.mrb[53].mxu0 }
 0x163   : > { %1961 = vst [vmem:[%s2853_s22] sm:$0xff] %v1960_v63   ;;  %v2236_v1 = vadd.f32 %v2235_v60, %v2234_v57  ;;  %v1391_v35 = vadd.f32 %v1390_v19, %v2792_v27  ;;  %v2237_v12 = vpop.f32.mrb[54].mxu1  ;;  %v2311_v13 = vpop.f32.mrb[54].mxu0 }
 0x164   : > { %v1402_v26 = vadd.f32 %v2311_v13, %v2800_v48  ;;  %v2238_v14 = vpop.f32.mrb[55].mxu1  ;;  %v1393_v6 = vpop.f32.mrb[55].mxu0  ;;  %v1507_v20 = vmax.f32 %v1399_v52, 0.0 }
 0x165   : > { %v2239_v47 = vadd.f32 %v2238_v14, %v2237_v12  ;;  %v1394_v24 = vadd.f32 %v1393_v6, %v2794_v29  ;;  %v2867_v40 = vadd.f32 %v2236_v1, %v1125_v0  ;;  %v1505_v11 = vmax.f32 %v1391_v35, 0.0 }
 0x166   : > { %v1508_v50 = vmax.f32 %v1402_v26, 0.0  ;;  %v1133_v29 = vadd.f32 %v2821_v43, %v2776_v38 }
 0x167   : > { %v1506_v27 = vmax.f32 %v1394_v24, 0.0  ;;  %v2869_v25 = vadd.f32 %v2239_v47, %v1128_v21  ;;  %v1144_v47 = vadd.f32 %v2834_v44, %v2776_v38  ;;  %v1149_v44 = vadd.f32 %v2757_v56, %v2776_v38 }
 0x168   : > { %v1975_v36 = vpack.c.bf16 %v1508_v50, %v1507_v20 }
 0x169   : > { %v1970_v48 = vpack.c.bf16 %v1506_v27, %v1505_v11  ;;  %v2240_v18 = vpop.f32.mrb[56].mxu1  ;;  %v2314_v37 = vpop.f32.mrb[56].mxu0 }
 0x16a   : > { %2039 = vst [vmem:[%s2853_s22 + $0x18] sm:$0xff] %v1975_v36   ;;  %v1415_v46 = vadd.f32 %v2314_v37, %v2816_v32  ;;  %v2241_v31 = vpop.f32.mrb[57].mxu1  ;;  %v1406_v61 = vpop.f32.mrb[57].mxu0 }
 0x16b   : > { %2038 = vst [vmem:[%s2853_s22 + $0x10] sm:$0xff] %v1970_v48   ;;  %v2242_v39 = vadd.f32 %v2241_v31, %v2240_v18  ;;  %v1407_v41 = vadd.f32 %v1406_v61, %v2806_v3  ;;  %v2243_v42 = vpop.f32.mrb[58].mxu1  ;;  %v2315_v23 = vpop.f32.mrb[58].mxu0 }
 0x16c   : > { %v1418_v7 = vadd.f32 %v2315_v23, %v2818_v33  ;;  %v2244_v5 = vpop.f32.mrb[59].mxu1  ;;  %v1409_v59 = vpop.f32.mrb[59].mxu0  ;;  %v1511_v43 = vmax.f32 %v1415_v46, 0.0 }
 0x16d   : > { %v2245_v32 = vadd.f32 %v2244_v5, %v2243_v42  ;;  %v1410_v51 = vadd.f32 %v1409_v59, %v2808_v9  ;;  %v2881_v53 = vadd.f32 %v2242_v39, %v1133_v29  ;;  %v1509_v57 = vmax.f32 %v1407_v41, 0.0 }
 0x16e   : > { %v1512_v63 = vmax.f32 %v1418_v7, 0.0  ;;  %v1141_v9 = vadd.f32 %v2831_v2, %v2776_v38  ;;  %v1152_v7 = vadd.f32 %v2759_v62, %v2776_v38  ;;  %v1157_v62 = vadd.f32 %v2761_v4, %v2776_v38 }
 0x16f   : > { %v1510_v3 = vmax.f32 %v1410_v51, 0.0  ;;  %v2883_v58 = vadd.f32 %v2245_v32, %v1136_v49 }
 0x170   : > { %v1985_v52 = vpack.c.bf16 %v1512_v63, %v1511_v43 }
 0x171   : > { %v1980_v33 = vpack.c.bf16 %v1510_v3, %v1509_v57  ;;  %v2246_v60 = vpop.f32.mrb[60].mxu1  ;;  %v2318_v19 = vpop.f32.mrb[60].mxu0 }
 0x172   : > { %2041 = vst [vmem:[%s2853_s22 + $0x28] sm:$0xff] %v1985_v52   ;;  %v1431_v0 = vadd.f32 %v2318_v19, %v2836_v15  ;;  %v2247_v54 = vpop.f32.mrb[61].mxu1  ;;  %v1422_v1 = vpop.f32.mrb[61].mxu0 }
 0x173   : > { %2040 = vst [vmem:[%s2853_s22 + $0x20] sm:$0xff] %v1980_v33   ;;  %v2248_v35 = vadd.f32 %v2247_v54, %v2246_v60  ;;  %v1423_v12 = vadd.f32 %v1422_v1, %v2826_v55  ;;  %v2249_v13 = vpop.f32.mrb[62].mxu1  ;;  %v2319_v26 = vpop.f32.mrb[62].mxu0 }
 0x174   : > { %v1434_v14 = vadd.f32 %v2319_v26, %v2838_v17  ;;  %v2250_v6 = vpop.f32.mrb[63].mxu1  ;;  %v1425_v21 = vpop.f32.mrb[63].mxu0  ;;  %v1515_v2 = vmax.f32 %v1431_v0, 0.0 }
 0x175   : > { %v2251_v15 = vadd.f32 %v2250_v6, %v2249_v13  ;;  %v1426_v24 = vadd.f32 %v1425_v21, %v2828_v30  ;;  %v1302_v20 = vadd.f32 %v2248_v35, %v1141_v9  ;;  %v1513_v11 = vmax.f32 %v1423_v12, 0.0 }
 0x176   : > { %v1516_v50 = vmax.f32 %v1434_v14, 0.0  ;;  %v1160_v35 = vadd.f32 %v2763_v10, %v2776_v38  ;;  %v1165_v10 = vadd.f32 %v2765_v16, %v2776_v38 }
 0x177   : > { %v1514_v27 = vmax.f32 %v1426_v24, 0.0  ;;  %v1305_v55 = vadd.f32 %v2251_v15, %v1144_v47 }
 0x178   : > { %v1995_v36 = vpack.c.bf16 %v1516_v50, %v1515_v2 }
 0x179   : > { %v1990_v48 = vpack.c.bf16 %v1514_v27, %v1513_v11  ;;  %v2252_v18 = vpop.f32.mrb[64].mxu1  ;;  %v2322_v17 = vpop.f32.mrb[64].mxu0 }
 0x17a   : > { %2043 = vst [vmem:[%s2853_s22 + $0x38] sm:$0xff] %v1995_v36   ;;  %v1447_v37 = vadd.f32 %v2322_v17, %v2867_v40  ;;  %v2253_v46 = vpop.f32.mrb[65].mxu1  ;;  %v1438_v31 = vpop.f32.mrb[65].mxu0 }
 0x17b   : > { %2042 = vst [vmem:[%s2853_s22 + $0x30] sm:$0xff] %v1990_v48   ;;  %v2254_v30 = vadd.f32 %v2253_v46, %v2252_v18  ;;  %v1439_v61 = vadd.f32 %v1438_v31, %v2848_v45  ;;  %v2255_v29 = vpop.f32.mrb[66].mxu1  ;;  %v2323_v39 = vpop.f32.mrb[66].mxu0 }
 0x17c   : > { %v1450_v41 = vadd.f32 %v2323_v39, %v2869_v25  ;;  %v2256_v42 = vpop.f32.mrb[67].mxu1  ;;  %v1441_v23 = vpop.f32.mrb[67].mxu0  ;;  %v1519_v56 = vmax.f32 %v1447_v37, 0.0  ;;  %v1168_v37 = vadd.f32 %v2767_v22, %v2776_v38 }
 0x17d   : > { %v2257_v40 = vadd.f32 %v2256_v42, %v2255_v29  ;;  %v1442_v5 = vadd.f32 %v1441_v23, %v2855_v8  ;;  %v1310_v59 = vadd.f32 %v2254_v30, %v1149_v44  ;;  %v1517_v32 = vmax.f32 %v1439_v61, 0.0 }
 0x17e   : > { %v1520_v49 = vmax.f32 %v1450_v41, 0.0 }
 0x17f   : > { %v1518_v51 = vmax.f32 %v1442_v5, 0.0  ;;  %v1313_v45 = vadd.f32 %v2257_v40, %v1152_v7 }
 0x180   : > { %v2005_v43 = vpack.c.bf16 %v1520_v49, %v1519_v56 }
 0x181   : > { %v2000_v63 = vpack.c.bf16 %v1518_v51, %v1517_v32  ;;  %v2258_v57 = vpop.f32.mrb[68].mxu1  ;;  %v2326_v25 = vpop.f32.mrb[68].mxu0 }
 0x182   : > { %2045 = vst [vmem:[%s2853_s22 + $0x48] sm:$0xff] %v2005_v43   ;;  %v1463_v3 = vadd.f32 %v2326_v25, %v1302_v20  ;;  %v2259_v52 = vpop.f32.mrb[69].mxu1  ;;  %v1454_v33 = vpop.f32.mrb[69].mxu0  ;;  %v1176_v43 = vadd.f32 %v2771_v34, %v2776_v38 }
 0x183   : > { %2044 = vst [vmem:[%s2853_s22 + $0x40] sm:$0xff] %v2000_v63   ;;  %v2260_v8 = vadd.f32 %v2259_v52, %v2258_v57  ;;  %v1455_v60 = vadd.f32 %v1454_v33, %v2881_v53  ;;  %v2261_v19 = vpop.f32.mrb[70].mxu1  ;;  %v2327_v0 = vpop.f32.mrb[70].mxu0 }
 0x184   : > { %v1466_v54 = vadd.f32 %v2327_v0, %v1305_v55  ;;  %v2262_v1 = vpop.f32.mrb[71].mxu1  ;;  %v1457_v9 = vpop.f32.mrb[71].mxu0  ;;  %v1523_v14 = vmax.f32 %v1463_v3, 0.0 }
 0x185   : > { %v2263_v12 = vadd.f32 %v2262_v1, %v2261_v19  ;;  %v1458_v13 = vadd.f32 %v1457_v9, %v2883_v58  ;;  %v1318_v26 = vadd.f32 %v2260_v8, %v1157_v62  ;;  %v1521_v6 = vmax.f32 %v1455_v60, 0.0 }
 0x186   : > { %v1524_v4 = vmax.f32 %v1466_v54, 0.0 }
 0x187   : > { %v1522_v21 = vmax.f32 %v1458_v13, 0.0  ;;  %v1321_v47 = vadd.f32 %v2263_v12, %v1160_v35 }
 0x188   : > { %v2015_v53 = vpack.c.bf16 %v1524_v4, %v1523_v14 }
 0x189   : > { %v2010_v15 = vpack.c.bf16 %v1522_v21, %v1521_v6  ;;  %v2264_v24 = vpop.f32.mrb[72].mxu1  ;;  %v2330_v20 = vpop.f32.mrb[72].mxu0 }
 0x18a   : > { %2047 = vst [vmem:[%s2853_s22 + $0x58] sm:$0xff] %v2015_v53   ;;  %v1479_v2 = vadd.f32 %v2330_v20, %v1318_v26  ;;  %v2265_v50 = vpop.f32.mrb[73].mxu1  ;;  %v1470_v11 = vpop.f32.mrb[73].mxu0 }
 0x18b   : > { %2046 = vst [vmem:[%s2853_s22 + $0x50] sm:$0xff] %v2010_v15   ;;  %v2266_v58 = vadd.f32 %v2265_v50, %v2264_v24  ;;  %v1471_v27 = vadd.f32 %v1470_v11, %v1310_v59  ;;  %v2267_v55 = vpop.f32.mrb[74].mxu1  ;;  %v2331_v36 = vpop.f32.mrb[74].mxu0  ;;  %v1173_v59 = vadd.f32 %v2769_v28, %v2776_v38 }
 0x18c   : > { %v1482_v48 = vadd.f32 %v2331_v36, %v1321_v47  ;;  %v2268_v18 = vpop.f32.mrb[75].mxu1  ;;  %v1473_v17 = vpop.f32.mrb[75].mxu0  ;;  %v1527_v30 = vmax.f32 %v1479_v2, 0.0 }
 0x18d   : > { %v2269_v46 = vadd.f32 %v2268_v18, %v2267_v55  ;;  %v1474_v31 = vadd.f32 %v1473_v17, %v1313_v45  ;;  %v1326_v44 = vadd.f32 %v2266_v58, %v1165_v10  ;;  %v1525_v29 = vmax.f32 %v1471_v27, 0.0 }
 0x18e   : > { %v1528_v61 = vmax.f32 %v1482_v48, 0.0 }
 0x18f   : > { %v1526_v16 = vmax.f32 %v1474_v31, 0.0  ;;  %v1329_v39 = vadd.f32 %v2269_v46, %v1168_v37 }
 0x190   : > { %v2025_v41 = vpack.c.bf16 %v1528_v61, %v1527_v30 }
 0x191   : > { %v2020_v42 = vpack.c.bf16 %v1526_v16, %v1525_v29  ;;  %v2270_v23 = vpop.f32.mrb[76].mxu1  ;;  %v2334_v7 = vpop.f32.mrb[76].mxu0 }
 0x192   : > { %2049 = vst [vmem:[%s2853_s22 + $0x68] sm:$0xff] %v2025_v41   ;;  %v2271_v40 = vpop.f32.mrb[77].mxu1  ;;  %v1486_v5 = vpop.f32.mrb[77].mxu0 }
 0x193   : > { %2048 = vst [vmem:[%s2853_s22 + $0x60] sm:$0xff] %v2020_v42   ;;  %v2272_v22 = vadd.f32 %v2271_v40, %v2270_v23  ;;  %v1487_v56 = vadd.f32 %v1486_v5, %v1326_v44  ;;  %v2273_v49 = vpop.f32.mrb[78].mxu1  ;;  %v2335_v32 = vpop.f32.mrb[78].mxu0 }
 0x194   : > { %v2274_v51 = vpop.f32.mrb[79].mxu1  ;;  %v1489_v45 = vpop.f32.mrb[79].mxu0 }
 0x195   : > { %v1334_v63 = vadd.f32 %v2272_v22, %v1173_v59  ;;  %v2275_v57 = vadd.f32 %v2274_v51, %v2273_v49  ;;  %v1490_v25 = vadd.f32 %v1489_v45, %v1329_v39  ;;  %v1529_v52 = vmax.f32 %v1487_v56, 0.0 }
 0x197   : > { %v1495_v3 = vadd.f32 %v2334_v7, %v1334_v63  ;;  %v1337_v33 = vadd.f32 %v2275_v57, %v1176_v43  ;;  %v1530_v62 = vmax.f32 %v1490_v25, 0.0 }
 0x199   : > { %v1498_v28 = vadd.f32 %v2335_v32, %v1337_v33  ;;  %v2030_v8 = vpack.c.bf16 %v1530_v62, %v1529_v52  ;;  %v1531_v60 = vmax.f32 %v1495_v3, 0.0 }
 0x19b   : > { %v1532_v19 = vmax.f32 %v1498_v28, 0.0  ;;  %2050 = vst [vmem:[%s2853_s22 + $0x70] sm:$0xff] %v2030_v8  }
 0x19d   : > { %v2035_v0 = vpack.c.bf16 %v1532_v19, %v1531_v60 }
 0x19f   : > { %2051 = vst [vmem:[%s2853_s22 + $0x78] sm:$0xff] %v2035_v0  }
 0x1a0 PF: > { %s13_s12 = sadd.s32 1, %s2515_s12  }
 0x1a1   : > { %p10_p4 = scmp.ge.s32.totalorder %s13_s12, 4  }
 0x1a3   :  { %12 = sbr.rel (!%p10_p4) target bundleno = 1 (0x1), region = 62 }

// kernel: seg_model_forward.28
= control target key start
LH: loop header
LB: loop body
LE: loop exit
PB: predicated region body
PF: predicated region fallthrough
CT: control target
= control target key end

     0   :  { %s1487_s12 = smov 0   ;;  %s1713_s0 = inlined_call_operand.vmem [shape: bf16[512,288], index: 0, kind: input, shape index: {}]   ;;  %s1714_s1 = inlined_call_operand.vmem [shape: bf16[288,128], index: 1, kind: input, shape index: {}]   ;;  %s1715_s2 = inlined_call_operand.vmem [shape: f32[1,128], index: 2, kind: input, shape index: {}]   ;;  %s1716_s3 = inlined_call_operand.vmem [shape: bf16[512,128], index: 3, kind: output, shape index: {}]  }
   0x1 LB: > { %s1092_s13 = sadd.s32 4294967295, %s1465_s12   ;;  %p1096_p0 = scmp.ge.s32.totalorder %s1465_s12, 1  ;;  %s1465_s12 = sphi %s1487_s12, %s13_s12  }
   0x2   : > { %p139_p1 = scmp.lt.s32.totalorder %s1465_s12, 3 }
   0x4   : > { %p140_p2 = pnand %p1096_p0, %p139_p1 }
   0x5   : > { %v1377_v0 = vld [vmem:[%s1714_s1 + $0x40] sm:$0xff] (!%p140_p2)   ;;  %s1097_s16 = sshll.u32 (!%p140_p2), %s1092_s13, 5  ;;  %v1379_v2 = vld [vmem:[%s1714_s1 + $0x48] sm:$0xff] (!%p140_p2)   ;;  %v1381_v4 = vld [vmem:[%s1714_s1 + $0x50] sm:$0xff] (!%p140_p2)   ;;  %vm633_vm0 = vcmask (!%p140_p2), 261120   ;;  %s1099_s30 = sshll.u32 (!%p140_p2), %s1092_s13, 4 }
   0x6   : > { %143 = sbr.rel (%p140_p2) target bundleno = 350 (0x15e), region = 32  ;;  %v1378_v1 = vld [vmem:[%s1714_s1] sm:$0xff] (!%p140_p2)   ;;  %1186 = vmatprep.subr.bf16.mxu0 (!%p140_p2), %v1377_v0  ;;  %1352 = vmatprep.subr.bf16.mxu1 (!%p140_p2), %v1377_v0  ;;  %p165_p3 = scmp.lt.s32.totalorder (!%p140_p2), %s1097_s16, 63  ;;  %v1380_v3 = vld [vmem:[%s1714_s1 + $0x8] sm:$0xff] (!%p140_p2)   ;;  %v1382_v5 = vld [vmem:[%s1714_s1 + $0x10] sm:$0xff] (!%p140_p2)  }
   0x7   : > { %1187 = vmatpush3.bf16.msra.mxu0 (!%p140_p2), %v1378_v1  ;;  %1360 = vmatpush3.bf16.msra.mxu1 (!%p140_p2), %v1378_v1  ;;  %v1383_v6 = vld [vmem:[%s1714_s1 + $0x58] sm:$0xff] (!%p140_p2)   ;;  %v1385_v8 = vld [vmem:[%s1714_s1 + $0x60] sm:$0xff] (!%p140_p2)   ;;  %v1387_v10 = vld [vmem:[%s1714_s1 + $0x68] sm:$0xff] (!%p140_p2)   ;;  %p172_p4 = scmp.lt.s32.totalorder (!%p140_p2), %s1099_s30, 31 }
   0x8   : > { %1188 = vmatprep.subr.bf16.mxu0 (!%p140_p2), %v1379_v2  ;;  %1353 = vmatprep.subr.bf16.mxu1 (!%p140_p2), %v1379_v2  ;;  %v1384_v7 = vld [vmem:[%s1714_s1 + $0x18] sm:$0xff] (!%p140_p2)   ;;  %v1386_v9 = vld [vmem:[%s1714_s1 + $0x20] sm:$0xff] (!%p140_p2)   ;;  %v1388_v13 = vld [vmem:[%s1714_s1 + $0x28] sm:$0xff] (!%p140_p2)  }
   0x9   : > { %v1389_v14 = vld [vmem:[%s1714_s1 + $0x70] sm:$0xff] (!%p140_p2)   ;;  %v1391_v16 = vld [vmem:[%s1714_s1 + $0x78] sm:$0xff] (!%p140_p2)   ;;  %v1399_v18 = vld [vmem:[%s1714_s1 + $0x80] sm:$0xff] (!%p140_p2)  }
   0xa   : > { %v1390_v15 = vld [vmem:[%s1714_s1 + $0x30] sm:$0xff] (!%p140_p2)   ;;  %v1392_v17 = vld [vmem:[%s1714_s1 + $0x38] sm:$0xff] (!%p140_p2)   ;;  %v1412_v23 = vld [vmem:[%s1714_s1 + $0x88] sm:$0xff] (!%p140_p2)  }
   0xb   : > { %1189 = vmatpush3.bf16.msra.mxu0 (!%p140_p2), %v1380_v3  ;;  %1361 = vmatpush3.bf16.msra.mxu1 (!%p140_p2), %v1380_v3 }
   0xc   : > { %1190 = vmatprep.subr.bf16.mxu0 (!%p140_p2), %v1381_v4  ;;  %1354 = vmatprep.subr.bf16.mxu1 (!%p140_p2), %v1381_v4 }
   0xd   : > { %s1718_s16 = smov (!%p165_p3, %s1097_s16), 63  ;;  %s1720_s30 = smov (!%p172_p4, %s1099_s30), 31 }
   0xe   : > { %s1368_s29 = smul.u32 12, %s1718_s16  ;;  %s1100_s13 = sshll.u32 %s1720_s30, 3 }
   0xf   : > { %1191 = vmatpush3.bf16.msra.mxu0 %v1382_v5  ;;  %1362 = vmatpush3.bf16.msra.mxu1 %v1382_v5  ;;  %s1650_s8 = scalar_lea.vmem %s1716_s3, %s1100_s13 }
  0x10   : > { %1192 = vmatprep.subr.bf16.mxu0 %v1383_v6  ;;  %1355 = vmatprep.subr.bf16.mxu1 %v1383_v6  ;;  %s1527_s9 = scalar_lea.vmem %s1713_s0, %s1368_s29 }
  0x11   : > { %v1395_v11 = vld [vmem:[%s1527_s9 + $0x4] ss:$12 sps:$4 sm:$0xff]   ;;  %v1393_v19 = vld [vmem:[%s1527_s9] ss:$12 sps:$4 sm:$0xff]   ;;  %v1400_v21 = vld [vmem:[%s1527_s9 + $0x1c] ss:$12 sps:$4 sm:$0xff]  }
  0x12   : > { %v1398_v12 = vld [vmem:[%s1527_s9 + $0x124] ss:$12 sps:$4 sm:$0xff]   ;;  %714 = vmatprep.mubr.bf16.mxu0 %v1395_v11  ;;  %v1396_v20 = vld [vmem:[%s1527_s9 + $0x120] ss:$12 sps:$4 sm:$0xff]   ;;  %v1402_v22 = vld [vmem:[%s1527_s9 + $0x13c] ss:$12 sps:$4 sm:$0xff]  }
  0x13   : > { %1193 = vmatpush3.bf16.msra.mxu0 %v1384_v7  ;;  %1363 = vmatpush3.bf16.msra.mxu1 %v1384_v7  ;;  %v1404_v24 = vld [vmem:[%s1527_s9 + $0x18] ss:$12 sps:$4 sm:$0xff]   ;;  %v1406_v26 = vld [vmem:[%s1527_s9 + $0x34] ss:$12 sps:$4 sm:$0xff]   ;;  %v1410_v28 = vld [vmem:[%s1527_s9 + $0x30] ss:$12 sps:$4 sm:$0xff]  }
  0x14   : > { %1194 = vmatprep.subr.bf16.mxu0 %v1385_v8  ;;  %1356 = vmatprep.subr.bf16.mxu1 %v1385_v8  ;;  %v1405_v25 = vld [vmem:[%s1527_s9 + $0x138] ss:$12 sps:$4 sm:$0xff]   ;;  %v1408_v27 = vld [vmem:[%s1527_s9 + $0x154] ss:$12 sps:$4 sm:$0xff]   ;;  %v1411_v29 = vld [vmem:[%s1527_s9 + $0x150] ss:$12 sps:$4 sm:$0xff]  }
  0x15   : > { %810 = vmatprep.mubr.bf16.mxu1 %v1398_v12  ;;  %v1413_v30 = vld [vmem:[%s1527_s9 + $0x4c] ss:$12 sps:$4 sm:$0xff]   ;;  %v1417_v32 = vld [vmem:[%s1527_s9 + $0x48] ss:$12 sps:$4 sm:$0xff]   ;;  %v1419_v34 = vld [vmem:[%s1527_s9 + $0x64] ss:$12 sps:$4 sm:$0xff]  }
  0x16   : > { %v1415_v31 = vld [vmem:[%s1527_s9 + $0x16c] ss:$12 sps:$4 sm:$0xff]   ;;  %v1418_v33 = vld [vmem:[%s1527_s9 + $0x168] ss:$12 sps:$4 sm:$0xff]   ;;  %v1428_v41 = vld [vmem:[%s1527_s9 + $0x50] ss:$12 sps:$4 sm:$0xff]  }
  0x17   : > { %1195 = vmatpush3.bf16.msra.mxu0 %v1386_v9  ;;  %1364 = vmatpush3.bf16.msra.mxu1 %v1386_v9  ;;  %v1421_v35 = vld [vmem:[%s1527_s9 + $0x8] ss:$12 sps:$4 sm:$0xff]   ;;  %v1422_v36 = vld [vmem:[%s1527_s9 + $0x60] ss:$12 sps:$4 sm:$0xff]   ;;  %v1426_v39 = vld [vmem:[%s1527_s9 + $0x38] ss:$12 sps:$4 sm:$0xff]  }
  0x18   : > { %1196 = vmatprep.subr.bf16.mxu0 %v1387_v10  ;;  %1357 = vmatprep.subr.bf16.mxu1 %v1387_v10  ;;  %v1423_v37 = vld [vmem:[%s1527_s9 + $0x20] ss:$12 sps:$4 sm:$0xff]   ;;  %v1424_v38 = vld [vmem:[%s1527_s9 + $0x7c] ss:$12 sps:$4 sm:$0xff]   ;;  %v1427_v40 = vld [vmem:[%s1527_s9 + $0x78] ss:$12 sps:$4 sm:$0xff]  }
  0x19   : > { %v1429_v42 = vld [vmem:[%s1527_s9 + $0x94] ss:$12 sps:$4 sm:$0xff]   ;;  %v1432_v44 = vld [vmem:[%s1527_s9 + $0x90] ss:$12 sps:$4 sm:$0xff]   ;;  %v1434_v46 = vld [vmem:[%s1527_s9 + $0xac] ss:$12 sps:$4 sm:$0xff]  }
  0x1a   : > { %v1431_v43 = vld [vmem:[%s1527_s9 + $0x68] ss:$12 sps:$4 sm:$0xff]   ;;  %v1433_v45 = vld [vmem:[%s1527_s9 + $0x80] ss:$12 sps:$4 sm:$0xff]   ;;  %v1436_v47 = vld [vmem:[%s1527_s9 + $0x98] ss:$12 sps:$4 sm:$0xff]  }
  0x1b   : > { %1197 = vmatpush3.bf16.msra.mxu0 %v1388_v13  ;;  %1365 = vmatpush3.bf16.msra.mxu1 %v1388_v13  ;;  %v1437_v48 = vld [vmem:[%s1527_s9 + $0xa8] ss:$12 sps:$4 sm:$0xff]   ;;  %v1438_v49 = vld [vmem:[%s1527_s9 + $0xb0] ss:$12 sps:$4 sm:$0xff]   ;;  %v1442_v52 = vld [vmem:[%s1527_s9 + $0xc0] ss:$12 sps:$4 sm:$0xff]  }
  0x1c   : > { %1198 = vmatprep.subr.bf16.mxu0 %v1389_v14  ;;  %1358 = vmatprep.subr.bf16.mxu1 %v1389_v14  ;;  %v1439_v50 = vld [vmem:[%s1527_s9 + $0xc4] ss:$12 sps:$4 sm:$0xff]   ;;  %v1441_v51 = vld [vmem:[%s1527_s9 + $0xc8] ss:$12 sps:$4 sm:$0xff]   ;;  %v1443_v53 = vld [vmem:[%s1527_s9 + $0xe0] ss:$12 sps:$4 sm:$0xff]  }
  0x1d   : > { %v1444_v54 = vld [vmem:[%s1527_s9 + $0xdc] ss:$12 sps:$4 sm:$0xff]   ;;  %v1446_v55 = vld [vmem:[%s1527_s9 + $0xf8] ss:$12 sps:$4 sm:$0xff]   ;;  %v1449_v58 = vld [vmem:[%s1527_s9 + $0xf4] ss:$12 sps:$4 sm:$0xff]  }
  0x1e   : > { %v1447_v56 = vld [vmem:[%s1527_s9 + $0xd8] ss:$12 sps:$4 sm:$0xff]   ;;  %v1448_v57 = vld [vmem:[%s1527_s9 + $0x110] ss:$12 sps:$4 sm:$0xff]   ;;  %v1451_v59 = vld [vmem:[%s1527_s9 + $0x128] ss:$12 sps:$4 sm:$0xff]  }
  0x1f   : > { %1199 = vmatpush3.bf16.msra.mxu0 %v1390_v15  ;;  %1366 = vmatpush3.bf16.msra.mxu1 %v1390_v15  ;;  %v1452_v60 = vld [vmem:[%s1527_s9 + $0xf0] ss:$12 sps:$4 sm:$0xff]   ;;  %v1453_v61 = vld [vmem:[%s1527_s9 + $0x140] ss:$12 sps:$4 sm:$0xff]   ;;  %v1456_v63 = vld [vmem:[%s1527_s9 + $0x158] ss:$12 sps:$4 sm:$0xff]  }
  0x20   : > { %1200 = vmatprep.subr.bf16.mxu0 %v1391_v16  ;;  %1359 = vmatprep.subr.bf16.mxu1 %v1391_v16  ;;  %v1454_v62 = vld [vmem:[%s1527_s9 + $0x10c] ss:$12 sps:$4 sm:$0xff]   ;;  %v1457_v0 = vld [vmem:[%s1527_s9 + $0x108] ss:$12 sps:$4 sm:$0xff]   ;;  %v1458_v1 = vld [vmem:[%s1527_s9 + $0x170] ss:$12 sps:$4 sm:$0xff]  }
  0x23   : > { %1201 = vmatpush3.bf16.msra.mxu0 %v1392_v17  ;;  %1367 = vmatpush3.bf16.msra.mxu1 %v1392_v17 }
  0x24   : > { %1316 = vmatprep.subr.bf16.mxu1 %v1399_v18 }
  0x26   : > { %715 = vmatmul.mubr.bf16.vlgmr.msra.gmra.mrb[0].mxu0 %v1393_v19  ;;  %811 = vmatmul.mubr.bf16.vlgmr.msra.gmra.mrb[0].mxu1 %v1396_v20 }
  0x27   : > { %1317 = vmatpush3.bf16.msra.mxu1 %v1399_v18  ;;  %722 = vmatprep.mubr.bf16.mxu0 %v1400_v21 }
  0x28   : > { %818 = vmatprep.mubr.bf16.mxu1 %v1402_v22  ;;  %1318 = vmatprep.subr.bf16.mxu1 %v1412_v23 }
  0x2b   : > { %1319 = vmatpush3.bf16.msra.mxu1 %v1412_v23 }
  0x2e   : > { %723 = vmatmul.mubr.bf16.gmra.mrb[4].mxu0 %v1404_v24  ;;  %819 = vmatmul.mubr.bf16.gmra.mrb[4].mxu1 %v1405_v25 }
  0x2f   : > { %730 = vmatprep.mubr.bf16.mxu0 %v1406_v26  ;;  %826 = vmatprep.mubr.bf16.mxu1 %v1408_v27 }
  0x36   : > { %731 = vmatmul.mubr.bf16.gmra.mrb[8].mxu0 %v1410_v28  ;;  %827 = vmatmul.mubr.bf16.gmra.mrb[8].mxu1 %v1411_v29 }
  0x37   : > { %738 = vmatprep.mubr.bf16.mxu0 %v1413_v30  ;;  %834 = vmatprep.mubr.bf16.mxu1 %v1415_v31 }
  0x3e   : > { %739 = vmatmul.mubr.bf16.gmra.mrb[12].mxu0 %v1417_v32  ;;  %835 = vmatmul.mubr.bf16.gmra.mrb[12].mxu1 %v1418_v33 }
  0x3f   : > { %746 = vmatprep.mubr.bf16.mxu0 %v1419_v34  ;;  %1320 = vmatprep.mubr.msk.bf16.mxu1 %vm633_vm0, %v1421_v35 }
  0x46   : > { %747 = vmatmul.mubr.bf16.gmra.mrb[16].mxu0 %v1422_v36  ;;  %1321 = vmatmul.mubr.msk.bf16.vlgmr.msra.gmra.mrb[16].mxu1 %vm633_vm0, %v1423_v37 }
  0x47   : > { %754 = vmatprep.mubr.bf16.mxu0 %v1424_v38  ;;  %1324 = vmatprep.mubr.msk.bf16.mxu1 %vm633_vm0, %v1426_v39 }
  0x4e   : > { %755 = vmatmul.mubr.bf16.gmra.mrb[20].mxu0 %v1427_v40  ;;  %1325 = vmatmul.mubr.msk.bf16.gmra.mrb[20].mxu1 %vm633_vm0, %v1428_v41 }
  0x4f   : > { %762 = vmatprep.mubr.bf16.mxu0 %v1429_v42  ;;  %1328 = vmatprep.mubr.msk.bf16.mxu1 %vm633_vm0, %v1431_v43 }
  0x56   : > { %763 = vmatmul.mubr.bf16.gmra.mrb[24].mxu0 %v1432_v44  ;;  %1329 = vmatmul.mubr.msk.bf16.gmra.mrb[24].mxu1 %vm633_vm0, %v1433_v45 }
  0x57   : > { %770 = vmatprep.mubr.bf16.mxu0 %v1434_v46  ;;  %1332 = vmatprep.mubr.msk.bf16.mxu1 %vm633_vm0, %v1436_v47 }
  0x5e   : > { %771 = vmatmul.mubr.bf16.gmra.mrb[28].mxu0 %v1437_v48  ;;  %1333 = vmatmul.mubr.msk.bf16.gmra.mrb[28].mxu1 %vm633_vm0, %v1438_v49 }
  0x5f   : > { %778 = vmatprep.mubr.bf16.mxu0 %v1439_v50  ;;  %1336 = vmatprep.mubr.msk.bf16.mxu1 %vm633_vm0, %v1441_v51  ;;  %v1641_v50 = vld [vmem:[%s1715_s2] ss:$0 sm:$0xff] }
  0x66   : > { %779 = vmatmul.mubr.bf16.gmra.mrb[32].mxu0 %v1442_v52  ;;  %1337 = vmatmul.mubr.msk.bf16.gmra.mrb[32].mxu1 %vm633_vm0, %v1443_v53 }
  0x67   : > { %786 = vmatprep.mubr.bf16.mxu0 %v1444_v54  ;;  %1340 = vmatprep.mubr.msk.bf16.mxu1 %vm633_vm0, %v1446_v55 }
  0x6e   : > { %787 = vmatmul.mubr.bf16.gmra.mrb[36].mxu0 %v1447_v56  ;;  %1341 = vmatmul.mubr.msk.bf16.gmra.mrb[36].mxu1 %vm633_vm0, %v1448_v57 }
  0x6f   : > { %794 = vmatprep.mubr.bf16.mxu0 %v1449_v58  ;;  %1344 = vmatprep.mubr.msk.bf16.mxu1 %vm633_vm0, %v1451_v59 }
  0x76   : > { %795 = vmatmul.mubr.bf16.gmra.mrb[40].mxu0 %v1452_v60  ;;  %1345 = vmatmul.mubr.msk.bf16.gmra.mrb[40].mxu1 %vm633_vm0, %v1453_v61 }
  0x77   : > { %802 = vmatprep.mubr.bf16.mxu0 %v1454_v62  ;;  %1348 = vmatprep.mubr.msk.bf16.mxu1 %vm633_vm0, %v1456_v63 }
  0x7e   : > { %803 = vmatmul.mubr.bf16.gmra.mrb[44].mxu0 %v1457_v0  ;;  %1349 = vmatmul.mubr.msk.bf16.gmra.mrb[44].mxu1 %vm633_vm0, %v1458_v1 }
  0xf9   : > { %v1202_v2 = vpop.f32.mrb[0].mxu0  ;;  %v1274_v3 = vpop.f32.mrb[0].mxu1 }
  0xfa   : > { %v1203_v4 = vpop.f32.mrb[1].mxu0  ;;  %v1275_v5 = vpop.f32.mrb[1].mxu1 }
  0xfb   : > { %v1204_v6 = vadd.f32 %v1203_v4, %v1202_v2  ;;  %v1205_v7 = vpop.f32.mrb[2].mxu0  ;;  %v1620_v8 = vadd.f32 %v1275_v5, %v1274_v3  ;;  %v1277_v9 = vpop.f32.mrb[2].mxu1 }
  0xfc   : > { %v1206_v10 = vpop.f32.mrb[3].mxu0  ;;  %v1278_v11 = vpop.f32.mrb[3].mxu1 }
  0xfd   : > { %v1207_v12 = vadd.f32 %v1206_v10, %v1205_v7  ;;  %v1622_v13 = vadd.f32 %v1278_v11, %v1277_v9  ;;  %v717_v54 = vadd.f32 %v1204_v6, %v1641_v50 }
  0xff   : > { %v720_v63 = vadd.f32 %v1207_v12, %v1641_v50 }
 0x101   : > { %v1208_v14 = vpop.f32.mrb[4].mxu0  ;;  %v1280_v15 = vpop.f32.mrb[4].mxu1 }
 0x102   : > { %v1209_v16 = vpop.f32.mrb[5].mxu0  ;;  %v1281_v17 = vpop.f32.mrb[5].mxu1 }
 0x103   : > { %v1210_v18 = vadd.f32 %v1209_v16, %v1208_v14  ;;  %v1211_v19 = vpop.f32.mrb[6].mxu0  ;;  %v1624_v20 = vadd.f32 %v1281_v17, %v1280_v15  ;;  %v1283_v21 = vpop.f32.mrb[6].mxu1 }
 0x104   : > { %v1212_v22 = vpop.f32.mrb[7].mxu0  ;;  %v1284_v23 = vpop.f32.mrb[7].mxu1 }
 0x105   : > { %v1213_v24 = vadd.f32 %v1212_v22, %v1211_v19  ;;  %v1626_v25 = vadd.f32 %v1284_v23, %v1283_v21  ;;  %v725_v51 = vadd.f32 %v1210_v18, %v1641_v50 }
 0x107   : > { %v728_v58 = vadd.f32 %v1213_v24, %v1641_v50 }
 0x109   : > { %v1214_v26 = vpop.f32.mrb[8].mxu0  ;;  %v1286_v27 = vpop.f32.mrb[8].mxu1 }
 0x10a   : > { %v1215_v28 = vpop.f32.mrb[9].mxu0  ;;  %v1287_v29 = vpop.f32.mrb[9].mxu1 }
 0x10b   : > { %v1216_v30 = vadd.f32 %v1215_v28, %v1214_v26  ;;  %v1217_v31 = vpop.f32.mrb[10].mxu0  ;;  %v1628_v32 = vadd.f32 %v1287_v29, %v1286_v27  ;;  %v1289_v33 = vpop.f32.mrb[10].mxu1 }
 0x10c   : > { %v1218_v34 = vpop.f32.mrb[11].mxu0  ;;  %v1290_v35 = vpop.f32.mrb[11].mxu1 }
 0x10d   : > { %v1219_v36 = vadd.f32 %v1218_v34, %v1217_v31  ;;  %v1630_v37 = vadd.f32 %v1290_v35, %v1289_v33  ;;  %v733_v11 = vadd.f32 %v1216_v30, %v1641_v50 }
 0x10f   : > { %v736_v22 = vadd.f32 %v1219_v36, %v1641_v50 }
 0x111   : > { %v1220_v38 = vpop.f32.mrb[12].mxu0  ;;  %v1292_v39 = vpop.f32.mrb[12].mxu1 }
 0x112   : > { %v1221_v40 = vpop.f32.mrb[13].mxu0  ;;  %v1293_v41 = vpop.f32.mrb[13].mxu1 }
 0x113   : > { %v1222_v42 = vadd.f32 %v1221_v40, %v1220_v38  ;;  %v1223_v43 = vpop.f32.mrb[14].mxu0  ;;  %v1634_v44 = vadd.f32 %v1293_v41, %v1292_v39  ;;  %v1295_v45 = vpop.f32.mrb[14].mxu1 }
 0x114   : > { %v1224_v46 = vpop.f32.mrb[15].mxu0  ;;  %v1296_v47 = vpop.f32.mrb[15].mxu1 }
 0x115   : > { %v1225_v48 = vadd.f32 %v1224_v46, %v1223_v43  ;;  %v1636_v49 = vadd.f32 %v1296_v47, %v1295_v45  ;;  %v741_v7 = vadd.f32 %v1222_v42, %v1641_v50 }
 0x117   : > { %v744_v16 = vadd.f32 %v1225_v48, %v1641_v50 }
 0x119   : > { %v1226_v52 = vpop.f32.mrb[16].mxu0  ;;  %v1322_v53 = vpop.f32.mrb[16].mxu1 }
 0x11a   : > { %v886_v55 = vadd.f32 %v1322_v53, %v725_v51  ;;  %v1227_v56 = vpop.f32.mrb[17].mxu0  ;;  %v877_v57 = vpop.f32.mrb[17].mxu1 }
 0x11b   : > { %v1228_v59 = vadd.f32 %v1227_v56, %v1226_v52  ;;  %v878_v60 = vadd.f32 %v877_v57, %v717_v54  ;;  %v1229_v61 = vpop.f32.mrb[18].mxu0  ;;  %v1323_v62 = vpop.f32.mrb[18].mxu1 }
 0x11c   : > { %v889_v0 = vadd.f32 %v1323_v62, %v728_v58  ;;  %v1230_v1 = vpop.f32.mrb[19].mxu0  ;;  %v880_v2 = vpop.f32.mrb[19].mxu1 }
 0x11d   : > { %v1231_v3 = vadd.f32 %v1230_v1, %v1229_v61  ;;  %v881_v4 = vadd.f32 %v880_v2, %v720_v63  ;;  %v749_v35 = vadd.f32 %v1228_v59, %v1641_v50 }
 0x11e   : > { %v1005_v5 = vpack.c.bf16 %v889_v0, %v886_v55 }
 0x11f   : > { %v1004_v6 = vpack.c.bf16 %v881_v4, %v878_v60  ;;  %v752_v46 = vadd.f32 %v1231_v3, %v1641_v50 }
 0x120   : > { %1021 = vst [vmem:[%s1650_s8 + $0x8] sm:$0xff] %v1005_v5 }
 0x121   : > { %1020 = vst [vmem:[%s1650_s8] sm:$0xff] %v1004_v6  ;;  %v1232_v9 = vpop.f32.mrb[20].mxu0  ;;  %v1326_v10 = vpop.f32.mrb[20].mxu1 }
 0x122   : > { %v902_v12 = vadd.f32 %v1326_v10, %v741_v7  ;;  %v1233_v14 = vpop.f32.mrb[21].mxu0  ;;  %v893_v15 = vpop.f32.mrb[21].mxu1 }
 0x123   : > { %v1234_v17 = vadd.f32 %v1233_v14, %v1232_v9  ;;  %v894_v18 = vadd.f32 %v893_v15, %v733_v11  ;;  %v1235_v19 = vpop.f32.mrb[22].mxu0  ;;  %v1327_v21 = vpop.f32.mrb[22].mxu1 }
 0x124   : > { %v905_v23 = vadd.f32 %v1327_v21, %v744_v16  ;;  %v1236_v24 = vpop.f32.mrb[23].mxu0  ;;  %v896_v26 = vpop.f32.mrb[23].mxu1 }
 0x125   : > { %v1237_v27 = vadd.f32 %v1236_v24, %v1235_v19  ;;  %v897_v28 = vadd.f32 %v896_v26, %v736_v22  ;;  %v757_v31 = vadd.f32 %v1234_v17, %v1641_v50 }
 0x126   : > { %v1007_v29 = vpack.c.bf16 %v905_v23, %v902_v12 }
 0x127   : > { %v1006_v30 = vpack.c.bf16 %v897_v28, %v894_v18  ;;  %v760_v40 = vadd.f32 %v1237_v27, %v1641_v50 }
 0x128   : > { %1023 = vst [vmem:[%s1650_s8 + $0x18] sm:$0xff] %v1007_v29 }
 0x129   : > { %1022 = vst [vmem:[%s1650_s8 + $0x10] sm:$0xff] %v1006_v30  ;;  %v1238_v33 = vpop.f32.mrb[24].mxu0  ;;  %v1330_v34 = vpop.f32.mrb[24].mxu1 }
 0x12a   : > { %v918_v38 = vadd.f32 %v1330_v34, %v757_v31  ;;  %v1239_v39 = vpop.f32.mrb[25].mxu0  ;;  %v909_v36 = vpop.f32.mrb[25].mxu1 }
 0x12b   : > { %v1240_v41 = vadd.f32 %v1239_v39, %v1238_v33  ;;  %v910_v42 = vadd.f32 %v909_v36, %v749_v35  ;;  %v1241_v43 = vpop.f32.mrb[26].mxu0  ;;  %v1331_v45 = vpop.f32.mrb[26].mxu1 }
 0x12c   : > { %v921_v47 = vadd.f32 %v1331_v45, %v760_v40  ;;  %v1242_v48 = vpop.f32.mrb[27].mxu0  ;;  %v912_v51 = vpop.f32.mrb[27].mxu1 }
 0x12d   : > { %v1243_v52 = vadd.f32 %v1242_v48, %v1241_v43  ;;  %v913_v53 = vadd.f32 %v912_v51, %v752_v46  ;;  %v765_v58 = vadd.f32 %v1240_v41, %v1641_v50 }
 0x12e   : > { %v1009_v54 = vpack.c.bf16 %v921_v47, %v918_v38  ;;  %v821_v47 = vadd.f32 %v1624_v20, %v1641_v50  ;;  %v816_v20 = vadd.f32 %v1622_v13, %v1641_v50 }
 0x12f   : > { %v1008_v55 = vpack.c.bf16 %v913_v53, %v910_v42  ;;  %v768_v1 = vadd.f32 %v1243_v52, %v1641_v50  ;;  %v813_v53 = vadd.f32 %v1620_v8, %v1641_v50 }
 0x130   : > { %1025 = vst [vmem:[%s1650_s8 + $0x28] sm:$0xff] %v1009_v54 }
 0x131   : > { %1024 = vst [vmem:[%s1650_s8 + $0x20] sm:$0xff] %v1008_v55  ;;  %v1244_v56 = vpop.f32.mrb[28].mxu0  ;;  %v1334_v57 = vpop.f32.mrb[28].mxu1 }
 0x132   : > { %v1245_v59 = vpop.f32.mrb[29].mxu0  ;;  %v925_v60 = vpop.f32.mrb[29].mxu1 }
 0x133   : > { %v1246_v61 = vadd.f32 %v1245_v59, %v1244_v56  ;;  %v926_v62 = vadd.f32 %v925_v60, %v765_v58  ;;  %v1247_v63 = vpop.f32.mrb[30].mxu0  ;;  %v1335_v0 = vpop.f32.mrb[30].mxu1 }
 0x134   : > { %v1248_v2 = vpop.f32.mrb[31].mxu0  ;;  %v928_v3 = vpop.f32.mrb[31].mxu1 }
 0x135   : > { %v773_v4 = vadd.f32 %v1246_v61, %v1641_v50  ;;  %v1249_v5 = vadd.f32 %v1248_v2, %v1247_v63  ;;  %v929_v6 = vadd.f32 %v928_v3, %v768_v1 }
 0x137   : > { %v934_v7 = vadd.f32 %v1334_v57, %v773_v4  ;;  %v776_v9 = vadd.f32 %v1249_v5, %v1641_v50  ;;  %v1010_v10 = vpack.c.bf16 %v929_v6, %v926_v62  ;;  %v824_v57 = vadd.f32 %v1626_v25, %v1641_v50 }
 0x139   : > { %v937_v11 = vadd.f32 %v1335_v0, %v776_v9  ;;  %1026 = vst [vmem:[%s1650_s8 + $0x30] sm:$0xff] %v1010_v10  ;;  %v1250_v12 = vpop.f32.mrb[32].mxu0  ;;  %v1338_v14 = vpop.f32.mrb[32].mxu1 }
 0x13a   : > { %v1251_v15 = vpop.f32.mrb[33].mxu0  ;;  %v941_v16 = vpop.f32.mrb[33].mxu1 }
 0x13b   : > { %v1011_v17 = vpack.c.bf16 %v937_v11, %v934_v7  ;;  %v1252_v18 = vadd.f32 %v1251_v15, %v1250_v12  ;;  %v1253_v19 = vpop.f32.mrb[34].mxu0  ;;  %v1339_v21 = vpop.f32.mrb[34].mxu1  ;;  %v837_v7 = vadd.f32 %v1634_v44, %v1641_v50  ;;  %v829_v11 = vadd.f32 %v1628_v32, %v1641_v50 }
 0x13c   : > { %v1254_v22 = vpop.f32.mrb[35].mxu0  ;;  %v944_v23 = vpop.f32.mrb[35].mxu1 }
 0x13d   : > { %1027 = vst [vmem:[%s1650_s8 + $0x38] sm:$0xff] %v1011_v17  ;;  %v781_v24 = vadd.f32 %v1252_v18, %v1641_v50  ;;  %v1255_v26 = vadd.f32 %v1254_v22, %v1253_v19  ;;  %v832_v22 = vadd.f32 %v1630_v37, %v1641_v50 }
 0x13f   : > { %v942_v27 = vadd.f32 %v941_v16, %v781_v24  ;;  %v784_v28 = vadd.f32 %v1255_v26, %v1641_v50  ;;  %v840_v16 = vadd.f32 %v1636_v49, %v1641_v50 }
 0x141   : > { %v945_v29 = vadd.f32 %v944_v23, %v784_v28  ;;  %v1256_v30 = vpop.f32.mrb[36].mxu0  ;;  %v1674_v31 = vpop.f32.mrb[36].mxu1 }
 0x142   : > { %v1257_v33 = vpop.f32.mrb[37].mxu0  ;;  %v957_v34 = vpop.f32.mrb[37].mxu1 }
 0x143   : > { %v1012_v35 = vpack.c.bf16 %v945_v29, %v942_v27  ;;  %v1258_v38 = vadd.f32 %v1257_v33, %v1256_v30  ;;  %v1259_v39 = vpop.f32.mrb[38].mxu0  ;;  %v1676_v36 = vpop.f32.mrb[38].mxu1 }
 0x144   : > { %v1260_v40 = vpop.f32.mrb[39].mxu0  ;;  %v960_v41 = vpop.f32.mrb[39].mxu1 }
 0x145   : > { %1028 = vst [vmem:[%s1650_s8 + $0x40] sm:$0xff] %v1012_v35  ;;  %v789_v42 = vadd.f32 %v1258_v38, %v1641_v50  ;;  %v1261_v43 = vadd.f32 %v1260_v40, %v1259_v39 }
 0x147   : > { %v950_v45 = vadd.f32 %v1338_v14, %v789_v42  ;;  %v792_v46 = vadd.f32 %v1261_v43, %v1641_v50 }
 0x149   : > { %v953_v48 = vadd.f32 %v1339_v21, %v792_v46  ;;  %v1262_v51 = vpop.f32.mrb[40].mxu0  ;;  %v1346_v52 = vpop.f32.mrb[40].mxu1 }
 0x14a   : > { %v982_v54 = vadd.f32 %v1346_v52, %v821_v47  ;;  %v1263_v55 = vpop.f32.mrb[41].mxu0  ;;  %v973_v56 = vpop.f32.mrb[41].mxu1 }
 0x14b   : > { %v1013_v58 = vpack.c.bf16 %v953_v48, %v950_v45  ;;  %v1264_v59 = vadd.f32 %v1263_v55, %v1262_v51  ;;  %v974_v60 = vadd.f32 %v973_v56, %v813_v53  ;;  %v1265_v61 = vpop.f32.mrb[42].mxu0  ;;  %v1347_v62 = vpop.f32.mrb[42].mxu1 }
 0x14c   : > { %v985_v63 = vadd.f32 %v1347_v62, %v824_v57  ;;  %v1266_v0 = vpop.f32.mrb[43].mxu0  ;;  %v976_v1 = vpop.f32.mrb[43].mxu1 }
 0x14d   : > { %1029 = vst [vmem:[%s1650_s8 + $0x48] sm:$0xff] %v1013_v58  ;;  %v797_v8 = vadd.f32 %v1264_v59, %v1641_v50  ;;  %v1267_v2 = vadd.f32 %v1266_v0, %v1265_v61  ;;  %v977_v3 = vadd.f32 %v976_v1, %v816_v20 }
 0x14e   : > { %v1017_v4 = vpack.c.bf16 %v985_v63, %v982_v54 }
 0x14f   : > { %v958_v25 = vadd.f32 %v957_v34, %v797_v8  ;;  %v800_v5 = vadd.f32 %v1267_v2, %v1641_v50  ;;  %v1016_v6 = vpack.c.bf16 %v977_v3, %v974_v60 }
 0x150   : > { %1033 = vst [vmem:[%s1650_s8 + $0x68] sm:$0xff] %v1017_v4 }
 0x151   : > { %v961_v9 = vadd.f32 %v960_v41, %v800_v5  ;;  %1032 = vst [vmem:[%s1650_s8 + $0x60] sm:$0xff] %v1016_v6  ;;  %v1268_v13 = vpop.f32.mrb[44].mxu0  ;;  %v1350_v10 = vpop.f32.mrb[44].mxu1 }
 0x152   : > { %v998_v12 = vadd.f32 %v1350_v10, %v837_v7  ;;  %v1269_v14 = vpop.f32.mrb[45].mxu0  ;;  %v989_v15 = vpop.f32.mrb[45].mxu1 }
 0x153   : > { %v1014_v17 = vpack.c.bf16 %v961_v9, %v958_v25  ;;  %v1270_v18 = vadd.f32 %v1269_v14, %v1268_v13  ;;  %v990_v19 = vadd.f32 %v989_v15, %v829_v11  ;;  %v1271_v21 = vpop.f32.mrb[46].mxu0  ;;  %v1351_v44 = vpop.f32.mrb[46].mxu1 }
 0x154   : > { %v1001_v23 = vadd.f32 %v1351_v44, %v840_v16  ;;  %v1272_v24 = vpop.f32.mrb[47].mxu0  ;;  %v992_v32 = vpop.f32.mrb[47].mxu1 }
 0x155   : > { %1030 = vst [vmem:[%s1650_s8 + $0x50] sm:$0xff] %v1014_v17  ;;  %v805_v26 = vadd.f32 %v1270_v18, %v1641_v50  ;;  %v1273_v27 = vadd.f32 %v1272_v24, %v1271_v21  ;;  %v993_v28 = vadd.f32 %v992_v32, %v832_v22 }
 0x156   : > { %v1019_v49 = vpack.c.bf16 %v1001_v23, %v998_v12 }
 0x157   : > { %v966_v29 = vadd.f32 %v1674_v31, %v805_v26  ;;  %v808_v30 = vadd.f32 %v1273_v27, %v1641_v50  ;;  %v1018_v33 = vpack.c.bf16 %v993_v28, %v990_v19 }
 0x158   : > { %1035 = vst [vmem:[%s1650_s8 + $0x78] sm:$0xff] %v1019_v49 }
 0x159   : > { %v969_v34 = vadd.f32 %v1676_v36, %v808_v30  ;;  %1034 = vst [vmem:[%s1650_s8 + $0x70] sm:$0xff] %v1018_v33 }
 0x15b   : > { %v1015_v37 = vpack.c.bf16 %v969_v34, %v966_v29 }
 0x15d   : > { %1031 = vst [vmem:[%s1650_s8 + $0x58] sm:$0xff] %v1015_v37 }
 0x15e PF: > { %s13_s12 = sadd.s32 1, %s1465_s12  }
 0x15f   : > { %p10_p5 = scmp.ge.s32.totalorder %s13_s12, 4  }
 0x161   :  { %12 = sbr.rel (!%p10_p5) target bundleno = 1 (0x1), region = 62 }

// kernel: seg_model_forward.29
= control target key start
LH: loop header
LB: loop body
LE: loop exit
PB: predicated region body
PF: predicated region fallthrough
CT: control target
= control target key end

     0   :  { %s310_s0 = inlined_call_operand.vmem [shape: bf16[16,1024], index: 0, kind: input, shape index: {}]   ;;  %s311_s1 = inlined_call_operand.vmem [shape: f32[16,1024], index: 1, kind: output, shape index: {}]  }
   0x1   :  { %v8_v0 = vld [vmem:[%s310_s0] sm:$0xff]  ;;  %v9_v1 = vld [vmem:[%s310_s0 + $0x8] sm:$0xff]  ;;  %v10_v2 = vld [vmem:[%s310_s0 + $0x10] sm:$0xff] }
   0x2   :  { %v16_v3 = vunpack.c.l.bf16 %v8_v0  ;;  %v17_v4 = vunpack.c.h.bf16 %v8_v0  ;;  %v18_v5 = vunpack.c.l.bf16 %v9_v1  ;;  %v19_v6 = vunpack.c.h.bf16 %v9_v1  ;;  %v11_v7 = vld [vmem:[%s310_s0 + $0x18] sm:$0xff]  ;;  %v12_v10 = vld [vmem:[%s310_s0 + $0x20] sm:$0xff]  ;;  %v13_v17 = vld [vmem:[%s310_s0 + $0x28] sm:$0xff] }
   0x3   :  { %v20_v8 = vunpack.c.l.bf16 %v10_v2  ;;  %v21_v9 = vunpack.c.h.bf16 %v10_v2  ;;  %v22_v14 = vunpack.c.l.bf16 %v11_v7  ;;  %v23_v16 = vunpack.c.h.bf16 %v11_v7  ;;  %v14_v22 = vld [vmem:[%s310_s0 + $0x30] sm:$0xff]  ;;  %v15_v46 = vld [vmem:[%s310_s0 + $0x38] sm:$0xff] }
   0x4   :  { %v148_v11 = vmul.f32 -1.442695, %v16_v3  ;;  %v149_v12 = vmul.f32 -1.442695, %v17_v4  ;;  %v150_v13 = vmul.f32 -1.442695, %v18_v5  ;;  %v24_v19 = vunpack.c.l.bf16 %v12_v10 }
   0x5   :  { %v151_v15 = vmul.f32 -1.442695, %v19_v6  ;;  %v152_v18 = vmul.f32 -1.442695, %v20_v8  ;;  %v153_v20 = vmul.f32 -1.442695, %v21_v9  ;;  %v25_v21 = vunpack.c.h.bf16 %v12_v10 }
   0x6   :  { %164 = vpow2.f32 %v148_v11  ;;  %v154_v23 = vmul.f32 -1.442695, %v22_v14  ;;  %v26_v24 = vunpack.c.l.bf16 %v13_v17  ;;  %v155_v25 = vmul.f32 -1.442695, %v23_v16 }
   0x7   :  { %166 = vpow2.f32 %v149_v12  ;;  %v27_v26 = vunpack.c.h.bf16 %v13_v17  ;;  %v156_v27 = vmul.f32 -1.442695, %v24_v19  ;;  %v28_v28 = vunpack.c.l.bf16 %v14_v22 }
   0x8   :  { %168 = vpow2.f32 %v150_v13  ;;  %v157_v29 = vmul.f32 -1.442695, %v25_v21  ;;  %v158_v30 = vmul.f32 -1.442695, %v26_v24  ;;  %v29_v51 = vunpack.c.h.bf16 %v14_v22 }
   0x9   :  { %170 = vpow2.f32 %v151_v15  ;;  %v159_v31 = vmul.f32 -1.442695, %v27_v26  ;;  %v160_v32 = vmul.f32 -1.442695, %v28_v28  ;;  %v30_v54 = vunpack.c.l.bf16 %v15_v46 }
   0xa   :  { %172 = vpow2.f32 %v152_v18  ;;  %v31_v57 = vunpack.c.h.bf16 %v15_v46  ;;  %v161_v62 = vmul.f32 -1.442695, %v29_v51 }
   0xb   :  { %174 = vpow2.f32 %v153_v20  ;;  %v162_v1 = vmul.f32 -1.442695, %v30_v54 }
   0xc   :  { %176 = vpow2.f32 %v154_v23  ;;  %v163_v3 = vmul.f32 -1.442695, %v31_v57 }
   0xd   :  { %178 = vpow2.f32 %v155_v25 }
   0xe   :  { %180 = vpow2.f32 %v156_v27 }
   0xf   :  { %182 = vpow2.f32 %v157_v29 }
  0x10   :  { %v165_v33 = vpop.eup %164  ;;  %184 = vpow2.f32 %v158_v30 }
  0x11   :  { %v167_v34 = vpop.eup %166  ;;  %v80_v35 = vadd.f32 1.0, %v165_v33  ;;  %186 = vpow2.f32 %v159_v31 }
  0x12   :  { %v169_v36 = vpop.eup %168  ;;  %v81_v37 = vadd.f32 1.0, %v167_v34  ;;  %188 = vpow2.f32 %v160_v32 }
  0x13   :  { %v171_v38 = vpop.eup %170  ;;  %190 = vrcp.f32 %v80_v35  ;;  %v82_v39 = vadd.f32 1.0, %v169_v36 }
  0x14   :  { %v173_v40 = vpop.eup %172  ;;  %192 = vrcp.f32 %v81_v37  ;;  %v83_v41 = vadd.f32 1.0, %v171_v38 }
  0x15   :  { %v175_v42 = vpop.eup %174  ;;  %194 = vrcp.f32 %v82_v39  ;;  %v84_v43 = vadd.f32 1.0, %v173_v40 }
  0x16   :  { %v177_v44 = vpop.eup %176  ;;  %196 = vrcp.f32 %v83_v41  ;;  %v85_v45 = vadd.f32 1.0, %v175_v42 }
  0x17   :  { %v179_v47 = vpop.eup %178  ;;  %198 = vrcp.f32 %v84_v43  ;;  %v86_v48 = vadd.f32 1.0, %v177_v44 }
  0x18   :  { %v181_v49 = vpop.eup %180  ;;  %200 = vrcp.f32 %v85_v45  ;;  %v87_v50 = vadd.f32 1.0, %v179_v47 }
  0x19   :  { %v183_v52 = vpop.eup %182  ;;  %202 = vrcp.f32 %v86_v48  ;;  %v88_v53 = vadd.f32 1.0, %v181_v49 }
  0x1a   :  { %v185_v55 = vpop.eup %184  ;;  %204 = vrcp.f32 %v87_v50  ;;  %v89_v56 = vadd.f32 1.0, %v183_v52 }
  0x1b   :  { %v187_v58 = vpop.eup %186  ;;  %206 = vrcp.f32 %v88_v53  ;;  %v90_v59 = vadd.f32 1.0, %v185_v55 }
  0x1c   :  { %v189_v60 = vpop.eup %188  ;;  %208 = vrcp.f32 %v89_v56  ;;  %v91_v61 = vadd.f32 1.0, %v187_v58 }
  0x1d   :  { %v191_v63 = vpop.eup %190  ;;  %210 = vrcp.f32 %v90_v59  ;;  %v92_v0 = vadd.f32 1.0, %v189_v60 }
  0x1e   :  { %v193_v2 = vpop.eup %192  ;;  %128 = vst [vmem:[%s311_s1] sm:$0xff] %v191_v63  ;;  %212 = vrcp.f32 %v91_v61 }
  0x1f   :  { %v195_v4 = vpop.eup %194  ;;  %129 = vst [vmem:[%s311_s1 + $0x8] sm:$0xff] %v193_v2  ;;  %214 = vrcp.f32 %v92_v0 }
  0x20   :  { %v197_v5 = vpop.eup %196  ;;  %130 = vst [vmem:[%s311_s1 + $0x10] sm:$0xff] %v195_v4  ;;  %216 = vpow2.f32 %v161_v62 }
  0x21   :  { %v199_v6 = vpop.eup %198  ;;  %131 = vst [vmem:[%s311_s1 + $0x18] sm:$0xff] %v197_v5  ;;  %218 = vpow2.f32 %v162_v1 }
  0x22   :  { %v201_v7 = vpop.eup %200  ;;  %132 = vst [vmem:[%s311_s1 + $0x20] sm:$0xff] %v199_v6  ;;  %220 = vpow2.f32 %v163_v3 }
  0x23   :  { %v203_v8 = vpop.eup %202  ;;  %133 = vst [vmem:[%s311_s1 + $0x28] sm:$0xff] %v201_v7 }
  0x24   :  { %v205_v9 = vpop.eup %204  ;;  %134 = vst [vmem:[%s311_s1 + $0x30] sm:$0xff] %v203_v8 }
  0x25   :  { %v207_v10 = vpop.eup %206  ;;  %135 = vst [vmem:[%s311_s1 + $0x38] sm:$0xff] %v205_v9 }
  0x26   :  { %v209_v11 = vpop.eup %208  ;;  %136 = vst [vmem:[%s311_s1 + $0x40] sm:$0xff] %v207_v10 }
  0x27   :  { %v211_v12 = vpop.eup %210  ;;  %137 = vst [vmem:[%s311_s1 + $0x48] sm:$0xff] %v209_v11 }
  0x28   :  { %v213_v13 = vpop.eup %212  ;;  %138 = vst [vmem:[%s311_s1 + $0x50] sm:$0xff] %v211_v12 }
  0x29   :  { %v215_v14 = vpop.eup %214  ;;  %139 = vst [vmem:[%s311_s1 + $0x58] sm:$0xff] %v213_v13 }
  0x2a   :  { %v217_v15 = vpop.eup %216  ;;  %140 = vst [vmem:[%s311_s1 + $0x60] sm:$0xff] %v215_v14 }
  0x2b   :  { %v219_v16 = vpop.eup %218  ;;  %v93_v17 = vadd.f32 1.0, %v217_v15 }
  0x2c   :  { %v221_v18 = vpop.eup %220  ;;  %v94_v19 = vadd.f32 1.0, %v219_v16 }
  0x2d   :  { %222 = vrcp.f32 %v93_v17  ;;  %v95_v20 = vadd.f32 1.0, %v221_v18 }
  0x2e   :  { %224 = vrcp.f32 %v94_v19 }
  0x2f   :  { %226 = vrcp.f32 %v95_v20 }
  0x37   :  { %v223_v21 = vpop.eup %222 }
  0x38   :  { %v225_v22 = vpop.eup %224  ;;  %141 = vst [vmem:[%s311_s1 + $0x68] sm:$0xff] %v223_v21 }
  0x39   :  { %v227_v23 = vpop.eup %226  ;;  %142 = vst [vmem:[%s311_s1 + $0x70] sm:$0xff] %v225_v22 }
  0x3a   :  { %143 = vst [vmem:[%s311_s1 + $0x78] sm:$0xff] %v227_v23 }

</bundles_post_ra>
